<compile_context>
chip_gen: v6e
topology: v6e:2x2x1
jax: 0.10.0
libtpu: 0.0.40
codegen_flags: <defaults>
</compile_context>

<pallas_src>
import functools

import jax
import jax.numpy as jnp
from jax.experimental import pallas as pl
from jax.experimental.pallas import tpu as pltpu

_BN_EPS = 1e-5


def _full_spec(shape):
    n = len(shape)
    return pl.BlockSpec(shape, lambda i, n=n: (0,) * n)


def _pallas_full(kernel, out_struct, *inputs):
    """Single-block pallas_call: every operand is one full-array VMEM block."""
    return pl.pallas_call(
        kernel,
        out_shape=out_struct,
        grid=(1,),
        in_specs=[_full_spec(x.shape) for x in inputs],
        out_specs=_full_spec(out_struct.shape),
        compiler_params=pltpu.CompilerParams(dimension_semantics=("arbitrary",)),
    )(*inputs)


# ----------------------------- Pallas kernels ------------------------------

def _conv_bn_kernel(x_ref, w_ref, g_ref, b_ref, o_ref, *, relu):
    """Fused conv (im2col matmul, bf16 -> f32 acc) + train-mode BatchNorm (+ReLU)."""
    y = jnp.dot(x_ref[...], w_ref[...], preferred_element_type=jnp.float32)
    m = y.shape[0]
    mean = jnp.sum(y, axis=0, keepdims=True) * (1.0 / m)
    yc = y - mean
    var = jnp.sum(yc * yc, axis=0, keepdims=True) * (1.0 / m)  # biased (train mode)
    out = yc * (jax.lax.rsqrt(var + _BN_EPS) * g_ref[...]) + b_ref[...]
    if relu:
        out = jnp.maximum(out, 0.0)
    o_ref[...] = out


def _conv_bn_add_relu_kernel(x_ref, w_ref, g_ref, b_ref, res_ref, o_ref):
    """Fused conv + BatchNorm + residual add + ReLU (bottleneck epilogue)."""
    y = jnp.dot(x_ref[...], w_ref[...], preferred_element_type=jnp.float32)
    m = y.shape[0]
    mean = jnp.sum(y, axis=0, keepdims=True) * (1.0 / m)
    yc = y - mean
    var = jnp.sum(yc * yc, axis=0, keepdims=True) * (1.0 / m)
    out = yc * (jax.lax.rsqrt(var + _BN_EPS) * g_ref[...]) + b_ref[...]
    o_ref[...] = jnp.maximum(out + res_ref[...], 0.0)


def _maxpool_kernel(p_ref, o_ref):
    # p_ref: (k*k, M, C) shifted windows; reduce max over the window axis.
    acc = p_ref[0]
    for q in range(1, p_ref.shape[0]):
        acc = jnp.maximum(acc, p_ref[q])
    o_ref[...] = acc


def _fc_l2norm_kernel(x_ref, w_ref, b_ref, o_ref, *, alpha):
    """Fused Flatten->Linear + l2_norm + *alpha (matches reference semantics)."""
    emb = jnp.dot(x_ref[...], w_ref[...], preferred_element_type=jnp.float32)
    emb = emb + b_ref[...]
    normp = jnp.sum(emb * emb, axis=1, keepdims=True) + 1e-10
    o_ref[...] = emb / jnp.sqrt(normp) * alpha


def _matmul_bias_kernel(a_ref, b_ref, bias_ref, o_ref):
    o_ref[...] = (
        jnp.dot(a_ref[...], b_ref[...], preferred_element_type=jnp.float32)
        + bias_ref[...]
    )


# ------------------------------- wrappers -----------------------------------

def _im2col_nhwc(x, kh, kw, stride, padding):
    """x: (N,H,W,C) -> (N*Ho*Wo, kh*kw*C) patch slab (K index = (i*kw+j)*C + c)."""
    n, h, w, c = x.shape
    ho = (h + 2 * padding - kh) // stride + 1
    wo = (w + 2 * padding - kw) // stride + 1
    if kh == 1 and kw == 1 and padding == 0:
        if stride != 1:
            x = x[:, ::stride, ::stride, :]
        return x.reshape(n * ho * wo, c), ho, wo
    xp = jnp.pad(x, ((0, 0), (padding, padding), (padding, padding), (0, 0)))
    cols = [
        xp[:, i:i + stride * ho:stride, j:j + stride * wo:stride, :]
        for i in range(kh) for j in range(kw)
    ]
    patches = jnp.concatenate(cols, axis=-1)  # (N, Ho, Wo, kh*kw*C)
    return patches.reshape(n * ho * wo, kh * kw * c), ho, wo


def conv_bn(x, w, gamma, beta, *, stride, padding, relu, residual=None):
    """Bias-free Conv2d + train-mode BatchNorm, fused with either ReLU or
    (residual add + ReLU). x is NHWC f32; the matmul runs on the MXU in bf16."""
    n = x.shape[0]
    cout, cin, kh, kw = w.shape
    patches, ho, wo = _im2col_nhwc(x.astype(jnp.bfloat16), kh, kw, stride, padding)
    m, k = patches.shape
    wm = jnp.transpose(w, (2, 3, 1, 0)).reshape(k, cout).astype(jnp.bfloat16)
    g2 = gamma.reshape(1, cout)
    b2 = beta.reshape(1, cout)
    out_struct = jax.ShapeDtypeStruct((m, cout), jnp.float32)
    if residual is None:
        kernel = functools.partial(_conv_bn_kernel, relu=relu)
        out = _pallas_full(kernel, out_struct, patches, wm, g2, b2)
    else:
        res = residual.reshape(m, cout)
        out = _pallas_full(_conv_bn_add_relu_kernel, out_struct,
                           patches, wm, g2, b2, res)
    return out.reshape(n, ho, wo, cout)


def maxpool2d(x, kernel=3, stride=2, padding=1):
    n, h, w, c = x.shape
    ho = (h + 2 * padding - kernel) // stride + 1
    wo = (w + 2 * padding - kernel) // stride + 1
    xp = jnp.pad(x, ((0, 0), (padding, padding), (padding, padding), (0, 0)),
                 constant_values=-jnp.inf)
    cols = [
        xp[:, i:i + stride * ho:stride, j:j + stride * wo:stride, :]
        .reshape(n * ho * wo, c)
        for i in range(kernel) for j in range(kernel)
    ]
    patches = jnp.stack(cols, axis=0)  # (k*k, M, C)
    out_struct = jax.ShapeDtypeStruct((n * ho * wo, c), jnp.float32)
    y = _pallas_full(_maxpool_kernel, out_struct, patches)
    return y.reshape(n, ho, wo, c)


def fc_l2norm(x, w, bias, *, alpha):
    n = x.shape[0]
    e = w.shape[1]
    out_struct = jax.ShapeDtypeStruct((n, e), jnp.float32)
    kernel = functools.partial(_fc_l2norm_kernel, alpha=alpha)
    return _pallas_full(kernel, out_struct,
                        x.astype(jnp.bfloat16), w.astype(jnp.bfloat16),
                        bias.reshape(1, e))


def matmul_bias(a, b, bias):
    m = a.shape[0]
    n = b.shape[1]
    out_struct = jax.ShapeDtypeStruct((m, n), jnp.float32)
    return _pallas_full(_matmul_bias_kernel, out_struct,
                        a.astype(jnp.bfloat16), b.astype(jnp.bfloat16),
                        bias.reshape(1, n))


# --------------------------- parameter creation ------------------------------

def _he_conv(key, cout, cin, kh, kw):
    fan_in = cin * kh * kw
    return jax.random.normal(key, (cout, cin, kh, kw), jnp.float32) * (2.0 / fan_in) ** 0.5


def _bn_params(c):
    return jnp.ones((c,), jnp.float32), jnp.zeros((c,), jnp.float32)


def init_bottleneck(key, in_ch, planes, stride):
    ks = jax.random.split(key, 4)
    p = {
        "stride": stride,
        "w1": _he_conv(ks[0], planes, in_ch, 1, 1),
        "w2": _he_conv(ks[1], planes, planes, 3, 3),
        "w3": _he_conv(ks[2], planes * 4, planes, 1, 1),
    }
    p["g1"], p["b1"] = _bn_params(planes)
    p["g2"], p["b2"] = _bn_params(planes)
    p["g3"], p["b3"] = _bn_params(planes * 4)
    if stride != 1 or in_ch != planes * 4:
        p["wd"] = _he_conv(ks[3], planes * 4, in_ch, 1, 1)
        p["gd"], p["bd"] = _bn_params(planes * 4)
    return p


def init_params(key, base=8, in_ch=3, input_hw=32, embedding=128, num_classes=500):
    keys = jax.random.split(key, 4)
    params = {"conv1_w": _he_conv(keys[0], base, in_ch, 7, 7)}
    params["bn1_g"], params["bn1_b"] = _bn_params(base)

    block_cfg = [(base, 3, 1), (base * 2, 4, 2), (base * 4, 6, 2), (base * 8, 3, 2)]
    lkeys = jax.random.split(keys[1], sum(nb for _, nb, _ in block_cfg))
    layers, cur, ki = [], base, 0
    for planes, nblocks, stride in block_cfg:
        blocks = []
        for b in range(nblocks):
            s = stride if b == 0 else 1
            blocks.append(init_bottleneck(lkeys[ki], cur, planes, s))
            ki += 1
            cur = planes * 4
        layers.append(blocks)
    params["layers"] = layers

    final_hw = input_hw // 32
    fc_in = cur * final_hw * final_hw
    params["fc_w"] = jax.random.normal(keys[2], (fc_in, embedding), jnp.float32) * (1.0 / fc_in) ** 0.5
    params["fc_b"] = jnp.zeros((embedding,), jnp.float32)
    params["cls_w"] = jax.random.normal(keys[3], (embedding, num_classes), jnp.float32) * (1.0 / embedding) ** 0.5
    params["cls_b"] = jnp.zeros((num_classes,), jnp.float32)
    return params


# ------------------------------ forward pass ---------------------------------

def bottleneck_forward(x, p):
    out = conv_bn(x, p["w1"], p["g1"], p["b1"], stride=1, padding=0, relu=True)
    out = conv_bn(out, p["w2"], p["g2"], p["b2"], stride=p["stride"], padding=1,
                  relu=True)
    if "wd" in p:
        identity = conv_bn(x, p["wd"], p["gd"], p["bd"], stride=p["stride"],
                           padding=0, relu=False)
    else:
        identity = x
    # conv3 + bn3 + residual add + relu fused into one kernel.
    return conv_bn(out, p["w3"], p["g3"], p["b3"], stride=1, padding=0,
                   relu=False, residual=identity)


def facenet_forward(params, x_nchw):
    # Single layout conversion at ingress: NCHW -> NHWC; NHWC everywhere after.
    x = jnp.transpose(x_nchw, (0, 2, 3, 1))
    x = conv_bn(x, params["conv1_w"], params["bn1_g"], params["bn1_b"],
                stride=2, padding=3, relu=True)
    x = maxpool2d(x, kernel=3, stride=2, padding=1)
    for layer in params["layers"]:
        for blk in layer:
            x = bottleneck_forward(x, blk)
    # Flatten in PyTorch (C, H, W) order (final spatial is 1x1 here, so this
    # transpose is a no-op), then fused Linear + l2_norm + *alpha (alpha = 10).
    n = x.shape[0]
    flat = jnp.transpose(x, (0, 3, 1, 2)).reshape(n, -1)
    return fc_l2norm(flat, params["fc_w"], params["fc_b"], alpha=10.0)


def facenet_forward_classifier(params, x_nchw):
    feats = facenet_forward(params, x_nchw)
    return matmul_bias(feats, params["cls_w"], params["cls_b"])


# ---------------------------------- main --------------------------------------

if __name__ == "__main__":
    key = jax.random.PRNGKey(0)
    pkey, xkey = jax.random.split(key)
    params = init_params(pkey, base=8, in_ch=3, input_hw=32)
    x = jax.random.normal(xkey, (2, 3, 32, 32), jnp.float32)  # NCHW input

    fwd = jax.jit(functools.partial(facenet_forward, params))
    feats = jax.block_until_ready(fwd(x))

    assert feats.shape == (2, 128), feats.shape
    norms = jnp.sqrt(jnp.sum(feats * feats, axis=1))
    assert bool(jnp.all(jnp.isfinite(feats)))
    assert bool(jnp.allclose(norms, 10.0, atol=1e-3)), norms  # l2_norm * alpha
    print("KERNEL_OK")
</pallas_src>

<mosaic_0001>
module attributes {stable_mosaic.version = 11 : i64} {
  func.func @_conv_bn_kernel(%arg0: i32, %arg1: memref<512x147xbf16, #tpu.memory_space<vmem>>, %arg2: memref<147x8xbf16, #tpu.memory_space<vmem>>, %arg3: memref<1x8xf32, #tpu.memory_space<vmem>>, %arg4: memref<1x8xf32, #tpu.memory_space<vmem>>, %arg5: memref<512x8xf32, #tpu.memory_space<vmem>>) attributes {dimension_semantics = [#tpu.dimension_semantics<arbitrary>], iteration_bounds = array<i64: 1>, scalar_prefetch = 0 : i64, scratch_operands = 0 : i64, tpu.core_type = #tpu.core_type<tc>, window_params = [{pipeline_mode = #tpu.pipeline_mode<synchronous>, transform_indices = @transform_0, window_bounds = array<i64: 512, 147>}, {pipeline_mode = #tpu.pipeline_mode<synchronous>, transform_indices = @transform_1, window_bounds = array<i64: 147, 8>}, {pipeline_mode = #tpu.pipeline_mode<synchronous>, transform_indices = @transform_2, window_bounds = array<i64: 1, 8>}, {pipeline_mode = #tpu.pipeline_mode<synchronous>, transform_indices = @transform_3, window_bounds = array<i64: 1, 8>}, {pipeline_mode = #tpu.pipeline_mode<synchronous>, transform_indices = @transform_4, window_bounds = array<i64: 512, 8>}]} {
    %c0 = arith.constant 0 : index
    %c0_0 = arith.constant 0 : index
    %0 = vector.load %arg1[%c0, %c0_0] : memref<512x147xbf16, #tpu.memory_space<vmem>>, vector<512x147xbf16>
    %c0_1 = arith.constant 0 : index
    %c0_2 = arith.constant 0 : index
    %1 = vector.load %arg2[%c0_1, %c0_2] : memref<147x8xbf16, #tpu.memory_space<vmem>>, vector<147x8xbf16>
    %cst = arith.constant dense<0.000000e+00> : vector<512x8xf32>
    %2 = tpu.matmul %0, %1, %cst {dimension_numbers = #tpu.dot_dimension_numbers<[1], [0], [0], [1], [0, 0, 1, 1], [], []>} : vector<512x147xbf16>, vector<147x8xbf16>, vector<512x8xf32> -> vector<512x8xf32>
    %cst_3 = arith.constant dense<0.000000e+00> : vector<8xf32>
    %3 = vector.multi_reduction <add>, %2, %cst_3 [0] : vector<512x8xf32> to vector<8xf32>
    %4 = vector.shape_cast %3 : vector<8xf32> to vector<1x8xf32>
    %cst_4 = arith.constant 0.001953125 : f32
    %5 = vector.broadcast %cst_4 : f32 to vector<1x8xf32>
    %6 = arith.mulf %4, %5 : vector<1x8xf32>
    %7 = vector.broadcast %6 : vector<1x8xf32> to vector<512x8xf32>
    %8 = arith.subf %2, %7 : vector<512x8xf32>
    %9 = arith.mulf %8, %8 : vector<512x8xf32>
    %cst_5 = arith.constant dense<0.000000e+00> : vector<8xf32>
    %10 = vector.multi_reduction <add>, %9, %cst_5 [0] : vector<512x8xf32> to vector<8xf32>
    %11 = vector.shape_cast %10 : vector<8xf32> to vector<1x8xf32>
    %cst_6 = arith.constant 0.001953125 : f32
    %12 = vector.broadcast %cst_6 : f32 to vector<1x8xf32>
    %13 = arith.mulf %11, %12 : vector<1x8xf32>
    %cst_7 = arith.constant 9.99999974E-6 : f32
    %14 = vector.broadcast %cst_7 : f32 to vector<1x8xf32>
    %15 = arith.addf %13, %14 : vector<1x8xf32>
    %16 = math.rsqrt %15 : vector<1x8xf32>
    %c0_8 = arith.constant 0 : index
    %c0_9 = arith.constant 0 : index
    %17 = vector.load %arg3[%c0_8, %c0_9] : memref<1x8xf32, #tpu.memory_space<vmem>>, vector<1x8xf32>
    %18 = arith.mulf %16, %17 : vector<1x8xf32>
    %19 = vector.broadcast %18 : vector<1x8xf32> to vector<512x8xf32>
    %20 = arith.mulf %8, %19 : vector<512x8xf32>
    %c0_10 = arith.constant 0 : index
    %c0_11 = arith.constant 0 : index
    %21 = vector.load %arg4[%c0_10, %c0_11] : memref<1x8xf32, #tpu.memory_space<vmem>>, vector<1x8xf32>
    %22 = vector.broadcast %21 : vector<1x8xf32> to vector<512x8xf32>
    %23 = arith.addf %20, %22 : vector<512x8xf32>
    %cst_12 = arith.constant 0.000000e+00 : f32
    %24 = vector.broadcast %cst_12 : f32 to vector<512x8xf32>
    %25 = arith.maximumf %23, %24 : vector<512x8xf32>
    %c0_13 = arith.constant 0 : index
    %c0_14 = arith.constant 0 : index
    %26 = vector.load %arg5[%c0_13, %c0_14] : memref<512x8xf32, #tpu.memory_space<vmem>>, vector<512x8xf32>
    tpu.vector_store %arg5[%c0_13, %c0_14], %25 {strides = array<i32>} : memref<512x8xf32, #tpu.memory_space<vmem>>, vector<512x8xf32>,
    return
  }
  func.func @transform_0(%arg0: i32) -> (i32, i32) {
    %c0_i32 = arith.constant 0 : i32
    %c0_i32_0 = arith.constant 0 : i32
    %c0_i32_1 = arith.constant 0 : i32
    return %c0_i32, %c0_i32_0 : i32, i32
  }
  func.func @transform_1(%arg0: i32) -> (i32, i32) {
    %c0_i32 = arith.constant 0 : i32
    %c0_i32_0 = arith.constant 0 : i32
    %c0_i32_1 = arith.constant 0 : i32
    return %c0_i32, %c0_i32_0 : i32, i32
  }
  func.func @transform_2(%arg0: i32) -> (i32, i32) {
    %c0_i32 = arith.constant 0 : i32
    %c0_i32_0 = arith.constant 0 : i32
    %c0_i32_1 = arith.constant 0 : i32
    return %c0_i32, %c0_i32_0 : i32, i32
  }
  func.func @transform_3(%arg0: i32) -> (i32, i32) {
    %c0_i32 = arith.constant 0 : i32
    %c0_i32_0 = arith.constant 0 : i32
    %c0_i32_1 = arith.constant 0 : i32
    return %c0_i32, %c0_i32_0 : i32, i32
  }
  func.func @transform_4(%arg0: i32) -> (i32, i32) {
    %c0_i32 = arith.constant 0 : i32
    %c0_i32_0 = arith.constant 0 : i32
    %c0_i32_1 = arith.constant 0 : i32
    return %c0_i32, %c0_i32_0 : i32, i32
  }
}

module attributes {stable_mosaic.version = 11 : i64} {
  func.func @_maxpool_kernel(%arg0: i32, %arg1: memref<9x128x8xf32, #tpu.memory_space<vmem>>, %arg2: memref<128x8xf32, #tpu.memory_space<vmem>>) attributes {dimension_semantics = [#tpu.dimension_semantics<arbitrary>], iteration_bounds = array<i64: 1>, scalar_prefetch = 0 : i64, scratch_operands = 0 : i64, tpu.core_type = #tpu.core_type<tc>, window_params = [{pipeline_mode = #tpu.pipeline_mode<synchronous>, transform_indices = @transform_0, window_bounds = array<i64: 9, 128, 8>}, {pipeline_mode = #tpu.pipeline_mode<synchronous>, transform_indices = @transform_1, window_bounds = array<i64: 128, 8>}]} {
    %c0 = arith.constant 0 : index
    %c0_0 = arith.constant 0 : index
    %c0_1 = arith.constant 0 : index
    %0 = vector.load %arg1[%c0, %c0_0, %c0_1] : memref<9x128x8xf32, #tpu.memory_space<vmem>>, vector<1x128x8xf32>
    %1 = vector.shape_cast %0 : vector<1x128x8xf32> to vector<128x8xf32>
    %c1 = arith.constant 1 : index
    %c0_2 = arith.constant 0 : index
    %c0_3 = arith.constant 0 : index
    %2 = vector.load %arg1[%c1, %c0_2, %c0_3] : memref<9x128x8xf32, #tpu.memory_space<vmem>>, vector<1x128x8xf32>
    %3 = vector.shape_cast %2 : vector<1x128x8xf32> to vector<128x8xf32>
    %4 = arith.maximumf %1, %3 : vector<128x8xf32>
    %c2 = arith.constant 2 : index
    %c0_4 = arith.constant 0 : index
    %c0_5 = arith.constant 0 : index
    %5 = vector.load %arg1[%c2, %c0_4, %c0_5] : memref<9x128x8xf32, #tpu.memory_space<vmem>>, vector<1x128x8xf32>
    %6 = vector.shape_cast %5 : vector<1x128x8xf32> to vector<128x8xf32>
    %7 = arith.maximumf %4, %6 : vector<128x8xf32>
    %c3 = arith.constant 3 : index
    %c0_6 = arith.constant 0 : index
    %c0_7 = arith.constant 0 : index
    %8 = vector.load %arg1[%c3, %c0_6, %c0_7] : memref<9x128x8xf32, #tpu.memory_space<vmem>>, vector<1x128x8xf32>
    %9 = vector.shape_cast %8 : vector<1x128x8xf32> to vector<128x8xf32>
    %10 = arith.maximumf %7, %9 : vector<128x8xf32>
    %c4 = arith.constant 4 : index
    %c0_8 = arith.constant 0 : index
    %c0_9 = arith.constant 0 : index
    %11 = vector.load %arg1[%c4, %c0_8, %c0_9] : memref<9x128x8xf32, #tpu.memory_space<vmem>>, vector<1x128x8xf32>
    %12 = vector.shape_cast %11 : vector<1x128x8xf32> to vector<128x8xf32>
    %13 = arith.maximumf %10, %12 : vector<128x8xf32>
    %c5 = arith.constant 5 : index
    %c0_10 = arith.constant 0 : index
    %c0_11 = arith.constant 0 : index
    %14 = vector.load %arg1[%c5, %c0_10, %c0_11] : memref<9x128x8xf32, #tpu.memory_space<vmem>>, vector<1x128x8xf32>
    %15 = vector.shape_cast %14 : vector<1x128x8xf32> to vector<128x8xf32>
    %16 = arith.maximumf %13, %15 : vector<128x8xf32>
    %c6 = arith.constant 6 : index
    %c0_12 = arith.constant 0 : index
    %c0_13 = arith.constant 0 : index
    %17 = vector.load %arg1[%c6, %c0_12, %c0_13] : memref<9x128x8xf32, #tpu.memory_space<vmem>>, vector<1x128x8xf32>
    %18 = vector.shape_cast %17 : vector<1x128x8xf32> to vector<128x8xf32>
    %19 = arith.maximumf %16, %18 : vector<128x8xf32>
    %c7 = arith.constant 7 : index
    %c0_14 = arith.constant 0 : index
    %c0_15 = arith.constant 0 : index
    %20 = vector.load %arg1[%c7, %c0_14, %c0_15] : memref<9x128x8xf32, #tpu.memory_space<vmem>>, vector<1x128x8xf32>
    %21 = vector.shape_cast %20 : vector<1x128x8xf32> to vector<128x8xf32>
    %22 = arith.maximumf %19, %21 : vector<128x8xf32>
    %c8 = arith.constant 8 : index
    %c0_16 = arith.constant 0 : index
    %c0_17 = arith.constant 0 : index
    %23 = vector.load %arg1[%c8, %c0_16, %c0_17] : memref<9x128x8xf32, #tpu.memory_space<vmem>>, vector<1x128x8xf32>
    %24 = vector.shape_cast %23 : vector<1x128x8xf32> to vector<128x8xf32>
    %25 = arith.maximumf %22, %24 : vector<128x8xf32>
    %c0_18 = arith.constant 0 : index
    %c0_19 = arith.constant 0 : index
    %26 = vector.load %arg2[%c0_18, %c0_19] : memref<128x8xf32, #tpu.memory_space<vmem>>, vector<128x8xf32>
    tpu.vector_store %arg2[%c0_18, %c0_19], %25 {strides = array<i32>} : memref<128x8xf32, #tpu.memory_space<vmem>>, vector<128x8xf32>,
    return
  }
  func.func @transform_0(%arg0: i32) -> (i32, i32, i32) {
    %c0_i32 = arith.constant 0 : i32
    %c0_i32_0 = arith.constant 0 : i32
    %c0_i32_1 = arith.constant 0 : i32
    %c0_i32_2 = arith.constant 0 : i32
    return %c0_i32, %c0_i32_0, %c0_i32_1 : i32, i32, i32
  }
  func.func @transform_1(%arg0: i32) -> (i32, i32) {
    %c0_i32 = arith.constant 0 : i32
    %c0_i32_0 = arith.constant 0 : i32
    %c0_i32_1 = arith.constant 0 : i32
    return %c0_i32, %c0_i32_0 : i32, i32
  }
}

module attributes {stable_mosaic.version = 11 : i64} {
  func.func @_conv_bn_kernel(%arg0: i32, %arg1: memref<128x8xbf16, #tpu.memory_space<vmem>>, %arg2: memref<8x8xbf16, #tpu.memory_space<vmem>>, %arg3: memref<1x8xf32, #tpu.memory_space<vmem>>, %arg4: memref<1x8xf32, #tpu.memory_space<vmem>>, %arg5: memref<128x8xf32, #tpu.memory_space<vmem>>) attributes {dimension_semantics = [#tpu.dimension_semantics<arbitrary>], iteration_bounds = array<i64: 1>, scalar_prefetch = 0 : i64, scratch_operands = 0 : i64, tpu.core_type = #tpu.core_type<tc>, window_params = [{pipeline_mode = #tpu.pipeline_mode<synchronous>, transform_indices = @transform_0, window_bounds = array<i64: 128, 8>}, {pipeline_mode = #tpu.pipeline_mode<synchronous>, transform_indices = @transform_1, window_bounds = array<i64: 8, 8>}, {pipeline_mode = #tpu.pipeline_mode<synchronous>, transform_indices = @transform_2, window_bounds = array<i64: 1, 8>}, {pipeline_mode = #tpu.pipeline_mode<synchronous>, transform_indices = @transform_3, window_bounds = array<i64: 1, 8>}, {pipeline_mode = #tpu.pipeline_mode<synchronous>, transform_indices = @transform_4, window_bounds = array<i64: 128, 8>}]} {
    %c0 = arith.constant 0 : index
    %c0_0 = arith.constant 0 : index
    %0 = vector.load %arg1[%c0, %c0_0] : memref<128x8xbf16, #tpu.memory_space<vmem>>, vector<128x8xbf16>
    %c0_1 = arith.constant 0 : index
    %c0_2 = arith.constant 0 : index
    %1 = vector.load %arg2[%c0_1, %c0_2] : memref<8x8xbf16, #tpu.memory_space<vmem>>, vector<8x8xbf16>
    %cst = arith.constant dense<0.000000e+00> : vector<128x8xf32>
    %2 = tpu.matmul %0, %1, %cst {dimension_numbers = #tpu.dot_dimension_numbers<[1], [0], [0], [1], [0, 0, 1, 1], [], []>} : vector<128x8xbf16>, vector<8x8xbf16>, vector<128x8xf32> -> vector<128x8xf32>
    %cst_3 = arith.constant dense<0.000000e+00> : vector<8xf32>
    %3 = vector.multi_reduction <add>, %2, %cst_3 [0] : vector<128x8xf32> to vector<8xf32>
    %4 = vector.shape_cast %3 : vector<8xf32> to vector<1x8xf32>
    %cst_4 = arith.constant 7.812500e-03 : f32
    %5 = vector.broadcast %cst_4 : f32 to vector<1x8xf32>
    %6 = arith.mulf %4, %5 : vector<1x8xf32>
    %7 = vector.broadcast %6 : vector<1x8xf32> to vector<128x8xf32>
    %8 = arith.subf %2, %7 : vector<128x8xf32>
    %9 = arith.mulf %8, %8 : vector<128x8xf32>
    %cst_5 = arith.constant dense<0.000000e+00> : vector<8xf32>
    %10 = vector.multi_reduction <add>, %9, %cst_5 [0] : vector<128x8xf32> to vector<8xf32>
    %11 = vector.shape_cast %10 : vector<8xf32> to vector<1x8xf32>
    %cst_6 = arith.constant 7.812500e-03 : f32
    %12 = vector.broadcast %cst_6 : f32 to vector<1x8xf32>
    %13 = arith.mulf %11, %12 : vector<1x8xf32>
    %cst_7 = arith.constant 9.99999974E-6 : f32
    %14 = vector.broadcast %cst_7 : f32 to vector<1x8xf32>
    %15 = arith.addf %13, %14 : vector<1x8xf32>
    %16 = math.rsqrt %15 : vector<1x8xf32>
    %c0_8 = arith.constant 0 : index
    %c0_9 = arith.constant 0 : index
    %17 = vector.load %arg3[%c0_8, %c0_9] : memref<1x8xf32, #tpu.memory_space<vmem>>, vector<1x8xf32>
    %18 = arith.mulf %16, %17 : vector<1x8xf32>
    %19 = vector.broadcast %18 : vector<1x8xf32> to vector<128x8xf32>
    %20 = arith.mulf %8, %19 : vector<128x8xf32>
    %c0_10 = arith.constant 0 : index
    %c0_11 = arith.constant 0 : index
    %21 = vector.load %arg4[%c0_10, %c0_11] : memref<1x8xf32, #tpu.memory_space<vmem>>, vector<1x8xf32>
    %22 = vector.broadcast %21 : vector<1x8xf32> to vector<128x8xf32>
    %23 = arith.addf %20, %22 : vector<128x8xf32>
    %cst_12 = arith.constant 0.000000e+00 : f32
    %24 = vector.broadcast %cst_12 : f32 to vector<128x8xf32>
    %25 = arith.maximumf %23, %24 : vector<128x8xf32>
    %c0_13 = arith.constant 0 : index
    %c0_14 = arith.constant 0 : index
    %26 = vector.load %arg5[%c0_13, %c0_14] : memref<128x8xf32, #tpu.memory_space<vmem>>, vector<128x8xf32>
    tpu.vector_store %arg5[%c0_13, %c0_14], %25 {strides = array<i32>} : memref<128x8xf32, #tpu.memory_space<vmem>>, vector<128x8xf32>,
    return
  }
  func.func @transform_0(%arg0: i32) -> (i32, i32) {
    %c0_i32 = arith.constant 0 : i32
    %c0_i32_0 = arith.constant 0 : i32
    %c0_i32_1 = arith.constant 0 : i32
    return %c0_i32, %c0_i32_0 : i32, i32
  }
  func.func @transform_1(%arg0: i32) -> (i32, i32) {
    %c0_i32 = arith.constant 0 : i32
    %c0_i32_0 = arith.constant 0 : i32
    %c0_i32_1 = arith.constant 0 : i32
    return %c0_i32, %c0_i32_0 : i32, i32
  }
  func.func @transform_2(%arg0: i32) -> (i32, i32) {
    %c0_i32 = arith.constant 0 : i32
    %c0_i32_0 = arith.constant 0 : i32
    %c0_i32_1 = arith.constant 0 : i32
    return %c0_i32, %c0_i32_0 : i32, i32
  }
  func.func @transform_3(%arg0: i32) -> (i32, i32) {
    %c0_i32 = arith.constant 0 : i32
    %c0_i32_0 = arith.constant 0 : i32
    %c0_i32_1 = arith.constant 0 : i32
    return %c0_i32, %c0_i32_0 : i32, i32
  }
  func.func @transform_4(%arg0: i32) -> (i32, i32) {
    %c0_i32 = arith.constant 0 : i32
    %c0_i32_0 = arith.constant 0 : i32
    %c0_i32_1 = arith.constant 0 : i32
    return %c0_i32, %c0_i32_0 : i32, i32
  }
}

module attributes {stable_mosaic.version = 11 : i64} {
  func.func @_conv_bn_kernel(%arg0: i32, %arg1: memref<128x72xbf16, #tpu.memory_space<vmem>>, %arg2: memref<72x8xbf16, #tpu.memory_space<vmem>>, %arg3: memref<1x8xf32, #tpu.memory_space<vmem>>, %arg4: memref<1x8xf32, #tpu.memory_space<vmem>>, %arg5: memref<128x8xf32, #tpu.memory_space<vmem>>) attributes {dimension_semantics = [#tpu.dimension_semantics<arbitrary>], iteration_bounds = array<i64: 1>, scalar_prefetch = 0 : i64, scratch_operands = 0 : i64, tpu.core_type = #tpu.core_type<tc>, window_params = [{pipeline_mode = #tpu.pipeline_mode<synchronous>, transform_indices = @transform_0, window_bounds = array<i64: 128, 72>}, {pipeline_mode = #tpu.pipeline_mode<synchronous>, transform_indices = @transform_1, window_bounds = array<i64: 72, 8>}, {pipeline_mode = #tpu.pipeline_mode<synchronous>, transform_indices = @transform_2, window_bounds = array<i64: 1, 8>}, {pipeline_mode = #tpu.pipeline_mode<synchronous>, transform_indices = @transform_3, window_bounds = array<i64: 1, 8>}, {pipeline_mode = #tpu.pipeline_mode<synchronous>, transform_indices = @transform_4, window_bounds = array<i64: 128, 8>}]} {
    %c0 = arith.constant 0 : index
    %c0_0 = arith.constant 0 : index
    %0 = vector.load %arg1[%c0, %c0_0] : memref<128x72xbf16, #tpu.memory_space<vmem>>, vector<128x72xbf16>
    %c0_1 = arith.constant 0 : index
    %c0_2 = arith.constant 0 : index
    %1 = vector.load %arg2[%c0_1, %c0_2] : memref<72x8xbf16, #tpu.memory_space<vmem>>, vector<72x8xbf16>
    %cst = arith.constant dense<0.000000e+00> : vector<128x8xf32>
    %2 = tpu.matmul %0, %1, %cst {dimension_numbers = #tpu.dot_dimension_numbers<[1], [0], [0], [1], [0, 0, 1, 1], [], []>} : vector<128x72xbf16>, vector<72x8xbf16>, vector<128x8xf32> -> vector<128x8xf32>
    %cst_3 = arith.constant dense<0.000000e+00> : vector<8xf32>
    %3 = vector.multi_reduction <add>, %2, %cst_3 [0] : vector<128x8xf32> to vector<8xf32>
    %4 = vector.shape_cast %3 : vector<8xf32> to vector<1x8xf32>
    %cst_4 = arith.constant 7.812500e-03 : f32
    %5 = vector.broadcast %cst_4 : f32 to vector<1x8xf32>
    %6 = arith.mulf %4, %5 : vector<1x8xf32>
    %7 = vector.broadcast %6 : vector<1x8xf32> to vector<128x8xf32>
    %8 = arith.subf %2, %7 : vector<128x8xf32>
    %9 = arith.mulf %8, %8 : vector<128x8xf32>
    %cst_5 = arith.constant dense<0.000000e+00> : vector<8xf32>
    %10 = vector.multi_reduction <add>, %9, %cst_5 [0] : vector<128x8xf32> to vector<8xf32>
    %11 = vector.shape_cast %10 : vector<8xf32> to vector<1x8xf32>
    %cst_6 = arith.constant 7.812500e-03 : f32
    %12 = vector.broadcast %cst_6 : f32 to vector<1x8xf32>
    %13 = arith.mulf %11, %12 : vector<1x8xf32>
    %cst_7 = arith.constant 9.99999974E-6 : f32
    %14 = vector.broadcast %cst_7 : f32 to vector<1x8xf32>
    %15 = arith.addf %13, %14 : vector<1x8xf32>
    %16 = math.rsqrt %15 : vector<1x8xf32>
    %c0_8 = arith.constant 0 : index
    %c0_9 = arith.constant 0 : index
    %17 = vector.load %arg3[%c0_8, %c0_9] : memref<1x8xf32, #tpu.memory_space<vmem>>, vector<1x8xf32>
    %18 = arith.mulf %16, %17 : vector<1x8xf32>
    %19 = vector.broadcast %18 : vector<1x8xf32> to vector<128x8xf32>
    %20 = arith.mulf %8, %19 : vector<128x8xf32>
    %c0_10 = arith.constant 0 : index
    %c0_11 = arith.constant 0 : index
    %21 = vector.load %arg4[%c0_10, %c0_11] : memref<1x8xf32, #tpu.memory_space<vmem>>, vector<1x8xf32>
    %22 = vector.broadcast %21 : vector<1x8xf32> to vector<128x8xf32>
    %23 = arith.addf %20, %22 : vector<128x8xf32>
    %cst_12 = arith.constant 0.000000e+00 : f32
    %24 = vector.broadcast %cst_12 : f32 to vector<128x8xf32>
    %25 = arith.maximumf %23, %24 : vector<128x8xf32>
    %c0_13 = arith.constant 0 : index
    %c0_14 = arith.constant 0 : index
    %26 = vector.load %arg5[%c0_13, %c0_14] : memref<128x8xf32, #tpu.memory_space<vmem>>, vector<128x8xf32>
    tpu.vector_store %arg5[%c0_13, %c0_14], %25 {strides = array<i32>} : memref<128x8xf32, #tpu.memory_space<vmem>>, vector<128x8xf32>,
    return
  }
  func.func @transform_0(%arg0: i32) -> (i32, i32) {
    %c0_i32 = arith.constant 0 : i32
    %c0_i32_0 = arith.constant 0 : i32
    %c0_i32_1 = arith.constant 0 : i32
    return %c0_i32, %c0_i32_0 : i32, i32
  }
  func.func @transform_1(%arg0: i32) -> (i32, i32) {
    %c0_i32 = arith.constant 0 : i32
    %c0_i32_0 = arith.constant 0 : i32
    %c0_i32_1 = arith.constant 0 : i32
    return %c0_i32, %c0_i32_0 : i32, i32
  }
  func.func @transform_2(%arg0: i32) -> (i32, i32) {
    %c0_i32 = arith.constant 0 : i32
    %c0_i32_0 = arith.constant 0 : i32
    %c0_i32_1 = arith.constant 0 : i32
    return %c0_i32, %c0_i32_0 : i32, i32
  }
  func.func @transform_3(%arg0: i32) -> (i32, i32) {
    %c0_i32 = arith.constant 0 : i32
    %c0_i32_0 = arith.constant 0 : i32
    %c0_i32_1 = arith.constant 0 : i32
    return %c0_i32, %c0_i32_0 : i32, i32
  }
  func.func @transform_4(%arg0: i32) -> (i32, i32) {
    %c0_i32 = arith.constant 0 : i32
    %c0_i32_0 = arith.constant 0 : i32
    %c0_i32_1 = arith.constant 0 : i32
    return %c0_i32, %c0_i32_0 : i32, i32
  }
}

module attributes {stable_mosaic.version = 11 : i64} {
  func.func @_conv_bn_kernel(%arg0: i32, %arg1: memref<128x8xbf16, #tpu.memory_space<vmem>>, %arg2: memref<8x32xbf16, #tpu.memory_space<vmem>>, %arg3: memref<1x32xf32, #tpu.memory_space<vmem>>, %arg4: memref<1x32xf32, #tpu.memory_space<vmem>>, %arg5: memref<128x32xf32, #tpu.memory_space<vmem>>) attributes {dimension_semantics = [#tpu.dimension_semantics<arbitrary>], iteration_bounds = array<i64: 1>, scalar_prefetch = 0 : i64, scratch_operands = 0 : i64, tpu.core_type = #tpu.core_type<tc>, window_params = [{pipeline_mode = #tpu.pipeline_mode<synchronous>, transform_indices = @transform_0, window_bounds = array<i64: 128, 8>}, {pipeline_mode = #tpu.pipeline_mode<synchronous>, transform_indices = @transform_1, window_bounds = array<i64: 8, 32>}, {pipeline_mode = #tpu.pipeline_mode<synchronous>, transform_indices = @transform_2, window_bounds = array<i64: 1, 32>}, {pipeline_mode = #tpu.pipeline_mode<synchronous>, transform_indices = @transform_3, window_bounds = array<i64: 1, 32>}, {pipeline_mode = #tpu.pipeline_mode<synchronous>, transform_indices = @transform_4, window_bounds = array<i64: 128, 32>}]} {
    %c0 = arith.constant 0 : index
    %c0_0 = arith.constant 0 : index
    %0 = vector.load %arg1[%c0, %c0_0] : memref<128x8xbf16, #tpu.memory_space<vmem>>, vector<128x8xbf16>
    %c0_1 = arith.constant 0 : index
    %c0_2 = arith.constant 0 : index
    %1 = vector.load %arg2[%c0_1, %c0_2] : memref<8x32xbf16, #tpu.memory_space<vmem>>, vector<8x32xbf16>
    %cst = arith.constant dense<0.000000e+00> : vector<128x32xf32>
    %2 = tpu.matmul %0, %1, %cst {dimension_numbers = #tpu.dot_dimension_numbers<[1], [0], [0], [1], [0, 0, 1, 1], [], []>} : vector<128x8xbf16>, vector<8x32xbf16>, vector<128x32xf32> -> vector<128x32xf32>
    %cst_3 = arith.constant dense<0.000000e+00> : vector<32xf32>
    %3 = vector.multi_reduction <add>, %2, %cst_3 [0] : vector<128x32xf32> to vector<32xf32>
    %4 = vector.shape_cast %3 : vector<32xf32> to vector<1x32xf32>
    %cst_4 = arith.constant 7.812500e-03 : f32
    %5 = vector.broadcast %cst_4 : f32 to vector<1x32xf32>
    %6 = arith.mulf %4, %5 : vector<1x32xf32>
    %7 = vector.broadcast %6 : vector<1x32xf32> to vector<128x32xf32>
    %8 = arith.subf %2, %7 : vector<128x32xf32>
    %9 = arith.mulf %8, %8 : vector<128x32xf32>
    %cst_5 = arith.constant dense<0.000000e+00> : vector<32xf32>
    %10 = vector.multi_reduction <add>, %9, %cst_5 [0] : vector<128x32xf32> to vector<32xf32>
    %11 = vector.shape_cast %10 : vector<32xf32> to vector<1x32xf32>
    %cst_6 = arith.constant 7.812500e-03 : f32
    %12 = vector.broadcast %cst_6 : f32 to vector<1x32xf32>
    %13 = arith.mulf %11, %12 : vector<1x32xf32>
    %cst_7 = arith.constant 9.99999974E-6 : f32
    %14 = vector.broadcast %cst_7 : f32 to vector<1x32xf32>
    %15 = arith.addf %13, %14 : vector<1x32xf32>
    %16 = math.rsqrt %15 : vector<1x32xf32>
    %c0_8 = arith.constant 0 : index
    %c0_9 = arith.constant 0 : index
    %17 = vector.load %arg3[%c0_8, %c0_9] : memref<1x32xf32, #tpu.memory_space<vmem>>, vector<1x32xf32>
    %18 = arith.mulf %16, %17 : vector<1x32xf32>
    %19 = vector.broadcast %18 : vector<1x32xf32> to vector<128x32xf32>
    %20 = arith.mulf %8, %19 : vector<128x32xf32>
    %c0_10 = arith.constant 0 : index
    %c0_11 = arith.constant 0 : index
    %21 = vector.load %arg4[%c0_10, %c0_11] : memref<1x32xf32, #tpu.memory_space<vmem>>, vector<1x32xf32>
    %22 = vector.broadcast %21 : vector<1x32xf32> to vector<128x32xf32>
    %23 = arith.addf %20, %22 : vector<128x32xf32>
    %c0_12 = arith.constant 0 : index
    %c0_13 = arith.constant 0 : index
    %24 = vector.load %arg5[%c0_12, %c0_13] : memref<128x32xf32, #tpu.memory_space<vmem>>, vector<128x32xf32>
    tpu.vector_store %arg5[%c0_12, %c0_13], %23 {strides = array<i32>} : memref<128x32xf32, #tpu.memory_space<vmem>>, vector<128x32xf32>,
    return
  }
  func.func @transform_0(%arg0: i32) -> (i32, i32) {
    %c0_i32 = arith.constant 0 : i32
    %c0_i32_0 = arith.constant 0 : i32
    %c0_i32_1 = arith.constant 0 : i32
    return %c0_i32, %c0_i32_0 : i32, i32
  }
  func.func @transform_1(%arg0: i32) -> (i32, i32) {
    %c0_i32 = arith.constant 0 : i32
    %c0_i32_0 = arith.constant 0 : i32
    %c0_i32_1 = arith.constant 0 : i32
    return %c0_i32, %c0_i32_0 : i32, i32
  }
  func.func @transform_2(%arg0: i32) -> (i32, i32) {
    %c0_i32 = arith.constant 0 : i32
    %c0_i32_0 = arith.constant 0 : i32
    %c0_i32_1 = arith.constant 0 : i32
    return %c0_i32, %c0_i32_0 : i32, i32
  }
  func.func @transform_3(%arg0: i32) -> (i32, i32) {
    %c0_i32 = arith.constant 0 : i32
    %c0_i32_0 = arith.constant 0 : i32
    %c0_i32_1 = arith.constant 0 : i32
    return %c0_i32, %c0_i32_0 : i32, i32
  }
  func.func @transform_4(%arg0: i32) -> (i32, i32) {
    %c0_i32 = arith.constant 0 : i32
    %c0_i32_0 = arith.constant 0 : i32
    %c0_i32_1 = arith.constant 0 : i32
    return %c0_i32, %c0_i32_0 : i32, i32
  }
}

module attributes {stable_mosaic.version = 11 : i64} {
  func.func @_conv_bn_add_relu_kernel(%arg0: i32, %arg1: memref<128x8xbf16, #tpu.memory_space<vmem>>, %arg2: memref<8x32xbf16, #tpu.memory_space<vmem>>, %arg3: memref<1x32xf32, #tpu.memory_space<vmem>>, %arg4: memref<1x32xf32, #tpu.memory_space<vmem>>, %arg5: memref<128x32xf32, #tpu.memory_space<vmem>>, %arg6: memref<128x32xf32, #tpu.memory_space<vmem>>) attributes {dimension_semantics = [#tpu.dimension_semantics<arbitrary>], iteration_bounds = array<i64: 1>, scalar_prefetch = 0 : i64, scratch_operands = 0 : i64, tpu.core_type = #tpu.core_type<tc>, window_params = [{pipeline_mode = #tpu.pipeline_mode<synchronous>, transform_indices = @transform_0, window_bounds = array<i64: 128, 8>}, {pipeline_mode = #tpu.pipeline_mode<synchronous>, transform_indices = @transform_1, window_bounds = array<i64: 8, 32>}, {pipeline_mode = #tpu.pipeline_mode<synchronous>, transform_indices = @transform_2, window_bounds = array<i64: 1, 32>}, {pipeline_mode = #tpu.pipeline_mode<synchronous>, transform_indices = @transform_3, window_bounds = array<i64: 1, 32>}, {pipeline_mode = #tpu.pipeline_mode<synchronous>, transform_indices = @transform_4, window_bounds = array<i64: 128, 32>}, {pipeline_mode = #tpu.pipeline_mode<synchronous>, transform_indices = @transform_5, window_bounds = array<i64: 128, 32>}]} {
    %c0 = arith.constant 0 : index
    %c0_0 = arith.constant 0 : index
    %0 = vector.load %arg1[%c0, %c0_0] : memref<128x8xbf16, #tpu.memory_space<vmem>>, vector<128x8xbf16>
    %c0_1 = arith.constant 0 : index
    %c0_2 = arith.constant 0 : index
    %1 = vector.load %arg2[%c0_1, %c0_2] : memref<8x32xbf16, #tpu.memory_space<vmem>>, vector<8x32xbf16>
    %cst = arith.constant dense<0.000000e+00> : vector<128x32xf32>
    %2 = tpu.matmul %0, %1, %cst {dimension_numbers = #tpu.dot_dimension_numbers<[1], [0], [0], [1], [0, 0, 1, 1], [], []>} : vector<128x8xbf16>, vector<8x32xbf16>, vector<128x32xf32> -> vector<128x32xf32>
    %cst_3 = arith.constant dense<0.000000e+00> : vector<32xf32>
    %3 = vector.multi_reduction <add>, %2, %cst_3 [0] : vector<128x32xf32> to vector<32xf32>
    %4 = vector.shape_cast %3 : vector<32xf32> to vector<1x32xf32>
    %cst_4 = arith.constant 7.812500e-03 : f32
    %5 = vector.broadcast %cst_4 : f32 to vector<1x32xf32>
    %6 = arith.mulf %4, %5 : vector<1x32xf32>
    %7 = vector.broadcast %6 : vector<1x32xf32> to vector<128x32xf32>
    %8 = arith.subf %2, %7 : vector<128x32xf32>
    %9 = arith.mulf %8, %8 : vector<128x32xf32>
    %cst_5 = arith.constant dense<0.000000e+00> : vector<32xf32>
    %10 = vector.multi_reduction <add>, %9, %cst_5 [0] : vector<128x32xf32> to vector<32xf32>
    %11 = vector.shape_cast %10 : vector<32xf32> to vector<1x32xf32>
    %cst_6 = arith.constant 7.812500e-03 : f32
    %12 = vector.broadcast %cst_6 : f32 to vector<1x32xf32>
    %13 = arith.mulf %11, %12 : vector<1x32xf32>
    %cst_7 = arith.constant 9.99999974E-6 : f32
    %14 = vector.broadcast %cst_7 : f32 to vector<1x32xf32>
    %15 = arith.addf %13, %14 : vector<1x32xf32>
    %16 = math.rsqrt %15 : vector<1x32xf32>
    %c0_8 = arith.constant 0 : index
    %c0_9 = arith.constant 0 : index
    %17 = vector.load %arg3[%c0_8, %c0_9] : memref<1x32xf32, #tpu.memory_space<vmem>>, vector<1x32xf32>
    %18 = arith.mulf %16, %17 : vector<1x32xf32>
    %19 = vector.broadcast %18 : vector<1x32xf32> to vector<128x32xf32>
    %20 = arith.mulf %8, %19 : vector<128x32xf32>
    %c0_10 = arith.constant 0 : index
    %c0_11 = arith.constant 0 : index
    %21 = vector.load %arg4[%c0_10, %c0_11] : memref<1x32xf32, #tpu.memory_space<vmem>>, vector<1x32xf32>
    %22 = vector.broadcast %21 : vector<1x32xf32> to vector<128x32xf32>
    %23 = arith.addf %20, %22 : vector<128x32xf32>
    %c0_12 = arith.constant 0 : index
    %c0_13 = arith.constant 0 : index
    %24 = vector.load %arg5[%c0_12, %c0_13] : memref<128x32xf32, #tpu.memory_space<vmem>>, vector<128x32xf32>
    %25 = arith.addf %23, %24 : vector<128x32xf32>
    %cst_14 = arith.constant 0.000000e+00 : f32
    %26 = vector.broadcast %cst_14 : f32 to vector<128x32xf32>
    %27 = arith.maximumf %25, %26 : vector<128x32xf32>
    %c0_15 = arith.constant 0 : index
    %c0_16 = arith.constant 0 : index
    %28 = vector.load %arg6[%c0_15, %c0_16] : memref<128x32xf32, #tpu.memory_space<vmem>>, vector<128x32xf32>
    tpu.vector_store %arg6[%c0_15, %c0_16], %27 {strides = array<i32>} : memref<128x32xf32, #tpu.memory_space<vmem>>, vector<128x32xf32>,
    return
  }
  func.func @transform_0(%arg0: i32) -> (i32, i32) {
    %c0_i32 = arith.constant 0 : i32
    %c0_i32_0 = arith.constant 0 : i32
    %c0_i32_1 = arith.constant 0 : i32
    return %c0_i32, %c0_i32_0 : i32, i32
  }
  func.func @transform_1(%arg0: i32) -> (i32, i32) {
    %c0_i32 = arith.constant 0 : i32
    %c0_i32_0 = arith.constant 0 : i32
    %c0_i32_1 = arith.constant 0 : i32
    return %c0_i32, %c0_i32_0 : i32, i32
  }
  func.func @transform_2(%arg0: i32) -> (i32, i32) {
    %c0_i32 = arith.constant 0 : i32
    %c0_i32_0 = arith.constant 0 : i32
    %c0_i32_1 = arith.constant 0 : i32
    return %c0_i32, %c0_i32_0 : i32, i32
  }
  func.func @transform_3(%arg0: i32) -> (i32, i32) {
    %c0_i32 = arith.constant 0 : i32
    %c0_i32_0 = arith.constant 0 : i32
    %c0_i32_1 = arith.constant 0 : i32
    return %c0_i32, %c0_i32_0 : i32, i32
  }
  func.func @transform_4(%arg0: i32) -> (i32, i32) {
    %c0_i32 = arith.constant 0 : i32
    %c0_i32_0 = arith.constant 0 : i32
    %c0_i32_1 = arith.constant 0 : i32
    return %c0_i32, %c0_i32_0 : i32, i32
  }
  func.func @transform_5(%arg0: i32) -> (i32, i32) {
    %c0_i32 = arith.constant 0 : i32
    %c0_i32_0 = arith.constant 0 : i32
    %c0_i32_1 = arith.constant 0 : i32
    return %c0_i32, %c0_i32_0 : i32, i32
  }
}

module attributes {stable_mosaic.version = 11 : i64} {
  func.func @_conv_bn_kernel(%arg0: i32, %arg1: memref<128x32xbf16, #tpu.memory_space<vmem>>, %arg2: memref<32x8xbf16, #tpu.memory_space<vmem>>, %arg3: memref<1x8xf32, #tpu.memory_space<vmem>>, %arg4: memref<1x8xf32, #tpu.memory_space<vmem>>, %arg5: memref<128x8xf32, #tpu.memory_space<vmem>>) attributes {dimension_semantics = [#tpu.dimension_semantics<arbitrary>], iteration_bounds = array<i64: 1>, scalar_prefetch = 0 : i64, scratch_operands = 0 : i64, tpu.core_type = #tpu.core_type<tc>, window_params = [{pipeline_mode = #tpu.pipeline_mode<synchronous>, transform_indices = @transform_0, window_bounds = array<i64: 128, 32>}, {pipeline_mode = #tpu.pipeline_mode<synchronous>, transform_indices = @transform_1, window_bounds = array<i64: 32, 8>}, {pipeline_mode = #tpu.pipeline_mode<synchronous>, transform_indices = @transform_2, window_bounds = array<i64: 1, 8>}, {pipeline_mode = #tpu.pipeline_mode<synchronous>, transform_indices = @transform_3, window_bounds = array<i64: 1, 8>}, {pipeline_mode = #tpu.pipeline_mode<synchronous>, transform_indices = @transform_4, window_bounds = array<i64: 128, 8>}]} {
    %c0 = arith.constant 0 : index
    %c0_0 = arith.constant 0 : index
    %0 = vector.load %arg1[%c0, %c0_0] : memref<128x32xbf16, #tpu.memory_space<vmem>>, vector<128x32xbf16>
    %c0_1 = arith.constant 0 : index
    %c0_2 = arith.constant 0 : index
    %1 = vector.load %arg2[%c0_1, %c0_2] : memref<32x8xbf16, #tpu.memory_space<vmem>>, vector<32x8xbf16>
    %cst = arith.constant dense<0.000000e+00> : vector<128x8xf32>
    %2 = tpu.matmul %0, %1, %cst {dimension_numbers = #tpu.dot_dimension_numbers<[1], [0], [0], [1], [0, 0, 1, 1], [], []>} : vector<128x32xbf16>, vector<32x8xbf16>, vector<128x8xf32> -> vector<128x8xf32>
    %cst_3 = arith.constant dense<0.000000e+00> : vector<8xf32>
    %3 = vector.multi_reduction <add>, %2, %cst_3 [0] : vector<128x8xf32> to vector<8xf32>
    %4 = vector.shape_cast %3 : vector<8xf32> to vector<1x8xf32>
    %cst_4 = arith.constant 7.812500e-03 : f32
    %5 = vector.broadcast %cst_4 : f32 to vector<1x8xf32>
    %6 = arith.mulf %4, %5 : vector<1x8xf32>
    %7 = vector.broadcast %6 : vector<1x8xf32> to vector<128x8xf32>
    %8 = arith.subf %2, %7 : vector<128x8xf32>
    %9 = arith.mulf %8, %8 : vector<128x8xf32>
    %cst_5 = arith.constant dense<0.000000e+00> : vector<8xf32>
    %10 = vector.multi_reduction <add>, %9, %cst_5 [0] : vector<128x8xf32> to vector<8xf32>
    %11 = vector.shape_cast %10 : vector<8xf32> to vector<1x8xf32>
    %cst_6 = arith.constant 7.812500e-03 : f32
    %12 = vector.broadcast %cst_6 : f32 to vector<1x8xf32>
    %13 = arith.mulf %11, %12 : vector<1x8xf32>
    %cst_7 = arith.constant 9.99999974E-6 : f32
    %14 = vector.broadcast %cst_7 : f32 to vector<1x8xf32>
    %15 = arith.addf %13, %14 : vector<1x8xf32>
    %16 = math.rsqrt %15 : vector<1x8xf32>
    %c0_8 = arith.constant 0 : index
    %c0_9 = arith.constant 0 : index
    %17 = vector.load %arg3[%c0_8, %c0_9] : memref<1x8xf32, #tpu.memory_space<vmem>>, vector<1x8xf32>
    %18 = arith.mulf %16, %17 : vector<1x8xf32>
    %19 = vector.broadcast %18 : vector<1x8xf32> to vector<128x8xf32>
    %20 = arith.mulf %8, %19 : vector<128x8xf32>
    %c0_10 = arith.constant 0 : index
    %c0_11 = arith.constant 0 : index
    %21 = vector.load %arg4[%c0_10, %c0_11] : memref<1x8xf32, #tpu.memory_space<vmem>>, vector<1x8xf32>
    %22 = vector.broadcast %21 : vector<1x8xf32> to vector<128x8xf32>
    %23 = arith.addf %20, %22 : vector<128x8xf32>
    %cst_12 = arith.constant 0.000000e+00 : f32
    %24 = vector.broadcast %cst_12 : f32 to vector<128x8xf32>
    %25 = arith.maximumf %23, %24 : vector<128x8xf32>
    %c0_13 = arith.constant 0 : index
    %c0_14 = arith.constant 0 : index
    %26 = vector.load %arg5[%c0_13, %c0_14] : memref<128x8xf32, #tpu.memory_space<vmem>>, vector<128x8xf32>
    tpu.vector_store %arg5[%c0_13, %c0_14], %25 {strides = array<i32>} : memref<128x8xf32, #tpu.memory_space<vmem>>, vector<128x8xf32>,
    return
  }
  func.func @transform_0(%arg0: i32) -> (i32, i32) {
    %c0_i32 = arith.constant 0 : i32
    %c0_i32_0 = arith.constant 0 : i32
    %c0_i32_1 = arith.constant 0 : i32
    return %c0_i32, %c0_i32_0 : i32, i32
  }
  func.func @transform_1(%arg0: i32) -> (i32, i32) {
    %c0_i32 = arith.constant 0 : i32
    %c0_i32_0 = arith.constant 0 : i32
    %c0_i32_1 = arith.constant 0 : i32
    return %c0_i32, %c0_i32_0 : i32, i32
  }
  func.func @transform_2(%arg0: i32) -> (i32, i32) {
    %c0_i32 = arith.constant 0 : i32
    %c0_i32_0 = arith.constant 0 : i32
    %c0_i32_1 = arith.constant 0 : i32
    return %c0_i32, %c0_i32_0 : i32, i32
  }
  func.func @transform_3(%arg0: i32) -> (i32, i32) {
    %c0_i32 = arith.constant 0 : i32
    %c0_i32_0 = arith.constant 0 : i32
    %c0_i32_1 = arith.constant 0 : i32
    return %c0_i32, %c0_i32_0 : i32, i32
  }
  func.func @transform_4(%arg0: i32) -> (i32, i32) {
    %c0_i32 = arith.constant 0 : i32
    %c0_i32_0 = arith.constant 0 : i32
    %c0_i32_1 = arith.constant 0 : i32
    return %c0_i32, %c0_i32_0 : i32, i32
  }
}

module attributes {stable_mosaic.version = 11 : i64} {
  func.func @_conv_bn_kernel(%arg0: i32, %arg1: memref<128x32xbf16, #tpu.memory_space<vmem>>, %arg2: memref<32x16xbf16, #tpu.memory_space<vmem>>, %arg3: memref<1x16xf32, #tpu.memory_space<vmem>>, %arg4: memref<1x16xf32, #tpu.memory_space<vmem>>, %arg5: memref<128x16xf32, #tpu.memory_space<vmem>>) attributes {dimension_semantics = [#tpu.dimension_semantics<arbitrary>], iteration_bounds = array<i64: 1>, scalar_prefetch = 0 : i64, scratch_operands = 0 : i64, tpu.core_type = #tpu.core_type<tc>, window_params = [{pipeline_mode = #tpu.pipeline_mode<synchronous>, transform_indices = @transform_0, window_bounds = array<i64: 128, 32>}, {pipeline_mode = #tpu.pipeline_mode<synchronous>, transform_indices = @transform_1, window_bounds = array<i64: 32, 16>}, {pipeline_mode = #tpu.pipeline_mode<synchronous>, transform_indices = @transform_2, window_bounds = array<i64: 1, 16>}, {pipeline_mode = #tpu.pipeline_mode<synchronous>, transform_indices = @transform_3, window_bounds = array<i64: 1, 16>}, {pipeline_mode = #tpu.pipeline_mode<synchronous>, transform_indices = @transform_4, window_bounds = array<i64: 128, 16>}]} {
    %c0 = arith.constant 0 : index
    %c0_0 = arith.constant 0 : index
    %0 = vector.load %arg1[%c0, %c0_0] : memref<128x32xbf16, #tpu.memory_space<vmem>>, vector<128x32xbf16>
    %c0_1 = arith.constant 0 : index
    %c0_2 = arith.constant 0 : index
    %1 = vector.load %arg2[%c0_1, %c0_2] : memref<32x16xbf16, #tpu.memory_space<vmem>>, vector<32x16xbf16>
    %cst = arith.constant dense<0.000000e+00> : vector<128x16xf32>
    %2 = tpu.matmul %0, %1, %cst {dimension_numbers = #tpu.dot_dimension_numbers<[1], [0], [0], [1], [0, 0, 1, 1], [], []>} : vector<128x32xbf16>, vector<32x16xbf16>, vector<128x16xf32> -> vector<128x16xf32>
    %cst_3 = arith.constant dense<0.000000e+00> : vector<16xf32>
    %3 = vector.multi_reduction <add>, %2, %cst_3 [0] : vector<128x16xf32> to vector<16xf32>
    %4 = vector.shape_cast %3 : vector<16xf32> to vector<1x16xf32>
    %cst_4 = arith.constant 7.812500e-03 : f32
    %5 = vector.broadcast %cst_4 : f32 to vector<1x16xf32>
    %6 = arith.mulf %4, %5 : vector<1x16xf32>
    %7 = vector.broadcast %6 : vector<1x16xf32> to vector<128x16xf32>
    %8 = arith.subf %2, %7 : vector<128x16xf32>
    %9 = arith.mulf %8, %8 : vector<128x16xf32>
    %cst_5 = arith.constant dense<0.000000e+00> : vector<16xf32>
    %10 = vector.multi_reduction <add>, %9, %cst_5 [0] : vector<128x16xf32> to vector<16xf32>
    %11 = vector.shape_cast %10 : vector<16xf32> to vector<1x16xf32>
    %cst_6 = arith.constant 7.812500e-03 : f32
    %12 = vector.broadcast %cst_6 : f32 to vector<1x16xf32>
    %13 = arith.mulf %11, %12 : vector<1x16xf32>
    %cst_7 = arith.constant 9.99999974E-6 : f32
    %14 = vector.broadcast %cst_7 : f32 to vector<1x16xf32>
    %15 = arith.addf %13, %14 : vector<1x16xf32>
    %16 = math.rsqrt %15 : vector<1x16xf32>
    %c0_8 = arith.constant 0 : index
    %c0_9 = arith.constant 0 : index
    %17 = vector.load %arg3[%c0_8, %c0_9] : memref<1x16xf32, #tpu.memory_space<vmem>>, vector<1x16xf32>
    %18 = arith.mulf %16, %17 : vector<1x16xf32>
    %19 = vector.broadcast %18 : vector<1x16xf32> to vector<128x16xf32>
    %20 = arith.mulf %8, %19 : vector<128x16xf32>
    %c0_10 = arith.constant 0 : index
    %c0_11 = arith.constant 0 : index
    %21 = vector.load %arg4[%c0_10, %c0_11] : memref<1x16xf32, #tpu.memory_space<vmem>>, vector<1x16xf32>
    %22 = vector.broadcast %21 : vector<1x16xf32> to vector<128x16xf32>
    %23 = arith.addf %20, %22 : vector<128x16xf32>
    %cst_12 = arith.constant 0.000000e+00 : f32
    %24 = vector.broadcast %cst_12 : f32 to vector<128x16xf32>
    %25 = arith.maximumf %23, %24 : vector<128x16xf32>
    %c0_13 = arith.constant 0 : index
    %c0_14 = arith.constant 0 : index
    %26 = vector.load %arg5[%c0_13, %c0_14] : memref<128x16xf32, #tpu.memory_space<vmem>>, vector<128x16xf32>
    tpu.vector_store %arg5[%c0_13, %c0_14], %25 {strides = array<i32>} : memref<128x16xf32, #tpu.memory_space<vmem>>, vector<128x16xf32>,
    return
  }
  func.func @transform_0(%arg0: i32) -> (i32, i32) {
    %c0_i32 = arith.constant 0 : i32
    %c0_i32_0 = arith.constant 0 : i32
    %c0_i32_1 = arith.constant 0 : i32
    return %c0_i32, %c0_i32_0 : i32, i32
  }
  func.func @transform_1(%arg0: i32) -> (i32, i32) {
    %c0_i32 = arith.constant 0 : i32
    %c0_i32_0 = arith.constant 0 : i32
    %c0_i32_1 = arith.constant 0 : i32
    return %c0_i32, %c0_i32_0 : i32, i32
  }
  func.func @transform_2(%arg0: i32) -> (i32, i32) {
    %c0_i32 = arith.constant 0 : i32
    %c0_i32_0 = arith.constant 0 : i32
    %c0_i32_1 = arith.constant 0 : i32
    return %c0_i32, %c0_i32_0 : i32, i32
  }
  func.func @transform_3(%arg0: i32) -> (i32, i32) {
    %c0_i32 = arith.constant 0 : i32
    %c0_i32_0 = arith.constant 0 : i32
    %c0_i32_1 = arith.constant 0 : i32
    return %c0_i32, %c0_i32_0 : i32, i32
  }
  func.func @transform_4(%arg0: i32) -> (i32, i32) {
    %c0_i32 = arith.constant 0 : i32
    %c0_i32_0 = arith.constant 0 : i32
    %c0_i32_1 = arith.constant 0 : i32
    return %c0_i32, %c0_i32_0 : i32, i32
  }
}

module attributes {stable_mosaic.version = 11 : i64} {
  func.func @_conv_bn_kernel(%arg0: i32, %arg1: memref<32x144xbf16, #tpu.memory_space<vmem>>, %arg2: memref<144x16xbf16, #tpu.memory_space<vmem>>, %arg3: memref<1x16xf32, #tpu.memory_space<vmem>>, %arg4: memref<1x16xf32, #tpu.memory_space<vmem>>, %arg5: memref<32x16xf32, #tpu.memory_space<vmem>>) attributes {dimension_semantics = [#tpu.dimension_semantics<arbitrary>], iteration_bounds = array<i64: 1>, scalar_prefetch = 0 : i64, scratch_operands = 0 : i64, tpu.core_type = #tpu.core_type<tc>, window_params = [{pipeline_mode = #tpu.pipeline_mode<synchronous>, transform_indices = @transform_0, window_bounds = array<i64: 32, 144>}, {pipeline_mode = #tpu.pipeline_mode<synchronous>, transform_indices = @transform_1, window_bounds = array<i64: 144, 16>}, {pipeline_mode = #tpu.pipeline_mode<synchronous>, transform_indices = @transform_2, window_bounds = array<i64: 1, 16>}, {pipeline_mode = #tpu.pipeline_mode<synchronous>, transform_indices = @transform_3, window_bounds = array<i64: 1, 16>}, {pipeline_mode = #tpu.pipeline_mode<synchronous>, transform_indices = @transform_4, window_bounds = array<i64: 32, 16>}]} {
    %c0 = arith.constant 0 : index
    %c0_0 = arith.constant 0 : index
    %0 = vector.load %arg1[%c0, %c0_0] : memref<32x144xbf16, #tpu.memory_space<vmem>>, vector<32x144xbf16>
    %c0_1 = arith.constant 0 : index
    %c0_2 = arith.constant 0 : index
    %1 = vector.load %arg2[%c0_1, %c0_2] : memref<144x16xbf16, #tpu.memory_space<vmem>>, vector<144x16xbf16>
    %cst = arith.constant dense<0.000000e+00> : vector<32x16xf32>
    %2 = tpu.matmul %0, %1, %cst {dimension_numbers = #tpu.dot_dimension_numbers<[1], [0], [0], [1], [0, 0, 1, 1], [], []>} : vector<32x144xbf16>, vector<144x16xbf16>, vector<32x16xf32> -> vector<32x16xf32>
    %cst_3 = arith.constant dense<0.000000e+00> : vector<16xf32>
    %3 = vector.multi_reduction <add>, %2, %cst_3 [0] : vector<32x16xf32> to vector<16xf32>
    %4 = vector.shape_cast %3 : vector<16xf32> to vector<1x16xf32>
    %cst_4 = arith.constant 3.125000e-02 : f32
    %5 = vector.broadcast %cst_4 : f32 to vector<1x16xf32>
    %6 = arith.mulf %4, %5 : vector<1x16xf32>
    %7 = vector.broadcast %6 : vector<1x16xf32> to vector<32x16xf32>
    %8 = arith.subf %2, %7 : vector<32x16xf32>
    %9 = arith.mulf %8, %8 : vector<32x16xf32>
    %cst_5 = arith.constant dense<0.000000e+00> : vector<16xf32>
    %10 = vector.multi_reduction <add>, %9, %cst_5 [0] : vector<32x16xf32> to vector<16xf32>
    %11 = vector.shape_cast %10 : vector<16xf32> to vector<1x16xf32>
    %cst_6 = arith.constant 3.125000e-02 : f32
    %12 = vector.broadcast %cst_6 : f32 to vector<1x16xf32>
    %13 = arith.mulf %11, %12 : vector<1x16xf32>
    %cst_7 = arith.constant 9.99999974E-6 : f32
    %14 = vector.broadcast %cst_7 : f32 to vector<1x16xf32>
    %15 = arith.addf %13, %14 : vector<1x16xf32>
    %16 = math.rsqrt %15 : vector<1x16xf32>
    %c0_8 = arith.constant 0 : index
    %c0_9 = arith.constant 0 : index
    %17 = vector.load %arg3[%c0_8, %c0_9] : memref<1x16xf32, #tpu.memory_space<vmem>>, vector<1x16xf32>
    %18 = arith.mulf %16, %17 : vector<1x16xf32>
    %19 = vector.broadcast %18 : vector<1x16xf32> to vector<32x16xf32>
    %20 = arith.mulf %8, %19 : vector<32x16xf32>
    %c0_10 = arith.constant 0 : index
    %c0_11 = arith.constant 0 : index
    %21 = vector.load %arg4[%c0_10, %c0_11] : memref<1x16xf32, #tpu.memory_space<vmem>>, vector<1x16xf32>
    %22 = vector.broadcast %21 : vector<1x16xf32> to vector<32x16xf32>
    %23 = arith.addf %20, %22 : vector<32x16xf32>
    %cst_12 = arith.constant 0.000000e+00 : f32
    %24 = vector.broadcast %cst_12 : f32 to vector<32x16xf32>
    %25 = arith.maximumf %23, %24 : vector<32x16xf32>
    %c0_13 = arith.constant 0 : index
    %c0_14 = arith.constant 0 : index
    %26 = vector.load %arg5[%c0_13, %c0_14] : memref<32x16xf32, #tpu.memory_space<vmem>>, vector<32x16xf32>
    tpu.vector_store %arg5[%c0_13, %c0_14], %25 {strides = array<i32>} : memref<32x16xf32, #tpu.memory_space<vmem>>, vector<32x16xf32>,
    return
  }
  func.func @transform_0(%arg0: i32) -> (i32, i32) {
    %c0_i32 = arith.constant 0 : i32
    %c0_i32_0 = arith.constant 0 : i32
    %c0_i32_1 = arith.constant 0 : i32
    return %c0_i32, %c0_i32_0 : i32, i32
  }
  func.func @transform_1(%arg0: i32) -> (i32, i32) {
    %c0_i32 = arith.constant 0 : i32
    %c0_i32_0 = arith.constant 0 : i32
    %c0_i32_1 = arith.constant 0 : i32
    return %c0_i32, %c0_i32_0 : i32, i32
  }
  func.func @transform_2(%arg0: i32) -> (i32, i32) {
    %c0_i32 = arith.constant 0 : i32
    %c0_i32_0 = arith.constant 0 : i32
    %c0_i32_1 = arith.constant 0 : i32
    return %c0_i32, %c0_i32_0 : i32, i32
  }
  func.func @transform_3(%arg0: i32) -> (i32, i32) {
    %c0_i32 = arith.constant 0 : i32
    %c0_i32_0 = arith.constant 0 : i32
    %c0_i32_1 = arith.constant 0 : i32
    return %c0_i32, %c0_i32_0 : i32, i32
  }
  func.func @transform_4(%arg0: i32) -> (i32, i32) {
    %c0_i32 = arith.constant 0 : i32
    %c0_i32_0 = arith.constant 0 : i32
    %c0_i32_1 = arith.constant 0 : i32
    return %c0_i32, %c0_i32_0 : i32, i32
  }
}

module attributes {stable_mosaic.version = 11 : i64} {
  func.func @_conv_bn_kernel(%arg0: i32, %arg1: memref<32x32xbf16, #tpu.memory_space<vmem>>, %arg2: memref<32x64xbf16, #tpu.memory_space<vmem>>, %arg3: memref<1x64xf32, #tpu.memory_space<vmem>>, %arg4: memref<1x64xf32, #tpu.memory_space<vmem>>, %arg5: memref<32x64xf32, #tpu.memory_space<vmem>>) attributes {dimension_semantics = [#tpu.dimension_semantics<arbitrary>], iteration_bounds = array<i64: 1>, scalar_prefetch = 0 : i64, scratch_operands = 0 : i64, tpu.core_type = #tpu.core_type<tc>, window_params = [{pipeline_mode = #tpu.pipeline_mode<synchronous>, transform_indices = @transform_0, window_bounds = array<i64: 32, 32>}, {pipeline_mode = #tpu.pipeline_mode<synchronous>, transform_indices = @transform_1, window_bounds = array<i64: 32, 64>}, {pipeline_mode = #tpu.pipeline_mode<synchronous>, transform_indices = @transform_2, window_bounds = array<i64: 1, 64>}, {pipeline_mode = #tpu.pipeline_mode<synchronous>, transform_indices = @transform_3, window_bounds = array<i64: 1, 64>}, {pipeline_mode = #tpu.pipeline_mode<synchronous>, transform_indices = @transform_4, window_bounds = array<i64: 32, 64>}]} {
    %c0 = arith.constant 0 : index
    %c0_0 = arith.constant 0 : index
    %0 = vector.load %arg1[%c0, %c0_0] : memref<32x32xbf16, #tpu.memory_space<vmem>>, vector<32x32xbf16>
    %c0_1 = arith.constant 0 : index
    %c0_2 = arith.constant 0 : index
    %1 = vector.load %arg2[%c0_1, %c0_2] : memref<32x64xbf16, #tpu.memory_space<vmem>>, vector<32x64xbf16>
    %cst = arith.constant dense<0.000000e+00> : vector<32x64xf32>
    %2 = tpu.matmul %0, %1, %cst {dimension_numbers = #tpu.dot_dimension_numbers<[1], [0], [0], [1], [0, 0, 1, 1], [], []>} : vector<32x32xbf16>, vector<32x64xbf16>, vector<32x64xf32> -> vector<32x64xf32>
    %cst_3 = arith.constant dense<0.000000e+00> : vector<64xf32>
    %3 = vector.multi_reduction <add>, %2, %cst_3 [0] : vector<32x64xf32> to vector<64xf32>
    %4 = vector.shape_cast %3 : vector<64xf32> to vector<1x64xf32>
    %cst_4 = arith.constant 3.125000e-02 : f32
    %5 = vector.broadcast %cst_4 : f32 to vector<1x64xf32>
    %6 = arith.mulf %4, %5 : vector<1x64xf32>
    %7 = vector.broadcast %6 : vector<1x64xf32> to vector<32x64xf32>
    %8 = arith.subf %2, %7 : vector<32x64xf32>
    %9 = arith.mulf %8, %8 : vector<32x64xf32>
    %cst_5 = arith.constant dense<0.000000e+00> : vector<64xf32>
    %10 = vector.multi_reduction <add>, %9, %cst_5 [0] : vector<32x64xf32> to vector<64xf32>
    %11 = vector.shape_cast %10 : vector<64xf32> to vector<1x64xf32>
    %cst_6 = arith.constant 3.125000e-02 : f32
    %12 = vector.broadcast %cst_6 : f32 to vector<1x64xf32>
    %13 = arith.mulf %11, %12 : vector<1x64xf32>
    %cst_7 = arith.constant 9.99999974E-6 : f32
    %14 = vector.broadcast %cst_7 : f32 to vector<1x64xf32>
    %15 = arith.addf %13, %14 : vector<1x64xf32>
    %16 = math.rsqrt %15 : vector<1x64xf32>
    %c0_8 = arith.constant 0 : index
    %c0_9 = arith.constant 0 : index
    %17 = vector.load %arg3[%c0_8, %c0_9] : memref<1x64xf32, #tpu.memory_space<vmem>>, vector<1x64xf32>
    %18 = arith.mulf %16, %17 : vector<1x64xf32>
    %19 = vector.broadcast %18 : vector<1x64xf32> to vector<32x64xf32>
    %20 = arith.mulf %8, %19 : vector<32x64xf32>
    %c0_10 = arith.constant 0 : index
    %c0_11 = arith.constant 0 : index
    %21 = vector.load %arg4[%c0_10, %c0_11] : memref<1x64xf32, #tpu.memory_space<vmem>>, vector<1x64xf32>
    %22 = vector.broadcast %21 : vector<1x64xf32> to vector<32x64xf32>
    %23 = arith.addf %20, %22 : vector<32x64xf32>
    %c0_12 = arith.constant 0 : index
    %c0_13 = arith.constant 0 : index
    %24 = vector.load %arg5[%c0_12, %c0_13] : memref<32x64xf32, #tpu.memory_space<vmem>>, vector<32x64xf32>
    tpu.vector_store %arg5[%c0_12, %c0_13], %23 {strides = array<i32>} : memref<32x64xf32, #tpu.memory_space<vmem>>, vector<32x64xf32>,
    return
  }
  func.func @transform_0(%arg0: i32) -> (i32, i32) {
    %c0_i32 = arith.constant 0 : i32
    %c0_i32_0 = arith.constant 0 : i32
    %c0_i32_1 = arith.constant 0 : i32
    return %c0_i32, %c0_i32_0 : i32, i32
  }
  func.func @transform_1(%arg0: i32) -> (i32, i32) {
    %c0_i32 = arith.constant 0 : i32
    %c0_i32_0 = arith.constant 0 : i32
    %c0_i32_1 = arith.constant 0 : i32
    return %c0_i32, %c0_i32_0 : i32, i32
  }
  func.func @transform_2(%arg0: i32) -> (i32, i32) {
    %c0_i32 = arith.constant 0 : i32
    %c0_i32_0 = arith.constant 0 : i32
    %c0_i32_1 = arith.constant 0 : i32
    return %c0_i32, %c0_i32_0 : i32, i32
  }
  func.func @transform_3(%arg0: i32) -> (i32, i32) {
    %c0_i32 = arith.constant 0 : i32
    %c0_i32_0 = arith.constant 0 : i32
    %c0_i32_1 = arith.constant 0 : i32
    return %c0_i32, %c0_i32_0 : i32, i32
  }
  func.func @transform_4(%arg0: i32) -> (i32, i32) {
    %c0_i32 = arith.constant 0 : i32
    %c0_i32_0 = arith.constant 0 : i32
    %c0_i32_1 = arith.constant 0 : i32
    return %c0_i32, %c0_i32_0 : i32, i32
  }
}

module attributes {stable_mosaic.version = 11 : i64} {
  func.func @_conv_bn_add_relu_kernel(%arg0: i32, %arg1: memref<32x16xbf16, #tpu.memory_space<vmem>>, %arg2: memref<16x64xbf16, #tpu.memory_space<vmem>>, %arg3: memref<1x64xf32, #tpu.memory_space<vmem>>, %arg4: memref<1x64xf32, #tpu.memory_space<vmem>>, %arg5: memref<32x64xf32, #tpu.memory_space<vmem>>, %arg6: memref<32x64xf32, #tpu.memory_space<vmem>>) attributes {dimension_semantics = [#tpu.dimension_semantics<arbitrary>], iteration_bounds = array<i64: 1>, scalar_prefetch = 0 : i64, scratch_operands = 0 : i64, tpu.core_type = #tpu.core_type<tc>, window_params = [{pipeline_mode = #tpu.pipeline_mode<synchronous>, transform_indices = @transform_0, window_bounds = array<i64: 32, 16>}, {pipeline_mode = #tpu.pipeline_mode<synchronous>, transform_indices = @transform_1, window_bounds = array<i64: 16, 64>}, {pipeline_mode = #tpu.pipeline_mode<synchronous>, transform_indices = @transform_2, window_bounds = array<i64: 1, 64>}, {pipeline_mode = #tpu.pipeline_mode<synchronous>, transform_indices = @transform_3, window_bounds = array<i64: 1, 64>}, {pipeline_mode = #tpu.pipeline_mode<synchronous>, transform_indices = @transform_4, window_bounds = array<i64: 32, 64>}, {pipeline_mode = #tpu.pipeline_mode<synchronous>, transform_indices = @transform_5, window_bounds = array<i64: 32, 64>}]} {
    %c0 = arith.constant 0 : index
    %c0_0 = arith.constant 0 : index
    %0 = vector.load %arg1[%c0, %c0_0] : memref<32x16xbf16, #tpu.memory_space<vmem>>, vector<32x16xbf16>
    %c0_1 = arith.constant 0 : index
    %c0_2 = arith.constant 0 : index
    %1 = vector.load %arg2[%c0_1, %c0_2] : memref<16x64xbf16, #tpu.memory_space<vmem>>, vector<16x64xbf16>
    %cst = arith.constant dense<0.000000e+00> : vector<32x64xf32>
    %2 = tpu.matmul %0, %1, %cst {dimension_numbers = #tpu.dot_dimension_numbers<[1], [0], [0], [1], [0, 0, 1, 1], [], []>} : vector<32x16xbf16>, vector<16x64xbf16>, vector<32x64xf32> -> vector<32x64xf32>
    %cst_3 = arith.constant dense<0.000000e+00> : vector<64xf32>
    %3 = vector.multi_reduction <add>, %2, %cst_3 [0] : vector<32x64xf32> to vector<64xf32>
    %4 = vector.shape_cast %3 : vector<64xf32> to vector<1x64xf32>
    %cst_4 = arith.constant 3.125000e-02 : f32
    %5 = vector.broadcast %cst_4 : f32 to vector<1x64xf32>
    %6 = arith.mulf %4, %5 : vector<1x64xf32>
    %7 = vector.broadcast %6 : vector<1x64xf32> to vector<32x64xf32>
    %8 = arith.subf %2, %7 : vector<32x64xf32>
    %9 = arith.mulf %8, %8 : vector<32x64xf32>
    %cst_5 = arith.constant dense<0.000000e+00> : vector<64xf32>
    %10 = vector.multi_reduction <add>, %9, %cst_5 [0] : vector<32x64xf32> to vector<64xf32>
    %11 = vector.shape_cast %10 : vector<64xf32> to vector<1x64xf32>
    %cst_6 = arith.constant 3.125000e-02 : f32
    %12 = vector.broadcast %cst_6 : f32 to vector<1x64xf32>
    %13 = arith.mulf %11, %12 : vector<1x64xf32>
    %cst_7 = arith.constant 9.99999974E-6 : f32
    %14 = vector.broadcast %cst_7 : f32 to vector<1x64xf32>
    %15 = arith.addf %13, %14 : vector<1x64xf32>
    %16 = math.rsqrt %15 : vector<1x64xf32>
    %c0_8 = arith.constant 0 : index
    %c0_9 = arith.constant 0 : index
    %17 = vector.load %arg3[%c0_8, %c0_9] : memref<1x64xf32, #tpu.memory_space<vmem>>, vector<1x64xf32>
    %18 = arith.mulf %16, %17 : vector<1x64xf32>
    %19 = vector.broadcast %18 : vector<1x64xf32> to vector<32x64xf32>
    %20 = arith.mulf %8, %19 : vector<32x64xf32>
    %c0_10 = arith.constant 0 : index
    %c0_11 = arith.constant 0 : index
    %21 = vector.load %arg4[%c0_10, %c0_11] : memref<1x64xf32, #tpu.memory_space<vmem>>, vector<1x64xf32>
    %22 = vector.broadcast %21 : vector<1x64xf32> to vector<32x64xf32>
    %23 = arith.addf %20, %22 : vector<32x64xf32>
    %c0_12 = arith.constant 0 : index
    %c0_13 = arith.constant 0 : index
    %24 = vector.load %arg5[%c0_12, %c0_13] : memref<32x64xf32, #tpu.memory_space<vmem>>, vector<32x64xf32>
    %25 = arith.addf %23, %24 : vector<32x64xf32>
    %cst_14 = arith.constant 0.000000e+00 : f32
    %26 = vector.broadcast %cst_14 : f32 to vector<32x64xf32>
    %27 = arith.maximumf %25, %26 : vector<32x64xf32>
    %c0_15 = arith.constant 0 : index
    %c0_16 = arith.constant 0 : index
    %28 = vector.load %arg6[%c0_15, %c0_16] : memref<32x64xf32, #tpu.memory_space<vmem>>, vector<32x64xf32>
    tpu.vector_store %arg6[%c0_15, %c0_16], %27 {strides = array<i32>} : memref<32x64xf32, #tpu.memory_space<vmem>>, vector<32x64xf32>,
    return
  }
  func.func @transform_0(%arg0: i32) -> (i32, i32) {
    %c0_i32 = arith.constant 0 : i32
    %c0_i32_0 = arith.constant 0 : i32
    %c0_i32_1 = arith.constant 0 : i32
    return %c0_i32, %c0_i32_0 : i32, i32
  }
  func.func @transform_1(%arg0: i32) -> (i32, i32) {
    %c0_i32 = arith.constant 0 : i32
    %c0_i32_0 = arith.constant 0 : i32
    %c0_i32_1 = arith.constant 0 : i32
    return %c0_i32, %c0_i32_0 : i32, i32
  }
  func.func @transform_2(%arg0: i32) -> (i32, i32) {
    %c0_i32 = arith.constant 0 : i32
    %c0_i32_0 = arith.constant 0 : i32
    %c0_i32_1 = arith.constant 0 : i32
    return %c0_i32, %c0_i32_0 : i32, i32
  }
  func.func @transform_3(%arg0: i32) -> (i32, i32) {
    %c0_i32 = arith.constant 0 : i32
    %c0_i32_0 = arith.constant 0 : i32
    %c0_i32_1 = arith.constant 0 : i32
    return %c0_i32, %c0_i32_0 : i32, i32
  }
  func.func @transform_4(%arg0: i32) -> (i32, i32) {
    %c0_i32 = arith.constant 0 : i32
    %c0_i32_0 = arith.constant 0 : i32
    %c0_i32_1 = arith.constant 0 : i32
    return %c0_i32, %c0_i32_0 : i32, i32
  }
  func.func @transform_5(%arg0: i32) -> (i32, i32) {
    %c0_i32 = arith.constant 0 : i32
    %c0_i32_0 = arith.constant 0 : i32
    %c0_i32_1 = arith.constant 0 : i32
    return %c0_i32, %c0_i32_0 : i32, i32
  }
}

module attributes {stable_mosaic.version = 11 : i64} {
  func.func @_conv_bn_kernel(%arg0: i32, %arg1: memref<32x64xbf16, #tpu.memory_space<vmem>>, %arg2: memref<64x16xbf16, #tpu.memory_space<vmem>>, %arg3: memref<1x16xf32, #tpu.memory_space<vmem>>, %arg4: memref<1x16xf32, #tpu.memory_space<vmem>>, %arg5: memref<32x16xf32, #tpu.memory_space<vmem>>) attributes {dimension_semantics = [#tpu.dimension_semantics<arbitrary>], iteration_bounds = array<i64: 1>, scalar_prefetch = 0 : i64, scratch_operands = 0 : i64, tpu.core_type = #tpu.core_type<tc>, window_params = [{pipeline_mode = #tpu.pipeline_mode<synchronous>, transform_indices = @transform_0, window_bounds = array<i64: 32, 64>}, {pipeline_mode = #tpu.pipeline_mode<synchronous>, transform_indices = @transform_1, window_bounds = array<i64: 64, 16>}, {pipeline_mode = #tpu.pipeline_mode<synchronous>, transform_indices = @transform_2, window_bounds = array<i64: 1, 16>}, {pipeline_mode = #tpu.pipeline_mode<synchronous>, transform_indices = @transform_3, window_bounds = array<i64: 1, 16>}, {pipeline_mode = #tpu.pipeline_mode<synchronous>, transform_indices = @transform_4, window_bounds = array<i64: 32, 16>}]} {
    %c0 = arith.constant 0 : index
    %c0_0 = arith.constant 0 : index
    %0 = vector.load %arg1[%c0, %c0_0] : memref<32x64xbf16, #tpu.memory_space<vmem>>, vector<32x64xbf16>
    %c0_1 = arith.constant 0 : index
    %c0_2 = arith.constant 0 : index
    %1 = vector.load %arg2[%c0_1, %c0_2] : memref<64x16xbf16, #tpu.memory_space<vmem>>, vector<64x16xbf16>
    %cst = arith.constant dense<0.000000e+00> : vector<32x16xf32>
    %2 = tpu.matmul %0, %1, %cst {dimension_numbers = #tpu.dot_dimension_numbers<[1], [0], [0], [1], [0, 0, 1, 1], [], []>} : vector<32x64xbf16>, vector<64x16xbf16>, vector<32x16xf32> -> vector<32x16xf32>
    %cst_3 = arith.constant dense<0.000000e+00> : vector<16xf32>
    %3 = vector.multi_reduction <add>, %2, %cst_3 [0] : vector<32x16xf32> to vector<16xf32>
    %4 = vector.shape_cast %3 : vector<16xf32> to vector<1x16xf32>
    %cst_4 = arith.constant 3.125000e-02 : f32
    %5 = vector.broadcast %cst_4 : f32 to vector<1x16xf32>
    %6 = arith.mulf %4, %5 : vector<1x16xf32>
    %7 = vector.broadcast %6 : vector<1x16xf32> to vector<32x16xf32>
    %8 = arith.subf %2, %7 : vector<32x16xf32>
    %9 = arith.mulf %8, %8 : vector<32x16xf32>
    %cst_5 = arith.constant dense<0.000000e+00> : vector<16xf32>
    %10 = vector.multi_reduction <add>, %9, %cst_5 [0] : vector<32x16xf32> to vector<16xf32>
    %11 = vector.shape_cast %10 : vector<16xf32> to vector<1x16xf32>
    %cst_6 = arith.constant 3.125000e-02 : f32
    %12 = vector.broadcast %cst_6 : f32 to vector<1x16xf32>
    %13 = arith.mulf %11, %12 : vector<1x16xf32>
    %cst_7 = arith.constant 9.99999974E-6 : f32
    %14 = vector.broadcast %cst_7 : f32 to vector<1x16xf32>
    %15 = arith.addf %13, %14 : vector<1x16xf32>
    %16 = math.rsqrt %15 : vector<1x16xf32>
    %c0_8 = arith.constant 0 : index
    %c0_9 = arith.constant 0 : index
    %17 = vector.load %arg3[%c0_8, %c0_9] : memref<1x16xf32, #tpu.memory_space<vmem>>, vector<1x16xf32>
    %18 = arith.mulf %16, %17 : vector<1x16xf32>
    %19 = vector.broadcast %18 : vector<1x16xf32> to vector<32x16xf32>
    %20 = arith.mulf %8, %19 : vector<32x16xf32>
    %c0_10 = arith.constant 0 : index
    %c0_11 = arith.constant 0 : index
    %21 = vector.load %arg4[%c0_10, %c0_11] : memref<1x16xf32, #tpu.memory_space<vmem>>, vector<1x16xf32>
    %22 = vector.broadcast %21 : vector<1x16xf32> to vector<32x16xf32>
    %23 = arith.addf %20, %22 : vector<32x16xf32>
    %cst_12 = arith.constant 0.000000e+00 : f32
    %24 = vector.broadcast %cst_12 : f32 to vector<32x16xf32>
    %25 = arith.maximumf %23, %24 : vector<32x16xf32>
    %c0_13 = arith.constant 0 : index
    %c0_14 = arith.constant 0 : index
    %26 = vector.load %arg5[%c0_13, %c0_14] : memref<32x16xf32, #tpu.memory_space<vmem>>, vector<32x16xf32>
    tpu.vector_store %arg5[%c0_13, %c0_14], %25 {strides = array<i32>} : memref<32x16xf32, #tpu.memory_space<vmem>>, vector<32x16xf32>,
    return
  }
  func.func @transform_0(%arg0: i32) -> (i32, i32) {
    %c0_i32 = arith.constant 0 : i32
    %c0_i32_0 = arith.constant 0 : i32
    %c0_i32_1 = arith.constant 0 : i32
    return %c0_i32, %c0_i32_0 : i32, i32
  }
  func.func @transform_1(%arg0: i32) -> (i32, i32) {
    %c0_i32 = arith.constant 0 : i32
    %c0_i32_0 = arith.constant 0 : i32
    %c0_i32_1 = arith.constant 0 : i32
    return %c0_i32, %c0_i32_0 : i32, i32
  }
  func.func @transform_2(%arg0: i32) -> (i32, i32) {
    %c0_i32 = arith.constant 0 : i32
    %c0_i32_0 = arith.constant 0 : i32
    %c0_i32_1 = arith.constant 0 : i32
    return %c0_i32, %c0_i32_0 : i32, i32
  }
  func.func @transform_3(%arg0: i32) -> (i32, i32) {
    %c0_i32 = arith.constant 0 : i32
    %c0_i32_0 = arith.constant 0 : i32
    %c0_i32_1 = arith.constant 0 : i32
    return %c0_i32, %c0_i32_0 : i32, i32
  }
  func.func @transform_4(%arg0: i32) -> (i32, i32) {
    %c0_i32 = arith.constant 0 : i32
    %c0_i32_0 = arith.constant 0 : i32
    %c0_i32_1 = arith.constant 0 : i32
    return %c0_i32, %c0_i32_0 : i32, i32
  }
}

module attributes {stable_mosaic.version = 11 : i64} {
  func.func @_conv_bn_kernel(%arg0: i32, %arg1: memref<32x64xbf16, #tpu.memory_space<vmem>>, %arg2: memref<64x32xbf16, #tpu.memory_space<vmem>>, %arg3: memref<1x32xf32, #tpu.memory_space<vmem>>, %arg4: memref<1x32xf32, #tpu.memory_space<vmem>>, %arg5: memref<32x32xf32, #tpu.memory_space<vmem>>) attributes {dimension_semantics = [#tpu.dimension_semantics<arbitrary>], iteration_bounds = array<i64: 1>, scalar_prefetch = 0 : i64, scratch_operands = 0 : i64, tpu.core_type = #tpu.core_type<tc>, window_params = [{pipeline_mode = #tpu.pipeline_mode<synchronous>, transform_indices = @transform_0, window_bounds = array<i64: 32, 64>}, {pipeline_mode = #tpu.pipeline_mode<synchronous>, transform_indices = @transform_1, window_bounds = array<i64: 64, 32>}, {pipeline_mode = #tpu.pipeline_mode<synchronous>, transform_indices = @transform_2, window_bounds = array<i64: 1, 32>}, {pipeline_mode = #tpu.pipeline_mode<synchronous>, transform_indices = @transform_3, window_bounds = array<i64: 1, 32>}, {pipeline_mode = #tpu.pipeline_mode<synchronous>, transform_indices = @transform_4, window_bounds = array<i64: 32, 32>}]} {
    %c0 = arith.constant 0 : index
    %c0_0 = arith.constant 0 : index
    %0 = vector.load %arg1[%c0, %c0_0] : memref<32x64xbf16, #tpu.memory_space<vmem>>, vector<32x64xbf16>
    %c0_1 = arith.constant 0 : index
    %c0_2 = arith.constant 0 : index
    %1 = vector.load %arg2[%c0_1, %c0_2] : memref<64x32xbf16, #tpu.memory_space<vmem>>, vector<64x32xbf16>
    %cst = arith.constant dense<0.000000e+00> : vector<32x32xf32>
    %2 = tpu.matmul %0, %1, %cst {dimension_numbers = #tpu.dot_dimension_numbers<[1], [0], [0], [1], [0, 0, 1, 1], [], []>} : vector<32x64xbf16>, vector<64x32xbf16>, vector<32x32xf32> -> vector<32x32xf32>
    %cst_3 = arith.constant dense<0.000000e+00> : vector<32xf32>
    %3 = vector.multi_reduction <add>, %2, %cst_3 [0] : vector<32x32xf32> to vector<32xf32>
    %4 = vector.shape_cast %3 : vector<32xf32> to vector<1x32xf32>
    %cst_4 = arith.constant 3.125000e-02 : f32
    %5 = vector.broadcast %cst_4 : f32 to vector<1x32xf32>
    %6 = arith.mulf %4, %5 : vector<1x32xf32>
    %7 = vector.broadcast %6 : vector<1x32xf32> to vector<32x32xf32>
    %8 = arith.subf %2, %7 : vector<32x32xf32>
    %9 = arith.mulf %8, %8 : vector<32x32xf32>
    %cst_5 = arith.constant dense<0.000000e+00> : vector<32xf32>
    %10 = vector.multi_reduction <add>, %9, %cst_5 [0] : vector<32x32xf32> to vector<32xf32>
    %11 = vector.shape_cast %10 : vector<32xf32> to vector<1x32xf32>
    %cst_6 = arith.constant 3.125000e-02 : f32
    %12 = vector.broadcast %cst_6 : f32 to vector<1x32xf32>
    %13 = arith.mulf %11, %12 : vector<1x32xf32>
    %cst_7 = arith.constant 9.99999974E-6 : f32
    %14 = vector.broadcast %cst_7 : f32 to vector<1x32xf32>
    %15 = arith.addf %13, %14 : vector<1x32xf32>
    %16 = math.rsqrt %15 : vector<1x32xf32>
    %c0_8 = arith.constant 0 : index
    %c0_9 = arith.constant 0 : index
    %17 = vector.load %arg3[%c0_8, %c0_9] : memref<1x32xf32, #tpu.memory_space<vmem>>, vector<1x32xf32>
    %18 = arith.mulf %16, %17 : vector<1x32xf32>
    %19 = vector.broadcast %18 : vector<1x32xf32> to vector<32x32xf32>
    %20 = arith.mulf %8, %19 : vector<32x32xf32>
    %c0_10 = arith.constant 0 : index
    %c0_11 = arith.constant 0 : index
    %21 = vector.load %arg4[%c0_10, %c0_11] : memref<1x32xf32, #tpu.memory_space<vmem>>, vector<1x32xf32>
    %22 = vector.broadcast %21 : vector<1x32xf32> to vector<32x32xf32>
    %23 = arith.addf %20, %22 : vector<32x32xf32>
    %cst_12 = arith.constant 0.000000e+00 : f32
    %24 = vector.broadcast %cst_12 : f32 to vector<32x32xf32>
    %25 = arith.maximumf %23, %24 : vector<32x32xf32>
    %c0_13 = arith.constant 0 : index
    %c0_14 = arith.constant 0 : index
    %26 = vector.load %arg5[%c0_13, %c0_14] : memref<32x32xf32, #tpu.memory_space<vmem>>, vector<32x32xf32>
    tpu.vector_store %arg5[%c0_13, %c0_14], %25 {strides = array<i32>} : memref<32x32xf32, #tpu.memory_space<vmem>>, vector<32x32xf32>,
    return
  }
  func.func @transform_0(%arg0: i32) -> (i32, i32) {
    %c0_i32 = arith.constant 0 : i32
    %c0_i32_0 = arith.constant 0 : i32
    %c0_i32_1 = arith.constant 0 : i32
    return %c0_i32, %c0_i32_0 : i32, i32
  }
  func.func @transform_1(%arg0: i32) -> (i32, i32) {
    %c0_i32 = arith.constant 0 : i32
    %c0_i32_0 = arith.constant 0 : i32
    %c0_i32_1 = arith.constant 0 : i32
    return %c0_i32, %c0_i32_0 : i32, i32
  }
  func.func @transform_2(%arg0: i32) -> (i32, i32) {
    %c0_i32 = arith.constant 0 : i32
    %c0_i32_0 = arith.constant 0 : i32
    %c0_i32_1 = arith.constant 0 : i32
    return %c0_i32, %c0_i32_0 : i32, i32
  }
  func.func @transform_3(%arg0: i32) -> (i32, i32) {
    %c0_i32 = arith.constant 0 : i32
    %c0_i32_0 = arith.constant 0 : i32
    %c0_i32_1 = arith.constant 0 : i32
    return %c0_i32, %c0_i32_0 : i32, i32
  }
  func.func @transform_4(%arg0: i32) -> (i32, i32) {
    %c0_i32 = arith.constant 0 : i32
    %c0_i32_0 = arith.constant 0 : i32
    %c0_i32_1 = arith.constant 0 : i32
    return %c0_i32, %c0_i32_0 : i32, i32
  }
}

module attributes {stable_mosaic.version = 11 : i64} {
  func.func @_conv_bn_kernel(%arg0: i32, %arg1: memref<8x288xbf16, #tpu.memory_space<vmem>>, %arg2: memref<288x32xbf16, #tpu.memory_space<vmem>>, %arg3: memref<1x32xf32, #tpu.memory_space<vmem>>, %arg4: memref<1x32xf32, #tpu.memory_space<vmem>>, %arg5: memref<8x32xf32, #tpu.memory_space<vmem>>) attributes {dimension_semantics = [#tpu.dimension_semantics<arbitrary>], iteration_bounds = array<i64: 1>, scalar_prefetch = 0 : i64, scratch_operands = 0 : i64, tpu.core_type = #tpu.core_type<tc>, window_params = [{pipeline_mode = #tpu.pipeline_mode<synchronous>, transform_indices = @transform_0, window_bounds = array<i64: 8, 288>}, {pipeline_mode = #tpu.pipeline_mode<synchronous>, transform_indices = @transform_1, window_bounds = array<i64: 288, 32>}, {pipeline_mode = #tpu.pipeline_mode<synchronous>, transform_indices = @transform_2, window_bounds = array<i64: 1, 32>}, {pipeline_mode = #tpu.pipeline_mode<synchronous>, transform_indices = @transform_3, window_bounds = array<i64: 1, 32>}, {pipeline_mode = #tpu.pipeline_mode<synchronous>, transform_indices = @transform_4, window_bounds = array<i64: 8, 32>}]} {
    %c0 = arith.constant 0 : index
    %c0_0 = arith.constant 0 : index
    %0 = vector.load %arg1[%c0, %c0_0] : memref<8x288xbf16, #tpu.memory_space<vmem>>, vector<8x288xbf16>
    %c0_1 = arith.constant 0 : index
    %c0_2 = arith.constant 0 : index
    %1 = vector.load %arg2[%c0_1, %c0_2] : memref<288x32xbf16, #tpu.memory_space<vmem>>, vector<288x32xbf16>
    %cst = arith.constant dense<0.000000e+00> : vector<8x32xf32>
    %2 = tpu.matmul %0, %1, %cst {dimension_numbers = #tpu.dot_dimension_numbers<[1], [0], [0], [1], [0, 0, 1, 1], [], []>} : vector<8x288xbf16>, vector<288x32xbf16>, vector<8x32xf32> -> vector<8x32xf32>
    %cst_3 = arith.constant dense<0.000000e+00> : vector<32xf32>
    %3 = vector.multi_reduction <add>, %2, %cst_3 [0] : vector<8x32xf32> to vector<32xf32>
    %4 = vector.shape_cast %3 : vector<32xf32> to vector<1x32xf32>
    %cst_4 = arith.constant 1.250000e-01 : f32
    %5 = vector.broadcast %cst_4 : f32 to vector<1x32xf32>
    %6 = arith.mulf %4, %5 : vector<1x32xf32>
    %7 = vector.broadcast %6 : vector<1x32xf32> to vector<8x32xf32>
    %8 = arith.subf %2, %7 : vector<8x32xf32>
    %9 = arith.mulf %8, %8 : vector<8x32xf32>
    %cst_5 = arith.constant dense<0.000000e+00> : vector<32xf32>
    %10 = vector.multi_reduction <add>, %9, %cst_5 [0] : vector<8x32xf32> to vector<32xf32>
    %11 = vector.shape_cast %10 : vector<32xf32> to vector<1x32xf32>
    %cst_6 = arith.constant 1.250000e-01 : f32
    %12 = vector.broadcast %cst_6 : f32 to vector<1x32xf32>
    %13 = arith.mulf %11, %12 : vector<1x32xf32>
    %cst_7 = arith.constant 9.99999974E-6 : f32
    %14 = vector.broadcast %cst_7 : f32 to vector<1x32xf32>
    %15 = arith.addf %13, %14 : vector<1x32xf32>
    %16 = math.rsqrt %15 : vector<1x32xf32>
    %c0_8 = arith.constant 0 : index
    %c0_9 = arith.constant 0 : index
    %17 = vector.load %arg3[%c0_8, %c0_9] : memref<1x32xf32, #tpu.memory_space<vmem>>, vector<1x32xf32>
    %18 = arith.mulf %16, %17 : vector<1x32xf32>
    %19 = vector.broadcast %18 : vector<1x32xf32> to vector<8x32xf32>
    %20 = arith.mulf %8, %19 : vector<8x32xf32>
    %c0_10 = arith.constant 0 : index
    %c0_11 = arith.constant 0 : index
    %21 = vector.load %arg4[%c0_10, %c0_11] : memref<1x32xf32, #tpu.memory_space<vmem>>, vector<1x32xf32>
    %22 = vector.broadcast %21 : vector<1x32xf32> to vector<8x32xf32>
    %23 = arith.addf %20, %22 : vector<8x32xf32>
    %cst_12 = arith.constant 0.000000e+00 : f32
    %24 = vector.broadcast %cst_12 : f32 to vector<8x32xf32>
    %25 = arith.maximumf %23, %24 : vector<8x32xf32>
    %c0_13 = arith.constant 0 : index
    %c0_14 = arith.constant 0 : index
    %26 = vector.load %arg5[%c0_13, %c0_14] : memref<8x32xf32, #tpu.memory_space<vmem>>, vector<8x32xf32>
    tpu.vector_store %arg5[%c0_13, %c0_14], %25 {strides = array<i32>} : memref<8x32xf32, #tpu.memory_space<vmem>>, vector<8x32xf32>,
    return
  }
  func.func @transform_0(%arg0: i32) -> (i32, i32) {
    %c0_i32 = arith.constant 0 : i32
    %c0_i32_0 = arith.constant 0 : i32
    %c0_i32_1 = arith.constant 0 : i32
    return %c0_i32, %c0_i32_0 : i32, i32
  }
  func.func @transform_1(%arg0: i32) -> (i32, i32) {
    %c0_i32 = arith.constant 0 : i32
    %c0_i32_0 = arith.constant 0 : i32
    %c0_i32_1 = arith.constant 0 : i32
    return %c0_i32, %c0_i32_0 : i32, i32
  }
  func.func @transform_2(%arg0: i32) -> (i32, i32) {
    %c0_i32 = arith.constant 0 : i32
    %c0_i32_0 = arith.constant 0 : i32
    %c0_i32_1 = arith.constant 0 : i32
    return %c0_i32, %c0_i32_0 : i32, i32
  }
  func.func @transform_3(%arg0: i32) -> (i32, i32) {
    %c0_i32 = arith.constant 0 : i32
    %c0_i32_0 = arith.constant 0 : i32
    %c0_i32_1 = arith.constant 0 : i32
    return %c0_i32, %c0_i32_0 : i32, i32
  }
  func.func @transform_4(%arg0: i32) -> (i32, i32) {
    %c0_i32 = arith.constant 0 : i32
    %c0_i32_0 = arith.constant 0 : i32
    %c0_i32_1 = arith.constant 0 : i32
    return %c0_i32, %c0_i32_0 : i32, i32
  }
}

module attributes {stable_mosaic.version = 11 : i64} {
  func.func @_conv_bn_kernel(%arg0: i32, %arg1: memref<8x64xbf16, #tpu.memory_space<vmem>>, %arg2: memref<64x128xbf16, #tpu.memory_space<vmem>>, %arg3: memref<1x128xf32, #tpu.memory_space<vmem>>, %arg4: memref<1x128xf32, #tpu.memory_space<vmem>>, %arg5: memref<8x128xf32, #tpu.memory_space<vmem>>) attributes {dimension_semantics = [#tpu.dimension_semantics<arbitrary>], iteration_bounds = array<i64: 1>, scalar_prefetch = 0 : i64, scratch_operands = 0 : i64, tpu.core_type = #tpu.core_type<tc>, window_params = [{pipeline_mode = #tpu.pipeline_mode<synchronous>, transform_indices = @transform_0, window_bounds = array<i64: 8, 64>}, {pipeline_mode = #tpu.pipeline_mode<synchronous>, transform_indices = @transform_1, window_bounds = array<i64: 64, 128>}, {pipeline_mode = #tpu.pipeline_mode<synchronous>, transform_indices = @transform_2, window_bounds = array<i64: 1, 128>}, {pipeline_mode = #tpu.pipeline_mode<synchronous>, transform_indices = @transform_3, window_bounds = array<i64: 1, 128>}, {pipeline_mode = #tpu.pipeline_mode<synchronous>, transform_indices = @transform_4, window_bounds = array<i64: 8, 128>}]} {
    %c0 = arith.constant 0 : index
    %c0_0 = arith.constant 0 : index
    %0 = vector.load %arg1[%c0, %c0_0] : memref<8x64xbf16, #tpu.memory_space<vmem>>, vector<8x64xbf16>
    %c0_1 = arith.constant 0 : index
    %c0_2 = arith.constant 0 : index
    %1 = vector.load %arg2[%c0_1, %c0_2] : memref<64x128xbf16, #tpu.memory_space<vmem>>, vector<64x128xbf16>
    %cst = arith.constant dense<0.000000e+00> : vector<8x128xf32>
    %2 = tpu.matmul %0, %1, %cst {dimension_numbers = #tpu.dot_dimension_numbers<[1], [0], [0], [1], [0, 0, 1, 1], [], []>} : vector<8x64xbf16>, vector<64x128xbf16>, vector<8x128xf32> -> vector<8x128xf32>
    %cst_3 = arith.constant dense<0.000000e+00> : vector<128xf32>
    %3 = vector.multi_reduction <add>, %2, %cst_3 [0] : vector<8x128xf32> to vector<128xf32>
    %4 = vector.shape_cast %3 : vector<128xf32> to vector<1x128xf32>
    %cst_4 = arith.constant 1.250000e-01 : f32
    %5 = vector.broadcast %cst_4 : f32 to vector<1x128xf32>
    %6 = arith.mulf %4, %5 : vector<1x128xf32>
    %7 = vector.broadcast %6 : vector<1x128xf32> to vector<8x128xf32>
    %8 = arith.subf %2, %7 : vector<8x128xf32>
    %9 = arith.mulf %8, %8 : vector<8x128xf32>
    %cst_5 = arith.constant dense<0.000000e+00> : vector<128xf32>
    %10 = vector.multi_reduction <add>, %9, %cst_5 [0] : vector<8x128xf32> to vector<128xf32>
    %11 = vector.shape_cast %10 : vector<128xf32> to vector<1x128xf32>
    %cst_6 = arith.constant 1.250000e-01 : f32
    %12 = vector.broadcast %cst_6 : f32 to vector<1x128xf32>
    %13 = arith.mulf %11, %12 : vector<1x128xf32>
    %cst_7 = arith.constant 9.99999974E-6 : f32
    %14 = vector.broadcast %cst_7 : f32 to vector<1x128xf32>
    %15 = arith.addf %13, %14 : vector<1x128xf32>
    %16 = math.rsqrt %15 : vector<1x128xf32>
    %c0_8 = arith.constant 0 : index
    %c0_9 = arith.constant 0 : index
    %17 = vector.load %arg3[%c0_8, %c0_9] : memref<1x128xf32, #tpu.memory_space<vmem>>, vector<1x128xf32>
    %18 = arith.mulf %16, %17 : vector<1x128xf32>
    %19 = vector.broadcast %18 : vector<1x128xf32> to vector<8x128xf32>
    %20 = arith.mulf %8, %19 : vector<8x128xf32>
    %c0_10 = arith.constant 0 : index
    %c0_11 = arith.constant 0 : index
    %21 = vector.load %arg4[%c0_10, %c0_11] : memref<1x128xf32, #tpu.memory_space<vmem>>, vector<1x128xf32>
    %22 = vector.broadcast %21 : vector<1x128xf32> to vector<8x128xf32>
    %23 = arith.addf %20, %22 : vector<8x128xf32>
    %c0_12 = arith.constant 0 : index
    %c0_13 = arith.constant 0 : index
    %24 = vector.load %arg5[%c0_12, %c0_13] : memref<8x128xf32, #tpu.memory_space<vmem>>, vector<8x128xf32>
    tpu.vector_store %arg5[%c0_12, %c0_13], %23 {strides = array<i32>} : memref<8x128xf32, #tpu.memory_space<vmem>>, vector<8x128xf32>,
    return
  }
  func.func @transform_0(%arg0: i32) -> (i32, i32) {
    %c0_i32 = arith.constant 0 : i32
    %c0_i32_0 = arith.constant 0 : i32
    %c0_i32_1 = arith.constant 0 : i32
    return %c0_i32, %c0_i32_0 : i32, i32
  }
  func.func @transform_1(%arg0: i32) -> (i32, i32) {
    %c0_i32 = arith.constant 0 : i32
    %c0_i32_0 = arith.constant 0 : i32
    %c0_i32_1 = arith.constant 0 : i32
    return %c0_i32, %c0_i32_0 : i32, i32
  }
  func.func @transform_2(%arg0: i32) -> (i32, i32) {
    %c0_i32 = arith.constant 0 : i32
    %c0_i32_0 = arith.constant 0 : i32
    %c0_i32_1 = arith.constant 0 : i32
    return %c0_i32, %c0_i32_0 : i32, i32
  }
  func.func @transform_3(%arg0: i32) -> (i32, i32) {
    %c0_i32 = arith.constant 0 : i32
    %c0_i32_0 = arith.constant 0 : i32
    %c0_i32_1 = arith.constant 0 : i32
    return %c0_i32, %c0_i32_0 : i32, i32
  }
  func.func @transform_4(%arg0: i32) -> (i32, i32) {
    %c0_i32 = arith.constant 0 : i32
    %c0_i32_0 = arith.constant 0 : i32
    %c0_i32_1 = arith.constant 0 : i32
    return %c0_i32, %c0_i32_0 : i32, i32
  }
}

module attributes {stable_mosaic.version = 11 : i64} {
  func.func @_conv_bn_kernel(%arg0: i32, %arg1: memref<8x128xbf16, #tpu.memory_space<vmem>>, %arg2: memref<128x32xbf16, #tpu.memory_space<vmem>>, %arg3: memref<1x32xf32, #tpu.memory_space<vmem>>, %arg4: memref<1x32xf32, #tpu.memory_space<vmem>>, %arg5: memref<8x32xf32, #tpu.memory_space<vmem>>) attributes {dimension_semantics = [#tpu.dimension_semantics<arbitrary>], iteration_bounds = array<i64: 1>, scalar_prefetch = 0 : i64, scratch_operands = 0 : i64, tpu.core_type = #tpu.core_type<tc>, window_params = [{pipeline_mode = #tpu.pipeline_mode<synchronous>, transform_indices = @transform_0, window_bounds = array<i64: 8, 128>}, {pipeline_mode = #tpu.pipeline_mode<synchronous>, transform_indices = @transform_1, window_bounds = array<i64: 128, 32>}, {pipeline_mode = #tpu.pipeline_mode<synchronous>, transform_indices = @transform_2, window_bounds = array<i64: 1, 32>}, {pipeline_mode = #tpu.pipeline_mode<synchronous>, transform_indices = @transform_3, window_bounds = array<i64: 1, 32>}, {pipeline_mode = #tpu.pipeline_mode<synchronous>, transform_indices = @transform_4, window_bounds = array<i64: 8, 32>}]} {
    %c0 = arith.constant 0 : index
    %c0_0 = arith.constant 0 : index
    %0 = vector.load %arg1[%c0, %c0_0] : memref<8x128xbf16, #tpu.memory_space<vmem>>, vector<8x128xbf16>
    %c0_1 = arith.constant 0 : index
    %c0_2 = arith.constant 0 : index
    %1 = vector.load %arg2[%c0_1, %c0_2] : memref<128x32xbf16, #tpu.memory_space<vmem>>, vector<128x32xbf16>
    %cst = arith.constant dense<0.000000e+00> : vector<8x32xf32>
    %2 = tpu.matmul %0, %1, %cst {dimension_numbers = #tpu.dot_dimension_numbers<[1], [0], [0], [1], [0, 0, 1, 1], [], []>} : vector<8x128xbf16>, vector<128x32xbf16>, vector<8x32xf32> -> vector<8x32xf32>
    %cst_3 = arith.constant dense<0.000000e+00> : vector<32xf32>
    %3 = vector.multi_reduction <add>, %2, %cst_3 [0] : vector<8x32xf32> to vector<32xf32>
    %4 = vector.shape_cast %3 : vector<32xf32> to vector<1x32xf32>
    %cst_4 = arith.constant 1.250000e-01 : f32
    %5 = vector.broadcast %cst_4 : f32 to vector<1x32xf32>
    %6 = arith.mulf %4, %5 : vector<1x32xf32>
    %7 = vector.broadcast %6 : vector<1x32xf32> to vector<8x32xf32>
    %8 = arith.subf %2, %7 : vector<8x32xf32>
    %9 = arith.mulf %8, %8 : vector<8x32xf32>
    %cst_5 = arith.constant dense<0.000000e+00> : vector<32xf32>
    %10 = vector.multi_reduction <add>, %9, %cst_5 [0] : vector<8x32xf32> to vector<32xf32>
    %11 = vector.shape_cast %10 : vector<32xf32> to vector<1x32xf32>
    %cst_6 = arith.constant 1.250000e-01 : f32
    %12 = vector.broadcast %cst_6 : f32 to vector<1x32xf32>
    %13 = arith.mulf %11, %12 : vector<1x32xf32>
    %cst_7 = arith.constant 9.99999974E-6 : f32
    %14 = vector.broadcast %cst_7 : f32 to vector<1x32xf32>
    %15 = arith.addf %13, %14 : vector<1x32xf32>
    %16 = math.rsqrt %15 : vector<1x32xf32>
    %c0_8 = arith.constant 0 : index
    %c0_9 = arith.constant 0 : index
    %17 = vector.load %arg3[%c0_8, %c0_9] : memref<1x32xf32, #tpu.memory_space<vmem>>, vector<1x32xf32>
    %18 = arith.mulf %16, %17 : vector<1x32xf32>
    %19 = vector.broadcast %18 : vector<1x32xf32> to vector<8x32xf32>
    %20 = arith.mulf %8, %19 : vector<8x32xf32>
    %c0_10 = arith.constant 0 : index
    %c0_11 = arith.constant 0 : index
    %21 = vector.load %arg4[%c0_10, %c0_11] : memref<1x32xf32, #tpu.memory_space<vmem>>, vector<1x32xf32>
    %22 = vector.broadcast %21 : vector<1x32xf32> to vector<8x32xf32>
    %23 = arith.addf %20, %22 : vector<8x32xf32>
    %cst_12 = arith.constant 0.000000e+00 : f32
    %24 = vector.broadcast %cst_12 : f32 to vector<8x32xf32>
    %25 = arith.maximumf %23, %24 : vector<8x32xf32>
    %c0_13 = arith.constant 0 : index
    %c0_14 = arith.constant 0 : index
    %26 = vector.load %arg5[%c0_13, %c0_14] : memref<8x32xf32, #tpu.memory_space<vmem>>, vector<8x32xf32>
    tpu.vector_store %arg5[%c0_13, %c0_14], %25 {strides = array<i32>} : memref<8x32xf32, #tpu.memory_space<vmem>>, vector<8x32xf32>,
    return
  }
  func.func @transform_0(%arg0: i32) -> (i32, i32) {
    %c0_i32 = arith.constant 0 : i32
    %c0_i32_0 = arith.constant 0 : i32
    %c0_i32_1 = arith.constant 0 : i32
    return %c0_i32, %c0_i32_0 : i32, i32
  }
  func.func @transform_1(%arg0: i32) -> (i32, i32) {
    %c0_i32 = arith.constant 0 : i32
    %c0_i32_0 = arith.constant 0 : i32
    %c0_i32_1 = arith.constant 0 : i32
    return %c0_i32, %c0_i32_0 : i32, i32
  }
  func.func @transform_2(%arg0: i32) -> (i32, i32) {
    %c0_i32 = arith.constant 0 : i32
    %c0_i32_0 = arith.constant 0 : i32
    %c0_i32_1 = arith.constant 0 : i32
    return %c0_i32, %c0_i32_0 : i32, i32
  }
  func.func @transform_3(%arg0: i32) -> (i32, i32) {
    %c0_i32 = arith.constant 0 : i32
    %c0_i32_0 = arith.constant 0 : i32
    %c0_i32_1 = arith.constant 0 : i32
    return %c0_i32, %c0_i32_0 : i32, i32
  }
  func.func @transform_4(%arg0: i32) -> (i32, i32) {
    %c0_i32 = arith.constant 0 : i32
    %c0_i32_0 = arith.constant 0 : i32
    %c0_i32_1 = arith.constant 0 : i32
    return %c0_i32, %c0_i32_0 : i32, i32
  }
}

module attributes {stable_mosaic.version = 11 : i64} {
  func.func @_conv_bn_add_relu_kernel(%arg0: i32, %arg1: memref<8x32xbf16, #tpu.memory_space<vmem>>, %arg2: memref<32x128xbf16, #tpu.memory_space<vmem>>, %arg3: memref<1x128xf32, #tpu.memory_space<vmem>>, %arg4: memref<1x128xf32, #tpu.memory_space<vmem>>, %arg5: memref<8x128xf32, #tpu.memory_space<vmem>>, %arg6: memref<8x128xf32, #tpu.memory_space<vmem>>) attributes {dimension_semantics = [#tpu.dimension_semantics<arbitrary>], iteration_bounds = array<i64: 1>, scalar_prefetch = 0 : i64, scratch_operands = 0 : i64, tpu.core_type = #tpu.core_type<tc>, window_params = [{pipeline_mode = #tpu.pipeline_mode<synchronous>, transform_indices = @transform_0, window_bounds = array<i64: 8, 32>}, {pipeline_mode = #tpu.pipeline_mode<synchronous>, transform_indices = @transform_1, window_bounds = array<i64: 32, 128>}, {pipeline_mode = #tpu.pipeline_mode<synchronous>, transform_indices = @transform_2, window_bounds = array<i64: 1, 128>}, {pipeline_mode = #tpu.pipeline_mode<synchronous>, transform_indices = @transform_3, window_bounds = array<i64: 1, 128>}, {pipeline_mode = #tpu.pipeline_mode<synchronous>, transform_indices = @transform_4, window_bounds = array<i64: 8, 128>}, {pipeline_mode = #tpu.pipeline_mode<synchronous>, transform_indices = @transform_5, window_bounds = array<i64: 8, 128>}]} {
    %c0 = arith.constant 0 : index
    %c0_0 = arith.constant 0 : index
    %0 = vector.load %arg1[%c0, %c0_0] : memref<8x32xbf16, #tpu.memory_space<vmem>>, vector<8x32xbf16>
    %c0_1 = arith.constant 0 : index
    %c0_2 = arith.constant 0 : index
    %1 = vector.load %arg2[%c0_1, %c0_2] : memref<32x128xbf16, #tpu.memory_space<vmem>>, vector<32x128xbf16>
    %cst = arith.constant dense<0.000000e+00> : vector<8x128xf32>
    %2 = tpu.matmul %0, %1, %cst {dimension_numbers = #tpu.dot_dimension_numbers<[1], [0], [0], [1], [0, 0, 1, 1], [], []>} : vector<8x32xbf16>, vector<32x128xbf16>, vector<8x128xf32> -> vector<8x128xf32>
    %cst_3 = arith.constant dense<0.000000e+00> : vector<128xf32>
    %3 = vector.multi_reduction <add>, %2, %cst_3 [0] : vector<8x128xf32> to vector<128xf32>
    %4 = vector.shape_cast %3 : vector<128xf32> to vector<1x128xf32>
    %cst_4 = arith.constant 1.250000e-01 : f32
    %5 = vector.broadcast %cst_4 : f32 to vector<1x128xf32>
    %6 = arith.mulf %4, %5 : vector<1x128xf32>
    %7 = vector.broadcast %6 : vector<1x128xf32> to vector<8x128xf32>
    %8 = arith.subf %2, %7 : vector<8x128xf32>
    %9 = arith.mulf %8, %8 : vector<8x128xf32>
    %cst_5 = arith.constant dense<0.000000e+00> : vector<128xf32>
    %10 = vector.multi_reduction <add>, %9, %cst_5 [0] : vector<8x128xf32> to vector<128xf32>
    %11 = vector.shape_cast %10 : vector<128xf32> to vector<1x128xf32>
    %cst_6 = arith.constant 1.250000e-01 : f32
    %12 = vector.broadcast %cst_6 : f32 to vector<1x128xf32>
    %13 = arith.mulf %11, %12 : vector<1x128xf32>
    %cst_7 = arith.constant 9.99999974E-6 : f32
    %14 = vector.broadcast %cst_7 : f32 to vector<1x128xf32>
    %15 = arith.addf %13, %14 : vector<1x128xf32>
    %16 = math.rsqrt %15 : vector<1x128xf32>
    %c0_8 = arith.constant 0 : index
    %c0_9 = arith.constant 0 : index
    %17 = vector.load %arg3[%c0_8, %c0_9] : memref<1x128xf32, #tpu.memory_space<vmem>>, vector<1x128xf32>
    %18 = arith.mulf %16, %17 : vector<1x128xf32>
    %19 = vector.broadcast %18 : vector<1x128xf32> to vector<8x128xf32>
    %20 = arith.mulf %8, %19 : vector<8x128xf32>
    %c0_10 = arith.constant 0 : index
    %c0_11 = arith.constant 0 : index
    %21 = vector.load %arg4[%c0_10, %c0_11] : memref<1x128xf32, #tpu.memory_space<vmem>>, vector<1x128xf32>
    %22 = vector.broadcast %21 : vector<1x128xf32> to vector<8x128xf32>
    %23 = arith.addf %20, %22 : vector<8x128xf32>
    %c0_12 = arith.constant 0 : index
    %c0_13 = arith.constant 0 : index
    %24 = vector.load %arg5[%c0_12, %c0_13] : memref<8x128xf32, #tpu.memory_space<vmem>>, vector<8x128xf32>
    %25 = arith.addf %23, %24 : vector<8x128xf32>
    %cst_14 = arith.constant 0.000000e+00 : f32
    %26 = vector.broadcast %cst_14 : f32 to vector<8x128xf32>
    %27 = arith.maximumf %25, %26 : vector<8x128xf32>
    %c0_15 = arith.constant 0 : index
    %c0_16 = arith.constant 0 : index
    %28 = vector.load %arg6[%c0_15, %c0_16] : memref<8x128xf32, #tpu.memory_space<vmem>>, vector<8x128xf32>
    tpu.vector_store %arg6[%c0_15, %c0_16], %27 {strides = array<i32>} : memref<8x128xf32, #tpu.memory_space<vmem>>, vector<8x128xf32>,
    return
  }
  func.func @transform_0(%arg0: i32) -> (i32, i32) {
    %c0_i32 = arith.constant 0 : i32
    %c0_i32_0 = arith.constant 0 : i32
    %c0_i32_1 = arith.constant 0 : i32
    return %c0_i32, %c0_i32_0 : i32, i32
  }
  func.func @transform_1(%arg0: i32) -> (i32, i32) {
    %c0_i32 = arith.constant 0 : i32
    %c0_i32_0 = arith.constant 0 : i32
    %c0_i32_1 = arith.constant 0 : i32
    return %c0_i32, %c0_i32_0 : i32, i32
  }
  func.func @transform_2(%arg0: i32) -> (i32, i32) {
    %c0_i32 = arith.constant 0 : i32
    %c0_i32_0 = arith.constant 0 : i32
    %c0_i32_1 = arith.constant 0 : i32
    return %c0_i32, %c0_i32_0 : i32, i32
  }
  func.func @transform_3(%arg0: i32) -> (i32, i32) {
    %c0_i32 = arith.constant 0 : i32
    %c0_i32_0 = arith.constant 0 : i32
    %c0_i32_1 = arith.constant 0 : i32
    return %c0_i32, %c0_i32_0 : i32, i32
  }
  func.func @transform_4(%arg0: i32) -> (i32, i32) {
    %c0_i32 = arith.constant 0 : i32
    %c0_i32_0 = arith.constant 0 : i32
    %c0_i32_1 = arith.constant 0 : i32
    return %c0_i32, %c0_i32_0 : i32, i32
  }
  func.func @transform_5(%arg0: i32) -> (i32, i32) {
    %c0_i32 = arith.constant 0 : i32
    %c0_i32_0 = arith.constant 0 : i32
    %c0_i32_1 = arith.constant 0 : i32
    return %c0_i32, %c0_i32_0 : i32, i32
  }
}

module attributes {stable_mosaic.version = 11 : i64} {
  func.func @_conv_bn_kernel(%arg0: i32, %arg1: memref<8x128xbf16, #tpu.memory_space<vmem>>, %arg2: memref<128x64xbf16, #tpu.memory_space<vmem>>, %arg3: memref<1x64xf32, #tpu.memory_space<vmem>>, %arg4: memref<1x64xf32, #tpu.memory_space<vmem>>, %arg5: memref<8x64xf32, #tpu.memory_space<vmem>>) attributes {dimension_semantics = [#tpu.dimension_semantics<arbitrary>], iteration_bounds = array<i64: 1>, scalar_prefetch = 0 : i64, scratch_operands = 0 : i64, tpu.core_type = #tpu.core_type<tc>, window_params = [{pipeline_mode = #tpu.pipeline_mode<synchronous>, transform_indices = @transform_0, window_bounds = array<i64: 8, 128>}, {pipeline_mode = #tpu.pipeline_mode<synchronous>, transform_indices = @transform_1, window_bounds = array<i64: 128, 64>}, {pipeline_mode = #tpu.pipeline_mode<synchronous>, transform_indices = @transform_2, window_bounds = array<i64: 1, 64>}, {pipeline_mode = #tpu.pipeline_mode<synchronous>, transform_indices = @transform_3, window_bounds = array<i64: 1, 64>}, {pipeline_mode = #tpu.pipeline_mode<synchronous>, transform_indices = @transform_4, window_bounds = array<i64: 8, 64>}]} {
    %c0 = arith.constant 0 : index
    %c0_0 = arith.constant 0 : index
    %0 = vector.load %arg1[%c0, %c0_0] : memref<8x128xbf16, #tpu.memory_space<vmem>>, vector<8x128xbf16>
    %c0_1 = arith.constant 0 : index
    %c0_2 = arith.constant 0 : index
    %1 = vector.load %arg2[%c0_1, %c0_2] : memref<128x64xbf16, #tpu.memory_space<vmem>>, vector<128x64xbf16>
    %cst = arith.constant dense<0.000000e+00> : vector<8x64xf32>
    %2 = tpu.matmul %0, %1, %cst {dimension_numbers = #tpu.dot_dimension_numbers<[1], [0], [0], [1], [0, 0, 1, 1], [], []>} : vector<8x128xbf16>, vector<128x64xbf16>, vector<8x64xf32> -> vector<8x64xf32>
    %cst_3 = arith.constant dense<0.000000e+00> : vector<64xf32>
    %3 = vector.multi_reduction <add>, %2, %cst_3 [0] : vector<8x64xf32> to vector<64xf32>
    %4 = vector.shape_cast %3 : vector<64xf32> to vector<1x64xf32>
    %cst_4 = arith.constant 1.250000e-01 : f32
    %5 = vector.broadcast %cst_4 : f32 to vector<1x64xf32>
    %6 = arith.mulf %4, %5 : vector<1x64xf32>
    %7 = vector.broadcast %6 : vector<1x64xf32> to vector<8x64xf32>
    %8 = arith.subf %2, %7 : vector<8x64xf32>
    %9 = arith.mulf %8, %8 : vector<8x64xf32>
    %cst_5 = arith.constant dense<0.000000e+00> : vector<64xf32>
    %10 = vector.multi_reduction <add>, %9, %cst_5 [0] : vector<8x64xf32> to vector<64xf32>
    %11 = vector.shape_cast %10 : vector<64xf32> to vector<1x64xf32>
    %cst_6 = arith.constant 1.250000e-01 : f32
    %12 = vector.broadcast %cst_6 : f32 to vector<1x64xf32>
    %13 = arith.mulf %11, %12 : vector<1x64xf32>
    %cst_7 = arith.constant 9.99999974E-6 : f32
    %14 = vector.broadcast %cst_7 : f32 to vector<1x64xf32>
    %15 = arith.addf %13, %14 : vector<1x64xf32>
    %16 = math.rsqrt %15 : vector<1x64xf32>
    %c0_8 = arith.constant 0 : index
    %c0_9 = arith.constant 0 : index
    %17 = vector.load %arg3[%c0_8, %c0_9] : memref<1x64xf32, #tpu.memory_space<vmem>>, vector<1x64xf32>
    %18 = arith.mulf %16, %17 : vector<1x64xf32>
    %19 = vector.broadcast %18 : vector<1x64xf32> to vector<8x64xf32>
    %20 = arith.mulf %8, %19 : vector<8x64xf32>
    %c0_10 = arith.constant 0 : index
    %c0_11 = arith.constant 0 : index
    %21 = vector.load %arg4[%c0_10, %c0_11] : memref<1x64xf32, #tpu.memory_space<vmem>>, vector<1x64xf32>
    %22 = vector.broadcast %21 : vector<1x64xf32> to vector<8x64xf32>
    %23 = arith.addf %20, %22 : vector<8x64xf32>
    %cst_12 = arith.constant 0.000000e+00 : f32
    %24 = vector.broadcast %cst_12 : f32 to vector<8x64xf32>
    %25 = arith.maximumf %23, %24 : vector<8x64xf32>
    %c0_13 = arith.constant 0 : index
    %c0_14 = arith.constant 0 : index
    %26 = vector.load %arg5[%c0_13, %c0_14] : memref<8x64xf32, #tpu.memory_space<vmem>>, vector<8x64xf32>
    tpu.vector_store %arg5[%c0_13, %c0_14], %25 {strides = array<i32>} : memref<8x64xf32, #tpu.memory_space<vmem>>, vector<8x64xf32>,
    return
  }
  func.func @transform_0(%arg0: i32) -> (i32, i32) {
    %c0_i32 = arith.constant 0 : i32
    %c0_i32_0 = arith.constant 0 : i32
    %c0_i32_1 = arith.constant 0 : i32
    return %c0_i32, %c0_i32_0 : i32, i32
  }
  func.func @transform_1(%arg0: i32) -> (i32, i32) {
    %c0_i32 = arith.constant 0 : i32
    %c0_i32_0 = arith.constant 0 : i32
    %c0_i32_1 = arith.constant 0 : i32
    return %c0_i32, %c0_i32_0 : i32, i32
  }
  func.func @transform_2(%arg0: i32) -> (i32, i32) {
    %c0_i32 = arith.constant 0 : i32
    %c0_i32_0 = arith.constant 0 : i32
    %c0_i32_1 = arith.constant 0 : i32
    return %c0_i32, %c0_i32_0 : i32, i32
  }
  func.func @transform_3(%arg0: i32) -> (i32, i32) {
    %c0_i32 = arith.constant 0 : i32
    %c0_i32_0 = arith.constant 0 : i32
    %c0_i32_1 = arith.constant 0 : i32
    return %c0_i32, %c0_i32_0 : i32, i32
  }
  func.func @transform_4(%arg0: i32) -> (i32, i32) {
    %c0_i32 = arith.constant 0 : i32
    %c0_i32_0 = arith.constant 0 : i32
    %c0_i32_1 = arith.constant 0 : i32
    return %c0_i32, %c0_i32_0 : i32, i32
  }
}

module attributes {stable_mosaic.version = 11 : i64} {
  func.func @_conv_bn_kernel(%arg0: i32, %arg1: memref<2x576xbf16, #tpu.memory_space<vmem>>, %arg2: memref<576x64xbf16, #tpu.memory_space<vmem>>, %arg3: memref<1x64xf32, #tpu.memory_space<vmem>>, %arg4: memref<1x64xf32, #tpu.memory_space<vmem>>, %arg5: memref<2x64xf32, #tpu.memory_space<vmem>>) attributes {dimension_semantics = [#tpu.dimension_semantics<arbitrary>], iteration_bounds = array<i64: 1>, scalar_prefetch = 0 : i64, scratch_operands = 0 : i64, tpu.core_type = #tpu.core_type<tc>, window_params = [{pipeline_mode = #tpu.pipeline_mode<synchronous>, transform_indices = @transform_0, window_bounds = array<i64: 2, 576>}, {pipeline_mode = #tpu.pipeline_mode<synchronous>, transform_indices = @transform_1, window_bounds = array<i64: 576, 64>}, {pipeline_mode = #tpu.pipeline_mode<synchronous>, transform_indices = @transform_2, window_bounds = array<i64: 1, 64>}, {pipeline_mode = #tpu.pipeline_mode<synchronous>, transform_indices = @transform_3, window_bounds = array<i64: 1, 64>}, {pipeline_mode = #tpu.pipeline_mode<synchronous>, transform_indices = @transform_4, window_bounds = array<i64: 2, 64>}]} {
    %c0 = arith.constant 0 : index
    %c0_0 = arith.constant 0 : index
    %0 = vector.load %arg1[%c0, %c0_0] : memref<2x576xbf16, #tpu.memory_space<vmem>>, vector<2x576xbf16>
    %c0_1 = arith.constant 0 : index
    %c0_2 = arith.constant 0 : index
    %1 = vector.load %arg2[%c0_1, %c0_2] : memref<576x64xbf16, #tpu.memory_space<vmem>>, vector<576x64xbf16>
    %cst = arith.constant dense<0.000000e+00> : vector<2x64xf32>
    %2 = tpu.matmul %0, %1, %cst {dimension_numbers = #tpu.dot_dimension_numbers<[1], [0], [0], [1], [0, 0, 1, 1], [], []>} : vector<2x576xbf16>, vector<576x64xbf16>, vector<2x64xf32> -> vector<2x64xf32>
    %cst_3 = arith.constant dense<0.000000e+00> : vector<64xf32>
    %3 = vector.multi_reduction <add>, %2, %cst_3 [0] : vector<2x64xf32> to vector<64xf32>
    %4 = vector.shape_cast %3 : vector<64xf32> to vector<1x64xf32>
    %cst_4 = arith.constant 5.000000e-01 : f32
    %5 = vector.broadcast %cst_4 : f32 to vector<1x64xf32>
    %6 = arith.mulf %4, %5 : vector<1x64xf32>
    %7 = vector.broadcast %6 : vector<1x64xf32> to vector<2x64xf32>
    %8 = arith.subf %2, %7 : vector<2x64xf32>
    %9 = arith.mulf %8, %8 : vector<2x64xf32>
    %cst_5 = arith.constant dense<0.000000e+00> : vector<64xf32>
    %10 = vector.multi_reduction <add>, %9, %cst_5 [0] : vector<2x64xf32> to vector<64xf32>
    %11 = vector.shape_cast %10 : vector<64xf32> to vector<1x64xf32>
    %cst_6 = arith.constant 5.000000e-01 : f32
    %12 = vector.broadcast %cst_6 : f32 to vector<1x64xf32>
    %13 = arith.mulf %11, %12 : vector<1x64xf32>
    %cst_7 = arith.constant 9.99999974E-6 : f32
    %14 = vector.broadcast %cst_7 : f32 to vector<1x64xf32>
    %15 = arith.addf %13, %14 : vector<1x64xf32>
    %16 = math.rsqrt %15 : vector<1x64xf32>
    %c0_8 = arith.constant 0 : index
    %c0_9 = arith.constant 0 : index
    %17 = vector.load %arg3[%c0_8, %c0_9] : memref<1x64xf32, #tpu.memory_space<vmem>>, vector<1x64xf32>
    %18 = arith.mulf %16, %17 : vector<1x64xf32>
    %19 = vector.broadcast %18 : vector<1x64xf32> to vector<2x64xf32>
    %20 = arith.mulf %8, %19 : vector<2x64xf32>
    %c0_10 = arith.constant 0 : index
    %c0_11 = arith.constant 0 : index
    %21 = vector.load %arg4[%c0_10, %c0_11] : memref<1x64xf32, #tpu.memory_space<vmem>>, vector<1x64xf32>
    %22 = vector.broadcast %21 : vector<1x64xf32> to vector<2x64xf32>
    %23 = arith.addf %20, %22 : vector<2x64xf32>
    %cst_12 = arith.constant 0.000000e+00 : f32
    %24 = vector.broadcast %cst_12 : f32 to vector<2x64xf32>
    %25 = arith.maximumf %23, %24 : vector<2x64xf32>
    %c0_13 = arith.constant 0 : index
    %c0_14 = arith.constant 0 : index
    %26 = vector.load %arg5[%c0_13, %c0_14] : memref<2x64xf32, #tpu.memory_space<vmem>>, vector<2x64xf32>
    tpu.vector_store %arg5[%c0_13, %c0_14], %25 {strides = array<i32>} : memref<2x64xf32, #tpu.memory_space<vmem>>, vector<2x64xf32>,
    return
  }
  func.func @transform_0(%arg0: i32) -> (i32, i32) {
    %c0_i32 = arith.constant 0 : i32
    %c0_i32_0 = arith.constant 0 : i32
    %c0_i32_1 = arith.constant 0 : i32
    return %c0_i32, %c0_i32_0 : i32, i32
  }
  func.func @transform_1(%arg0: i32) -> (i32, i32) {
    %c0_i32 = arith.constant 0 : i32
    %c0_i32_0 = arith.constant 0 : i32
    %c0_i32_1 = arith.constant 0 : i32
    return %c0_i32, %c0_i32_0 : i32, i32
  }
  func.func @transform_2(%arg0: i32) -> (i32, i32) {
    %c0_i32 = arith.constant 0 : i32
    %c0_i32_0 = arith.constant 0 : i32
    %c0_i32_1 = arith.constant 0 : i32
    return %c0_i32, %c0_i32_0 : i32, i32
  }
  func.func @transform_3(%arg0: i32) -> (i32, i32) {
    %c0_i32 = arith.constant 0 : i32
    %c0_i32_0 = arith.constant 0 : i32
    %c0_i32_1 = arith.constant 0 : i32
    return %c0_i32, %c0_i32_0 : i32, i32
  }
  func.func @transform_4(%arg0: i32) -> (i32, i32) {
    %c0_i32 = arith.constant 0 : i32
    %c0_i32_0 = arith.constant 0 : i32
    %c0_i32_1 = arith.constant 0 : i32
    return %c0_i32, %c0_i32_0 : i32, i32
  }
}

module attributes {stable_mosaic.version = 11 : i64} {
  func.func @_conv_bn_kernel(%arg0: i32, %arg1: memref<2x128xbf16, #tpu.memory_space<vmem>>, %arg2: memref<128x256xbf16, #tpu.memory_space<vmem>>, %arg3: memref<1x256xf32, #tpu.memory_space<vmem>>, %arg4: memref<1x256xf32, #tpu.memory_space<vmem>>, %arg5: memref<2x256xf32, #tpu.memory_space<vmem>>) attributes {dimension_semantics = [#tpu.dimension_semantics<arbitrary>], iteration_bounds = array<i64: 1>, scalar_prefetch = 0 : i64, scratch_operands = 0 : i64, tpu.core_type = #tpu.core_type<tc>, window_params = [{pipeline_mode = #tpu.pipeline_mode<synchronous>, transform_indices = @transform_0, window_bounds = array<i64: 2, 128>}, {pipeline_mode = #tpu.pipeline_mode<synchronous>, transform_indices = @transform_1, window_bounds = array<i64: 128, 256>}, {pipeline_mode = #tpu.pipeline_mode<synchronous>, transform_indices = @transform_2, window_bounds = array<i64: 1, 256>}, {pipeline_mode = #tpu.pipeline_mode<synchronous>, transform_indices = @transform_3, window_bounds = array<i64: 1, 256>}, {pipeline_mode = #tpu.pipeline_mode<synchronous>, transform_indices = @transform_4, window_bounds = array<i64: 2, 256>}]} {
    %c0 = arith.constant 0 : index
    %c0_0 = arith.constant 0 : index
    %0 = vector.load %arg1[%c0, %c0_0] : memref<2x128xbf16, #tpu.memory_space<vmem>>, vector<2x128xbf16>
    %c0_1 = arith.constant 0 : index
    %c0_2 = arith.constant 0 : index
    %1 = vector.load %arg2[%c0_1, %c0_2] : memref<128x256xbf16, #tpu.memory_space<vmem>>, vector<128x256xbf16>
    %cst = arith.constant dense<0.000000e+00> : vector<2x256xf32>
    %2 = tpu.matmul %0, %1, %cst {dimension_numbers = #tpu.dot_dimension_numbers<[1], [0], [0], [1], [0, 0, 1, 1], [], []>} : vector<2x128xbf16>, vector<128x256xbf16>, vector<2x256xf32> -> vector<2x256xf32>
    %cst_3 = arith.constant dense<0.000000e+00> : vector<256xf32>
    %3 = vector.multi_reduction <add>, %2, %cst_3 [0] : vector<2x256xf32> to vector<256xf32>
    %4 = vector.shape_cast %3 : vector<256xf32> to vector<1x256xf32>
    %cst_4 = arith.constant 5.000000e-01 : f32
    %5 = vector.broadcast %cst_4 : f32 to vector<1x256xf32>
    %6 = arith.mulf %4, %5 : vector<1x256xf32>
    %7 = vector.broadcast %6 : vector<1x256xf32> to vector<2x256xf32>
    %8 = arith.subf %2, %7 : vector<2x256xf32>
    %9 = arith.mulf %8, %8 : vector<2x256xf32>
    %cst_5 = arith.constant dense<0.000000e+00> : vector<256xf32>
    %10 = vector.multi_reduction <add>, %9, %cst_5 [0] : vector<2x256xf32> to vector<256xf32>
    %11 = vector.shape_cast %10 : vector<256xf32> to vector<1x256xf32>
    %cst_6 = arith.constant 5.000000e-01 : f32
    %12 = vector.broadcast %cst_6 : f32 to vector<1x256xf32>
    %13 = arith.mulf %11, %12 : vector<1x256xf32>
    %cst_7 = arith.constant 9.99999974E-6 : f32
    %14 = vector.broadcast %cst_7 : f32 to vector<1x256xf32>
    %15 = arith.addf %13, %14 : vector<1x256xf32>
    %16 = math.rsqrt %15 : vector<1x256xf32>
    %c0_8 = arith.constant 0 : index
    %c0_9 = arith.constant 0 : index
    %17 = vector.load %arg3[%c0_8, %c0_9] : memref<1x256xf32, #tpu.memory_space<vmem>>, vector<1x256xf32>
    %18 = arith.mulf %16, %17 : vector<1x256xf32>
    %19 = vector.broadcast %18 : vector<1x256xf32> to vector<2x256xf32>
    %20 = arith.mulf %8, %19 : vector<2x256xf32>
    %c0_10 = arith.constant 0 : index
    %c0_11 = arith.constant 0 : index
    %21 = vector.load %arg4[%c0_10, %c0_11] : memref<1x256xf32, #tpu.memory_space<vmem>>, vector<1x256xf32>
    %22 = vector.broadcast %21 : vector<1x256xf32> to vector<2x256xf32>
    %23 = arith.addf %20, %22 : vector<2x256xf32>
    %c0_12 = arith.constant 0 : index
    %c0_13 = arith.constant 0 : index
    %24 = vector.load %arg5[%c0_12, %c0_13] : memref<2x256xf32, #tpu.memory_space<vmem>>, vector<2x256xf32>
    tpu.vector_store %arg5[%c0_12, %c0_13], %23 {strides = array<i32>} : memref<2x256xf32, #tpu.memory_space<vmem>>, vector<2x256xf32>,
    return
  }
  func.func @transform_0(%arg0: i32) -> (i32, i32) {
    %c0_i32 = arith.constant 0 : i32
    %c0_i32_0 = arith.constant 0 : i32
    %c0_i32_1 = arith.constant 0 : i32
    return %c0_i32, %c0_i32_0 : i32, i32
  }
  func.func @transform_1(%arg0: i32) -> (i32, i32) {
    %c0_i32 = arith.constant 0 : i32
    %c0_i32_0 = arith.constant 0 : i32
    %c0_i32_1 = arith.constant 0 : i32
    return %c0_i32, %c0_i32_0 : i32, i32
  }
  func.func @transform_2(%arg0: i32) -> (i32, i32) {
    %c0_i32 = arith.constant 0 : i32
    %c0_i32_0 = arith.constant 0 : i32
    %c0_i32_1 = arith.constant 0 : i32
    return %c0_i32, %c0_i32_0 : i32, i32
  }
  func.func @transform_3(%arg0: i32) -> (i32, i32) {
    %c0_i32 = arith.constant 0 : i32
    %c0_i32_0 = arith.constant 0 : i32
    %c0_i32_1 = arith.constant 0 : i32
    return %c0_i32, %c0_i32_0 : i32, i32
  }
  func.func @transform_4(%arg0: i32) -> (i32, i32) {
    %c0_i32 = arith.constant 0 : i32
    %c0_i32_0 = arith.constant 0 : i32
    %c0_i32_1 = arith.constant 0 : i32
    return %c0_i32, %c0_i32_0 : i32, i32
  }
}

module attributes {stable_mosaic.version = 11 : i64} {
  func.func @_conv_bn_add_relu_kernel(%arg0: i32, %arg1: memref<2x64xbf16, #tpu.memory_space<vmem>>, %arg2: memref<64x256xbf16, #tpu.memory_space<vmem>>, %arg3: memref<1x256xf32, #tpu.memory_space<vmem>>, %arg4: memref<1x256xf32, #tpu.memory_space<vmem>>, %arg5: memref<2x256xf32, #tpu.memory_space<vmem>>, %arg6: memref<2x256xf32, #tpu.memory_space<vmem>>) attributes {dimension_semantics = [#tpu.dimension_semantics<arbitrary>], iteration_bounds = array<i64: 1>, scalar_prefetch = 0 : i64, scratch_operands = 0 : i64, tpu.core_type = #tpu.core_type<tc>, window_params = [{pipeline_mode = #tpu.pipeline_mode<synchronous>, transform_indices = @transform_0, window_bounds = array<i64: 2, 64>}, {pipeline_mode = #tpu.pipeline_mode<synchronous>, transform_indices = @transform_1, window_bounds = array<i64: 64, 256>}, {pipeline_mode = #tpu.pipeline_mode<synchronous>, transform_indices = @transform_2, window_bounds = array<i64: 1, 256>}, {pipeline_mode = #tpu.pipeline_mode<synchronous>, transform_indices = @transform_3, window_bounds = array<i64: 1, 256>}, {pipeline_mode = #tpu.pipeline_mode<synchronous>, transform_indices = @transform_4, window_bounds = array<i64: 2, 256>}, {pipeline_mode = #tpu.pipeline_mode<synchronous>, transform_indices = @transform_5, window_bounds = array<i64: 2, 256>}]} {
    %c0 = arith.constant 0 : index
    %c0_0 = arith.constant 0 : index
    %0 = vector.load %arg1[%c0, %c0_0] : memref<2x64xbf16, #tpu.memory_space<vmem>>, vector<2x64xbf16>
    %c0_1 = arith.constant 0 : index
    %c0_2 = arith.constant 0 : index
    %1 = vector.load %arg2[%c0_1, %c0_2] : memref<64x256xbf16, #tpu.memory_space<vmem>>, vector<64x256xbf16>
    %cst = arith.constant dense<0.000000e+00> : vector<2x256xf32>
    %2 = tpu.matmul %0, %1, %cst {dimension_numbers = #tpu.dot_dimension_numbers<[1], [0], [0], [1], [0, 0, 1, 1], [], []>} : vector<2x64xbf16>, vector<64x256xbf16>, vector<2x256xf32> -> vector<2x256xf32>
    %cst_3 = arith.constant dense<0.000000e+00> : vector<256xf32>
    %3 = vector.multi_reduction <add>, %2, %cst_3 [0] : vector<2x256xf32> to vector<256xf32>
    %4 = vector.shape_cast %3 : vector<256xf32> to vector<1x256xf32>
    %cst_4 = arith.constant 5.000000e-01 : f32
    %5 = vector.broadcast %cst_4 : f32 to vector<1x256xf32>
    %6 = arith.mulf %4, %5 : vector<1x256xf32>
    %7 = vector.broadcast %6 : vector<1x256xf32> to vector<2x256xf32>
    %8 = arith.subf %2, %7 : vector<2x256xf32>
    %9 = arith.mulf %8, %8 : vector<2x256xf32>
    %cst_5 = arith.constant dense<0.000000e+00> : vector<256xf32>
    %10 = vector.multi_reduction <add>, %9, %cst_5 [0] : vector<2x256xf32> to vector<256xf32>
    %11 = vector.shape_cast %10 : vector<256xf32> to vector<1x256xf32>
    %cst_6 = arith.constant 5.000000e-01 : f32
    %12 = vector.broadcast %cst_6 : f32 to vector<1x256xf32>
    %13 = arith.mulf %11, %12 : vector<1x256xf32>
    %cst_7 = arith.constant 9.99999974E-6 : f32
    %14 = vector.broadcast %cst_7 : f32 to vector<1x256xf32>
    %15 = arith.addf %13, %14 : vector<1x256xf32>
    %16 = math.rsqrt %15 : vector<1x256xf32>
    %c0_8 = arith.constant 0 : index
    %c0_9 = arith.constant 0 : index
    %17 = vector.load %arg3[%c0_8, %c0_9] : memref<1x256xf32, #tpu.memory_space<vmem>>, vector<1x256xf32>
    %18 = arith.mulf %16, %17 : vector<1x256xf32>
    %19 = vector.broadcast %18 : vector<1x256xf32> to vector<2x256xf32>
    %20 = arith.mulf %8, %19 : vector<2x256xf32>
    %c0_10 = arith.constant 0 : index
    %c0_11 = arith.constant 0 : index
    %21 = vector.load %arg4[%c0_10, %c0_11] : memref<1x256xf32, #tpu.memory_space<vmem>>, vector<1x256xf32>
    %22 = vector.broadcast %21 : vector<1x256xf32> to vector<2x256xf32>
    %23 = arith.addf %20, %22 : vector<2x256xf32>
    %c0_12 = arith.constant 0 : index
    %c0_13 = arith.constant 0 : index
    %24 = vector.load %arg5[%c0_12, %c0_13] : memref<2x256xf32, #tpu.memory_space<vmem>>, vector<2x256xf32>
    %25 = arith.addf %23, %24 : vector<2x256xf32>
    %cst_14 = arith.constant 0.000000e+00 : f32
    %26 = vector.broadcast %cst_14 : f32 to vector<2x256xf32>
    %27 = arith.maximumf %25, %26 : vector<2x256xf32>
    %c0_15 = arith.constant 0 : index
    %c0_16 = arith.constant 0 : index
    %28 = vector.load %arg6[%c0_15, %c0_16] : memref<2x256xf32, #tpu.memory_space<vmem>>, vector<2x256xf32>
    tpu.vector_store %arg6[%c0_15, %c0_16], %27 {strides = array<i32>} : memref<2x256xf32, #tpu.memory_space<vmem>>, vector<2x256xf32>,
    return
  }
  func.func @transform_0(%arg0: i32) -> (i32, i32) {
    %c0_i32 = arith.constant 0 : i32
    %c0_i32_0 = arith.constant 0 : i32
    %c0_i32_1 = arith.constant 0 : i32
    return %c0_i32, %c0_i32_0 : i32, i32
  }
  func.func @transform_1(%arg0: i32) -> (i32, i32) {
    %c0_i32 = arith.constant 0 : i32
    %c0_i32_0 = arith.constant 0 : i32
    %c0_i32_1 = arith.constant 0 : i32
    return %c0_i32, %c0_i32_0 : i32, i32
  }
  func.func @transform_2(%arg0: i32) -> (i32, i32) {
    %c0_i32 = arith.constant 0 : i32
    %c0_i32_0 = arith.constant 0 : i32
    %c0_i32_1 = arith.constant 0 : i32
    return %c0_i32, %c0_i32_0 : i32, i32
  }
  func.func @transform_3(%arg0: i32) -> (i32, i32) {
    %c0_i32 = arith.constant 0 : i32
    %c0_i32_0 = arith.constant 0 : i32
    %c0_i32_1 = arith.constant 0 : i32
    return %c0_i32, %c0_i32_0 : i32, i32
  }
  func.func @transform_4(%arg0: i32) -> (i32, i32) {
    %c0_i32 = arith.constant 0 : i32
    %c0_i32_0 = arith.constant 0 : i32
    %c0_i32_1 = arith.constant 0 : i32
    return %c0_i32, %c0_i32_0 : i32, i32
  }
  func.func @transform_5(%arg0: i32) -> (i32, i32) {
    %c0_i32 = arith.constant 0 : i32
    %c0_i32_0 = arith.constant 0 : i32
    %c0_i32_1 = arith.constant 0 : i32
    return %c0_i32, %c0_i32_0 : i32, i32
  }
}

module attributes {stable_mosaic.version = 11 : i64} {
  func.func @_conv_bn_kernel(%arg0: i32, %arg1: memref<2x256xbf16, #tpu.memory_space<vmem>>, %arg2: memref<256x64xbf16, #tpu.memory_space<vmem>>, %arg3: memref<1x64xf32, #tpu.memory_space<vmem>>, %arg4: memref<1x64xf32, #tpu.memory_space<vmem>>, %arg5: memref<2x64xf32, #tpu.memory_space<vmem>>) attributes {dimension_semantics = [#tpu.dimension_semantics<arbitrary>], iteration_bounds = array<i64: 1>, scalar_prefetch = 0 : i64, scratch_operands = 0 : i64, tpu.core_type = #tpu.core_type<tc>, window_params = [{pipeline_mode = #tpu.pipeline_mode<synchronous>, transform_indices = @transform_0, window_bounds = array<i64: 2, 256>}, {pipeline_mode = #tpu.pipeline_mode<synchronous>, transform_indices = @transform_1, window_bounds = array<i64: 256, 64>}, {pipeline_mode = #tpu.pipeline_mode<synchronous>, transform_indices = @transform_2, window_bounds = array<i64: 1, 64>}, {pipeline_mode = #tpu.pipeline_mode<synchronous>, transform_indices = @transform_3, window_bounds = array<i64: 1, 64>}, {pipeline_mode = #tpu.pipeline_mode<synchronous>, transform_indices = @transform_4, window_bounds = array<i64: 2, 64>}]} {
    %c0 = arith.constant 0 : index
    %c0_0 = arith.constant 0 : index
    %0 = vector.load %arg1[%c0, %c0_0] : memref<2x256xbf16, #tpu.memory_space<vmem>>, vector<2x256xbf16>
    %c0_1 = arith.constant 0 : index
    %c0_2 = arith.constant 0 : index
    %1 = vector.load %arg2[%c0_1, %c0_2] : memref<256x64xbf16, #tpu.memory_space<vmem>>, vector<256x64xbf16>
    %cst = arith.constant dense<0.000000e+00> : vector<2x64xf32>
    %2 = tpu.matmul %0, %1, %cst {dimension_numbers = #tpu.dot_dimension_numbers<[1], [0], [0], [1], [0, 0, 1, 1], [], []>} : vector<2x256xbf16>, vector<256x64xbf16>, vector<2x64xf32> -> vector<2x64xf32>
    %cst_3 = arith.constant dense<0.000000e+00> : vector<64xf32>
    %3 = vector.multi_reduction <add>, %2, %cst_3 [0] : vector<2x64xf32> to vector<64xf32>
    %4 = vector.shape_cast %3 : vector<64xf32> to vector<1x64xf32>
    %cst_4 = arith.constant 5.000000e-01 : f32
    %5 = vector.broadcast %cst_4 : f32 to vector<1x64xf32>
    %6 = arith.mulf %4, %5 : vector<1x64xf32>
    %7 = vector.broadcast %6 : vector<1x64xf32> to vector<2x64xf32>
    %8 = arith.subf %2, %7 : vector<2x64xf32>
    %9 = arith.mulf %8, %8 : vector<2x64xf32>
    %cst_5 = arith.constant dense<0.000000e+00> : vector<64xf32>
    %10 = vector.multi_reduction <add>, %9, %cst_5 [0] : vector<2x64xf32> to vector<64xf32>
    %11 = vector.shape_cast %10 : vector<64xf32> to vector<1x64xf32>
    %cst_6 = arith.constant 5.000000e-01 : f32
    %12 = vector.broadcast %cst_6 : f32 to vector<1x64xf32>
    %13 = arith.mulf %11, %12 : vector<1x64xf32>
    %cst_7 = arith.constant 9.99999974E-6 : f32
    %14 = vector.broadcast %cst_7 : f32 to vector<1x64xf32>
    %15 = arith.addf %13, %14 : vector<1x64xf32>
    %16 = math.rsqrt %15 : vector<1x64xf32>
    %c0_8 = arith.constant 0 : index
    %c0_9 = arith.constant 0 : index
    %17 = vector.load %arg3[%c0_8, %c0_9] : memref<1x64xf32, #tpu.memory_space<vmem>>, vector<1x64xf32>
    %18 = arith.mulf %16, %17 : vector<1x64xf32>
    %19 = vector.broadcast %18 : vector<1x64xf32> to vector<2x64xf32>
    %20 = arith.mulf %8, %19 : vector<2x64xf32>
    %c0_10 = arith.constant 0 : index
    %c0_11 = arith.constant 0 : index
    %21 = vector.load %arg4[%c0_10, %c0_11] : memref<1x64xf32, #tpu.memory_space<vmem>>, vector<1x64xf32>
    %22 = vector.broadcast %21 : vector<1x64xf32> to vector<2x64xf32>
    %23 = arith.addf %20, %22 : vector<2x64xf32>
    %cst_12 = arith.constant 0.000000e+00 : f32
    %24 = vector.broadcast %cst_12 : f32 to vector<2x64xf32>
    %25 = arith.maximumf %23, %24 : vector<2x64xf32>
    %c0_13 = arith.constant 0 : index
    %c0_14 = arith.constant 0 : index
    %26 = vector.load %arg5[%c0_13, %c0_14] : memref<2x64xf32, #tpu.memory_space<vmem>>, vector<2x64xf32>
    tpu.vector_store %arg5[%c0_13, %c0_14], %25 {strides = array<i32>} : memref<2x64xf32, #tpu.memory_space<vmem>>, vector<2x64xf32>,
    return
  }
  func.func @transform_0(%arg0: i32) -> (i32, i32) {
    %c0_i32 = arith.constant 0 : i32
    %c0_i32_0 = arith.constant 0 : i32
    %c0_i32_1 = arith.constant 0 : i32
    return %c0_i32, %c0_i32_0 : i32, i32
  }
  func.func @transform_1(%arg0: i32) -> (i32, i32) {
    %c0_i32 = arith.constant 0 : i32
    %c0_i32_0 = arith.constant 0 : i32
    %c0_i32_1 = arith.constant 0 : i32
    return %c0_i32, %c0_i32_0 : i32, i32
  }
  func.func @transform_2(%arg0: i32) -> (i32, i32) {
    %c0_i32 = arith.constant 0 : i32
    %c0_i32_0 = arith.constant 0 : i32
    %c0_i32_1 = arith.constant 0 : i32
    return %c0_i32, %c0_i32_0 : i32, i32
  }
  func.func @transform_3(%arg0: i32) -> (i32, i32) {
    %c0_i32 = arith.constant 0 : i32
    %c0_i32_0 = arith.constant 0 : i32
    %c0_i32_1 = arith.constant 0 : i32
    return %c0_i32, %c0_i32_0 : i32, i32
  }
  func.func @transform_4(%arg0: i32) -> (i32, i32) {
    %c0_i32 = arith.constant 0 : i32
    %c0_i32_0 = arith.constant 0 : i32
    %c0_i32_1 = arith.constant 0 : i32
    return %c0_i32, %c0_i32_0 : i32, i32
  }
}

module attributes {stable_mosaic.version = 11 : i64} {
  func.func @_fc_l2norm_kernel(%arg0: i32, %arg1: memref<2x256xbf16, #tpu.memory_space<vmem>>, %arg2: memref<256x128xbf16, #tpu.memory_space<vmem>>, %arg3: memref<1x128xf32, #tpu.memory_space<vmem>>, %arg4: memref<2x128xf32, #tpu.memory_space<vmem>>) attributes {dimension_semantics = [#tpu.dimension_semantics<arbitrary>], iteration_bounds = array<i64: 1>, scalar_prefetch = 0 : i64, scratch_operands = 0 : i64, tpu.core_type = #tpu.core_type<tc>, window_params = [{pipeline_mode = #tpu.pipeline_mode<synchronous>, transform_indices = @transform_0, window_bounds = array<i64: 2, 256>}, {pipeline_mode = #tpu.pipeline_mode<synchronous>, transform_indices = @transform_1, window_bounds = array<i64: 256, 128>}, {pipeline_mode = #tpu.pipeline_mode<synchronous>, transform_indices = @transform_2, window_bounds = array<i64: 1, 128>}, {pipeline_mode = #tpu.pipeline_mode<synchronous>, transform_indices = @transform_3, window_bounds = array<i64: 2, 128>}]} {
    %c0 = arith.constant 0 : index
    %c0_0 = arith.constant 0 : index
    %0 = vector.load %arg1[%c0, %c0_0] : memref<2x256xbf16, #tpu.memory_space<vmem>>, vector<2x256xbf16>
    %c0_1 = arith.constant 0 : index
    %c0_2 = arith.constant 0 : index
    %1 = vector.load %arg2[%c0_1, %c0_2] : memref<256x128xbf16, #tpu.memory_space<vmem>>, vector<256x128xbf16>
    %cst = arith.constant dense<0.000000e+00> : vector<2x128xf32>
    %2 = tpu.matmul %0, %1, %cst {dimension_numbers = #tpu.dot_dimension_numbers<[1], [0], [0], [1], [0, 0, 1, 1], [], []>} : vector<2x256xbf16>, vector<256x128xbf16>, vector<2x128xf32> -> vector<2x128xf32>
    %c0_3 = arith.constant 0 : index
    %c0_4 = arith.constant 0 : index
    %3 = vector.load %arg3[%c0_3, %c0_4] : memref<1x128xf32, #tpu.memory_space<vmem>>, vector<1x128xf32>
    %4 = vector.broadcast %3 : vector<1x128xf32> to vector<2x128xf32>
    %5 = arith.addf %2, %4 : vector<2x128xf32>
    %6 = arith.mulf %5, %5 : vector<2x128xf32>
    %cst_5 = arith.constant dense<0.000000e+00> : vector<2xf32>
    %7 = vector.multi_reduction <add>, %6, %cst_5 [1] : vector<2x128xf32> to vector<2xf32>
    %8 = vector.shape_cast %7 : vector<2xf32> to vector<2x1xf32>
    %cst_6 = arith.constant 1.000000e-10 : f32
    %9 = vector.broadcast %cst_6 : f32 to vector<2x1xf32>
    %10 = arith.addf %8, %9 : vector<2x1xf32>
    %11 = math.sqrt %10 : vector<2x1xf32>
    %12 = vector.broadcast %11 : vector<2x1xf32> to vector<2x128xf32>
    %13 = arith.divf %5, %12 : vector<2x128xf32>
    %cst_7 = arith.constant 1.000000e+01 : f32
    %14 = vector.broadcast %cst_7 : f32 to vector<2x128xf32>
    %15 = arith.mulf %13, %14 : vector<2x128xf32>
    %c0_8 = arith.constant 0 : index
    %c0_9 = arith.constant 0 : index
    %16 = vector.load %arg4[%c0_8, %c0_9] : memref<2x128xf32, #tpu.memory_space<vmem>>, vector<2x128xf32>
    tpu.vector_store %arg4[%c0_8, %c0_9], %15 {strides = array<i32>} : memref<2x128xf32, #tpu.memory_space<vmem>>, vector<2x128xf32>,
    return
  }
  func.func @transform_0(%arg0: i32) -> (i32, i32) {
    %c0_i32 = arith.constant 0 : i32
    %c0_i32_0 = arith.constant 0 : i32
    %c0_i32_1 = arith.constant 0 : i32
    return %c0_i32, %c0_i32_0 : i32, i32
  }
  func.func @transform_1(%arg0: i32) -> (i32, i32) {
    %c0_i32 = arith.constant 0 : i32
    %c0_i32_0 = arith.constant 0 : i32
    %c0_i32_1 = arith.constant 0 : i32
    return %c0_i32, %c0_i32_0 : i32, i32
  }
  func.func @transform_2(%arg0: i32) -> (i32, i32) {
    %c0_i32 = arith.constant 0 : i32
    %c0_i32_0 = arith.constant 0 : i32
    %c0_i32_1 = arith.constant 0 : i32
    return %c0_i32, %c0_i32_0 : i32, i32
  }
  func.func @transform_3(%arg0: i32) -> (i32, i32) {
    %c0_i32 = arith.constant 0 : i32
    %c0_i32_0 = arith.constant 0 : i32
    %c0_i32_1 = arith.constant 0 : i32
    return %c0_i32, %c0_i32_0 : i32, i32
  }
}

</mosaic_0001>

<bundles_post_ra>
// kernel: facenet_forward.55
= control target key start
LH: loop header
LB: loop body
LE: loop exit
PB: predicated region body
PF: predicated region fallthrough
CT: control target
= control target key end

     0   :  { %v1748_v0 = vmov 0   ;;  %vm446_vm0 = vcmask 154624   ;;  %vm543_vm1 = vcmask 1040384   ;;  %vm544_vm2 = vcmask 1041408   ;;  %s3577_s1 = inlined_call_operand.vmem [shape: bf16[147,8], index: 1, kind: input, shape index: {}]   ;;  %s3578_s0 = inlined_call_operand.vmem [shape: bf16[512,147], index: 0, kind: input, shape index: {}]   ;;  %s3579_s2 = inlined_call_operand.vmem [shape: f32[1,8], index: 2, kind: input, shape index: {}]   ;;  %s3580_s3 = inlined_call_operand.vmem [shape: f32[1,8], index: 3, kind: input, shape index: {}]   ;;  %s3581_s4 = inlined_call_operand.vmem [shape: f32[512,8], index: 4, kind: output, shape index: {}]  }
   0x1   :  { %550 = vmatprep.subr.bf16.mxu0 %v1748_v0  ;;  %v1640_v1 = vld [vmem:[%s3577_s1 + $0x38] sm:$0xff]   ;;  %1618 = vmatprep.subr.bf16.mxu1 %v1748_v0  ;;  %v1641_v2 = vld [vmem:[%s3577_s1 + $0x30] sm:$0xff]   ;;  %v1642_v3 = vld [vmem:[%s3577_s1 + $0x28] sm:$0xff]   ;;  %v1749_v10 = vmov 65535   ;;  %vm839_vm3 = vcmask 64512  }
   0x2   :  { %551 = vmatpush1.bf16.msra.mxu0 %v1640_v1  ;;  %1628 = vmatpush1.bf16.msra.mxu1 %v1640_v1  ;;  %v1643_v4 = vld [vmem:[%s3577_s1 + $0x20] sm:$0xff]   ;;  %v1644_v6 = vld [vmem:[%s3577_s1 + $0x18] sm:$0xff]   ;;  %v1645_v7 = vld [vmem:[%s3577_s1 + $0x10] sm:$0xff]   ;;  %v545_v11 = vsel %vm543_vm1, 4294967295, %v1749_v10 }
   0x3   :  { %552 = vmatprep.subr.bf16.mxu0 %v1748_v0  ;;  %1619 = vmatprep.subr.bf16.mxu1 %v1748_v0  ;;  %v1652_v5 = vld [vmem:[%s3578_s0 + $0x4] ss:$8 sps:$4 sm:$0xff]   ;;  %v1648_v13 = vld [vmem:[%s3577_s1 + $0x48] ss:$0 sps:$4 sm:$0x33]   ;;  %v546_v14 = vsel %vm544_vm2, %v545_v11, 0 }
   0x4   :  { %1585 = vmatprep.mubr.msk.bf16.mxu0 %vm446_vm0, %v1652_v5  ;;  %v1676_v8 = vld [vmem:[%s3578_s0 + $0x104] ss:$8 sps:$4 sm:$0xff]   ;;  %v548_v15 = vand.u32 %v1648_v13, %v546_v14  ;;  %v1650_v17 = vld [vmem:[%s3578_s0] ss:$8 sps:$4 sm:$0xff]   ;;  %v1653_v19 = vld [vmem:[%s3578_s0 + $0x14] ss:$8 sps:$4 sm:$0xff]  }
   0x5   :  { %v1646_v9 = vld [vmem:[%s3577_s1 + $0x8] sm:$0xff]   ;;  %1601 = vmatprep.mubr.msk.bf16.mxu1 %vm446_vm0, %v1676_v8  ;;  %v1647_v12 = vld [vmem:[%s3577_s1] sm:$0xff]   ;;  %v1680_v20 = vld [vmem:[%s3578_s0 + $0x114] ss:$8 sps:$4 sm:$0xff]  }
   0x6   :  { %553 = vmatpush1.bf16.msra.mxu0 %v1641_v2  ;;  %1629 = vmatpush1.bf16.msra.mxu1 %v1641_v2  ;;  %v1649_v16 = vld [vmem:[%s3577_s1 + $0x40] sm:$0xff]   ;;  %v1655_v21 = vld [vmem:[%s3578_s0 + $0x10] ss:$8 sps:$4 sm:$0xff]   ;;  %v1659_v27 = vld [vmem:[%s3578_s0 + $0x34] ss:$8 sps:$4 sm:$0xff]  }
   0x7   :  { %554 = vmatprep.subr.bf16.mxu0 %v1748_v0  ;;  %1620 = vmatprep.subr.bf16.mxu1 %v1748_v0  ;;  %v1674_v18 = vld [vmem:[%s3578_s0 + $0x100] ss:$8 sps:$4 sm:$0xff]   ;;  %v1682_v22 = vld [vmem:[%s3578_s0 + $0x110] ss:$8 sps:$4 sm:$0xff]   ;;  %v1656_v23 = vld [vmem:[%s3578_s0 + $0x24] ss:$8 sps:$4 sm:$0xff]  }
   0x8   :  { %v1686_v24 = vld [vmem:[%s3578_s0 + $0x124] ss:$8 sps:$4 sm:$0xff]   ;;  %v1658_v25 = vld [vmem:[%s3578_s0 + $0x20] ss:$8 sps:$4 sm:$0xff]   ;;  %v1692_v28 = vld [vmem:[%s3578_s0 + $0x134] ss:$8 sps:$4 sm:$0xff]  }
   0x9   :  { %v1688_v26 = vld [vmem:[%s3578_s0 + $0x120] ss:$8 sps:$4 sm:$0xff]   ;;  %v1661_v29 = vld [vmem:[%s3578_s0 + $0x30] ss:$8 sps:$4 sm:$0xff]   ;;  %v1662_v31 = vld [vmem:[%s3578_s0 + $0x44] ss:$8 sps:$4 sm:$0xff]  }
   0xa   :  { %555 = vmatpush1.bf16.msra.mxu0 %v1642_v3  ;;  %1630 = vmatpush1.bf16.msra.mxu1 %v1642_v3  ;;  %v1694_v30 = vld [vmem:[%s3578_s0 + $0x130] ss:$8 sps:$4 sm:$0xff]   ;;  %v1698_v32 = vld [vmem:[%s3578_s0 + $0x144] ss:$8 sps:$4 sm:$0xff]   ;;  %v1664_v33 = vld [vmem:[%s3578_s0 + $0x40] ss:$8 sps:$4 sm:$0xff]  }
   0xb   :  { %556 = vmatprep.subr.bf16.mxu0 %v1748_v0  ;;  %1621 = vmatprep.subr.bf16.mxu1 %v1748_v0  ;;  %v1700_v34 = vld [vmem:[%s3578_s0 + $0x140] ss:$8 sps:$4 sm:$0xff]   ;;  %v1665_v35 = vld [vmem:[%s3578_s0 + $0x54] ss:$8 sps:$4 sm:$0xff]   ;;  %v1667_v37 = vld [vmem:[%s3578_s0 + $0x50] ss:$8 sps:$4 sm:$0xff]  }
   0xc   :  { %v1704_v36 = vld [vmem:[%s3578_s0 + $0x154] ss:$8 sps:$4 sm:$0xff]   ;;  %v1706_v38 = vld [vmem:[%s3578_s0 + $0x150] ss:$8 sps:$4 sm:$0xff]   ;;  %v1668_v39 = vld [vmem:[%s3578_s0 + $0x64] ss:$8 sps:$4 sm:$0xff]  }
   0xd   :  { %v1710_v40 = vld [vmem:[%s3578_s0 + $0x164] ss:$8 sps:$4 sm:$0xff]   ;;  %v1670_v41 = vld [vmem:[%s3578_s0 + $0x60] ss:$8 sps:$4 sm:$0xff]   ;;  %v1671_v43 = vld [vmem:[%s3578_s0 + $0x74] ss:$8 sps:$4 sm:$0xff]  }
   0xe   :  { %557 = vmatpush1.bf16.msra.mxu0 %v1643_v4  ;;  %1631 = vmatpush1.bf16.msra.mxu1 %v1643_v4  ;;  %v1712_v42 = vld [vmem:[%s3578_s0 + $0x160] ss:$8 sps:$4 sm:$0xff]   ;;  %v1716_v44 = vld [vmem:[%s3578_s0 + $0x174] ss:$8 sps:$4 sm:$0xff]   ;;  %v1673_v45 = vld [vmem:[%s3578_s0 + $0x70] ss:$8 sps:$4 sm:$0xff]  }
   0xf   :  { %558 = vmatprep.subr.bf16.mxu0 %v1748_v0  ;;  %1622 = vmatprep.subr.bf16.mxu1 %v1748_v0  ;;  %v1718_v46 = vld [vmem:[%s3578_s0 + $0x170] ss:$8 sps:$4 sm:$0xff]   ;;  %v1677_v47 = vld [vmem:[%s3578_s0 + $0x84] ss:$8 sps:$4 sm:$0xff]   ;;  %v1679_v49 = vld [vmem:[%s3578_s0 + $0x80] ss:$8 sps:$4 sm:$0xff]  }
  0x10   :  { %v1722_v48 = vld [vmem:[%s3578_s0 + $0x184] ss:$8 sps:$4 sm:$0xff]   ;;  %v1724_v50 = vld [vmem:[%s3578_s0 + $0x180] ss:$8 sps:$4 sm:$0xff]   ;;  %v1683_v51 = vld [vmem:[%s3578_s0 + $0x94] ss:$8 sps:$4 sm:$0xff]  }
  0x11   :  { %v1725_v52 = vld [vmem:[%s3578_s0 + $0x194] ss:$8 sps:$4 sm:$0xff]   ;;  %v1685_v53 = vld [vmem:[%s3578_s0 + $0x90] ss:$8 sps:$4 sm:$0xff]   ;;  %v1689_v55 = vld [vmem:[%s3578_s0 + $0xa4] ss:$8 sps:$4 sm:$0xff]  }
  0x12   :  { %559 = vmatpush1.bf16.msra.mxu0 %v1644_v6  ;;  %1632 = vmatpush1.bf16.msra.mxu1 %v1644_v6  ;;  %v1727_v54 = vld [vmem:[%s3578_s0 + $0x190] ss:$8 sps:$4 sm:$0xff]   ;;  %v1728_v56 = vld [vmem:[%s3578_s0 + $0x1a4] ss:$8 sps:$4 sm:$0xff]   ;;  %v1691_v57 = vld [vmem:[%s3578_s0 + $0xa0] ss:$8 sps:$4 sm:$0xff]  }
  0x13   :  { %560 = vmatprep.subr.bf16.mxu0 %v1748_v0  ;;  %1623 = vmatprep.subr.bf16.mxu1 %v1748_v0  ;;  %v1730_v58 = vld [vmem:[%s3578_s0 + $0x1a0] ss:$8 sps:$4 sm:$0xff]   ;;  %v1695_v59 = vld [vmem:[%s3578_s0 + $0xb4] ss:$8 sps:$4 sm:$0xff]   ;;  %v1697_v61 = vld [vmem:[%s3578_s0 + $0xb0] ss:$8 sps:$4 sm:$0xff]  }
  0x14   :  { %v1731_v60 = vld [vmem:[%s3578_s0 + $0x1b4] ss:$8 sps:$4 sm:$0xff]   ;;  %v1733_v62 = vld [vmem:[%s3578_s0 + $0x1b0] ss:$8 sps:$4 sm:$0xff]   ;;  %v1701_v63 = vld [vmem:[%s3578_s0 + $0xc4] ss:$8 sps:$4 sm:$0xff]  }
  0x15   :  { %v1703_v1 = vld [vmem:[%s3578_s0 + $0xc0] ss:$8 sps:$4 sm:$0xff]   ;;  %v1707_v3 = vld [vmem:[%s3578_s0 + $0xd4] ss:$8 sps:$4 sm:$0xff]   ;;  %v1709_v5 = vld [vmem:[%s3578_s0 + $0xd0] ss:$8 sps:$4 sm:$0xff]  }
  0x16   :  { %561 = vmatpush1.bf16.msra.mxu0 %v1645_v7  ;;  %1633 = vmatpush1.bf16.msra.mxu1 %v1645_v7  ;;  %v1736_v2 = vld [vmem:[%s3578_s0 + $0x1c0] ss:$8 sps:$4 sm:$0xff]   ;;  %v1737_v4 = vld [vmem:[%s3578_s0 + $0x1d4] ss:$8 sps:$4 sm:$0xff]   ;;  %v1739_v6 = vld [vmem:[%s3578_s0 + $0x1d0] ss:$8 sps:$4 sm:$0xff]  }
  0x17   :  { %562 = vmatprep.subr.bf16.mxu0 %v1748_v0  ;;  %1624 = vmatprep.subr.bf16.mxu1 %v1748_v0  ;;  %v1713_v7 = vld [vmem:[%s3578_s0 + $0xe4] ss:$8 sps:$4 sm:$0xff]   ;;  %v1742_v10 = vld [vmem:[%s3578_s0 + $0x1e0] ss:$8 sps:$4 sm:$0xff]   ;;  %v1719_v11 = vld [vmem:[%s3578_s0 + $0xf4] ss:$8 sps:$4 sm:$0xff]  }
  0x18   :  { %v1740_v8 = vld [vmem:[%s3578_s0 + $0x1e4] ss:$8 sps:$4 sm:$0xff]   ;;  %v1721_v13 = vld [vmem:[%s3578_s0 + $0xf0] ss:$8 sps:$4 sm:$0xff]  }
  0x19   :  { %v1745_v14 = vld [vmem:[%s3578_s0 + $0x1f0] ss:$8 sps:$4 sm:$0xff]  }
  0x1a   :  { %563 = vmatpush1.bf16.msra.mxu0 %v1646_v9  ;;  %1634 = vmatpush1.bf16.msra.mxu1 %v1646_v9  ;;  %v1715_v9 = vld [vmem:[%s3578_s0 + $0xe0] ss:$8 sps:$4 sm:$0xff]  }
  0x1b   :  { %564 = vmatprep.subr.bf16.mxu0 %v1748_v0  ;;  %1625 = vmatprep.subr.bf16.mxu1 %v1748_v0 }
  0x1e   :  { %565 = vmatpush1.bf16.msra.mxu0 %v1647_v12  ;;  %1635 = vmatpush1.bf16.msra.mxu1 %v1647_v12  ;;  %v1743_v12 = vld [vmem:[%s3578_s0 + $0x1f4] ss:$8 sps:$4 sm:$0xff]  }
  0x1f   :  { %578 = vmatprep.subr.bf16.mxu0 %v1748_v0  ;;  %1626 = vmatprep.subr.bf16.mxu1 %v1748_v0 }
  0x22   :  { %579 = vmatpush2.bf16.msra.mxu0 %v548_v15  ;;  %1636 = vmatpush2.bf16.msra.mxu1 %v548_v15 }
  0x23   :  { %580 = vmatprep.subr.bf16.mxu0 %v1748_v0  ;;  %1627 = vmatprep.subr.bf16.mxu1 %v1748_v0  ;;  %v1734_v0 = vld [vmem:[%s3578_s0 + $0x1c4] ss:$8 sps:$4 sm:$0xff]  }
  0x26   :  { %581 = vmatpush2.bf16.msra.mxu0 %v1649_v16  ;;  %1637 = vmatpush2.bf16.msra.mxu1 %v1649_v16 }
  0x29   :  { %583 = vmatmul.mubr.bf16.vlgmr.msra.gmra.mxu0 %v1650_v17  ;;  %711 = vmatmul.mubr.bf16.vlgmr.msra.gmra.mxu1 %v1674_v18 }
  0x2a   :  { %1586 = vmatprep.mubr.msk.bf16.mxu0 %vm446_vm0, %v1653_v19  ;;  %1602 = vmatprep.mubr.msk.bf16.mxu1 %vm446_vm0, %v1680_v20 }
  0x31   :  { %591 = vmatmul.mubr.bf16.gmra.mxu0 %v1655_v21  ;;  %719 = vmatmul.mubr.bf16.gmra.mxu1 %v1682_v22 }
  0x32   :  { %1587 = vmatprep.mubr.msk.bf16.mxu0 %vm446_vm0, %v1656_v23  ;;  %1603 = vmatprep.mubr.msk.bf16.mxu1 %vm446_vm0, %v1686_v24 }
  0x39   :  { %599 = vmatmul.mubr.bf16.gmra.mxu0 %v1658_v25  ;;  %727 = vmatmul.mubr.bf16.gmra.mxu1 %v1688_v26 }
  0x3a   :  { %1588 = vmatprep.mubr.msk.bf16.mxu0 %vm446_vm0, %v1659_v27  ;;  %1604 = vmatprep.mubr.msk.bf16.mxu1 %vm446_vm0, %v1692_v28 }
  0x41   :  { %607 = vmatmul.mubr.bf16.gmra.mxu0 %v1661_v29  ;;  %735 = vmatmul.mubr.bf16.gmra.mxu1 %v1694_v30 }
  0x42   :  { %1589 = vmatprep.mubr.msk.bf16.mxu0 %vm446_vm0, %v1662_v31  ;;  %1605 = vmatprep.mubr.msk.bf16.mxu1 %vm446_vm0, %v1698_v32 }
  0x49   :  { %615 = vmatmul.mubr.bf16.gmra.mxu0 %v1664_v33  ;;  %743 = vmatmul.mubr.bf16.gmra.mxu1 %v1700_v34 }
  0x4a   :  { %1590 = vmatprep.mubr.msk.bf16.mxu0 %vm446_vm0, %v1665_v35  ;;  %1606 = vmatprep.mubr.msk.bf16.mxu1 %vm446_vm0, %v1704_v36 }
  0x51   :  { %623 = vmatmul.mubr.bf16.gmra.mxu0 %v1667_v37  ;;  %751 = vmatmul.mubr.bf16.gmra.mxu1 %v1706_v38 }
  0x52   :  { %1591 = vmatprep.mubr.msk.bf16.mxu0 %vm446_vm0, %v1668_v39  ;;  %1607 = vmatprep.mubr.msk.bf16.mxu1 %vm446_vm0, %v1710_v40 }
  0x59   :  { %631 = vmatmul.mubr.bf16.gmra.mxu0 %v1670_v41  ;;  %759 = vmatmul.mubr.bf16.gmra.mxu1 %v1712_v42 }
  0x5a   :  { %1592 = vmatprep.mubr.msk.bf16.mxu0 %vm446_vm0, %v1671_v43  ;;  %1608 = vmatprep.mubr.msk.bf16.mxu1 %vm446_vm0, %v1716_v44 }
  0x61   :  { %639 = vmatmul.mubr.bf16.gmra.mxu0 %v1673_v45  ;;  %767 = vmatmul.mubr.bf16.gmra.mxu1 %v1718_v46 }
  0x62   :  { %1593 = vmatprep.mubr.msk.bf16.mxu0 %vm446_vm0, %v1677_v47  ;;  %1609 = vmatprep.mubr.msk.bf16.mxu1 %vm446_vm0, %v1722_v48 }
  0x69   :  { %647 = vmatmul.mubr.bf16.gmra.mxu0 %v1679_v49  ;;  %775 = vmatmul.mubr.bf16.gmra.mxu1 %v1724_v50 }
  0x6a   :  { %1594 = vmatprep.mubr.msk.bf16.mxu0 %vm446_vm0, %v1683_v51  ;;  %1610 = vmatprep.mubr.msk.bf16.mxu1 %vm446_vm0, %v1725_v52 }
  0x71   :  { %655 = vmatmul.mubr.bf16.gmra.mxu0 %v1685_v53  ;;  %783 = vmatmul.mubr.bf16.gmra.mxu1 %v1727_v54 }
  0x72   :  { %1595 = vmatprep.mubr.msk.bf16.mxu0 %vm446_vm0, %v1689_v55  ;;  %1611 = vmatprep.mubr.msk.bf16.mxu1 %vm446_vm0, %v1728_v56 }
  0x79   :  { %663 = vmatmul.mubr.bf16.gmra.mxu0 %v1691_v57  ;;  %791 = vmatmul.mubr.bf16.gmra.mxu1 %v1730_v58 }
  0x7a   :  { %1596 = vmatprep.mubr.msk.bf16.mxu0 %vm446_vm0, %v1695_v59  ;;  %1612 = vmatprep.mubr.msk.bf16.mxu1 %vm446_vm0, %v1731_v60 }
  0x81   :  { %671 = vmatmul.mubr.bf16.gmra.mxu0 %v1697_v61  ;;  %799 = vmatmul.mubr.bf16.gmra.mxu1 %v1733_v62 }
  0x82   :  { %1597 = vmatprep.mubr.msk.bf16.mxu0 %vm446_vm0, %v1701_v63  ;;  %1613 = vmatprep.mubr.msk.bf16.mxu1 %vm446_vm0, %v1734_v0 }
  0x89   :  { %679 = vmatmul.mubr.bf16.gmra.mxu0 %v1703_v1  ;;  %807 = vmatmul.mubr.bf16.gmra.mxu1 %v1736_v2 }
  0x8a   :  { %1598 = vmatprep.mubr.msk.bf16.mxu0 %vm446_vm0, %v1707_v3  ;;  %1614 = vmatprep.mubr.msk.bf16.mxu1 %vm446_vm0, %v1737_v4 }
  0x91   :  { %687 = vmatmul.mubr.bf16.gmra.mxu0 %v1709_v5  ;;  %815 = vmatmul.mubr.bf16.gmra.mxu1 %v1739_v6 }
  0x92   :  { %1599 = vmatprep.mubr.msk.bf16.mxu0 %vm446_vm0, %v1713_v7  ;;  %1615 = vmatprep.mubr.msk.bf16.mxu1 %vm446_vm0, %v1740_v8 }
  0x99   :  { %695 = vmatmul.mubr.bf16.gmra.mxu0 %v1715_v9  ;;  %823 = vmatmul.mubr.bf16.gmra.mxu1 %v1742_v10 }
  0x9a   :  { %1600 = vmatprep.mubr.msk.bf16.mxu0 %vm446_vm0, %v1719_v11  ;;  %1616 = vmatprep.mubr.msk.bf16.mxu1 %vm446_vm0, %v1743_v12 }
  0xa1   :  { %703 = vmatmul.mubr.bf16.gmra.mxu0 %v1721_v13  ;;  %831 = vmatmul.mubr.bf16.gmra.mxu1 %v1745_v14 }
  0xe9   :  { %v2029_v15 = vpop.f32.mrf.mxu0  ;;  %v2031_v16 = vpop.f32.mrf.mxu1 }
  0xeb   :  { %v586_v17 = vpop.f32.mrf.mxu0  ;;  %v714_v18 = vpop.f32.mrf.mxu1 }
  0xed   :  { %v2033_v19 = vpop.f32.mrf.mxu0  ;;  %v2035_v20 = vpop.f32.mrf.mxu1 }
  0xee   :  { %v841_v17 = vsel %vm839_vm3, %v2033_v19, 0.0 }
  0xef   :  { %v589_v21 = vpop.f32.mrf.mxu0  ;;  %v717_v22 = vpop.f32.mrf.mxu1 }
  0xf0   :  { %v840_v22 = vsel %vm839_vm3, %v2029_v15, 0.0 }
  0xf1   :  { %v2037_v23 = vpop.f32.mrf.mxu0  ;;  %v2039_v24 = vpop.f32.mrf.mxu1 }
  0xf3   :  { %v594_v25 = vpop.f32.mrf.mxu0  ;;  %v722_v26 = vpop.f32.mrf.mxu1 }
  0xf4   :  { %v843_v25 = vsel %vm839_vm3, %v2037_v23, 0.0  ;;  %v842_v26 = vadd.f32 %v841_v17, %v840_v22 }
  0xf5   :  { %v2041_v27 = vpop.f32.mrf.mxu0  ;;  %v2043_v28 = vpop.f32.mrf.mxu1 }
  0xf7   :  { %v597_v29 = vpop.f32.mrf.mxu0  ;;  %v725_v30 = vpop.f32.mrf.mxu1 }
  0xf9   :  { %v2045_v31 = vpop.f32.mrf.mxu0  ;;  %v2047_v32 = vpop.f32.mrf.mxu1 }
  0xfb   :  { %v602_v33 = vpop.f32.mrf.mxu0  ;;  %v730_v34 = vpop.f32.mrf.mxu1 }
  0xfc   :  { %v845_v33 = vsel %vm839_vm3, %v2041_v27, 0.0  ;;  %v844_v34 = vadd.f32 %v843_v25, %v842_v26 }
  0xfd   :  { %v2049_v35 = vpop.f32.mrf.mxu0  ;;  %v2051_v36 = vpop.f32.mrf.mxu1 }
  0xff   :  { %v605_v37 = vpop.f32.mrf.mxu0  ;;  %v733_v38 = vpop.f32.mrf.mxu1 }
 0x101   :  { %v2053_v39 = vpop.f32.mrf.mxu0  ;;  %v2055_v40 = vpop.f32.mrf.mxu1 }
 0x103   :  { %v610_v41 = vpop.f32.mrf.mxu0  ;;  %v738_v42 = vpop.f32.mrf.mxu1 }
 0x104   :  { %v847_v41 = vsel %vm839_vm3, %v2045_v31, 0.0  ;;  %v846_v42 = vadd.f32 %v845_v33, %v844_v34 }
 0x105   :  { %v2057_v43 = vpop.f32.mrf.mxu0  ;;  %v2059_v44 = vpop.f32.mrf.mxu1 }
 0x107   :  { %v613_v45 = vpop.f32.mrf.mxu0  ;;  %v741_v46 = vpop.f32.mrf.mxu1 }
 0x109   :  { %v2061_v47 = vpop.f32.mrf.mxu0  ;;  %v2063_v48 = vpop.f32.mrf.mxu1 }
 0x10b   :  { %v618_v49 = vpop.f32.mrf.mxu0  ;;  %v746_v50 = vpop.f32.mrf.mxu1 }
 0x10c   :  { %v849_v49 = vsel %vm839_vm3, %v2049_v35, 0.0  ;;  %v848_v50 = vadd.f32 %v847_v41, %v846_v42 }
 0x10d   :  { %v2065_v51 = vpop.f32.mrf.mxu0  ;;  %v2067_v52 = vpop.f32.mrf.mxu1 }
 0x10e   :  { %v857_v17 = vsel %vm839_vm3, %v2065_v51, 0.0 }
 0x10f   :  { %v621_v53 = vpop.f32.mrf.mxu0  ;;  %v749_v54 = vpop.f32.mrf.mxu1 }
 0x111   :  { %v2069_v55 = vpop.f32.mrf.mxu0  ;;  %v2071_v56 = vpop.f32.mrf.mxu1 }
 0x113   :  { %v626_v57 = vpop.f32.mrf.mxu0  ;;  %v754_v58 = vpop.f32.mrf.mxu1 }
 0x114   :  { %v851_v57 = vsel %vm839_vm3, %v2053_v39, 0.0  ;;  %v850_v58 = vadd.f32 %v849_v49, %v848_v50 }
 0x115   :  { %v2073_v59 = vpop.f32.mrf.mxu0  ;;  %v2075_v60 = vpop.f32.mrf.mxu1 }
 0x116   :  { %v861_v41 = vsel %vm839_vm3, %v2073_v59, 0.0 }
 0x117   :  { %v629_v61 = vpop.f32.mrf.mxu0  ;;  %v757_v62 = vpop.f32.mrf.mxu1 }
 0x119   :  { %v2077_v63 = vpop.f32.mrf.mxu0  ;;  %v2079_v0 = vpop.f32.mrf.mxu1 }
 0x11a   :  { %v863_v49 = vsel %vm839_vm3, %v2077_v63, 0.0 }
 0x11b   :  { %v634_v1 = vpop.f32.mrf.mxu0  ;;  %v762_v2 = vpop.f32.mrf.mxu1 }
 0x11c   :  { %v853_v1 = vsel %vm839_vm3, %v2057_v43, 0.0  ;;  %v852_v2 = vadd.f32 %v851_v57, %v850_v58 }
 0x11d   :  { %v2081_v3 = vpop.f32.mrf.mxu0  ;;  %v2083_v4 = vpop.f32.mrf.mxu1 }
 0x11f   :  { %v637_v5 = vpop.f32.mrf.mxu0  ;;  %v765_v6 = vpop.f32.mrf.mxu1 }
 0x121   :  { %v2085_v7 = vpop.f32.mrf.mxu0  ;;  %v2087_v8 = vpop.f32.mrf.mxu1 }
 0x123   :  { %v642_v9 = vpop.f32.mrf.mxu0  ;;  %v770_v10 = vpop.f32.mrf.mxu1 }
 0x124   :  { %v855_v9 = vsel %vm839_vm3, %v2061_v47, 0.0  ;;  %v854_v10 = vadd.f32 %v853_v1, %v852_v2 }
 0x125   :  { %v2089_v11 = vpop.f32.mrf.mxu0  ;;  %v2091_v12 = vpop.f32.mrf.mxu1 }
 0x126   :  { %v856_v22 = vadd.f32 %v855_v9, %v854_v10  ;;  %v867_v9 = vsel %vm839_vm3, %v2085_v7, 0.0 }
 0x127   :  { %v645_v13 = vpop.f32.mrf.mxu0  ;;  %v773_v14 = vpop.f32.mrf.mxu1 }
 0x129   :  { %v2095_v18 = vpop.f32.mrf.mxu0  ;;  %v2097_v21 = vpop.f32.mrf.mxu1 }
 0x12a   :  { %3618 = vst [vmem:[#allocation2_spill] sm:$0xff] %v2095_v18 }
 0x12b   :  { %v650_v29 = vpop.f32.mrf.mxu0  ;;  %v778_v30 = vpop.f32.mrf.mxu1 }
 0x12c   :  { %v859_v29 = vsel %vm839_vm3, %v2069_v55, 0.0  ;;  %v858_v30 = vadd.f32 %v857_v17, %v856_v22  ;;  %v869_v17 = vsel %vm839_vm3, %v2089_v11, 0.0 }
 0x12d   :  { %v2105_v37 = vpop.f32.mrf.mxu0  ;;  %v2107_v38 = vpop.f32.mrf.mxu1 }
 0x12e   :  { %3619 = vst [vmem:[#allocation3_spill] sm:$0xff] %v2105_v37  ;;  %v860_v42 = vadd.f32 %v859_v29, %v858_v30 }
 0x12f   :  { %v653_v45 = vpop.f32.mrf.mxu0  ;;  %v781_v46 = vpop.f32.mrf.mxu1 }
 0x130   :  { %v862_v50 = vadd.f32 %v861_v41, %v860_v42 }
 0x131   :  { %v2113_v53 = vpop.f32.mrf.mxu0  ;;  %v2115_v54 = vpop.f32.mrf.mxu1 }
 0x132   :  { %3620 = vst [vmem:[#allocation4_spill] sm:$0xff] %v2113_v53 }
 0x133   :  { %v658_v61 = vpop.f32.mrf.mxu0  ;;  %v786_v62 = vpop.f32.mrf.mxu1 }
 0x134   :  { %v865_v61 = vsel %vm839_vm3, %v2081_v3, 0.0  ;;  %v864_v62 = vadd.f32 %v863_v49, %v862_v50  ;;  %v873_v49 = vsel %vm839_vm3, %v2105_v37, 0.0 }
 0x135   :  { %v2121_v5 = vpop.f32.mrf.mxu0  ;;  %v2123_v6 = vpop.f32.mrf.mxu1 }
 0x136   :  { %3621 = vst [vmem:[#allocation5_spill] sm:$0xff] %v2121_v5  ;;  %v866_v10 = vadd.f32 %v865_v61, %v864_v62  ;;  %v875_v61 = vsel %vm839_vm3, %v2113_v53, 0.0 }
 0x137   :  { %v661_v13 = vpop.f32.mrf.mxu0  ;;  %v789_v14 = vpop.f32.mrf.mxu1 }
 0x138   :  { %v868_v22 = vadd.f32 %v867_v9, %v866_v10 }
 0x139   :  { %v2129_v25 = vpop.f32.mrf.mxu0  ;;  %v2131_v26 = vpop.f32.mrf.mxu1 }
 0x13a   :  { %3622 = vst [vmem:[#allocation6_spill] sm:$0xff] %v2129_v25 }
 0x13b   :  { %v666_v33 = vpop.f32.mrf.mxu0  ;;  %v794_v34 = vpop.f32.mrf.mxu1 }
 0x13c   :  { %v871_v33 = vsel %vm839_vm3, %v2095_v18, 0.0  ;;  %v870_v34 = vadd.f32 %v869_v17, %v868_v22 }
 0x13d   :  { %v2137_v45 = vpop.f32.mrf.mxu0  ;;  %v2139_v46 = vpop.f32.mrf.mxu1 }
 0x13e   :  { %3623 = vst [vmem:[#allocation7_spill] sm:$0xff] %v2137_v45  ;;  %v872_v50 = vadd.f32 %v871_v33, %v870_v34  ;;  %v879_v33 = vsel %vm839_vm3, %v2129_v25, 0.0  ;;  %v881_v53 = vsel %vm839_vm3, %v2137_v45, 0.0 }
 0x13f   :  { %v669_v57 = vpop.f32.mrf.mxu0  ;;  %v797_v58 = vpop.f32.mrf.mxu1 }
 0x140   :  { %v874_v62 = vadd.f32 %v873_v49, %v872_v50 }
 0x141   :  { %v2145_v1 = vpop.f32.mrf.mxu0  ;;  %v2147_v2 = vpop.f32.mrf.mxu1 }
 0x142   :  { %3624 = vst [vmem:[#allocation8_spill] sm:$0xff] %v2145_v1 }
 0x143   :  { %v674_v13 = vpop.f32.mrf.mxu0  ;;  %v802_v14 = vpop.f32.mrf.mxu1 }
 0x144   :  { %v877_v13 = vsel %vm839_vm3, %v2121_v5, 0.0  ;;  %v876_v14 = vadd.f32 %v875_v61, %v874_v62  ;;  %v883_v61 = vsel %vm839_vm3, %v2145_v1, 0.0 }
 0x145   :  { %v2153_v29 = vpop.f32.mrf.mxu0  ;;  %v2155_v30 = vpop.f32.mrf.mxu1 }
 0x146   :  { %3625 = vst [vmem:[#allocation9_spill] sm:$0xff] %v2153_v29  ;;  %v878_v34 = vadd.f32 %v877_v13, %v876_v14  ;;  %v885_v25 = vsel %vm839_vm3, %v2153_v29, 0.0 }
 0x147   :  { %v677_v41 = vpop.f32.mrf.mxu0  ;;  %v805_v42 = vpop.f32.mrf.mxu1 }
 0x148   :  { %v880_v49 = vadd.f32 %v879_v33, %v878_v34 }
 0x149   :  { %v2161_v57 = vpop.f32.mrf.mxu0  ;;  %v2163_v58 = vpop.f32.mrf.mxu1 }
 0x14a   :  { %3626 = vst [vmem:[#allocation10_spill] sm:$0xff] %v2161_v57  ;;  %v882_v62 = vadd.f32 %v881_v53, %v880_v49  ;;  %v887_v33 = vsel %vm839_vm3, %v2161_v57, 0.0 }
 0x14b   :  { %v682_v9 = vpop.f32.mrf.mxu0  ;;  %v810_v10 = vpop.f32.mrf.mxu1 }
 0x14c   :  { %v884_v13 = vadd.f32 %v883_v61, %v882_v62 }
 0x14d   :  { %v2169_v17 = vpop.f32.mrf.mxu0  ;;  %v2171_v22 = vpop.f32.mrf.mxu1 }
 0x14e   :  { %3627 = vst [vmem:[#allocation11_spill] sm:$0xff] %v2169_v17  ;;  %v886_v34 = vadd.f32 %v885_v25, %v884_v13  ;;  %v889_v1 = vsel %vm839_vm3, %v2169_v17, 0.0 }
 0x14f   :  { %v685_v41 = vpop.f32.mrf.mxu0  ;;  %v813_v42 = vpop.f32.mrf.mxu1 }
 0x150   :  { %v888_v53 = vadd.f32 %v887_v33, %v886_v34 }
 0x151   :  { %v2177_v50 = vpop.f32.mrf.mxu0  ;;  %v2179_v9 = vpop.f32.mrf.mxu1 }
 0x152   :  { %3628 = vst [vmem:[#allocation12_spill] sm:$0xff] %v2177_v50  ;;  %3629 = vst [vmem:[#allocation13_spill] sm:$0xff] %v2179_v9  ;;  %v891_v61 = vsel %vm839_vm3, %v2177_v50, 0.0  ;;  %v890_v62 = vadd.f32 %v889_v1, %v888_v53 }
 0x153   :  { %v690_v10 = vpop.f32.mrf.mxu0  ;;  %v818_v5 = vpop.f32.mrf.mxu1 }
 0x154   :  { %v892_v25 = vadd.f32 %v891_v61, %v890_v62 }
 0x155   :  { %v2185_v14 = vpop.f32.mrf.mxu0  ;;  %v2187_v41 = vpop.f32.mrf.mxu1 }
 0x156   :  { %3630 = vst [vmem:[#allocation14_spill] sm:$0xff] %v2185_v14  ;;  %3631 = vst [vmem:[#allocation15_spill] sm:$0xff] %v2187_v41  ;;  %v893_v57 = vsel %vm839_vm3, %v2185_v14, 0.0 }
 0x157   :  { %v693_v42 = vpop.f32.mrf.mxu0  ;;  %v821_v45 = vpop.f32.mrf.mxu1  ;;  %v894_v34 = vadd.f32 %v893_v57, %v892_v25 }
 0x159   :  { %v2193_v49 = vpop.f32.mrf.mxu0  ;;  %v2195_v5 = vpop.f32.mrf.mxu1 }
 0x15a   :  { %3632 = vst [vmem:[#allocation16_spill] sm:$0xff] %v2195_v5  ;;  %v895_v33 = vsel %vm839_vm3, %v2193_v49, 0.0 }
 0x15b   :  { %v698_v10 = vpop.f32.mrf.mxu0  ;;  %v826_v29 = vpop.f32.mrf.mxu1  ;;  %v896_v1 = vadd.f32 %v895_v33, %v894_v34 }
 0x15d   :  { %v2201_v13 = vpop.f32.mrf.mxu0  ;;  %v2203_v45 = vpop.f32.mrf.mxu1 }
 0x15e   :  { %3633 = vst [vmem:[#allocation17_spill] sm:$0xff] %v2201_v13  ;;  %v897_v50 = vsel %vm839_vm3, %v2201_v13, 0.0 }
 0x15f   :  { %v701_v42 = vpop.f32.mrf.mxu0  ;;  %v829_v17 = vpop.f32.mrf.mxu1  ;;  %v898_v62 = vadd.f32 %v897_v50, %v896_v1  ;;  %v905_v50 = vsel %vm839_vm3, %v2035_v20, 0.0 }
 0x160   :  { %v903_v42 = vsel %vm839_vm3, %v2031_v16, 0.0 }
 0x161   :  { %v2209_v53 = vpop.f32.mrf.mxu0  ;;  %v2211_v29 = vpop.f32.mrf.mxu1 }
 0x162   :  { %v899_v61 = vsel %vm839_vm3, %v2209_v53, 0.0 }
 0x163   :  { %v706_v10 = vpop.f32.mrf.mxu0  ;;  %v834_v14 = vpop.f32.mrf.mxu1  ;;  %v900_v37 = vadd.f32 %v899_v61, %v898_v62  ;;  %v909_v62 = vsel %vm839_vm3, %v2043_v28, 0.0 }
 0x164   :  { %v907_v14 = vsel %vm839_vm3, %v2039_v24, 0.0 }
 0x165   :  { %v2215_v18 = vpop.f32.mrf.mxu0  ;;  %v2217_v57 = vpop.f32.mrf.mxu1 }
 0x166   :  { %v901_v17 = vsel %vm839_vm3, %v2215_v18, 0.0 }
 0x167   :  { %v902_v25 = vadd.f32 %v901_v17, %v900_v37  ;;  %v709_v33 = vpop.f32.mrf.mxu0  ;;  %v837_v34 = vpop.f32.mrf.mxu1  ;;  %v911_v37 = vsel %vm839_vm3, %v2047_v32, 0.0 }
 0x168   :  { %v913_v33 = vsel %vm839_vm3, %v2051_v36, 0.0  ;;  %v915_v34 = vsel %vm839_vm3, %v2055_v40, 0.0 }
 0x169   :  { %v904_v13 = vadd.f32 %v903_v42, %v902_v25  ;;  %v917_v42 = vsel %vm839_vm3, %v2059_v44, 0.0 }
 0x16b   :  { %v906_v1 = vadd.f32 %v905_v50, %v904_v13 }
 0x16d   :  { %v908_v61 = vadd.f32 %v907_v14, %v906_v1  ;;  %v919_v1 = vsel %vm839_vm3, %v2063_v48, 0.0 }
 0x16f   :  { %v910_v10 = vadd.f32 %v909_v62, %v908_v61  ;;  %v921_v61 = vsel %vm839_vm3, %v2067_v52, 0.0 }
 0x171   :  { %v912_v17 = vadd.f32 %v911_v37, %v910_v10  ;;  %v923_v10 = vsel %vm839_vm3, %v2071_v56, 0.0 }
 0x173   :  { %v914_v25 = vadd.f32 %v913_v33, %v912_v17  ;;  %v925_v17 = vsel %vm839_vm3, %v2075_v60, 0.0 }
 0x175   :  { %v916_v13 = vadd.f32 %v915_v34, %v914_v25  ;;  %v927_v25 = vsel %vm839_vm3, %v2079_v0, 0.0 }
 0x177   :  { %v918_v50 = vadd.f32 %v917_v42, %v916_v13  ;;  %v929_v13 = vsel %vm839_vm3, %v2083_v4, 0.0 }
 0x179   :  { %v920_v14 = vadd.f32 %v919_v1, %v918_v50  ;;  %v931_v50 = vsel %vm839_vm3, %v2087_v8, 0.0 }
 0x17b   :  { %v922_v62 = vadd.f32 %v921_v61, %v920_v14  ;;  %v933_v14 = vsel %vm839_vm3, %v2091_v12, 0.0 }
 0x17d   :  { %v924_v37 = vadd.f32 %v923_v10, %v922_v62  ;;  %v935_v62 = vsel %vm839_vm3, %v2097_v21, 0.0 }
 0x17f   :  { %v926_v33 = vadd.f32 %v925_v17, %v924_v37  ;;  %v937_v37 = vsel %vm839_vm3, %v2107_v38, 0.0 }
 0x181   :  { %v928_v34 = vadd.f32 %v927_v25, %v926_v33  ;;  %v939_v33 = vsel %vm839_vm3, %v2115_v54, 0.0 }
 0x183   :  { %v930_v42 = vadd.f32 %v929_v13, %v928_v34  ;;  %v941_v34 = vsel %vm839_vm3, %v2123_v6, 0.0 }
 0x185   :  { %v932_v1 = vadd.f32 %v931_v50, %v930_v42  ;;  %v943_v42 = vsel %vm839_vm3, %v2131_v26, 0.0 }
 0x187   :  { %v934_v61 = vadd.f32 %v933_v14, %v932_v1  ;;  %v945_v1 = vsel %vm839_vm3, %v2139_v46, 0.0 }
 0x189   :  { %v936_v10 = vadd.f32 %v935_v62, %v934_v61  ;;  %v947_v61 = vsel %vm839_vm3, %v2147_v2, 0.0 }
 0x18b   :  { %v938_v17 = vadd.f32 %v937_v37, %v936_v10  ;;  %v949_v10 = vsel %vm839_vm3, %v2155_v30, 0.0 }
 0x18d   :  { %v940_v25 = vadd.f32 %v939_v33, %v938_v17  ;;  %v951_v17 = vsel %vm839_vm3, %v2163_v58, 0.0 }
 0x18f   :  { %v942_v13 = vadd.f32 %v941_v34, %v940_v25  ;;  %v953_v25 = vsel %vm839_vm3, %v2171_v22, 0.0 }
 0x191   :  { %v944_v50 = vadd.f32 %v943_v42, %v942_v13  ;;  %v955_v13 = vsel %vm839_vm3, %v2179_v9, 0.0 }
 0x193   :  { %v946_v14 = vadd.f32 %v945_v1, %v944_v50  ;;  %v957_v50 = vsel %vm839_vm3, %v2187_v41, 0.0 }
 0x195   :  { %v948_v62 = vadd.f32 %v947_v61, %v946_v14  ;;  %v959_v14 = vsel %vm839_vm3, %v2195_v5, 0.0 }
 0x197   :  { %v950_v37 = vadd.f32 %v949_v10, %v948_v62  ;;  %v961_v62 = vsel %vm839_vm3, %v2203_v45, 0.0 }
 0x199   :  { %v952_v33 = vadd.f32 %v951_v17, %v950_v37  ;;  %v963_v37 = vsel %vm839_vm3, %v2211_v29, 0.0 }
 0x19b   :  { %v954_v34 = vadd.f32 %v953_v25, %v952_v33  ;;  %v965_v33 = vsel %vm839_vm3, %v2217_v57, 0.0 }
 0x19d   :  { %v956_v42 = vadd.f32 %v955_v13, %v954_v34 }
 0x19f   :  { %v958_v1 = vadd.f32 %v957_v50, %v956_v42 }
 0x1a1   :  { %v960_v61 = vadd.f32 %v959_v14, %v958_v1 }
 0x1a3   :  { %v962_v10 = vadd.f32 %v961_v62, %v960_v61 }
 0x1a5   :  { %v964_v17 = vadd.f32 %v963_v37, %v962_v10 }
 0x1a7   :  { %v966_v25 = vadd.f32 %v965_v33, %v964_v17 }
 0x1a9   :  { %v967_v34 = vrot.slane %v966_v25, 4 }
 0x1ab   :  { %v968_v13 = vadd.f32 %v967_v34, %v966_v25 }
 0x1ad   :  { %v969_v41 = vrot.slane %v968_v13, 2 }
 0x1af   :  { %v970_v42 = vadd.f32 %v969_v41, %v968_v13 }
 0x1b1   :  { %v971_v50 = vrot.slane %v970_v42, 1 }
 0x1b3   :  { %v972_v9 = vadd.f32 %v971_v50, %v970_v42 }
 0x1b5   :  { %v2285_v5 = vmul.f32 0.001953125, %v972_v9 }
 0x1b7   :  { %v2289_v1 = vsub.f32 %v2029_v15, %v2285_v5  ;;  %v2293_v14 = vsub.f32 %v2033_v19, %v2285_v5  ;;  %v2297_v61 = vsub.f32 %v2037_v23, %v2285_v5  ;;  %v2301_v62 = vsub.f32 %v2041_v27, %v2285_v5 }
 0x1b8   :  { %v2309_v15 = vsub.f32 %v2045_v31, %v2285_v5  ;;  %v2315_v23 = vsub.f32 %v2049_v35, %v2285_v5  ;;  %v2323_v33 = vsub.f32 %v2053_v39, %v2285_v5  ;;  %v2330_v35 = vsub.f32 %v2057_v43, %v2285_v5 }
 0x1b9   :  { %v1038_v9 = vmul.f32 %v2289_v1, %v2289_v1  ;;  %v1039_v41 = vmul.f32 %v2293_v14, %v2293_v14  ;;  %v1040_v19 = vmul.f32 %v2297_v61, %v2297_v61  ;;  %v1041_v27 = vmul.f32 %v2301_v62, %v2301_v62 }
 0x1ba   :  { %v1042_v31 = vmul.f32 %v2309_v15, %v2309_v15  ;;  %v1043_v13 = vmul.f32 %v2315_v23, %v2315_v23  ;;  %v2337_v39 = vsub.f32 %v2061_v47, %v2285_v5  ;;  %v2344_v43 = vsub.f32 %v2065_v51, %v2285_v5 }
 0x1bb   :  { %v1102_v10 = vsel %vm839_vm3, %v1038_v9, 0.0  ;;  %v1103_v37 = vsel %vm839_vm3, %v1039_v41, 0.0  ;;  %v1105_v25 = vsel %vm839_vm3, %v1040_v19, 0.0  ;;  %v1107_v42 = vsel %vm839_vm3, %v1041_v27, 0.0 }
 0x1bc   :  { %v1104_v17 = vadd.f32 %v1103_v37, %v1102_v10  ;;  %v1044_v9 = vmul.f32 %v2323_v33, %v2323_v33  ;;  %v1109_v41 = vsel %vm839_vm3, %v1042_v31, 0.0  ;;  %v1045_v10 = vmul.f32 %v2330_v35, %v2330_v35 }
 0x1bd   :  { %v1111_v27 = vsel %vm839_vm3, %v1043_v13, 0.0  ;;  %v2351_v47 = vsub.f32 %v2069_v55, %v2285_v5  ;;  %v2358_v51 = vsub.f32 %v2073_v59, %v2285_v5  ;;  %v2365_v55 = vsub.f32 %v2077_v63, %v2285_v5 }
 0x1be   :  { %v1106_v34 = vadd.f32 %v1105_v25, %v1104_v17  ;;  %v1046_v17 = vmul.f32 %v2337_v39, %v2337_v39  ;;  %v1113_v31 = vsel %vm839_vm3, %v1044_v9, 0.0  ;;  %v1115_v13 = vsel %vm839_vm3, %v1045_v10, 0.0 }
 0x1bf   :  { %v2372_v59 = vsub.f32 %v2081_v3, %v2285_v5  ;;  %v2379_v63 = vsub.f32 %v2085_v7, %v2285_v5  ;;  %v2386_v3 = vsub.f32 %v2089_v11, %v2285_v5 }
 0x1c0   :  { %v1108_v50 = vadd.f32 %v1107_v42, %v1106_v34  ;;  %v1047_v34 = vmul.f32 %v2344_v43, %v2344_v43  ;;  %v1117_v9 = vsel %vm839_vm3, %v1046_v17, 0.0 }
 0x1c1   :  { %3634 = vst [vmem:[#allocation18_spill] sm:$0xff] %v2386_v3 }
 0x1c2   :  { %v1110_v19 = vadd.f32 %v1109_v41, %v1108_v50  ;;  %v1048_v50 = vmul.f32 %v2351_v47, %v2351_v47  ;;  %v1119_v10 = vsel %vm839_vm3, %v1047_v34, 0.0 }
 0x1c4   :  { %v1112_v37 = vadd.f32 %v1111_v27, %v1110_v19  ;;  %v1049_v19 = vmul.f32 %v2358_v51, %v2358_v51  ;;  %v1121_v17 = vsel %vm839_vm3, %v1048_v50, 0.0 }
 0x1c6   :  { %v1114_v25 = vadd.f32 %v1113_v31, %v1112_v37  ;;  %v1050_v37 = vmul.f32 %v2365_v55, %v2365_v55  ;;  %v1123_v34 = vsel %vm839_vm3, %v1049_v19, 0.0 }
 0x1c8   :  { %v1116_v42 = vadd.f32 %v1115_v13, %v1114_v25  ;;  %v1051_v25 = vmul.f32 %v2372_v59, %v2372_v59  ;;  %v1125_v50 = vsel %vm839_vm3, %v1050_v37, 0.0 }
 0x1ca   :  { %v1118_v41 = vadd.f32 %v1117_v9, %v1116_v42  ;;  %v3635_v42 = vld [vmem:[#allocation2_spill] sm:$0xff]  ;;  %v1052_v9 = vmul.f32 %v2379_v63, %v2379_v63  ;;  %v1127_v19 = vsel %vm839_vm3, %v1051_v25, 0.0 }
 0x1cb   :  { %v2393_v7 = vsub.f32 %v3635_v42, %v2285_v5 }
 0x1cc   :  { %v1120_v27 = vadd.f32 %v1119_v10, %v1118_v41  ;;  %v3637_v10 = vld [vmem:[#allocation3_spill] sm:$0xff]  ;;  %v1129_v37 = vsel %vm839_vm3, %v1052_v9, 0.0 }
 0x1cd   :  { %3636 = vst [vmem:[#allocation2_spill] sm:$0xff] %v2393_v7  ;;  %v2400_v11 = vsub.f32 %v3637_v10, %v2285_v5  ;;  %v1054_v42 = vmul.f32 %v2393_v7, %v2393_v7 }
 0x1ce   :  { %v1122_v31 = vadd.f32 %v1121_v17, %v1120_v27  ;;  %v1053_v27 = vmul.f32 %v2386_v3, %v2386_v3 }
 0x1cf   :  { %3638 = vst [vmem:[#allocation3_spill] sm:$0xff] %v2400_v11  ;;  %v1055_v3 = vmul.f32 %v2400_v11, %v2400_v11  ;;  %v1133_v9 = vsel %vm839_vm3, %v1054_v42, 0.0 }
 0x1d0   :  { %v1124_v13 = vadd.f32 %v1123_v34, %v1122_v31  ;;  %v3639_v31 = vld [vmem:[#allocation4_spill] sm:$0xff]  ;;  %v1131_v25 = vsel %vm839_vm3, %v1053_v27, 0.0 }
 0x1d1   :  { %v2407_v34 = vsub.f32 %v3639_v31, %v2285_v5  ;;  %v1135_v27 = vsel %vm839_vm3, %v1055_v3, 0.0 }
 0x1d2   :  { %v1126_v41 = vadd.f32 %v1125_v50, %v1124_v13  ;;  %v3641_v50 = vld [vmem:[#allocation5_spill] sm:$0xff] }
 0x1d3   :  { %3640 = vst [vmem:[#allocation4_spill] sm:$0xff] %v2407_v34  ;;  %v2414_v10 = vsub.f32 %v3641_v50, %v2285_v5  ;;  %v1056_v7 = vmul.f32 %v2407_v34, %v2407_v34 }
 0x1d4   :  { %v1128_v17 = vadd.f32 %v1127_v19, %v1126_v41  ;;  %v3643_v19 = vld [vmem:[#allocation6_spill] sm:$0xff] }
 0x1d5   :  { %3642 = vst [vmem:[#allocation5_spill] sm:$0xff] %v2414_v10  ;;  %v2421_v31 = vsub.f32 %v3643_v19, %v2285_v5  ;;  %v1057_v11 = vmul.f32 %v2414_v10, %v2414_v10  ;;  %v1137_v42 = vsel %vm839_vm3, %v1056_v7, 0.0 }
 0x1d6   :  { %v1130_v13 = vadd.f32 %v1129_v37, %v1128_v17  ;;  %v3645_v37 = vld [vmem:[#allocation7_spill] sm:$0xff] }
 0x1d7   :  { %3644 = vst [vmem:[#allocation6_spill] sm:$0xff] %v2421_v31  ;;  %v2428_v50 = vsub.f32 %v3645_v37, %v2285_v5  ;;  %v1058_v34 = vmul.f32 %v2421_v31, %v2421_v31  ;;  %v1139_v3 = vsel %vm839_vm3, %v1057_v11, 0.0 }
 0x1d8   :  { %v1132_v41 = vadd.f32 %v1131_v25, %v1130_v13  ;;  %v3647_v25 = vld [vmem:[#allocation8_spill] sm:$0xff] }
 0x1d9   :  { %3646 = vst [vmem:[#allocation7_spill] sm:$0xff] %v2428_v50  ;;  %v2435_v19 = vsub.f32 %v3647_v25, %v2285_v5  ;;  %v1059_v10 = vmul.f32 %v2428_v50, %v2428_v50  ;;  %v1141_v7 = vsel %vm839_vm3, %v1058_v34, 0.0 }
 0x1da   :  { %v1134_v17 = vadd.f32 %v1133_v9, %v1132_v41  ;;  %v3649_v9 = vld [vmem:[#allocation9_spill] sm:$0xff] }
 0x1db   :  { %3648 = vst [vmem:[#allocation8_spill] sm:$0xff] %v2435_v19  ;;  %v2442_v37 = vsub.f32 %v3649_v9, %v2285_v5  ;;  %v1060_v31 = vmul.f32 %v2435_v19, %v2435_v19  ;;  %v1143_v11 = vsel %vm839_vm3, %v1059_v10, 0.0 }
 0x1dc   :  { %v1136_v13 = vadd.f32 %v1135_v27, %v1134_v17  ;;  %v3651_v27 = vld [vmem:[#allocation10_spill] sm:$0xff] }
 0x1dd   :  { %3650 = vst [vmem:[#allocation9_spill] sm:$0xff] %v2442_v37  ;;  %v2449_v25 = vsub.f32 %v3651_v27, %v2285_v5  ;;  %v1061_v50 = vmul.f32 %v2442_v37, %v2442_v37  ;;  %v1145_v34 = vsel %vm839_vm3, %v1060_v31, 0.0 }
 0x1de   :  { %v1138_v41 = vadd.f32 %v1137_v42, %v1136_v13  ;;  %v3652_v42 = vld [vmem:[#allocation11_spill] sm:$0xff] }
 0x1df   :  { %v2456_v9 = vsub.f32 %v3652_v42, %v2285_v5  ;;  %v1062_v19 = vmul.f32 %v2449_v25, %v2449_v25  ;;  %v1147_v10 = vsel %vm839_vm3, %v1061_v50, 0.0 }
 0x1e0   :  { %v1140_v17 = vadd.f32 %v1139_v3, %v1138_v41  ;;  %v3654_v3 = vld [vmem:[#allocation12_spill] sm:$0xff] }
 0x1e1   :  { %3653 = vst [vmem:[#allocation10_spill] sm:$0xff] %v2456_v9  ;;  %v2463_v27 = vsub.f32 %v3654_v3, %v2285_v5  ;;  %v1063_v37 = vmul.f32 %v2456_v9, %v2456_v9  ;;  %v1149_v31 = vsel %vm839_vm3, %v1062_v19, 0.0 }
 0x1e2   :  { %v1142_v13 = vadd.f32 %v1141_v7, %v1140_v17  ;;  %v3655_v7 = vld [vmem:[#allocation14_spill] sm:$0xff] }
 0x1e3   :  { %v2470_v42 = vsub.f32 %v3655_v7, %v2285_v5  ;;  %v1064_v3 = vmul.f32 %v2463_v27, %v2463_v27  ;;  %v1151_v50 = vsel %vm839_vm3, %v1063_v37, 0.0 }
 0x1e4   :  { %v1144_v41 = vadd.f32 %v1143_v11, %v1142_v13  ;;  %v2477_v11 = vsub.f32 %v2193_v49, %v2285_v5  ;;  %v2491_v49 = vsub.f32 %v2209_v53, %v2285_v5  ;;  %v2505_v53 = vsub.f32 %v2031_v16, %v2285_v5 }
 0x1e5   :  { %v1065_v9 = vmul.f32 %v2470_v42, %v2470_v42  ;;  %v1153_v19 = vsel %vm839_vm3, %v1064_v3, 0.0  ;;  %v2519_v16 = vsub.f32 %v2039_v24, %v2285_v5  ;;  %v2533_v24 = vsub.f32 %v2047_v32, %v2285_v5 }
 0x1e6   :  { %v1146_v17 = vadd.f32 %v1145_v34, %v1144_v41  ;;  %v3656_v34 = vld [vmem:[#allocation17_spill] sm:$0xff]  ;;  %v2547_v32 = vsub.f32 %v2055_v40, %v2285_v5  ;;  %v2561_v40 = vsub.f32 %v2063_v48, %v2285_v5  ;;  %v2575_v48 = vsub.f32 %v2071_v56, %v2285_v5 }
 0x1e7   :  { %v2484_v7 = vsub.f32 %v3656_v34, %v2285_v5  ;;  %v1155_v37 = vsel %vm839_vm3, %v1065_v9, 0.0  ;;  %v2589_v56 = vsub.f32 %v2079_v0, %v2285_v5  ;;  %v2603_v0 = vsub.f32 %v2087_v8, %v2285_v5 }
 0x1e8   :  { %v1148_v13 = vadd.f32 %v1147_v10, %v1146_v17  ;;  %v1066_v10 = vmul.f32 %v2477_v11, %v2477_v11  ;;  %v2617_v8 = vsub.f32 %v2097_v21, %v2285_v5  ;;  %v2631_v21 = vsub.f32 %v2115_v54, %v2285_v5 }
 0x1e9   :  { %v1067_v34 = vmul.f32 %v2484_v7, %v2484_v7  ;;  %v2645_v54 = vsub.f32 %v2131_v26, %v2285_v5  ;;  %v2659_v26 = vsub.f32 %v2147_v2, %v2285_v5  ;;  %v2673_v2 = vsub.f32 %v2163_v58, %v2285_v5 }
 0x1ea   :  { %v1150_v41 = vadd.f32 %v1149_v31, %v1148_v13  ;;  %v2498_v31 = vsub.f32 %v2215_v18, %v2285_v5  ;;  %v1157_v3 = vsel %vm839_vm3, %v1066_v10, 0.0  ;;  %v2512_v18 = vsub.f32 %v2035_v20, %v2285_v5 }
 0x1eb   :  { %v1159_v9 = vsel %vm839_vm3, %v1067_v34, 0.0  ;;  %v2526_v20 = vsub.f32 %v2043_v28, %v2285_v5  ;;  %v2540_v28 = vsub.f32 %v2051_v36, %v2285_v5  ;;  %v2554_v36 = vsub.f32 %v2059_v44, %v2285_v5  ;;  %3657 = vst [vmem:[#allocation11_spill] sm:$0xff] %v2659_v26  ;;  %3659 = vst [vmem:[#allocation14_spill] sm:$0xff] %v2673_v2 }
 0x1ec   :  { %v1152_v17 = vadd.f32 %v1151_v50, %v1150_v41  ;;  %v1068_v50 = vmul.f32 %v2491_v49, %v2491_v49  ;;  %v2568_v44 = vsub.f32 %v2067_v52, %v2285_v5  ;;  %v2582_v52 = vsub.f32 %v2075_v60, %v2285_v5 }
 0x1ed   :  { %v2596_v60 = vsub.f32 %v2083_v4, %v2285_v5  ;;  %v2610_v4 = vsub.f32 %v2091_v12, %v2285_v5  ;;  %v2624_v12 = vsub.f32 %v2107_v38, %v2285_v5  ;;  %v2638_v38 = vsub.f32 %v2123_v6, %v2285_v5 }
 0x1ee   :  { %v1154_v13 = vadd.f32 %v1153_v19, %v1152_v17  ;;  %v1069_v19 = vmul.f32 %v2498_v31, %v2498_v31  ;;  %v1161_v10 = vsel %vm839_vm3, %v1068_v50, 0.0  ;;  %v2652_v6 = vsub.f32 %v2139_v46, %v2285_v5 }
 0x1ef   :  { %v2666_v46 = vsub.f32 %v2155_v30, %v2285_v5  ;;  %v2680_v30 = vsub.f32 %v2171_v22, %v2285_v5 }
 0x1f0   :  { %v1156_v41 = vadd.f32 %v1155_v37, %v1154_v13  ;;  %v1070_v37 = vmul.f32 %v2505_v53, %v2505_v53  ;;  %v1163_v34 = vsel %vm839_vm3, %v1069_v19, 0.0 }
 0x1f1   :  { %3658 = vst [vmem:[#allocation12_spill] sm:$0xff] %v2666_v46  ;;  %3660 = vst [vmem:[#allocation17_spill] sm:$0xff] %v2680_v30 }
 0x1f2   :  { %v1158_v17 = vadd.f32 %v1157_v3, %v1156_v41  ;;  %v1071_v3 = vmul.f32 %v2512_v18, %v2512_v18  ;;  %v1165_v50 = vsel %vm839_vm3, %v1070_v37, 0.0 }
 0x1f4   :  { %v1160_v13 = vadd.f32 %v1159_v9, %v1158_v17  ;;  %v1072_v9 = vmul.f32 %v2519_v16, %v2519_v16  ;;  %v1167_v19 = vsel %vm839_vm3, %v1071_v3, 0.0 }
 0x1f6   :  { %v1162_v41 = vadd.f32 %v1161_v10, %v1160_v13  ;;  %v1073_v10 = vmul.f32 %v2526_v20, %v2526_v20  ;;  %v1169_v37 = vsel %vm839_vm3, %v1072_v9, 0.0 }
 0x1f8   :  { %v1164_v17 = vadd.f32 %v1163_v34, %v1162_v41  ;;  %v1074_v34 = vmul.f32 %v2533_v24, %v2533_v24  ;;  %v1171_v3 = vsel %vm839_vm3, %v1073_v10, 0.0 }
 0x1fa   :  { %v1166_v13 = vadd.f32 %v1165_v50, %v1164_v17  ;;  %v1075_v50 = vmul.f32 %v2540_v28, %v2540_v28  ;;  %v1173_v9 = vsel %vm839_vm3, %v1074_v34, 0.0 }
 0x1fc   :  { %v1168_v41 = vadd.f32 %v1167_v19, %v1166_v13  ;;  %v1076_v19 = vmul.f32 %v2547_v32, %v2547_v32  ;;  %v1175_v10 = vsel %vm839_vm3, %v1075_v50, 0.0 }
 0x1fe   :  { %v1170_v17 = vadd.f32 %v1169_v37, %v1168_v41  ;;  %v1077_v37 = vmul.f32 %v2554_v36, %v2554_v36  ;;  %v1177_v34 = vsel %vm839_vm3, %v1076_v19, 0.0 }
 0x200   :  { %v1172_v13 = vadd.f32 %v1171_v3, %v1170_v17  ;;  %v1078_v3 = vmul.f32 %v2561_v40, %v2561_v40  ;;  %v1179_v50 = vsel %vm839_vm3, %v1077_v37, 0.0 }
 0x202   :  { %v1174_v41 = vadd.f32 %v1173_v9, %v1172_v13  ;;  %v1079_v9 = vmul.f32 %v2568_v44, %v2568_v44  ;;  %v1181_v19 = vsel %vm839_vm3, %v1078_v3, 0.0 }
 0x204   :  { %v1176_v17 = vadd.f32 %v1175_v10, %v1174_v41  ;;  %v1080_v10 = vmul.f32 %v2575_v48, %v2575_v48  ;;  %v1183_v37 = vsel %vm839_vm3, %v1079_v9, 0.0 }
 0x206   :  { %v1178_v13 = vadd.f32 %v1177_v34, %v1176_v17  ;;  %v1081_v34 = vmul.f32 %v2582_v52, %v2582_v52  ;;  %v1185_v3 = vsel %vm839_vm3, %v1080_v10, 0.0 }
 0x208   :  { %v1180_v41 = vadd.f32 %v1179_v50, %v1178_v13  ;;  %v1082_v50 = vmul.f32 %v2589_v56, %v2589_v56  ;;  %v1187_v9 = vsel %vm839_vm3, %v1081_v34, 0.0 }
 0x20a   :  { %v1182_v17 = vadd.f32 %v1181_v19, %v1180_v41  ;;  %v1083_v19 = vmul.f32 %v2596_v60, %v2596_v60  ;;  %v1189_v10 = vsel %vm839_vm3, %v1082_v50, 0.0 }
 0x20c   :  { %v1184_v13 = vadd.f32 %v1183_v37, %v1182_v17  ;;  %v1084_v37 = vmul.f32 %v2603_v0, %v2603_v0  ;;  %v1191_v34 = vsel %vm839_vm3, %v1083_v19, 0.0 }
 0x20e   :  { %v1186_v41 = vadd.f32 %v1185_v3, %v1184_v13  ;;  %v1085_v3 = vmul.f32 %v2610_v4, %v2610_v4  ;;  %v1193_v50 = vsel %vm839_vm3, %v1084_v37, 0.0 }
 0x210   :  { %v1188_v17 = vadd.f32 %v1187_v9, %v1186_v41  ;;  %v1086_v9 = vmul.f32 %v2617_v8, %v2617_v8  ;;  %v1195_v19 = vsel %vm839_vm3, %v1085_v3, 0.0 }
 0x212   :  { %v1190_v13 = vadd.f32 %v1189_v10, %v1188_v17  ;;  %v1087_v10 = vmul.f32 %v2624_v12, %v2624_v12  ;;  %v1197_v37 = vsel %vm839_vm3, %v1086_v9, 0.0 }
 0x214   :  { %v1192_v41 = vadd.f32 %v1191_v34, %v1190_v13  ;;  %v1088_v34 = vmul.f32 %v2631_v21, %v2631_v21  ;;  %v1199_v3 = vsel %vm839_vm3, %v1087_v10, 0.0 }
 0x216   :  { %v1194_v17 = vadd.f32 %v1193_v50, %v1192_v41  ;;  %v1089_v50 = vmul.f32 %v2638_v38, %v2638_v38  ;;  %v1201_v9 = vsel %vm839_vm3, %v1088_v34, 0.0 }
 0x218   :  { %v1196_v13 = vadd.f32 %v1195_v19, %v1194_v17  ;;  %v1090_v19 = vmul.f32 %v2645_v54, %v2645_v54  ;;  %v1203_v10 = vsel %vm839_vm3, %v1089_v50, 0.0 }
 0x21a   :  { %v1198_v41 = vadd.f32 %v1197_v37, %v1196_v13  ;;  %v1091_v37 = vmul.f32 %v2652_v6, %v2652_v6  ;;  %v1205_v34 = vsel %vm839_vm3, %v1090_v19, 0.0 }
 0x21c   :  { %v1200_v17 = vadd.f32 %v1199_v3, %v1198_v41  ;;  %v1092_v3 = vmul.f32 %v2659_v26, %v2659_v26  ;;  %v1207_v50 = vsel %vm839_vm3, %v1091_v37, 0.0  ;;  %v1094_v26 = vmul.f32 %v2673_v2, %v2673_v2 }
 0x21e   :  { %v1202_v13 = vadd.f32 %v1201_v9, %v1200_v17  ;;  %v1093_v9 = vmul.f32 %v2666_v46, %v2666_v46  ;;  %v1209_v19 = vsel %vm839_vm3, %v1092_v3, 0.0  ;;  %v1095_v46 = vmul.f32 %v2680_v30, %v2680_v30 }
 0x21f   :  { %v1213_v3 = vsel %vm839_vm3, %v1094_v26, 0.0 }
 0x220   :  { %v1204_v41 = vadd.f32 %v1203_v10, %v1202_v13  ;;  %v3661_v10 = vld [vmem:[#allocation13_spill] sm:$0xff]  ;;  %v1211_v37 = vsel %vm839_vm3, %v1093_v9, 0.0  ;;  %v1215_v9 = vsel %vm839_vm3, %v1095_v46, 0.0 }
 0x221   :  { %v2687_v58 = vsub.f32 %v3661_v10, %v2285_v5 }
 0x222   :  { %v1206_v17 = vadd.f32 %v1205_v34, %v1204_v41  ;;  %v3663_v34 = vld [vmem:[#allocation15_spill] sm:$0xff] }
 0x223   :  { %3662 = vst [vmem:[#allocation13_spill] sm:$0xff] %v2687_v58  ;;  %v2694_v22 = vsub.f32 %v3663_v34, %v2285_v5  ;;  %v1096_v2 = vmul.f32 %v2687_v58, %v2687_v58 }
 0x224   :  { %v1208_v13 = vadd.f32 %v1207_v50, %v1206_v17  ;;  %v3665_v50 = vld [vmem:[#allocation16_spill] sm:$0xff] }
 0x225   :  { %3664 = vst [vmem:[#allocation15_spill] sm:$0xff] %v2694_v22  ;;  %v2701_v10 = vsub.f32 %v3665_v50, %v2285_v5  ;;  %v1097_v34 = vmul.f32 %v2694_v22, %v2694_v22  ;;  %v1217_v26 = vsel %vm839_vm3, %v1096_v2, 0.0 }
 0x226   :  { %v1210_v41 = vadd.f32 %v1209_v19, %v1208_v13  ;;  %v2708_v19 = vsub.f32 %v2203_v45, %v2285_v5  ;;  %v2722_v45 = vsub.f32 %v2217_v57, %v2285_v5 }
 0x227   :  { %3666 = vst [vmem:[#allocation16_spill] sm:$0xff] %v2701_v10  ;;  %v1098_v50 = vmul.f32 %v2701_v10, %v2701_v10  ;;  %v1219_v46 = vsel %vm839_vm3, %v1097_v34, 0.0 }
 0x228   :  { %v1212_v17 = vadd.f32 %v1211_v37, %v1210_v41  ;;  %3667 = vst [vmem:[#allocation19_spill] sm:$0xff] %v2708_v19  ;;  %v2715_v37 = vsub.f32 %v2211_v29, %v2285_v5  ;;  %3669 = vst [vmem:[#allocation21_spill] sm:$0xff] %v2722_v45  ;;  %v1101_v2 = vmul.f32 %v2722_v45, %v2722_v45 }
 0x22a   :  { %v1214_v13 = vadd.f32 %v1213_v3, %v1212_v17  ;;  %3668 = vst [vmem:[#allocation20_spill] sm:$0xff] %v2715_v37  ;;  %v1099_v3 = vmul.f32 %v2708_v19, %v2708_v19  ;;  %v1100_v29 = vmul.f32 %v2715_v37, %v2715_v37  ;;  %v1227_v19 = vsel %vm839_vm3, %v1101_v2, 0.0 }
 0x22c   :  { %v1216_v41 = vadd.f32 %v1215_v9, %v1214_v13  ;;  %v1221_v9 = vsel %vm839_vm3, %v1098_v50, 0.0  ;;  %v1225_v5 = vsel %vm839_vm3, %v1100_v29, 0.0 }
 0x22e   :  { %v1218_v17 = vadd.f32 %v1217_v26, %v1216_v41  ;;  %v1223_v41 = vsel %vm839_vm3, %v1099_v3, 0.0 }
 0x230   :  { %v1220_v13 = vadd.f32 %v1219_v46, %v1218_v17 }
 0x232   :  { %v1222_v22 = vadd.f32 %v1221_v9, %v1220_v13  ;;  %v1240_v9 = vlaneseq }
 0x234   :  { %v1224_v26 = vadd.f32 %v1223_v41, %v1222_v22  ;;  %v1241_v45 = vshrl.u32 %v1240_v9, 7  ;;  %v1238_v22 = vld [vmem:[%s3579_s2] sm:$0x1]  ;;  %v3677_v9 = vld [vmem:[#allocation8_spill] sm:$0xff] }
 0x236   :  { %v1226_v57 = vadd.f32 %v1225_v5, %v1224_v26  ;;  %v1242_v3 = vsub.s32 0, %v1241_v45  ;;  %v3670_v45 = vld [vmem:[#allocation18_spill] sm:$0xff]  ;;  %v3672_v5 = vld [vmem:[#allocation3_spill] sm:$0xff] }
 0x237   :  { %v3671_v26 = vld [vmem:[#allocation2_spill] sm:$0xff] }
 0x238   :  { %v1228_v10 = vadd.f32 %v1227_v19, %v1226_v57  ;;  %v3673_v57 = vld [vmem:[#allocation4_spill] sm:$0xff] }
 0x23a   :  { %v1229_v34 = vrot.slane %v1228_v10, 4 }
 0x23c   :  { %v1230_v17 = vadd.f32 %v1229_v34, %v1228_v10  ;;  %v3674_v34 = vld [vmem:[#allocation5_spill] sm:$0xff] }
 0x23e   :  { %v1231_v46 = vrot.slane %v1230_v17, 2 }
 0x240   :  { %v1232_v58 = vadd.f32 %v1231_v46, %v1230_v17  ;;  %v3675_v17 = vld [vmem:[#allocation6_spill] sm:$0xff] }
 0x242   :  { %v1233_v37 = vrot.slane %v1232_v58, 1 }
 0x244   :  { %v1234_v30 = vadd.f32 %v1233_v37, %v1232_v58 }
 0x246   :  { %v1235_v50 = vmul.f32 0.001953125, %v1234_v30 }
 0x248   :  { %v1236_v13 = vadd.f32 1e-05, %v1235_v50  ;;  %v3676_v50 = vld [vmem:[#allocation7_spill] sm:$0xff] }
 0x24a   :  { %1746 = vrsqrt.f32 %v1236_v13 }
 0x257   :  { %v1747_v29 = vpop.eup %1746 }
 0x258   :  { %v1239_v41 = vmul.f32 %v1747_v29, %v1238_v22 }
 0x25a   :  { %v2738_v2 = vrot.slane %v1239_v41, %v1242_v3  ;;  %v3678_v3 = vld [vmem:[#allocation9_spill] sm:$0xff] }
 0x25c   :  { %v2742_v10 = vmul.f32 %v2738_v2, %v2289_v1  ;;  %v2746_v30 = vmul.f32 %v2738_v2, %v2293_v14  ;;  %v2750_v58 = vmul.f32 %v2738_v2, %v2297_v61  ;;  %v2754_v19 = vmul.f32 %v2738_v2, %v2301_v62 }
 0x25d   :  { %v2758_v37 = vmul.f32 %v2738_v2, %v2309_v15  ;;  %v2762_v1 = vmul.f32 %v2738_v2, %v2315_v23  ;;  %v2766_v14 = vmul.f32 %v2738_v2, %v2323_v33  ;;  %v2770_v61 = vmul.f32 %v2738_v2, %v2330_v35 }
 0x25e   :  { %v2774_v62 = vmul.f32 %v2738_v2, %v2337_v39  ;;  %v2778_v15 = vmul.f32 %v2738_v2, %v2344_v43  ;;  %v2782_v23 = vmul.f32 %v2738_v2, %v2351_v47  ;;  %v2786_v33 = vmul.f32 %v2738_v2, %v2358_v51 }
 0x25f   :  { %v2790_v35 = vmul.f32 %v2738_v2, %v2365_v55  ;;  %v2794_v39 = vmul.f32 %v2738_v2, %v2372_v59  ;;  %v2798_v43 = vmul.f32 %v2738_v2, %v2379_v63  ;;  %v2802_v47 = vmul.f32 %v2738_v2, %v3670_v45  ;;  %v3679_v45 = vld [vmem:[#allocation10_spill] sm:$0xff] }
 0x260   :  { %v2806_v51 = vmul.f32 %v2738_v2, %v3671_v26  ;;  %v2810_v55 = vmul.f32 %v2738_v2, %v3672_v5  ;;  %v2814_v59 = vmul.f32 %v2738_v2, %v3673_v57  ;;  %v2818_v63 = vmul.f32 %v2738_v2, %v3674_v34 }
 0x261   :  { %v2822_v46 = vmul.f32 %v2738_v2, %v3675_v17  ;;  %v2826_v13 = vmul.f32 %v2738_v2, %v3676_v50  ;;  %v2830_v22 = vmul.f32 %v2738_v2, %v3677_v9  ;;  %v2834_v29 = vmul.f32 %v2738_v2, %v3678_v3  ;;  %v3683_v50 = vld [vmem:[#allocation11_spill] sm:$0xff]  ;;  %v3685_v9 = vld [vmem:[#allocation12_spill] sm:$0xff]  ;;  %v3687_v3 = vld [vmem:[#allocation14_spill] sm:$0xff] }
 0x262   :  { %v2838_v41 = vmul.f32 %v2738_v2, %v2449_v25  ;;  %v2842_v26 = vmul.f32 %v2738_v2, %v3679_v45  ;;  %v2846_v5 = vmul.f32 %v2738_v2, %v2463_v27  ;;  %v2850_v57 = vmul.f32 %v2738_v2, %v2470_v42  ;;  %v3689_v45 = vld [vmem:[#allocation17_spill] sm:$0xff] }
 0x263   :  { %v2854_v34 = vmul.f32 %v2738_v2, %v2477_v11  ;;  %v2858_v25 = vmul.f32 %v2738_v2, %v2484_v7  ;;  %v2862_v17 = vmul.f32 %v2738_v2, %v2491_v49  ;;  %v2866_v27 = vmul.f32 %v2738_v2, %v2498_v31 }
 0x264   :  { %v2870_v42 = vmul.f32 %v2738_v2, %v2505_v53  ;;  %v2874_v11 = vmul.f32 %v2738_v2, %v2512_v18  ;;  %v2878_v7 = vmul.f32 %v2738_v2, %v2519_v16  ;;  %v2882_v49 = vmul.f32 %v2738_v2, %v2526_v20 }
 0x265   :  { %v2886_v31 = vmul.f32 %v2738_v2, %v2533_v24  ;;  %v2890_v53 = vmul.f32 %v2738_v2, %v2540_v28  ;;  %v2894_v18 = vmul.f32 %v2738_v2, %v2547_v32  ;;  %v2898_v16 = vmul.f32 %v2738_v2, %v2554_v36 }
 0x266   :  { %v2902_v20 = vmul.f32 %v2738_v2, %v2561_v40  ;;  %v2906_v24 = vmul.f32 %v2738_v2, %v2568_v44  ;;  %v2910_v28 = vmul.f32 %v2738_v2, %v2575_v48  ;;  %v2914_v32 = vmul.f32 %v2738_v2, %v2582_v52 }
 0x267   :  { %v2918_v36 = vmul.f32 %v2738_v2, %v2589_v56  ;;  %v2922_v40 = vmul.f32 %v2738_v2, %v2596_v60  ;;  %v2926_v44 = vmul.f32 %v2738_v2, %v2603_v0  ;;  %v2930_v48 = vmul.f32 %v2738_v2, %v2610_v4 }
 0x268   :  { %v2934_v52 = vmul.f32 %v2738_v2, %v2617_v8  ;;  %v2938_v56 = vmul.f32 %v2738_v2, %v2624_v12  ;;  %v2942_v60 = vmul.f32 %v2738_v2, %v2631_v21  ;;  %v2946_v0 = vmul.f32 %v2738_v2, %v2638_v38  ;;  %v2967_v38 = vld [vmem:[%s3580_s3] ss:$0 sm:$0xff] }
 0x269   :  { %v2950_v4 = vmul.f32 %v2738_v2, %v2645_v54  ;;  %v2954_v8 = vmul.f32 %v2738_v2, %v2652_v6  ;;  %v2958_v12 = vmul.f32 %v2738_v2, %v3683_v50  ;;  %v2962_v21 = vmul.f32 %v2738_v2, %v3685_v9 }
 0x26a   :  { %3680 = vst [vmem:[#allocation18_spill] sm:$0xff] %v2946_v0  ;;  %v2971_v54 = vmul.f32 %v2738_v2, %v3687_v3  ;;  %v2975_v6 = vmul.f32 %v2738_v2, %v3689_v45  ;;  %v3694_v0 = vld [vmem:[#allocation19_spill] sm:$0xff] }
 0x26b   :  { %3681 = vst [vmem:[#allocation2_spill] sm:$0xff] %v2950_v4  ;;  %3682 = vst [vmem:[#allocation3_spill] sm:$0xff] %v2954_v8  ;;  %v3691_v8 = vld [vmem:[#allocation13_spill] sm:$0xff]  ;;  %v2991_v3 = vmul.f32 %v2738_v2, %v3694_v0  ;;  %v3011_v0 = vadd.f32 %v2967_v38, %v2750_v58  ;;  %v3031_v58 = vadd.f32 %v2967_v38, %v2770_v61 }
 0x26c   :  { %3684 = vst [vmem:[#allocation4_spill] sm:$0xff] %v2958_v12  ;;  %3686 = vst [vmem:[#allocation5_spill] sm:$0xff] %v2962_v21  ;;  %v2979_v50 = vmul.f32 %v2738_v2, %v3691_v8  ;;  %v3692_v12 = vld [vmem:[#allocation15_spill] sm:$0xff]  ;;  %v3693_v21 = vld [vmem:[#allocation16_spill] sm:$0xff]  ;;  %v3051_v61 = vadd.f32 %v2967_v38, %v2790_v35  ;;  %v3071_v35 = vadd.f32 %v2967_v38, %v2810_v55 }
 0x26d   :  { %3688 = vst [vmem:[#allocation6_spill] sm:$0xff] %v2971_v54  ;;  %3690 = vst [vmem:[#allocation7_spill] sm:$0xff] %v2975_v6  ;;  %v2983_v9 = vmul.f32 %v2738_v2, %v3692_v12  ;;  %v2987_v4 = vmul.f32 %v2738_v2, %v3693_v21  ;;  %v3695_v54 = vld [vmem:[#allocation20_spill] sm:$0xff]  ;;  %v3696_v6 = vld [vmem:[#allocation21_spill] sm:$0xff]  ;;  %v3003_v12 = vadd.f32 %v2967_v38, %v2742_v10 }
 0x26e   :  { %v2995_v45 = vmul.f32 %v2738_v2, %v3695_v54  ;;  %v2999_v8 = vmul.f32 %v2738_v2, %v3696_v6  ;;  %v3007_v21 = vadd.f32 %v2967_v38, %v2746_v30  ;;  %v3015_v54 = vadd.f32 %v2967_v38, %v2754_v19 }
 0x26f   :  { %v3019_v2 = vadd.f32 %v2967_v38, %v2758_v37  ;;  %v3023_v10 = vadd.f32 %v2967_v38, %v2762_v1  ;;  %v3027_v30 = vadd.f32 %v2967_v38, %v2766_v14  ;;  %v3035_v19 = vadd.f32 %v2967_v38, %v2774_v62 }
 0x270   :  { %v3039_v37 = vadd.f32 %v2967_v38, %v2778_v15  ;;  %v3043_v1 = vadd.f32 %v2967_v38, %v2782_v23  ;;  %v3047_v14 = vadd.f32 %v2967_v38, %v2786_v33  ;;  %v3055_v62 = vadd.f32 %v2967_v38, %v2794_v39 }
 0x271   :  { %v3059_v15 = vadd.f32 %v2967_v38, %v2798_v43  ;;  %v3063_v23 = vadd.f32 %v2967_v38, %v2802_v47  ;;  %v3067_v33 = vadd.f32 %v2967_v38, %v2806_v51  ;;  %v3075_v39 = vadd.f32 %v2967_v38, %v2814_v59  ;;  %v3702_v6 = vld [vmem:[#allocation18_spill] sm:$0xff] }
 0x272   :  { %v3079_v43 = vadd.f32 %v2967_v38, %v2818_v63  ;;  %v3083_v47 = vadd.f32 %v2967_v38, %v2822_v46  ;;  %v3087_v51 = vadd.f32 %v2967_v38, %v2826_v13  ;;  %v3091_v55 = vadd.f32 %v2967_v38, %v2830_v22 }
 0x273   :  { %v3095_v59 = vadd.f32 %v2967_v38, %v2834_v29  ;;  %v3099_v63 = vadd.f32 %v2967_v38, %v2838_v41  ;;  %v3103_v46 = vadd.f32 %v2967_v38, %v2842_v26  ;;  %v3107_v13 = vadd.f32 %v2967_v38, %v2846_v5 }
 0x274   :  { %v3111_v22 = vadd.f32 %v2967_v38, %v2850_v57  ;;  %v3115_v29 = vadd.f32 %v2967_v38, %v2854_v34  ;;  %v3119_v41 = vadd.f32 %v2967_v38, %v2858_v25  ;;  %v3123_v26 = vadd.f32 %v2967_v38, %v2862_v17 }
 0x275   :  { %v3127_v5 = vadd.f32 %v2967_v38, %v2866_v27  ;;  %v3131_v57 = vadd.f32 %v2967_v38, %v2870_v42  ;;  %v3135_v34 = vadd.f32 %v2967_v38, %v2874_v11  ;;  %v3139_v25 = vadd.f32 %v2967_v38, %v2878_v7 }
 0x276   :  { %v3143_v17 = vadd.f32 %v2967_v38, %v2882_v49  ;;  %v3147_v27 = vadd.f32 %v2967_v38, %v2886_v31  ;;  %v3151_v42 = vadd.f32 %v2967_v38, %v2890_v53  ;;  %v3155_v11 = vadd.f32 %v2967_v38, %v2894_v18 }
 0x277   :  { %v3159_v7 = vadd.f32 %v2967_v38, %v2898_v16  ;;  %v3163_v49 = vadd.f32 %v2967_v38, %v2902_v20  ;;  %v3167_v31 = vadd.f32 %v2967_v38, %v2906_v24  ;;  %v3171_v53 = vadd.f32 %v2967_v38, %v2910_v28 }
 0x278   :  { %v3175_v18 = vadd.f32 %v2967_v38, %v2914_v32  ;;  %v3179_v16 = vadd.f32 %v2967_v38, %v2918_v36  ;;  %v3183_v20 = vadd.f32 %v2967_v38, %v2922_v40  ;;  %v3187_v24 = vadd.f32 %v2967_v38, %v2926_v44 }
 0x279   :  { %v3191_v28 = vadd.f32 %v2967_v38, %v2930_v48  ;;  %v3195_v32 = vadd.f32 %v2967_v38, %v2934_v52  ;;  %v3199_v36 = vadd.f32 %v2967_v38, %v2938_v56  ;;  %v3203_v40 = vadd.f32 %v2967_v38, %v2942_v60 }
 0x27a   :  { %3697 = vst [vmem:[#allocation8_spill] sm:$0xff] %v3187_v24  ;;  %v3207_v44 = vadd.f32 %v2967_v38, %v3702_v6  ;;  %v3704_v24 = vld [vmem:[#allocation2_spill] sm:$0xff] }
 0x27b   :  { %3698 = vst [vmem:[#allocation9_spill] sm:$0xff] %v3191_v28  ;;  %3699 = vst [vmem:[#allocation10_spill] sm:$0xff] %v3195_v32  ;;  %v3211_v48 = vadd.f32 %v2967_v38, %v3704_v24  ;;  %v3705_v28 = vld [vmem:[#allocation3_spill] sm:$0xff]  ;;  %v3706_v32 = vld [vmem:[#allocation4_spill] sm:$0xff] }
 0x27c   :  { %3700 = vst [vmem:[#allocation11_spill] sm:$0xff] %v3199_v36  ;;  %3701 = vst [vmem:[#allocation12_spill] sm:$0xff] %v3203_v40  ;;  %v3215_v52 = vadd.f32 %v2967_v38, %v3705_v28  ;;  %v3219_v56 = vadd.f32 %v2967_v38, %v3706_v32  ;;  %v3707_v36 = vld [vmem:[#allocation5_spill] sm:$0xff]  ;;  %v3708_v40 = vld [vmem:[#allocation6_spill] sm:$0xff]  ;;  %v3235_v28 = vadd.f32 %v2967_v38, %v2979_v50 }
 0x27d   :  { %3703 = vst [vmem:[#allocation14_spill] sm:$0xff] %v3207_v44  ;;  %v3223_v60 = vadd.f32 %v2967_v38, %v3707_v36  ;;  %v3227_v6 = vadd.f32 %v2967_v38, %v3708_v40  ;;  %v3709_v44 = vld [vmem:[#allocation7_spill] sm:$0xff]  ;;  %v3239_v32 = vadd.f32 %v2967_v38, %v2983_v9  ;;  %v3243_v36 = vadd.f32 %v2967_v38, %v2987_v4 }
 0x27e   :  { %v3231_v24 = vadd.f32 %v2967_v38, %v3709_v44  ;;  %3710 = vst [vmem:[#allocation17_spill] sm:$0xff] %v3235_v28  ;;  %v3247_v40 = vadd.f32 %v2967_v38, %v2991_v3  ;;  %v3251_v44 = vadd.f32 %v2967_v38, %v2995_v45  ;;  %v3255_v50 = vadd.f32 %v2967_v38, %v2999_v8 }
 0x27f   :  { %3711 = vst [vmem:[#allocation13_spill] sm:$0xff] %v3239_v32  ;;  %3712 = vst [vmem:[#allocation15_spill] sm:$0xff] %v3243_v36  ;;  %v1379_v28 = vmax.f32 %v3003_v12, 0.0  ;;  %v1380_v9 = vmax.f32 %v3007_v21, 0.0  ;;  %v1381_v32 = vmax.f32 %v3011_v0, 0.0  ;;  %v1382_v4 = vmax.f32 %v3015_v54, 0.0 }
 0x280   :  { %3713 = vst [vmem:[#allocation16_spill] sm:$0xff] %v3247_v40  ;;  %3714 = vst [vmem:[#allocation19_spill] sm:$0xff] %v3251_v44  ;;  %v1383_v36 = vmax.f32 %v3019_v2, 0.0  ;;  %v1384_v3 = vmax.f32 %v3023_v10, 0.0  ;;  %v1385_v40 = vmax.f32 %v3027_v30, 0.0  ;;  %v1386_v45 = vmax.f32 %v3031_v58, 0.0 }
 0x281   :  { %v1387_v44 = vmax.f32 %v3035_v19, 0.0  ;;  %v1388_v38 = vmax.f32 %v3039_v37, 0.0  ;;  %v1389_v8 = vmax.f32 %v3043_v1, 0.0  ;;  %v1390_v12 = vmax.f32 %v3047_v14, 0.0  ;;  %1443 = vst.msk [vmem:[%s3581_s4] sm:$0xff] %vm839_vm3, %v1379_v28  ;;  %1444 = vst.msk [vmem:[%s3581_s4 + $0x8] sm:$0xff] %vm839_vm3, %v1380_v9 }
 0x282   :  { %1445 = vst.msk [vmem:[%s3581_s4 + $0x10] sm:$0xff] %vm839_vm3, %v1381_v32  ;;  %1446 = vst.msk [vmem:[%s3581_s4 + $0x18] sm:$0xff] %vm839_vm3, %v1382_v4  ;;  %v1391_v21 = vmax.f32 %v3051_v61, 0.0  ;;  %v1392_v0 = vmax.f32 %v3055_v62, 0.0  ;;  %v1393_v54 = vmax.f32 %v3059_v15, 0.0  ;;  %v1394_v2 = vmax.f32 %v3063_v23, 0.0 }
 0x283   :  { %1447 = vst.msk [vmem:[%s3581_s4 + $0x20] sm:$0xff] %vm839_vm3, %v1383_v36  ;;  %1448 = vst.msk [vmem:[%s3581_s4 + $0x28] sm:$0xff] %vm839_vm3, %v1384_v3  ;;  %v1395_v10 = vmax.f32 %v3067_v33, 0.0  ;;  %v1396_v30 = vmax.f32 %v3071_v35, 0.0  ;;  %v1397_v58 = vmax.f32 %v3075_v39, 0.0  ;;  %v1398_v19 = vmax.f32 %v3079_v43, 0.0 }
 0x284   :  { %1449 = vst.msk [vmem:[%s3581_s4 + $0x30] sm:$0xff] %vm839_vm3, %v1385_v40  ;;  %1450 = vst.msk [vmem:[%s3581_s4 + $0x38] sm:$0xff] %vm839_vm3, %v1386_v45  ;;  %v1399_v37 = vmax.f32 %v3083_v47, 0.0  ;;  %v1400_v1 = vmax.f32 %v3087_v51, 0.0  ;;  %v1401_v14 = vmax.f32 %v3091_v55, 0.0  ;;  %v1402_v61 = vmax.f32 %v3095_v59, 0.0 }
 0x285   :  { %1451 = vst.msk [vmem:[%s3581_s4 + $0x40] sm:$0xff] %vm839_vm3, %v1387_v44  ;;  %1452 = vst.msk [vmem:[%s3581_s4 + $0x48] sm:$0xff] %vm839_vm3, %v1388_v38  ;;  %v1403_v62 = vmax.f32 %v3099_v63, 0.0  ;;  %v1404_v15 = vmax.f32 %v3103_v46, 0.0  ;;  %v1405_v23 = vmax.f32 %v3107_v13, 0.0  ;;  %v1406_v33 = vmax.f32 %v3111_v22, 0.0 }
 0x286   :  { %1453 = vst.msk [vmem:[%s3581_s4 + $0x50] sm:$0xff] %vm839_vm3, %v1389_v8  ;;  %1454 = vst.msk [vmem:[%s3581_s4 + $0x58] sm:$0xff] %vm839_vm3, %v1390_v12  ;;  %v1407_v35 = vmax.f32 %v3115_v29, 0.0  ;;  %v1408_v39 = vmax.f32 %v3119_v41, 0.0  ;;  %v1409_v43 = vmax.f32 %v3123_v26, 0.0  ;;  %v1410_v47 = vmax.f32 %v3127_v5, 0.0 }
 0x287   :  { %1455 = vst.msk [vmem:[%s3581_s4 + $0x60] sm:$0xff] %vm839_vm3, %v1391_v21  ;;  %1456 = vst.msk [vmem:[%s3581_s4 + $0x68] sm:$0xff] %vm839_vm3, %v1392_v0  ;;  %v1411_v51 = vmax.f32 %v3131_v57, 0.0  ;;  %v1412_v55 = vmax.f32 %v3135_v34, 0.0  ;;  %v1413_v59 = vmax.f32 %v3139_v25, 0.0  ;;  %v1414_v63 = vmax.f32 %v3143_v17, 0.0 }
 0x288   :  { %1457 = vst.msk [vmem:[%s3581_s4 + $0x70] sm:$0xff] %vm839_vm3, %v1393_v54  ;;  %1458 = vst.msk [vmem:[%s3581_s4 + $0x78] sm:$0xff] %vm839_vm3, %v1394_v2  ;;  %v1415_v46 = vmax.f32 %v3147_v27, 0.0  ;;  %v1416_v13 = vmax.f32 %v3151_v42, 0.0  ;;  %v1417_v22 = vmax.f32 %v3155_v11, 0.0  ;;  %v1418_v29 = vmax.f32 %v3159_v7, 0.0 }
 0x289   :  { %1459 = vst.msk [vmem:[%s3581_s4 + $0x80] sm:$0xff] %vm839_vm3, %v1395_v10  ;;  %1460 = vst.msk [vmem:[%s3581_s4 + $0x88] sm:$0xff] %vm839_vm3, %v1396_v30  ;;  %v1419_v41 = vmax.f32 %v3163_v49, 0.0  ;;  %v1420_v26 = vmax.f32 %v3167_v31, 0.0  ;;  %v1421_v5 = vmax.f32 %v3171_v53, 0.0  ;;  %v1422_v57 = vmax.f32 %v3175_v18, 0.0 }
 0x28a   :  { %1461 = vst.msk [vmem:[%s3581_s4 + $0x90] sm:$0xff] %vm839_vm3, %v1397_v58  ;;  %1462 = vst.msk [vmem:[%s3581_s4 + $0x98] sm:$0xff] %vm839_vm3, %v1398_v19  ;;  %v1423_v34 = vmax.f32 %v3179_v16, 0.0  ;;  %v1424_v25 = vmax.f32 %v3183_v20, 0.0  ;;  %v3715_v17 = vld [vmem:[#allocation8_spill] sm:$0xff]  ;;  %v3716_v42 = vld [vmem:[#allocation9_spill] sm:$0xff] }
 0x28b   :  { %1463 = vst.msk [vmem:[%s3581_s4 + $0xa0] sm:$0xff] %vm839_vm3, %v1399_v37  ;;  %1464 = vst.msk [vmem:[%s3581_s4 + $0xa8] sm:$0xff] %vm839_vm3, %v1400_v1  ;;  %v1425_v27 = vmax.f32 %v3715_v17, 0.0  ;;  %v1426_v11 = vmax.f32 %v3716_v42, 0.0  ;;  %v3717_v7 = vld [vmem:[#allocation10_spill] sm:$0xff]  ;;  %v3718_v31 = vld [vmem:[#allocation11_spill] sm:$0xff] }
 0x28c   :  { %1465 = vst.msk [vmem:[%s3581_s4 + $0xb0] sm:$0xff] %vm839_vm3, %v1401_v14  ;;  %1466 = vst.msk [vmem:[%s3581_s4 + $0xb8] sm:$0xff] %vm839_vm3, %v1402_v61  ;;  %v1427_v49 = vmax.f32 %v3717_v7, 0.0  ;;  %v1428_v53 = vmax.f32 %v3718_v31, 0.0  ;;  %v3719_v18 = vld [vmem:[#allocation12_spill] sm:$0xff]  ;;  %v3720_v20 = vld [vmem:[#allocation14_spill] sm:$0xff] }
 0x28d   :  { %1467 = vst.msk [vmem:[%s3581_s4 + $0xc0] sm:$0xff] %vm839_vm3, %v1403_v62  ;;  %1468 = vst.msk [vmem:[%s3581_s4 + $0xc8] sm:$0xff] %vm839_vm3, %v1404_v15  ;;  %v1429_v16 = vmax.f32 %v3719_v18, 0.0  ;;  %v1430_v28 = vmax.f32 %v3720_v20, 0.0  ;;  %v1431_v32 = vmax.f32 %v3211_v48, 0.0  ;;  %v1432_v36 = vmax.f32 %v3215_v52, 0.0 }
 0x28e   :  { %1469 = vst.msk [vmem:[%s3581_s4 + $0xd0] sm:$0xff] %vm839_vm3, %v1405_v23  ;;  %1470 = vst.msk [vmem:[%s3581_s4 + $0xd8] sm:$0xff] %vm839_vm3, %v1406_v33  ;;  %v1433_v40 = vmax.f32 %v3219_v56, 0.0  ;;  %v1434_v44 = vmax.f32 %v3223_v60, 0.0  ;;  %v1435_v48 = vmax.f32 %v3227_v6, 0.0  ;;  %v1436_v52 = vmax.f32 %v3231_v24, 0.0 }
 0x28f   :  { %1471 = vst.msk [vmem:[%s3581_s4 + $0xe0] sm:$0xff] %vm839_vm3, %v1407_v35  ;;  %1472 = vst.msk [vmem:[%s3581_s4 + $0xe8] sm:$0xff] %vm839_vm3, %v1408_v39  ;;  %v3721_v56 = vld [vmem:[#allocation17_spill] sm:$0xff]  ;;  %v3723_v6 = vld [vmem:[#allocation15_spill] sm:$0xff]  ;;  %v1442_v12 = vmax.f32 %v3255_v50, 0.0 }
 0x290   :  { %1473 = vst.msk [vmem:[%s3581_s4 + $0xf0] sm:$0xff] %vm839_vm3, %v1409_v43  ;;  %1474 = vst.msk [vmem:[%s3581_s4 + $0xf8] sm:$0xff] %vm839_vm3, %v1410_v47  ;;  %v1437_v60 = vmax.f32 %v3721_v56, 0.0  ;;  %v3722_v9 = vld [vmem:[#allocation13_spill] sm:$0xff]  ;;  %v1439_v24 = vmax.f32 %v3723_v6, 0.0  ;;  %v3724_v3 = vld [vmem:[#allocation16_spill] sm:$0xff] }
 0x291   :  { %1475 = vst.msk [vmem:[%s3581_s4 + $0x100] sm:$0xff] %vm839_vm3, %v1411_v51  ;;  %1476 = vst.msk [vmem:[%s3581_s4 + $0x108] sm:$0xff] %vm839_vm3, %v1412_v55  ;;  %v1438_v4 = vmax.f32 %v3722_v9, 0.0  ;;  %v1440_v45 = vmax.f32 %v3724_v3, 0.0  ;;  %v3725_v38 = vld [vmem:[#allocation19_spill] sm:$0xff] }
 0x292   :  { %1477 = vst.msk [vmem:[%s3581_s4 + $0x110] sm:$0xff] %vm839_vm3, %v1413_v59  ;;  %1478 = vst.msk [vmem:[%s3581_s4 + $0x118] sm:$0xff] %vm839_vm3, %v1414_v63  ;;  %v1441_v8 = vmax.f32 %v3725_v38, 0.0 }
 0x293   :  { %1479 = vst.msk [vmem:[%s3581_s4 + $0x120] sm:$0xff] %vm839_vm3, %v1415_v46  ;;  %1480 = vst.msk [vmem:[%s3581_s4 + $0x128] sm:$0xff] %vm839_vm3, %v1416_v13 }
 0x294   :  { %1481 = vst.msk [vmem:[%s3581_s4 + $0x130] sm:$0xff] %vm839_vm3, %v1417_v22  ;;  %1482 = vst.msk [vmem:[%s3581_s4 + $0x138] sm:$0xff] %vm839_vm3, %v1418_v29 }
 0x295   :  { %1483 = vst.msk [vmem:[%s3581_s4 + $0x140] sm:$0xff] %vm839_vm3, %v1419_v41  ;;  %1484 = vst.msk [vmem:[%s3581_s4 + $0x148] sm:$0xff] %vm839_vm3, %v1420_v26 }
 0x296   :  { %1485 = vst.msk [vmem:[%s3581_s4 + $0x150] sm:$0xff] %vm839_vm3, %v1421_v5  ;;  %1486 = vst.msk [vmem:[%s3581_s4 + $0x158] sm:$0xff] %vm839_vm3, %v1422_v57 }
 0x297   :  { %1487 = vst.msk [vmem:[%s3581_s4 + $0x160] sm:$0xff] %vm839_vm3, %v1423_v34  ;;  %1488 = vst.msk [vmem:[%s3581_s4 + $0x168] sm:$0xff] %vm839_vm3, %v1424_v25 }
 0x298   :  { %1489 = vst.msk [vmem:[%s3581_s4 + $0x170] sm:$0xff] %vm839_vm3, %v1425_v27  ;;  %1490 = vst.msk [vmem:[%s3581_s4 + $0x178] sm:$0xff] %vm839_vm3, %v1426_v11 }
 0x299   :  { %1491 = vst.msk [vmem:[%s3581_s4 + $0x180] sm:$0xff] %vm839_vm3, %v1427_v49  ;;  %1492 = vst.msk [vmem:[%s3581_s4 + $0x188] sm:$0xff] %vm839_vm3, %v1428_v53 }
 0x29a   :  { %1493 = vst.msk [vmem:[%s3581_s4 + $0x190] sm:$0xff] %vm839_vm3, %v1429_v16  ;;  %1494 = vst.msk [vmem:[%s3581_s4 + $0x198] sm:$0xff] %vm839_vm3, %v1430_v28 }
 0x29b   :  { %1495 = vst.msk [vmem:[%s3581_s4 + $0x1a0] sm:$0xff] %vm839_vm3, %v1431_v32  ;;  %1496 = vst.msk [vmem:[%s3581_s4 + $0x1a8] sm:$0xff] %vm839_vm3, %v1432_v36 }
 0x29c   :  { %1497 = vst.msk [vmem:[%s3581_s4 + $0x1b0] sm:$0xff] %vm839_vm3, %v1433_v40  ;;  %1498 = vst.msk [vmem:[%s3581_s4 + $0x1b8] sm:$0xff] %vm839_vm3, %v1434_v44 }
 0x29d   :  { %1499 = vst.msk [vmem:[%s3581_s4 + $0x1c0] sm:$0xff] %vm839_vm3, %v1435_v48  ;;  %1500 = vst.msk [vmem:[%s3581_s4 + $0x1c8] sm:$0xff] %vm839_vm3, %v1436_v52 }
 0x29e   :  { %1501 = vst.msk [vmem:[%s3581_s4 + $0x1d0] sm:$0xff] %vm839_vm3, %v1437_v60  ;;  %1502 = vst.msk [vmem:[%s3581_s4 + $0x1d8] sm:$0xff] %vm839_vm3, %v1438_v4 }
 0x29f   :  { %1503 = vst.msk [vmem:[%s3581_s4 + $0x1e0] sm:$0xff] %vm839_vm3, %v1439_v24  ;;  %1504 = vst.msk [vmem:[%s3581_s4 + $0x1e8] sm:$0xff] %vm839_vm3, %v1440_v45 }
 0x2a0   :  { %1505 = vst.msk [vmem:[%s3581_s4 + $0x1f0] sm:$0xff] %vm839_vm3, %v1441_v8  ;;  %1506 = vst.msk [vmem:[%s3581_s4 + $0x1f8] sm:$0xff] %vm839_vm3, %v1442_v12 }

// kernel: facenet_forward.56
= control target key start
LH: loop header
LB: loop body
LE: loop exit
PB: predicated region body
PF: predicated region fallthrough
CT: control target
= control target key end

     0   :  { %vm288_vm0 = vcmask 64512   ;;  %s943_s0 = inlined_call_operand.vmem [shape: f32[9,128,8], index: 0, kind: input, shape index: {}]   ;;  %s944_s1 = inlined_call_operand.vmem [shape: f32[128,8], index: 1, kind: output, shape index: {}]  }
   0x1   :  { %v8_v0 = vld [vmem:[%s943_s0] sm:$0xff]  ;;  %v9_v6 = vld [vmem:[%s943_s0 + $0x8] sm:$0xff]  ;;  %v10_v15 = vld [vmem:[%s943_s0 + $0x10] sm:$0xff] }
   0x2   :  { %v309_v1 = vld [vmem:[%s943_s0 + $0x80] sm:$0xff]  ;;  %v310_v7 = vld [vmem:[%s943_s0 + $0x88] sm:$0xff]  ;;  %v311_v16 = vld [vmem:[%s943_s0 + $0x90] sm:$0xff] }
   0x3   :  { %v325_v2 = vld [vmem:[%s943_s0 + $0x100] sm:$0xff]  ;;  %v41_v3 = vmax.f32 %v8_v0, %v309_v1  ;;  %v326_v8 = vld [vmem:[%s943_s0 + $0x108] sm:$0xff]  ;;  %v42_v10 = vmax.f32 %v9_v6, %v310_v7  ;;  %v327_v17 = vld [vmem:[%s943_s0 + $0x110] sm:$0xff]  ;;  %v43_v20 = vmax.f32 %v10_v15, %v311_v16 }
   0x4   :  { %v341_v4 = vld [vmem:[%s943_s0 + $0x180] sm:$0xff]  ;;  %v342_v13 = vld [vmem:[%s943_s0 + $0x188] sm:$0xff]  ;;  %v343_v24 = vld [vmem:[%s943_s0 + $0x190] sm:$0xff] }
   0x5   :  { %v74_v5 = vmax.f32 %v41_v3, %v325_v2  ;;  %v357_v9 = vld [vmem:[%s943_s0 + $0x200] sm:$0xff]  ;;  %v75_v14 = vmax.f32 %v42_v10, %v326_v8  ;;  %v358_v19 = vld [vmem:[%s943_s0 + $0x208] sm:$0xff]  ;;  %v76_v26 = vmax.f32 %v43_v20, %v327_v17  ;;  %v11_v27 = vld [vmem:[%s943_s0 + $0x18] sm:$0xff] }
   0x6   :  { %v373_v12 = vld [vmem:[%s943_s0 + $0x280] sm:$0xff]  ;;  %v374_v23 = vld [vmem:[%s943_s0 + $0x288] sm:$0xff]  ;;  %v312_v28 = vld [vmem:[%s943_s0 + $0x98] sm:$0xff] }
   0x7   :  { %v107_v11 = vmax.f32 %v74_v5, %v341_v4  ;;  %v389_v21 = vld [vmem:[%s943_s0 + $0x300] sm:$0xff]  ;;  %v108_v22 = vmax.f32 %v75_v14, %v342_v13  ;;  %v328_v29 = vld [vmem:[%s943_s0 + $0x118] sm:$0xff]  ;;  %v359_v33 = vld [vmem:[%s943_s0 + $0x210] sm:$0xff]  ;;  %v44_v34 = vmax.f32 %v11_v27, %v312_v28  ;;  %v109_v37 = vmax.f32 %v76_v26, %v343_v24 }
   0x8   :  { %v405_v30 = vld [vmem:[%s943_s0 + $0x380] sm:$0xff]  ;;  %v390_v36 = vld [vmem:[%s943_s0 + $0x308] sm:$0xff]  ;;  %v375_v38 = vld [vmem:[%s943_s0 + $0x290] sm:$0xff] }
   0x9   :  { %v140_v18 = vmax.f32 %v107_v11, %v357_v9  ;;  %v421_v31 = vld [vmem:[%s943_s0 + $0x400] sm:$0xff]  ;;  %v141_v32 = vmax.f32 %v108_v22, %v358_v19  ;;  %v344_v39 = vld [vmem:[%s943_s0 + $0x198] sm:$0xff]  ;;  %v77_v41 = vmax.f32 %v44_v34, %v328_v29  ;;  %v406_v46 = vld [vmem:[%s943_s0 + $0x388] sm:$0xff]  ;;  %v142_v48 = vmax.f32 %v109_v37, %v359_v33 }
   0xa   :  { %v12_v42 = vld [vmem:[%s943_s0 + $0x20] sm:$0xff]  ;;  %v422_v47 = vld [vmem:[%s943_s0 + $0x408] sm:$0xff]  ;;  %v360_v49 = vld [vmem:[%s943_s0 + $0x218] sm:$0xff] }
   0xb   :  { %v173_v25 = vmax.f32 %v140_v18, %v373_v12  ;;  %v174_v40 = vmax.f32 %v141_v32, %v374_v23  ;;  %v313_v43 = vld [vmem:[%s943_s0 + $0xa0] sm:$0xff]  ;;  %v391_v52 = vld [vmem:[%s943_s0 + $0x310] sm:$0xff]  ;;  %v110_v53 = vmax.f32 %v77_v41, %v344_v39  ;;  %v376_v54 = vld [vmem:[%s943_s0 + $0x298] sm:$0xff]  ;;  %v175_v57 = vmax.f32 %v142_v48, %v375_v38 }
   0xc   :  { %v329_v44 = vld [vmem:[%s943_s0 + $0x120] sm:$0xff]  ;;  %v45_v50 = vmax.f32 %v12_v42, %v313_v43  ;;  %v13_v59 = vld [vmem:[%s943_s0 + $0x28] sm:$0xff]  ;;  %v407_v63 = vld [vmem:[%s943_s0 + $0x390] sm:$0xff] }
   0xd   :  { %v206_v35 = vmax.f32 %v173_v25, %v389_v21  ;;  %v207_v51 = vmax.f32 %v174_v40, %v390_v36  ;;  %v345_v55 = vld [vmem:[%s943_s0 + $0x1a0] sm:$0xff]  ;;  %v314_v60 = vld [vmem:[%s943_s0 + $0xa8] sm:$0xff]  ;;  %v423_v0 = vld [vmem:[%s943_s0 + $0x410] sm:$0xff]  ;;  %v143_v1 = vmax.f32 %v110_v53, %v360_v49  ;;  %v208_v4 = vmax.f32 %v175_v57, %v391_v52 }
   0xe   :  { %v78_v58 = vmax.f32 %v45_v50, %v329_v44  ;;  %v330_v61 = vld [vmem:[%s943_s0 + $0x128] sm:$0xff]  ;;  %v361_v2 = vld [vmem:[%s943_s0 + $0x220] sm:$0xff]  ;;  %v46_v3 = vmax.f32 %v13_v59, %v314_v60  ;;  %v392_v5 = vld [vmem:[%s943_s0 + $0x318] sm:$0xff] }
   0xf   :  { %v239_v45 = vmax.f32 %v206_v35, %v405_v30  ;;  %v240_v62 = vmax.f32 %v207_v51, %v406_v46  ;;  %v377_v7 = vld [vmem:[%s943_s0 + $0x2a0] sm:$0xff]  ;;  %v346_v8 = vld [vmem:[%s943_s0 + $0x1a8] sm:$0xff]  ;;  %v176_v10 = vmax.f32 %v143_v1, %v376_v54  ;;  %v14_v12 = vld [vmem:[%s943_s0 + $0x30] sm:$0xff]  ;;  %v241_v15 = vmax.f32 %v208_v4, %v407_v63 }
  0x10   :  { %v111_v6 = vmax.f32 %v78_v58, %v345_v55  ;;  %v79_v11 = vmax.f32 %v46_v3, %v330_v61  ;;  %v315_v13 = vld [vmem:[%s943_s0 + $0xb0] sm:$0xff]  ;;  %v408_v16 = vld [vmem:[%s943_s0 + $0x398] sm:$0xff]  ;;  %v362_v19 = vld [vmem:[%s943_s0 + $0x228] sm:$0xff] }
  0x11   :  { %v272_v56 = vmax.f32 %v239_v45, %v421_v31  ;;  %v273_v9 = vmax.f32 %v240_v62, %v422_v47  ;;  %v331_v14 = vld [vmem:[%s943_s0 + $0x130] sm:$0xff]  ;;  %v424_v17 = vld [vmem:[%s943_s0 + $0x418] sm:$0xff]  ;;  %v47_v20 = vmax.f32 %v14_v12, %v315_v13  ;;  %v209_v21 = vmax.f32 %v176_v10, %v392_v5  ;;  %v393_v22 = vld [vmem:[%s943_s0 + $0x320] sm:$0xff] }
  0x12   :  { %v144_v18 = vmax.f32 %v111_v6, %v361_v2  ;;  %v112_v23 = vmax.f32 %v79_v11, %v346_v8  ;;  %v378_v24 = vld [vmem:[%s943_s0 + $0x2a8] sm:$0xff]  ;;  %v347_v25 = vld [vmem:[%s943_s0 + $0x1b0] sm:$0xff]  ;;  %v274_v26 = vmax.f32 %v241_v15, %v423_v0  ;;  %v15_v29 = vld [vmem:[%s943_s0 + $0x38] sm:$0xff] }
  0x13   :  { %289 = vst.msk [vmem:[%s944_s1] sm:$0xff] %vm288_vm0, %v272_v56  ;;  %290 = vst.msk [vmem:[%s944_s1 + $0x8] sm:$0xff] %vm288_vm0, %v273_v9  ;;  %v80_v28 = vmax.f32 %v47_v20, %v331_v14  ;;  %v316_v30 = vld [vmem:[%s943_s0 + $0xb8] sm:$0xff]  ;;  %v242_v32 = vmax.f32 %v209_v21, %v408_v16  ;;  %v409_v33 = vld [vmem:[%s943_s0 + $0x3a0] sm:$0xff] }
  0x14   :  { %v177_v27 = vmax.f32 %v144_v18, %v377_v7  ;;  %v332_v31 = vld [vmem:[%s943_s0 + $0x138] sm:$0xff]  ;;  %v425_v34 = vld [vmem:[%s943_s0 + $0x420] sm:$0xff]  ;;  %v145_v35 = vmax.f32 %v112_v23, %v362_v19  ;;  %v363_v36 = vld [vmem:[%s943_s0 + $0x230] sm:$0xff]  ;;  %v48_v37 = vmax.f32 %v15_v29, %v316_v30  ;;  %291 = vst.msk [vmem:[%s944_s1 + $0x10] sm:$0xff] %vm288_vm0, %v274_v26 }
  0x15   :  { %v394_v39 = vld [vmem:[%s943_s0 + $0x328] sm:$0xff]  ;;  %v113_v40 = vmax.f32 %v80_v28, %v347_v25  ;;  %v379_v41 = vld [vmem:[%s943_s0 + $0x2b0] sm:$0xff]  ;;  %v348_v42 = vld [vmem:[%s943_s0 + $0x1b8] sm:$0xff]  ;;  %v275_v43 = vmax.f32 %v242_v32, %v424_v17 }
  0x16   :  { %v210_v38 = vmax.f32 %v177_v27, %v393_v22  ;;  %v178_v44 = vmax.f32 %v145_v35, %v378_v24  ;;  %v81_v45 = vmax.f32 %v48_v37, %v332_v31  ;;  %v16_v46 = vld [vmem:[%s943_s0 + $0x40] sm:$0xff]  ;;  %v410_v50 = vld [vmem:[%s943_s0 + $0x3a8] sm:$0xff]  ;;  %v364_v53 = vld [vmem:[%s943_s0 + $0x238] sm:$0xff] }
  0x17   :  { %v317_v47 = vld [vmem:[%s943_s0 + $0xc0] sm:$0xff]  ;;  %v426_v51 = vld [vmem:[%s943_s0 + $0x428] sm:$0xff]  ;;  %v146_v52 = vmax.f32 %v113_v40, %v363_v36  ;;  %292 = vst.msk [vmem:[%s944_s1 + $0x18] sm:$0xff] %vm288_vm0, %v275_v43  ;;  %v395_v56 = vld [vmem:[%s943_s0 + $0x330] sm:$0xff] }
  0x18   :  { %v333_v48 = vld [vmem:[%s943_s0 + $0x140] sm:$0xff]  ;;  %v243_v49 = vmax.f32 %v210_v38, %v409_v33  ;;  %v49_v54 = vmax.f32 %v16_v46, %v317_v47  ;;  %v211_v55 = vmax.f32 %v178_v44, %v394_v39  ;;  %v114_v57 = vmax.f32 %v81_v45, %v348_v42  ;;  %v380_v58 = vld [vmem:[%s943_s0 + $0x2b8] sm:$0xff]  ;;  %v17_v63 = vld [vmem:[%s943_s0 + $0x48] sm:$0xff] }
  0x19   :  { %v349_v59 = vld [vmem:[%s943_s0 + $0x1c0] sm:$0xff]  ;;  %v179_v61 = vmax.f32 %v146_v52, %v379_v41  ;;  %v318_v0 = vld [vmem:[%s943_s0 + $0xc8] sm:$0xff]  ;;  %v411_v3 = vld [vmem:[%s943_s0 + $0x3b0] sm:$0xff] }
  0x1a   :  { %v276_v60 = vmax.f32 %v243_v49, %v425_v34  ;;  %v82_v62 = vmax.f32 %v49_v54, %v333_v48  ;;  %v334_v1 = vld [vmem:[%s943_s0 + $0x148] sm:$0xff]  ;;  %v244_v2 = vmax.f32 %v211_v55, %v410_v50  ;;  %v427_v4 = vld [vmem:[%s943_s0 + $0x430] sm:$0xff]  ;;  %v147_v5 = vmax.f32 %v114_v57, %v364_v53  ;;  %v365_v6 = vld [vmem:[%s943_s0 + $0x240] sm:$0xff] }
  0x1b   :  { %v50_v7 = vmax.f32 %v17_v63, %v318_v0  ;;  %v212_v8 = vmax.f32 %v179_v61, %v395_v56  ;;  %v396_v9 = vld [vmem:[%s943_s0 + $0x338] sm:$0xff]  ;;  %v381_v11 = vld [vmem:[%s943_s0 + $0x2c0] sm:$0xff]  ;;  %v350_v12 = vld [vmem:[%s943_s0 + $0x1c8] sm:$0xff] }
  0x1c   :  { %293 = vst.msk [vmem:[%s944_s1 + $0x20] sm:$0xff] %vm288_vm0, %v276_v60  ;;  %v115_v10 = vmax.f32 %v82_v62, %v349_v59  ;;  %v277_v13 = vmax.f32 %v244_v2, %v426_v51  ;;  %v180_v14 = vmax.f32 %v147_v5, %v380_v58  ;;  %v18_v16 = vld [vmem:[%s943_s0 + $0x50] sm:$0xff]  ;;  %v412_v20 = vld [vmem:[%s943_s0 + $0x3b8] sm:$0xff]  ;;  %v366_v23 = vld [vmem:[%s943_s0 + $0x248] sm:$0xff] }
  0x1d   :  { %v83_v15 = vmax.f32 %v50_v7, %v334_v1  ;;  %v319_v17 = vld [vmem:[%s943_s0 + $0xd0] sm:$0xff]  ;;  %v245_v19 = vmax.f32 %v212_v8, %v411_v3  ;;  %v428_v21 = vld [vmem:[%s943_s0 + $0x438] sm:$0xff]  ;;  %v397_v26 = vld [vmem:[%s943_s0 + $0x340] sm:$0xff] }
  0x1e   :  { %v335_v18 = vld [vmem:[%s943_s0 + $0x150] sm:$0xff]  ;;  %v148_v22 = vmax.f32 %v115_v10, %v365_v6  ;;  %v51_v24 = vmax.f32 %v18_v16, %v319_v17  ;;  %294 = vst.msk [vmem:[%s944_s1 + $0x28] sm:$0xff] %vm288_vm0, %v277_v13  ;;  %v213_v25 = vmax.f32 %v180_v14, %v396_v9  ;;  %v382_v28 = vld [vmem:[%s943_s0 + $0x2c8] sm:$0xff]  ;;  %v19_v33 = vld [vmem:[%s943_s0 + $0x58] sm:$0xff] }
  0x1f   :  { %v116_v27 = vmax.f32 %v83_v15, %v350_v12  ;;  %v351_v29 = vld [vmem:[%s943_s0 + $0x1d0] sm:$0xff]  ;;  %v278_v30 = vmax.f32 %v245_v19, %v427_v4  ;;  %v320_v34 = vld [vmem:[%s943_s0 + $0xd8] sm:$0xff]  ;;  %v413_v37 = vld [vmem:[%s943_s0 + $0x3c0] sm:$0xff] }
  0x20   :  { %v181_v31 = vmax.f32 %v148_v22, %v381_v11  ;;  %v84_v32 = vmax.f32 %v51_v24, %v335_v18  ;;  %v336_v35 = vld [vmem:[%s943_s0 + $0x158] sm:$0xff]  ;;  %v246_v36 = vmax.f32 %v213_v25, %v412_v20  ;;  %v429_v38 = vld [vmem:[%s943_s0 + $0x440] sm:$0xff]  ;;  %v367_v40 = vld [vmem:[%s943_s0 + $0x250] sm:$0xff]  ;;  %v52_v41 = vmax.f32 %v19_v33, %v320_v34 }
  0x21   :  { %v149_v39 = vmax.f32 %v116_v27, %v366_v23  ;;  %295 = vst.msk [vmem:[%s944_s1 + $0x30] sm:$0xff] %vm288_vm0, %v278_v30  ;;  %v398_v43 = vld [vmem:[%s943_s0 + $0x348] sm:$0xff]  ;;  %v383_v45 = vld [vmem:[%s943_s0 + $0x2d0] sm:$0xff]  ;;  %v352_v46 = vld [vmem:[%s943_s0 + $0x1d8] sm:$0xff] }
  0x22   :  { %v214_v42 = vmax.f32 %v181_v31, %v397_v26  ;;  %v117_v44 = vmax.f32 %v84_v32, %v351_v29  ;;  %v279_v47 = vmax.f32 %v246_v36, %v428_v21  ;;  %v85_v49 = vmax.f32 %v52_v41, %v336_v35  ;;  %v20_v50 = vld [vmem:[%s943_s0 + $0x60] sm:$0xff]  ;;  %v414_v54 = vld [vmem:[%s943_s0 + $0x3c8] sm:$0xff]  ;;  %v368_v57 = vld [vmem:[%s943_s0 + $0x258] sm:$0xff] }
  0x23   :  { %v182_v48 = vmax.f32 %v149_v39, %v382_v28  ;;  %v321_v51 = vld [vmem:[%s943_s0 + $0xe0] sm:$0xff]  ;;  %v430_v55 = vld [vmem:[%s943_s0 + $0x448] sm:$0xff]  ;;  %v399_v60 = vld [vmem:[%s943_s0 + $0x350] sm:$0xff] }
  0x24   :  { %v337_v52 = vld [vmem:[%s943_s0 + $0x160] sm:$0xff]  ;;  %v247_v53 = vmax.f32 %v214_v42, %v413_v37  ;;  %v150_v56 = vmax.f32 %v117_v44, %v367_v40  ;;  %v53_v58 = vmax.f32 %v20_v50, %v321_v51  ;;  %296 = vst.msk [vmem:[%s944_s1 + $0x38] sm:$0xff] %vm288_vm0, %v279_v47  ;;  %v118_v61 = vmax.f32 %v85_v49, %v352_v46  ;;  %v384_v62 = vld [vmem:[%s943_s0 + $0x2d8] sm:$0xff]  ;;  %v21_v3 = vld [vmem:[%s943_s0 + $0x68] sm:$0xff] }
  0x25   :  { %v215_v59 = vmax.f32 %v182_v48, %v398_v43  ;;  %v353_v63 = vld [vmem:[%s943_s0 + $0x1e0] sm:$0xff]  ;;  %v322_v4 = vld [vmem:[%s943_s0 + $0xe8] sm:$0xff]  ;;  %v415_v7 = vld [vmem:[%s943_s0 + $0x3d0] sm:$0xff] }
  0x26   :  { %v280_v0 = vmax.f32 %v247_v53, %v429_v38  ;;  %v183_v1 = vmax.f32 %v150_v56, %v383_v45  ;;  %v86_v2 = vmax.f32 %v53_v58, %v337_v52  ;;  %v338_v5 = vld [vmem:[%s943_s0 + $0x168] sm:$0xff]  ;;  %v431_v8 = vld [vmem:[%s943_s0 + $0x450] sm:$0xff]  ;;  %v151_v9 = vmax.f32 %v118_v61, %v368_v57  ;;  %v369_v10 = vld [vmem:[%s943_s0 + $0x260] sm:$0xff] }
  0x27   :  { %v248_v6 = vmax.f32 %v215_v59, %v414_v54  ;;  %v54_v11 = vmax.f32 %v21_v3, %v322_v4  ;;  %v400_v13 = vld [vmem:[%s943_s0 + $0x358] sm:$0xff]  ;;  %v385_v15 = vld [vmem:[%s943_s0 + $0x2e0] sm:$0xff]  ;;  %v354_v16 = vld [vmem:[%s943_s0 + $0x1e8] sm:$0xff] }
  0x28   :  { %297 = vst.msk [vmem:[%s944_s1 + $0x40] sm:$0xff] %vm288_vm0, %v280_v0  ;;  %v216_v12 = vmax.f32 %v183_v1, %v399_v60  ;;  %v119_v14 = vmax.f32 %v86_v2, %v353_v63  ;;  %v184_v18 = vmax.f32 %v151_v9, %v384_v62  ;;  %v22_v20 = vld [vmem:[%s943_s0 + $0x70] sm:$0xff]  ;;  %v416_v24 = vld [vmem:[%s943_s0 + $0x3d8] sm:$0xff]  ;;  %v370_v27 = vld [vmem:[%s943_s0 + $0x268] sm:$0xff] }
  0x29   :  { %v281_v17 = vmax.f32 %v248_v6, %v430_v55  ;;  %v87_v19 = vmax.f32 %v54_v11, %v338_v5  ;;  %v323_v21 = vld [vmem:[%s943_s0 + $0xf0] sm:$0xff]  ;;  %v432_v25 = vld [vmem:[%s943_s0 + $0x458] sm:$0xff]  ;;  %v401_v30 = vld [vmem:[%s943_s0 + $0x360] sm:$0xff] }
  0x2a   :  { %v339_v22 = vld [vmem:[%s943_s0 + $0x170] sm:$0xff]  ;;  %v249_v23 = vmax.f32 %v216_v12, %v415_v7  ;;  %v152_v26 = vmax.f32 %v119_v14, %v369_v10  ;;  %v55_v28 = vmax.f32 %v22_v20, %v323_v21  ;;  %v217_v29 = vmax.f32 %v184_v18, %v400_v13  ;;  %v386_v32 = vld [vmem:[%s943_s0 + $0x2e8] sm:$0xff]  ;;  %v23_v37 = vld [vmem:[%s943_s0 + $0x78] sm:$0xff] }
  0x2b   :  { %298 = vst.msk [vmem:[%s944_s1 + $0x48] sm:$0xff] %vm288_vm0, %v281_v17  ;;  %v120_v31 = vmax.f32 %v87_v19, %v354_v16  ;;  %v355_v33 = vld [vmem:[%s943_s0 + $0x1f0] sm:$0xff]  ;;  %v324_v38 = vld [vmem:[%s943_s0 + $0xf8] sm:$0xff]  ;;  %v417_v41 = vld [vmem:[%s943_s0 + $0x3e0] sm:$0xff] }
  0x2c   :  { %v282_v34 = vmax.f32 %v249_v23, %v431_v8  ;;  %v185_v35 = vmax.f32 %v152_v26, %v385_v15  ;;  %v88_v36 = vmax.f32 %v55_v28, %v339_v22  ;;  %v340_v39 = vld [vmem:[%s943_s0 + $0x178] sm:$0xff]  ;;  %v250_v40 = vmax.f32 %v217_v29, %v416_v24  ;;  %v371_v43 = vld [vmem:[%s943_s0 + $0x270] sm:$0xff]  ;;  %v402_v46 = vld [vmem:[%s943_s0 + $0x368] sm:$0xff] }
  0x2d   :  { %v153_v42 = vmax.f32 %v120_v31, %v370_v27  ;;  %v56_v44 = vmax.f32 %v23_v37, %v324_v38  ;;  %v356_v48 = vld [vmem:[%s943_s0 + $0x1f8] sm:$0xff]  ;;  %v433_v50 = vld [vmem:[%s943_s0 + $0x460] sm:$0xff]  ;;  %v387_v52 = vld [vmem:[%s943_s0 + $0x2f0] sm:$0xff] }
  0x2e   :  { %299 = vst.msk [vmem:[%s944_s1 + $0x50] sm:$0xff] %vm288_vm0, %v282_v34  ;;  %v218_v45 = vmax.f32 %v185_v35, %v401_v30  ;;  %v121_v47 = vmax.f32 %v88_v36, %v355_v33  ;;  %v283_v49 = vmax.f32 %v250_v40, %v432_v25  ;;  %v418_v55 = vld [vmem:[%s943_s0 + $0x3e8] sm:$0xff]  ;;  %v372_v57 = vld [vmem:[%s943_s0 + $0x278] sm:$0xff]  ;;  %v403_v59 = vld [vmem:[%s943_s0 + $0x370] sm:$0xff] }
  0x2f   :  { %v186_v51 = vmax.f32 %v153_v42, %v386_v32  ;;  %v89_v53 = vmax.f32 %v56_v44, %v340_v39  ;;  %v434_v62 = vld [vmem:[%s943_s0 + $0x468] sm:$0xff]  ;;  %v388_v0 = vld [vmem:[%s943_s0 + $0x2f8] sm:$0xff]  ;;  %v419_v2 = vld [vmem:[%s943_s0 + $0x3f0] sm:$0xff] }
  0x30   :  { %v251_v54 = vmax.f32 %v218_v45, %v417_v41  ;;  %v154_v56 = vmax.f32 %v121_v47, %v371_v43  ;;  %300 = vst.msk [vmem:[%s944_s1 + $0x58] sm:$0xff] %vm288_vm0, %v283_v49  ;;  %v404_v5 = vld [vmem:[%s943_s0 + $0x378] sm:$0xff]  ;;  %v435_v7 = vld [vmem:[%s943_s0 + $0x470] sm:$0xff] }
  0x31   :  { %v219_v58 = vmax.f32 %v186_v51, %v402_v46  ;;  %v122_v60 = vmax.f32 %v89_v53, %v356_v48  ;;  %v420_v10 = vld [vmem:[%s943_s0 + $0x3f8] sm:$0xff] }
  0x32   :  { %v284_v61 = vmax.f32 %v251_v54, %v433_v50  ;;  %v187_v63 = vmax.f32 %v154_v56, %v387_v52  ;;  %v436_v13 = vld [vmem:[%s943_s0 + $0x478] sm:$0xff] }
  0x33   :  { %v252_v1 = vmax.f32 %v219_v58, %v418_v55  ;;  %v155_v3 = vmax.f32 %v122_v60, %v372_v57 }
  0x34   :  { %301 = vst.msk [vmem:[%s944_s1 + $0x60] sm:$0xff] %vm288_vm0, %v284_v61  ;;  %v220_v4 = vmax.f32 %v187_v63, %v403_v59 }
  0x35   :  { %v285_v6 = vmax.f32 %v252_v1, %v434_v62  ;;  %v188_v8 = vmax.f32 %v155_v3, %v388_v0 }
  0x36   :  { %v253_v9 = vmax.f32 %v220_v4, %v419_v2 }
  0x37   :  { %302 = vst.msk [vmem:[%s944_s1 + $0x68] sm:$0xff] %vm288_vm0, %v285_v6  ;;  %v221_v11 = vmax.f32 %v188_v8, %v404_v5 }
  0x38   :  { %v286_v12 = vmax.f32 %v253_v9, %v435_v7 }
  0x39   :  { %v254_v14 = vmax.f32 %v221_v11, %v420_v10 }
  0x3a   :  { %303 = vst.msk [vmem:[%s944_s1 + $0x70] sm:$0xff] %vm288_vm0, %v286_v12 }
  0x3b   :  { %v287_v15 = vmax.f32 %v254_v14, %v436_v13 }
  0x3d   :  { %304 = vst.msk [vmem:[%s944_s1 + $0x78] sm:$0xff] %vm288_vm0, %v287_v15 }

// kernel: facenet_forward.57
= control target key start
LH: loop header
LB: loop body
LE: loop exit
PB: predicated region body
PF: predicated region fallthrough
CT: control target
= control target key end

     0   :  { %vm100_vm0 = vcmask 1043456   ;;  %vm75_vm1 = vcmask 64512   ;;  %s691_s1 = inlined_call_operand.vmem [shape: bf16[8,8], index: 1, kind: input, shape index: {}]   ;;  %s692_s0 = inlined_call_operand.vmem [shape: bf16[128,8], index: 0, kind: input, shape index: {}]   ;;  %s693_s2 = inlined_call_operand.vmem [shape: f32[1,8], index: 2, kind: input, shape index: {}]   ;;  %s694_s3 = inlined_call_operand.vmem [shape: f32[1,8], index: 3, kind: input, shape index: {}]   ;;  %s695_s4 = inlined_call_operand.vmem [shape: f32[128,8], index: 4, kind: output, shape index: {}]  }
   0x1   :  { %v34_v0 = vld [vmem:[%s691_s1] sm:$0xf]  ;;  %v441_v3 = vld [vmem:[%s692_s0 + $0x8] sm:$0xff]   ;;  %v442_v4 = vld [vmem:[%s692_s0 + $0x10] sm:$0xff]  }
   0x2   :  { %438 = vmatprep.subr.msk.bf16.mxu0 %vm100_vm0, %v34_v0  ;;  %v102_v1 = vsel %vm100_vm0, %v34_v0, 0  ;;  %v440_v2 = vld [vmem:[%s692_s0] sm:$0xff]   ;;  %439 = vmatprep.subr.msk.bf16.mxu1 %vm100_vm0, %v34_v0  ;;  %v445_v6 = vld [vmem:[%s692_s0 + $0x28] sm:$0xff]   ;;  %v446_v7 = vld [vmem:[%s692_s0 + $0x30] sm:$0xff]  }
   0x3   :  { %419 = vmatpush3.bf16.msra.mxu0 %v102_v1  ;;  %437 = vmatpush3.bf16.msra.mxu1 %v102_v1  ;;  %v444_v5 = vld [vmem:[%s692_s0 + $0x20] sm:$0xff]   ;;  %v443_v8 = vld [vmem:[%s692_s0 + $0x18] sm:$0xff]  }
   0x4   :  { %420 = vmatprep.mubr.msk.bf16.mxu0 %vm75_vm1, %v440_v2  ;;  %428 = vmatprep.mubr.msk.bf16.mxu1 %vm75_vm1, %v444_v5  ;;  %v447_v9 = vld [vmem:[%s692_s0 + $0x38] sm:$0xff]  }
   0x6   :  { %421 = vmatmul.mubr.msk.bf16.vlgmr.msra.gmra.mxu0 %vm75_vm1, %v441_v3  ;;  %429 = vmatmul.mubr.msk.bf16.vlgmr.msra.gmra.mxu1 %vm75_vm1, %v445_v6 }
   0x7   :  { %424 = vmatprep.mubr.msk.bf16.mxu0 %vm75_vm1, %v442_v4  ;;  %432 = vmatprep.mubr.msk.bf16.mxu1 %vm75_vm1, %v446_v7 }
   0xe   :  { %425 = vmatmul.mubr.msk.bf16.gmra.mxu0 %vm75_vm1, %v443_v8  ;;  %433 = vmatmul.mubr.msk.bf16.gmra.mxu1 %vm75_vm1, %v447_v9 }
  0xc6   :  { %v422_v10 = vpop.f32.mrf.mxu0  ;;  %v510_v12 = vpop.f32.mrf.mxu1 }
  0xc7   :  { %v204_v21 = vsel %vm75_vm1, %v422_v10, 0.0  ;;  %v220_v44 = vsel %vm75_vm1, %v510_v12, 0.0 }
  0xc8   :  { %v138_v11 = vpop.f32.mrf.mxu0  ;;  %v512_v14 = vpop.f32.mrf.mxu1 }
  0xc9   :  { %v201_v16 = vsel %vm75_vm1, %v138_v11, 0.0  ;;  %v216_v39 = vsel %vm75_vm1, %v512_v14, 0.0 }
  0xca   :  { %v423_v13 = vpop.f32.mrf.mxu0  ;;  %v516_v20 = vpop.f32.mrf.mxu1 }
  0xcb   :  { %v206_v24 = vsel %vm75_vm1, %v423_v13, 0.0  ;;  %v222_v46 = vsel %vm75_vm1, %v516_v20, 0.0 }
  0xcc   :  { %v141_v15 = vpop.f32.mrf.mxu0  ;;  %v173_v27 = vpop.f32.mrf.mxu1 }
  0xcd   :  { %v202_v17 = vsel %vm75_vm1, %v141_v15, 0.0  ;;  %v218_v41 = vsel %vm75_vm1, %v173_v27, 0.0 }
  0xce   :  { %v203_v18 = vadd.f32 %v202_v17, %v201_v16  ;;  %v426_v19 = vpop.f32.mrf.mxu0  ;;  %v522_v33 = vpop.f32.mrf.mxu1 }
  0xcf   :  { %v212_v34 = vsel %vm75_vm1, %v426_v19, 0.0  ;;  %v228_v53 = vsel %vm75_vm1, %v522_v33, 0.0 }
  0xd0   :  { %v205_v22 = vadd.f32 %v204_v21, %v203_v18  ;;  %v154_v23 = vpop.f32.mrf.mxu0  ;;  %v526_v38 = vpop.f32.mrf.mxu1 }
  0xd1   :  { %v208_v28 = vsel %vm75_vm1, %v154_v23, 0.0  ;;  %v224_v49 = vsel %vm75_vm1, %v526_v38, 0.0 }
  0xd2   :  { %v207_v25 = vadd.f32 %v206_v24, %v205_v22  ;;  %v427_v26 = vpop.f32.mrf.mxu0  ;;  %v531_v43 = vpop.f32.mrf.mxu1 }
  0xd3   :  { %v214_v36 = vsel %vm75_vm1, %v427_v26, 0.0  ;;  %v230_v55 = vsel %vm75_vm1, %v531_v43, 0.0 }
  0xd4   :  { %v209_v29 = vadd.f32 %v208_v28, %v207_v25  ;;  %v157_v30 = vpop.f32.mrf.mxu0  ;;  %v189_v48 = vpop.f32.mrf.mxu1 }
  0xd5   :  { %v210_v31 = vsel %vm75_vm1, %v157_v30, 0.0  ;;  %v226_v51 = vsel %vm75_vm1, %v189_v48, 0.0 }
  0xd6   :  { %v211_v32 = vadd.f32 %v210_v31, %v209_v29 }
  0xd8   :  { %v213_v35 = vadd.f32 %v212_v34, %v211_v32 }
  0xda   :  { %v215_v37 = vadd.f32 %v214_v36, %v213_v35 }
  0xdc   :  { %v217_v40 = vadd.f32 %v216_v39, %v215_v37 }
  0xde   :  { %v219_v42 = vadd.f32 %v218_v41, %v217_v40 }
  0xe0   :  { %v221_v45 = vadd.f32 %v220_v44, %v219_v42 }
  0xe2   :  { %v223_v47 = vadd.f32 %v222_v46, %v221_v45 }
  0xe4   :  { %v225_v50 = vadd.f32 %v224_v49, %v223_v47 }
  0xe6   :  { %v227_v52 = vadd.f32 %v226_v51, %v225_v50 }
  0xe8   :  { %v229_v54 = vadd.f32 %v228_v53, %v227_v52 }
  0xea   :  { %v231_v56 = vadd.f32 %v230_v55, %v229_v54 }
  0xec   :  { %v232_v57 = vrot.slane %v231_v56, 4 }
  0xee   :  { %v233_v58 = vadd.f32 %v232_v57, %v231_v56 }
  0xf0   :  { %v234_v59 = vrot.slane %v233_v58, 2 }
  0xf2   :  { %v235_v60 = vadd.f32 %v234_v59, %v233_v58 }
  0xf4   :  { %v236_v61 = vrot.slane %v235_v60, 1 }
  0xf6   :  { %v237_v62 = vadd.f32 %v236_v61, %v235_v60 }
  0xf8   :  { %v238_v63 = vmul.f32 0.0078125, %v237_v62 }
  0xfa   :  { %v544_v0 = vsub.f32 %v138_v11, %v238_v63  ;;  %v546_v1 = vsub.f32 %v141_v15, %v238_v63  ;;  %v548_v2 = vsub.f32 %v422_v10, %v238_v63  ;;  %v550_v3 = vsub.f32 %v423_v13, %v238_v63 }
  0xfb   :  { %v556_v6 = vsub.f32 %v154_v23, %v238_v63  ;;  %v560_v8 = vsub.f32 %v157_v30, %v238_v63  ;;  %v566_v15 = vsub.f32 %v426_v19, %v238_v63  ;;  %v571_v21 = vsub.f32 %v427_v26, %v238_v63 }
  0xfc   :  { %v255_v4 = vmul.f32 %v544_v0, %v544_v0  ;;  %v256_v5 = vmul.f32 %v546_v1, %v546_v1  ;;  %v257_v7 = vmul.f32 %v548_v2, %v548_v2  ;;  %v258_v9 = vmul.f32 %v550_v3, %v550_v3 }
  0xfd   :  { %v259_v16 = vmul.f32 %v556_v6, %v556_v6  ;;  %v260_v22 = vmul.f32 %v560_v8, %v560_v8  ;;  %v577_v25 = vsub.f32 %v512_v14, %v238_v63  ;;  %v261_v19 = vmul.f32 %v566_v15, %v566_v15 }
  0xfe   :  { %v271_v10 = vsel %vm75_vm1, %v255_v4, 0.0  ;;  %v272_v11 = vsel %vm75_vm1, %v256_v5, 0.0  ;;  %v274_v17 = vsel %vm75_vm1, %v257_v7, 0.0  ;;  %v276_v23 = vsel %vm75_vm1, %v258_v9, 0.0 }
  0xff   :  { %v273_v13 = vadd.f32 %v272_v11, %v271_v10  ;;  %v278_v28 = vsel %vm75_vm1, %v259_v16, 0.0  ;;  %v582_v30 = vsub.f32 %v173_v27, %v238_v63  ;;  %v262_v26 = vmul.f32 %v571_v21, %v571_v21 }
 0x100   :  { %v280_v31 = vsel %vm75_vm1, %v260_v22, 0.0  ;;  %v588_v34 = vsub.f32 %v510_v12, %v238_v63  ;;  %v263_v14 = vmul.f32 %v577_v25, %v577_v25  ;;  %v282_v35 = vsel %vm75_vm1, %v261_v19, 0.0 }
 0x101   :  { %v275_v18 = vadd.f32 %v274_v17, %v273_v13  ;;  %v250_v37 = vsub.f32 %v516_v20, %v238_v63  ;;  %v264_v27 = vmul.f32 %v582_v30, %v582_v30  ;;  %v284_v39 = vsel %vm75_vm1, %v262_v26, 0.0 }
 0x102   :  { %v251_v41 = vsub.f32 %v526_v38, %v238_v63  ;;  %v265_v12 = vmul.f32 %v588_v34, %v588_v34  ;;  %v286_v42 = vsel %vm75_vm1, %v263_v14, 0.0  ;;  %v252_v45 = vsub.f32 %v189_v48, %v238_v63 }
 0x103   :  { %v277_v24 = vadd.f32 %v276_v23, %v275_v18  ;;  %v266_v46 = vmul.f32 %v250_v37, %v250_v37  ;;  %v288_v47 = vsel %vm75_vm1, %v264_v27, 0.0  ;;  %v253_v20 = vsub.f32 %v522_v33, %v238_v63  ;;  %v311_v18 = vld [vmem:[%s693_s2] sm:$0x1] }
 0x104   :  { %v267_v50 = vmul.f32 %v251_v41, %v251_v41  ;;  %v290_v51 = vsel %vm75_vm1, %v265_v12, 0.0  ;;  %v254_v53 = vsub.f32 %v531_v43, %v238_v63  ;;  %v268_v38 = vmul.f32 %v252_v45, %v252_v45  ;;  %v408_v27 = vld [vmem:[%s694_s3] ss:$0 sm:$0xff] }
 0x105   :  { %v279_v29 = vadd.f32 %v278_v28, %v277_v24  ;;  %v292_v54 = vsel %vm75_vm1, %v266_v46, 0.0  ;;  %v269_v56 = vmul.f32 %v253_v20, %v253_v20  ;;  %v313_v16 = vlaneseq }
 0x106   :  { %v294_v57 = vsel %vm75_vm1, %v267_v50, 0.0  ;;  %v270_v58 = vmul.f32 %v254_v53, %v254_v53  ;;  %v296_v59 = vsel %vm75_vm1, %v268_v38, 0.0 }
 0x107   :  { %v281_v32 = vadd.f32 %v280_v31, %v279_v29  ;;  %v298_v33 = vsel %vm75_vm1, %v269_v56, 0.0  ;;  %v314_v17 = vshrl.u32 %v313_v16, 7 }
 0x108   :  { %v300_v62 = vsel %vm75_vm1, %v270_v58, 0.0 }
 0x109   :  { %v283_v36 = vadd.f32 %v282_v35, %v281_v32  ;;  %v315_v22 = vsub.s32 0, %v314_v17 }
 0x10b   :  { %v285_v40 = vadd.f32 %v284_v39, %v283_v36 }
 0x10d   :  { %v287_v44 = vadd.f32 %v286_v42, %v285_v40 }
 0x10f   :  { %v289_v49 = vadd.f32 %v288_v47, %v287_v44 }
 0x111   :  { %v291_v52 = vadd.f32 %v290_v51, %v289_v49 }
 0x113   :  { %v293_v55 = vadd.f32 %v292_v54, %v291_v52 }
 0x115   :  { %v295_v48 = vadd.f32 %v294_v57, %v293_v55 }
 0x117   :  { %v297_v60 = vadd.f32 %v296_v59, %v295_v48 }
 0x119   :  { %v299_v61 = vadd.f32 %v298_v33, %v297_v60 }
 0x11b   :  { %v301_v4 = vadd.f32 %v300_v62, %v299_v61 }
 0x11d   :  { %v302_v5 = vrot.slane %v301_v4, 4 }
 0x11f   :  { %v303_v43 = vadd.f32 %v302_v5, %v301_v4 }
 0x121   :  { %v304_v63 = vrot.slane %v303_v43, 2 }
 0x123   :  { %v305_v7 = vadd.f32 %v304_v63, %v303_v43 }
 0x125   :  { %v306_v9 = vrot.slane %v305_v7, 1 }
 0x127   :  { %v307_v10 = vadd.f32 %v306_v9, %v305_v7 }
 0x129   :  { %v308_v11 = vmul.f32 0.0078125, %v307_v10 }
 0x12b   :  { %v309_v13 = vadd.f32 1e-05, %v308_v11 }
 0x12d   :  { %448 = vrsqrt.f32 %v309_v13 }
 0x13a   :  { %v449_v23 = vpop.eup %448 }
 0x13b   :  { %v312_v24 = vmul.f32 %v449_v23, %v311_v18 }
 0x13d   :  { %v316_v19 = vrot.slane %v312_v24, %v315_v22 }
 0x13f   :  { %v317_v28 = vmul.f32 %v316_v19, %v544_v0  ;;  %v318_v29 = vmul.f32 %v316_v19, %v546_v1  ;;  %v319_v26 = vmul.f32 %v316_v19, %v548_v2  ;;  %v320_v31 = vmul.f32 %v316_v19, %v550_v3 }
 0x140   :  { %v321_v32 = vmul.f32 %v316_v19, %v556_v6  ;;  %v322_v14 = vmul.f32 %v316_v19, %v560_v8  ;;  %v323_v35 = vmul.f32 %v316_v19, %v566_v15  ;;  %v324_v36 = vmul.f32 %v316_v19, %v571_v21 }
 0x141   :  { %v325_v0 = vmul.f32 %v316_v19, %v577_v25  ;;  %v326_v1 = vmul.f32 %v316_v19, %v582_v30  ;;  %v327_v2 = vmul.f32 %v316_v19, %v588_v34  ;;  %v328_v39 = vmul.f32 %v316_v19, %v250_v37 }
 0x142   :  { %v329_v3 = vmul.f32 %v316_v19, %v251_v41  ;;  %v330_v40 = vmul.f32 %v316_v19, %v252_v45  ;;  %v331_v6 = vmul.f32 %v316_v19, %v253_v20  ;;  %v332_v12 = vmul.f32 %v316_v19, %v254_v53 }
 0x143   :  { %v340_v8 = vadd.f32 %v408_v27, %v317_v28  ;;  %v341_v42 = vadd.f32 %v408_v27, %v318_v29  ;;  %v342_v15 = vadd.f32 %v408_v27, %v319_v26  ;;  %v343_v44 = vadd.f32 %v408_v27, %v320_v31 }
 0x144   :  { %v344_v21 = vadd.f32 %v408_v27, %v321_v32  ;;  %v345_v46 = vadd.f32 %v408_v27, %v322_v14  ;;  %v346_v47 = vadd.f32 %v408_v27, %v323_v35  ;;  %v347_v49 = vadd.f32 %v408_v27, %v324_v36 }
 0x145   :  { %v348_v50 = vadd.f32 %v408_v27, %v325_v0  ;;  %v349_v51 = vadd.f32 %v408_v27, %v326_v1  ;;  %v350_v25 = vadd.f32 %v408_v27, %v327_v2  ;;  %v351_v52 = vadd.f32 %v408_v27, %v328_v39 }
 0x146   :  { %v352_v30 = vadd.f32 %v408_v27, %v329_v3  ;;  %v353_v38 = vadd.f32 %v408_v27, %v330_v40  ;;  %v354_v34 = vadd.f32 %v408_v27, %v331_v6  ;;  %v355_v37 = vadd.f32 %v408_v27, %v332_v12 }
 0x147   :  { %v356_v41 = vmax.f32 %v340_v8, 0.0  ;;  %v357_v45 = vmax.f32 %v341_v42, 0.0  ;;  %v358_v20 = vmax.f32 %v342_v15, 0.0  ;;  %v359_v53 = vmax.f32 %v343_v44, 0.0 }
 0x148   :  { %v360_v54 = vmax.f32 %v344_v21, 0.0  ;;  %v361_v55 = vmax.f32 %v345_v46, 0.0  ;;  %v362_v56 = vmax.f32 %v346_v47, 0.0  ;;  %v363_v57 = vmax.f32 %v347_v49, 0.0 }
 0x149   :  { %v364_v48 = vmax.f32 %v348_v50, 0.0  ;;  %v365_v58 = vmax.f32 %v349_v51, 0.0  ;;  %v366_v59 = vmax.f32 %v350_v25, 0.0  ;;  %v367_v60 = vmax.f32 %v351_v52, 0.0  ;;  %372 = vst.msk [vmem:[%s695_s4] sm:$0xff] %vm75_vm1, %v356_v41  ;;  %373 = vst.msk [vmem:[%s695_s4 + $0x8] sm:$0xff] %vm75_vm1, %v357_v45 }
 0x14a   :  { %374 = vst.msk [vmem:[%s695_s4 + $0x10] sm:$0xff] %vm75_vm1, %v358_v20  ;;  %375 = vst.msk [vmem:[%s695_s4 + $0x18] sm:$0xff] %vm75_vm1, %v359_v53  ;;  %v368_v33 = vmax.f32 %v352_v30, 0.0  ;;  %v369_v61 = vmax.f32 %v353_v38, 0.0  ;;  %v370_v62 = vmax.f32 %v354_v34, 0.0  ;;  %v371_v4 = vmax.f32 %v355_v37, 0.0 }
 0x14b   :  { %376 = vst.msk [vmem:[%s695_s4 + $0x20] sm:$0xff] %vm75_vm1, %v360_v54  ;;  %377 = vst.msk [vmem:[%s695_s4 + $0x28] sm:$0xff] %vm75_vm1, %v361_v55 }
 0x14c   :  { %378 = vst.msk [vmem:[%s695_s4 + $0x30] sm:$0xff] %vm75_vm1, %v362_v56  ;;  %379 = vst.msk [vmem:[%s695_s4 + $0x38] sm:$0xff] %vm75_vm1, %v363_v57 }
 0x14d   :  { %380 = vst.msk [vmem:[%s695_s4 + $0x40] sm:$0xff] %vm75_vm1, %v364_v48  ;;  %381 = vst.msk [vmem:[%s695_s4 + $0x48] sm:$0xff] %vm75_vm1, %v365_v58 }
 0x14e   :  { %382 = vst.msk [vmem:[%s695_s4 + $0x50] sm:$0xff] %vm75_vm1, %v366_v59  ;;  %383 = vst.msk [vmem:[%s695_s4 + $0x58] sm:$0xff] %vm75_vm1, %v367_v60 }
 0x14f   :  { %384 = vst.msk [vmem:[%s695_s4 + $0x60] sm:$0xff] %vm75_vm1, %v368_v33  ;;  %385 = vst.msk [vmem:[%s695_s4 + $0x68] sm:$0xff] %vm75_vm1, %v369_v61 }
 0x150   :  { %386 = vst.msk [vmem:[%s695_s4 + $0x70] sm:$0xff] %vm75_vm1, %v370_v62  ;;  %387 = vst.msk [vmem:[%s695_s4 + $0x78] sm:$0xff] %vm75_vm1, %v371_v4 }

// kernel: facenet_forward.58
= control target key start
LH: loop header
LB: loop body
LE: loop exit
PB: predicated region body
PF: predicated region fallthrough
CT: control target
= control target key end

     0   :  { %vm135_vm0 = vcmask 1043456   ;;  %vm110_vm1 = vcmask 588800   ;;  %vm236_vm2 = vcmask 64512   ;;  %s769_s1 = inlined_call_operand.vmem [shape: bf16[72,8], index: 1, kind: input, shape index: {}]   ;;  %s770_s0 = inlined_call_operand.vmem [shape: bf16[128,72], index: 0, kind: input, shape index: {}]   ;;  %s771_s2 = inlined_call_operand.vmem [shape: f32[1,8], index: 2, kind: input, shape index: {}]   ;;  %s772_s3 = inlined_call_operand.vmem [shape: f32[1,8], index: 3, kind: input, shape index: {}]   ;;  %s773_s4 = inlined_call_operand.vmem [shape: f32[128,8], index: 4, kind: output, shape index: {}]  }
   0x1   :  { %v501_v0 = vld [vmem:[%s769_s1 + $0x20] ss:$0 sps:$4 sm:$0xff]   ;;  %v502_v1 = vld [vmem:[%s769_s1 + $0x18] sm:$0xff]   ;;  %v503_v3 = vld [vmem:[%s769_s1 + $0x10] sm:$0xff]  }
   0x2   :  { %499 = vmatprep.subr.msk.bf16.mxu0 %vm135_vm0, %v501_v0  ;;  %v137_v2 = vsel %vm135_vm0, %v501_v0, 0  ;;  %500 = vmatprep.subr.msk.bf16.mxu1 %vm135_vm0, %v501_v0  ;;  %v506_v4 = vld [vmem:[%s770_s0] sm:$0xff]   ;;  %v504_v5 = vld [vmem:[%s769_s1 + $0x8] sm:$0xff]   ;;  %v508_v10 = vld [vmem:[%s770_s0 + $0x10] sm:$0xff]  }
   0x3   :  { %464 = vmatpush3.bf16.msra.mxu0 %v137_v2  ;;  %494 = vmatpush3.bf16.msra.mxu1 %v137_v2  ;;  %v510_v6 = vld [vmem:[%s770_s0 + $0x20] sm:$0xff]   ;;  %v507_v8 = vld [vmem:[%s770_s0 + $0x8] sm:$0xff]   ;;  %v512_v11 = vld [vmem:[%s770_s0 + $0x30] sm:$0xff]  }
   0x4   :  { %465 = vmatprep.subr.bf16.mxu0 %v502_v1  ;;  %490 = vmatprep.subr.bf16.mxu1 %v502_v1  ;;  %v505_v7 = vld [vmem:[%s769_s1] sm:$0xff]   ;;  %v511_v9 = vld [vmem:[%s770_s0 + $0x28] sm:$0xff]   ;;  %v509_v12 = vld [vmem:[%s770_s0 + $0x18] sm:$0xff]  }
   0x5   :  { %473 = vmatprep.mubr.msk.bf16.mxu0 %vm110_vm1, %v506_v4  ;;  %481 = vmatprep.mubr.msk.bf16.mxu1 %vm110_vm1, %v510_v6  ;;  %v513_v13 = vld [vmem:[%s770_s0 + $0x38] sm:$0xff]  }
   0x7   :  { %466 = vmatpush3.bf16.msra.mxu0 %v502_v1  ;;  %495 = vmatpush3.bf16.msra.mxu1 %v502_v1 }
   0x8   :  { %467 = vmatprep.subr.bf16.mxu0 %v503_v3  ;;  %491 = vmatprep.subr.bf16.mxu1 %v503_v3 }
   0xb   :  { %468 = vmatpush3.bf16.msra.mxu0 %v503_v3  ;;  %496 = vmatpush3.bf16.msra.mxu1 %v503_v3 }
   0xc   :  { %469 = vmatprep.subr.bf16.mxu0 %v504_v5  ;;  %492 = vmatprep.subr.bf16.mxu1 %v504_v5 }
   0xf   :  { %470 = vmatpush3.bf16.msra.mxu0 %v504_v5  ;;  %497 = vmatpush3.bf16.msra.mxu1 %v504_v5 }
  0x10   :  { %471 = vmatprep.subr.bf16.mxu0 %v505_v7  ;;  %493 = vmatprep.subr.bf16.mxu1 %v505_v7 }
  0x13   :  { %472 = vmatpush3.bf16.msra.mxu0 %v505_v7  ;;  %498 = vmatpush3.bf16.msra.mxu1 %v505_v7 }
  0x16   :  { %474 = vmatmul.mubr.msk.bf16.vlgmr.msra.gmra.mxu0 %vm110_vm1, %v507_v8  ;;  %482 = vmatmul.mubr.msk.bf16.vlgmr.msra.gmra.mxu1 %vm110_vm1, %v511_v9 }
  0x17   :  { %477 = vmatprep.mubr.msk.bf16.mxu0 %vm110_vm1, %v508_v10  ;;  %485 = vmatprep.mubr.msk.bf16.mxu1 %vm110_vm1, %v512_v11 }
  0x1e   :  { %478 = vmatmul.mubr.msk.bf16.gmra.mxu0 %vm110_vm1, %v509_v12  ;;  %486 = vmatmul.mubr.msk.bf16.gmra.mxu1 %vm110_vm1, %v513_v13 }
  0xd6   :  { %v475_v14 = vpop.f32.mrf.mxu0  ;;  %v588_v15 = vpop.f32.mrf.mxu1 }
  0xd7   :  { %v240_v25 = vsel %vm236_vm2, %v475_v14, 0.0  ;;  %v256_v48 = vsel %vm236_vm2, %v588_v15, 0.0 }
  0xd8   :  { %v173_v16 = vpop.f32.mrf.mxu0  ;;  %v590_v18 = vpop.f32.mrf.mxu1 }
  0xd9   :  { %v237_v20 = vsel %vm236_vm2, %v173_v16, 0.0  ;;  %v252_v43 = vsel %vm236_vm2, %v590_v18, 0.0 }
  0xda   :  { %v476_v17 = vpop.f32.mrf.mxu0  ;;  %v594_v24 = vpop.f32.mrf.mxu1 }
  0xdb   :  { %v242_v28 = vsel %vm236_vm2, %v476_v17, 0.0  ;;  %v258_v50 = vsel %vm236_vm2, %v594_v24, 0.0 }
  0xdc   :  { %v176_v19 = vpop.f32.mrf.mxu0  ;;  %v208_v31 = vpop.f32.mrf.mxu1 }
  0xdd   :  { %v238_v21 = vsel %vm236_vm2, %v176_v19, 0.0  ;;  %v254_v45 = vsel %vm236_vm2, %v208_v31, 0.0 }
  0xde   :  { %v239_v22 = vadd.f32 %v238_v21, %v237_v20  ;;  %v479_v23 = vpop.f32.mrf.mxu0  ;;  %v600_v37 = vpop.f32.mrf.mxu1 }
  0xdf   :  { %v248_v38 = vsel %vm236_vm2, %v479_v23, 0.0  ;;  %v264_v57 = vsel %vm236_vm2, %v600_v37, 0.0 }
  0xe0   :  { %v241_v26 = vadd.f32 %v240_v25, %v239_v22  ;;  %v189_v27 = vpop.f32.mrf.mxu0  ;;  %v604_v42 = vpop.f32.mrf.mxu1 }
  0xe1   :  { %v244_v32 = vsel %vm236_vm2, %v189_v27, 0.0  ;;  %v260_v53 = vsel %vm236_vm2, %v604_v42, 0.0 }
  0xe2   :  { %v243_v29 = vadd.f32 %v242_v28, %v241_v26  ;;  %v480_v30 = vpop.f32.mrf.mxu0  ;;  %v609_v47 = vpop.f32.mrf.mxu1 }
  0xe3   :  { %v250_v40 = vsel %vm236_vm2, %v480_v30, 0.0  ;;  %v266_v59 = vsel %vm236_vm2, %v609_v47, 0.0 }
  0xe4   :  { %v245_v33 = vadd.f32 %v244_v32, %v243_v29  ;;  %v192_v34 = vpop.f32.mrf.mxu0  ;;  %v224_v52 = vpop.f32.mrf.mxu1 }
  0xe5   :  { %v246_v35 = vsel %vm236_vm2, %v192_v34, 0.0  ;;  %v262_v55 = vsel %vm236_vm2, %v224_v52, 0.0 }
  0xe6   :  { %v247_v36 = vadd.f32 %v246_v35, %v245_v33 }
  0xe8   :  { %v249_v39 = vadd.f32 %v248_v38, %v247_v36 }
  0xea   :  { %v251_v41 = vadd.f32 %v250_v40, %v249_v39 }
  0xec   :  { %v253_v44 = vadd.f32 %v252_v43, %v251_v41 }
  0xee   :  { %v255_v46 = vadd.f32 %v254_v45, %v253_v44 }
  0xf0   :  { %v257_v49 = vadd.f32 %v256_v48, %v255_v46 }
  0xf2   :  { %v259_v51 = vadd.f32 %v258_v50, %v257_v49 }
  0xf4   :  { %v261_v54 = vadd.f32 %v260_v53, %v259_v51 }
  0xf6   :  { %v263_v56 = vadd.f32 %v262_v55, %v261_v54 }
  0xf8   :  { %v265_v58 = vadd.f32 %v264_v57, %v263_v56 }
  0xfa   :  { %v267_v60 = vadd.f32 %v266_v59, %v265_v58 }
  0xfc   :  { %v268_v61 = vrot.slane %v267_v60, 4 }
  0xfe   :  { %v269_v62 = vadd.f32 %v268_v61, %v267_v60 }
 0x100   :  { %v270_v63 = vrot.slane %v269_v62, 2 }
 0x102   :  { %v271_v0 = vadd.f32 %v270_v63, %v269_v62 }
 0x104   :  { %v272_v1 = vrot.slane %v271_v0, 1 }
 0x106   :  { %v273_v2 = vadd.f32 %v272_v1, %v271_v0 }
 0x108   :  { %v274_v3 = vmul.f32 0.0078125, %v273_v2 }
 0x10a   :  { %v622_v4 = vsub.f32 %v173_v16, %v274_v3  ;;  %v624_v5 = vsub.f32 %v176_v19, %v274_v3  ;;  %v626_v6 = vsub.f32 %v475_v14, %v274_v3  ;;  %v628_v7 = vsub.f32 %v476_v17, %v274_v3 }
 0x10b   :  { %v634_v10 = vsub.f32 %v189_v27, %v274_v3  ;;  %v638_v12 = vsub.f32 %v192_v34, %v274_v3  ;;  %v644_v19 = vsub.f32 %v479_v23, %v274_v3  ;;  %v649_v25 = vsub.f32 %v480_v30, %v274_v3 }
 0x10c   :  { %v291_v8 = vmul.f32 %v622_v4, %v622_v4  ;;  %v292_v9 = vmul.f32 %v624_v5, %v624_v5  ;;  %v293_v11 = vmul.f32 %v626_v6, %v626_v6  ;;  %v294_v13 = vmul.f32 %v628_v7, %v628_v7 }
 0x10d   :  { %v295_v20 = vmul.f32 %v634_v10, %v634_v10  ;;  %v296_v26 = vmul.f32 %v638_v12, %v638_v12  ;;  %v655_v29 = vsub.f32 %v590_v18, %v274_v3  ;;  %v297_v23 = vmul.f32 %v644_v19, %v644_v19 }
 0x10e   :  { %v307_v14 = vsel %vm236_vm2, %v291_v8, 0.0  ;;  %v308_v16 = vsel %vm236_vm2, %v292_v9, 0.0  ;;  %v310_v21 = vsel %vm236_vm2, %v293_v11, 0.0  ;;  %v312_v27 = vsel %vm236_vm2, %v294_v13, 0.0 }
 0x10f   :  { %v309_v17 = vadd.f32 %v308_v16, %v307_v14  ;;  %v314_v32 = vsel %vm236_vm2, %v295_v20, 0.0  ;;  %v660_v34 = vsub.f32 %v208_v31, %v274_v3  ;;  %v298_v30 = vmul.f32 %v649_v25, %v649_v25 }
 0x110   :  { %v316_v35 = vsel %vm236_vm2, %v296_v26, 0.0  ;;  %v666_v38 = vsub.f32 %v588_v15, %v274_v3  ;;  %v299_v18 = vmul.f32 %v655_v29, %v655_v29  ;;  %v318_v39 = vsel %vm236_vm2, %v297_v23, 0.0 }
 0x111   :  { %v311_v22 = vadd.f32 %v310_v21, %v309_v17  ;;  %v286_v41 = vsub.f32 %v594_v24, %v274_v3  ;;  %v300_v31 = vmul.f32 %v660_v34, %v660_v34  ;;  %v320_v43 = vsel %vm236_vm2, %v298_v30, 0.0 }
 0x112   :  { %v287_v45 = vsub.f32 %v604_v42, %v274_v3  ;;  %v301_v15 = vmul.f32 %v666_v38, %v666_v38  ;;  %v322_v46 = vsel %vm236_vm2, %v299_v18, 0.0  ;;  %v288_v49 = vsub.f32 %v224_v52, %v274_v3 }
 0x113   :  { %v313_v28 = vadd.f32 %v312_v27, %v311_v22  ;;  %v302_v50 = vmul.f32 %v286_v41, %v286_v41  ;;  %v324_v51 = vsel %vm236_vm2, %v300_v31, 0.0  ;;  %v289_v24 = vsub.f32 %v600_v37, %v274_v3  ;;  %v347_v22 = vld [vmem:[%s771_s2] sm:$0x1] }
 0x114   :  { %v303_v54 = vmul.f32 %v287_v45, %v287_v45  ;;  %v326_v55 = vsel %vm236_vm2, %v301_v15, 0.0  ;;  %v290_v57 = vsub.f32 %v609_v47, %v274_v3  ;;  %v304_v42 = vmul.f32 %v288_v49, %v288_v49  ;;  %v449_v31 = vld [vmem:[%s772_s3] ss:$0 sm:$0xff] }
 0x115   :  { %v315_v33 = vadd.f32 %v314_v32, %v313_v28  ;;  %v328_v58 = vsel %vm236_vm2, %v302_v50, 0.0  ;;  %v305_v60 = vmul.f32 %v289_v24, %v289_v24  ;;  %v349_v20 = vlaneseq }
 0x116   :  { %v330_v61 = vsel %vm236_vm2, %v303_v54, 0.0  ;;  %v306_v62 = vmul.f32 %v290_v57, %v290_v57  ;;  %v332_v63 = vsel %vm236_vm2, %v304_v42, 0.0 }
 0x117   :  { %v317_v36 = vadd.f32 %v316_v35, %v315_v33  ;;  %v334_v37 = vsel %vm236_vm2, %v305_v60, 0.0  ;;  %v350_v21 = vshrl.u32 %v349_v20, 7 }
 0x118   :  { %v336_v2 = vsel %vm236_vm2, %v306_v62, 0.0 }
 0x119   :  { %v319_v40 = vadd.f32 %v318_v39, %v317_v36  ;;  %v351_v26 = vsub.s32 0, %v350_v21 }
 0x11b   :  { %v321_v44 = vadd.f32 %v320_v43, %v319_v40 }
 0x11d   :  { %v323_v48 = vadd.f32 %v322_v46, %v321_v44 }
 0x11f   :  { %v325_v53 = vadd.f32 %v324_v51, %v323_v48 }
 0x121   :  { %v327_v56 = vadd.f32 %v326_v55, %v325_v53 }
 0x123   :  { %v329_v59 = vadd.f32 %v328_v58, %v327_v56 }
 0x125   :  { %v331_v52 = vadd.f32 %v330_v61, %v329_v59 }
 0x127   :  { %v333_v0 = vadd.f32 %v332_v63, %v331_v52 }
 0x129   :  { %v335_v1 = vadd.f32 %v334_v37, %v333_v0 }
 0x12b   :  { %v337_v8 = vadd.f32 %v336_v2, %v335_v1 }
 0x12d   :  { %v338_v9 = vrot.slane %v337_v8, 4 }
 0x12f   :  { %v339_v47 = vadd.f32 %v338_v9, %v337_v8 }
 0x131   :  { %v340_v3 = vrot.slane %v339_v47, 2 }
 0x133   :  { %v341_v11 = vadd.f32 %v340_v3, %v339_v47 }
 0x135   :  { %v342_v13 = vrot.slane %v341_v11, 1 }
 0x137   :  { %v343_v14 = vadd.f32 %v342_v13, %v341_v11 }
 0x139   :  { %v344_v16 = vmul.f32 0.0078125, %v343_v14 }
 0x13b   :  { %v345_v17 = vadd.f32 1e-05, %v344_v16 }
 0x13d   :  { %514 = vrsqrt.f32 %v345_v17 }
 0x14a   :  { %v515_v27 = vpop.eup %514 }
 0x14b   :  { %v348_v28 = vmul.f32 %v515_v27, %v347_v22 }
 0x14d   :  { %v352_v23 = vrot.slane %v348_v28, %v351_v26 }
 0x14f   :  { %v353_v32 = vmul.f32 %v352_v23, %v622_v4  ;;  %v354_v33 = vmul.f32 %v352_v23, %v624_v5  ;;  %v355_v30 = vmul.f32 %v352_v23, %v626_v6  ;;  %v356_v35 = vmul.f32 %v352_v23, %v628_v7 }
 0x150   :  { %v357_v36 = vmul.f32 %v352_v23, %v634_v10  ;;  %v358_v18 = vmul.f32 %v352_v23, %v638_v12  ;;  %v359_v39 = vmul.f32 %v352_v23, %v644_v19  ;;  %v360_v40 = vmul.f32 %v352_v23, %v649_v25 }
 0x151   :  { %v361_v4 = vmul.f32 %v352_v23, %v655_v29  ;;  %v362_v5 = vmul.f32 %v352_v23, %v660_v34  ;;  %v363_v6 = vmul.f32 %v352_v23, %v666_v38  ;;  %v364_v43 = vmul.f32 %v352_v23, %v286_v41 }
 0x152   :  { %v365_v7 = vmul.f32 %v352_v23, %v287_v45  ;;  %v366_v44 = vmul.f32 %v352_v23, %v288_v49  ;;  %v367_v10 = vmul.f32 %v352_v23, %v289_v24  ;;  %v368_v15 = vmul.f32 %v352_v23, %v290_v57 }
 0x153   :  { %v376_v12 = vadd.f32 %v449_v31, %v353_v32  ;;  %v377_v46 = vadd.f32 %v449_v31, %v354_v33  ;;  %v378_v19 = vadd.f32 %v449_v31, %v355_v30  ;;  %v379_v48 = vadd.f32 %v449_v31, %v356_v35 }
 0x154   :  { %v380_v25 = vadd.f32 %v449_v31, %v357_v36  ;;  %v381_v50 = vadd.f32 %v449_v31, %v358_v18  ;;  %v382_v51 = vadd.f32 %v449_v31, %v359_v39  ;;  %v383_v53 = vadd.f32 %v449_v31, %v360_v40 }
 0x155   :  { %v384_v54 = vadd.f32 %v449_v31, %v361_v4  ;;  %v385_v55 = vadd.f32 %v449_v31, %v362_v5  ;;  %v386_v29 = vadd.f32 %v449_v31, %v363_v6  ;;  %v387_v56 = vadd.f32 %v449_v31, %v364_v43 }
 0x156   :  { %v388_v34 = vadd.f32 %v449_v31, %v365_v7  ;;  %v389_v42 = vadd.f32 %v449_v31, %v366_v44  ;;  %v390_v38 = vadd.f32 %v449_v31, %v367_v10  ;;  %v391_v41 = vadd.f32 %v449_v31, %v368_v15 }
 0x157   :  { %v392_v45 = vmax.f32 %v376_v12, 0.0  ;;  %v393_v49 = vmax.f32 %v377_v46, 0.0  ;;  %v394_v24 = vmax.f32 %v378_v19, 0.0  ;;  %v395_v57 = vmax.f32 %v379_v48, 0.0 }
 0x158   :  { %v396_v58 = vmax.f32 %v380_v25, 0.0  ;;  %v397_v59 = vmax.f32 %v381_v50, 0.0  ;;  %v398_v60 = vmax.f32 %v382_v51, 0.0  ;;  %v399_v61 = vmax.f32 %v383_v53, 0.0 }
 0x159   :  { %v400_v52 = vmax.f32 %v384_v54, 0.0  ;;  %v401_v62 = vmax.f32 %v385_v55, 0.0  ;;  %v402_v63 = vmax.f32 %v386_v29, 0.0  ;;  %v403_v0 = vmax.f32 %v387_v56, 0.0  ;;  %408 = vst.msk [vmem:[%s773_s4] sm:$0xff] %vm236_vm2, %v392_v45  ;;  %409 = vst.msk [vmem:[%s773_s4 + $0x8] sm:$0xff] %vm236_vm2, %v393_v49 }
 0x15a   :  { %410 = vst.msk [vmem:[%s773_s4 + $0x10] sm:$0xff] %vm236_vm2, %v394_v24  ;;  %411 = vst.msk [vmem:[%s773_s4 + $0x18] sm:$0xff] %vm236_vm2, %v395_v57  ;;  %v404_v37 = vmax.f32 %v388_v34, 0.0  ;;  %v405_v1 = vmax.f32 %v389_v42, 0.0  ;;  %v406_v2 = vmax.f32 %v390_v38, 0.0  ;;  %v407_v8 = vmax.f32 %v391_v41, 0.0 }
 0x15b   :  { %412 = vst.msk [vmem:[%s773_s4 + $0x20] sm:$0xff] %vm236_vm2, %v396_v58  ;;  %413 = vst.msk [vmem:[%s773_s4 + $0x28] sm:$0xff] %vm236_vm2, %v397_v59 }
 0x15c   :  { %414 = vst.msk [vmem:[%s773_s4 + $0x30] sm:$0xff] %vm236_vm2, %v398_v60  ;;  %415 = vst.msk [vmem:[%s773_s4 + $0x38] sm:$0xff] %vm236_vm2, %v399_v61 }
 0x15d   :  { %416 = vst.msk [vmem:[%s773_s4 + $0x40] sm:$0xff] %vm236_vm2, %v400_v52  ;;  %417 = vst.msk [vmem:[%s773_s4 + $0x48] sm:$0xff] %vm236_vm2, %v401_v62 }
 0x15e   :  { %418 = vst.msk [vmem:[%s773_s4 + $0x50] sm:$0xff] %vm236_vm2, %v402_v63  ;;  %419 = vst.msk [vmem:[%s773_s4 + $0x58] sm:$0xff] %vm236_vm2, %v403_v0 }
 0x15f   :  { %420 = vst.msk [vmem:[%s773_s4 + $0x60] sm:$0xff] %vm236_vm2, %v404_v37  ;;  %421 = vst.msk [vmem:[%s773_s4 + $0x68] sm:$0xff] %vm236_vm2, %v405_v1 }
 0x160   :  { %422 = vst.msk [vmem:[%s773_s4 + $0x70] sm:$0xff] %vm236_vm2, %v406_v2  ;;  %423 = vst.msk [vmem:[%s773_s4 + $0x78] sm:$0xff] %vm236_vm2, %v407_v8 }

// kernel: facenet_forward.59
= control target key start
LH: loop header
LB: loop body
LE: loop exit
PB: predicated region body
PF: predicated region fallthrough
CT: control target
= control target key end

     0   :  { %vm100_vm0 = vcmask 1043456   ;;  %vm75_vm1 = vcmask 64512   ;;  %vm201_vm2 = vcmask 261120   ;;  %s676_s1 = inlined_call_operand.vmem [shape: bf16[8,32], index: 1, kind: input, shape index: {}]   ;;  %s677_s0 = inlined_call_operand.vmem [shape: bf16[128,8], index: 0, kind: input, shape index: {}]   ;;  %s678_s2 = inlined_call_operand.vmem [shape: f32[1,32], index: 2, kind: input, shape index: {}]   ;;  %s679_s3 = inlined_call_operand.vmem [shape: f32[1,32], index: 3, kind: input, shape index: {}]   ;;  %s680_s4 = inlined_call_operand.vmem [shape: f32[128,32], index: 4, kind: output, shape index: {}]  }
   0x1   :  { %v34_v0 = vld [vmem:[%s676_s1] sm:$0xf]  ;;  %v426_v3 = vld [vmem:[%s677_s0 + $0x8] sm:$0xff]   ;;  %v427_v4 = vld [vmem:[%s677_s0 + $0x10] sm:$0xff]  }
   0x2   :  { %423 = vmatprep.subr.msk.bf16.mxu0 %vm100_vm0, %v34_v0  ;;  %v102_v1 = vsel %vm100_vm0, %v34_v0, 0  ;;  %v425_v2 = vld [vmem:[%s677_s0] sm:$0xff]   ;;  %424 = vmatprep.subr.msk.bf16.mxu1 %vm100_vm0, %v34_v0  ;;  %v430_v6 = vld [vmem:[%s677_s0 + $0x28] sm:$0xff]   ;;  %v431_v7 = vld [vmem:[%s677_s0 + $0x30] sm:$0xff]  }
   0x3   :  { %404 = vmatpush3.bf16.msra.mxu0 %v102_v1  ;;  %422 = vmatpush3.bf16.msra.mxu1 %v102_v1  ;;  %v429_v5 = vld [vmem:[%s677_s0 + $0x20] sm:$0xff]   ;;  %v428_v8 = vld [vmem:[%s677_s0 + $0x18] sm:$0xff]  }
   0x4   :  { %405 = vmatprep.mubr.msk.bf16.mxu0 %vm75_vm1, %v425_v2  ;;  %413 = vmatprep.mubr.msk.bf16.mxu1 %vm75_vm1, %v429_v5  ;;  %v432_v9 = vld [vmem:[%s677_s0 + $0x38] sm:$0xff]  }
   0x6   :  { %406 = vmatmul.mubr.msk.bf16.vlgmr.msra.gmra.mxu0 %vm75_vm1, %v426_v3  ;;  %414 = vmatmul.mubr.msk.bf16.vlgmr.msra.gmra.mxu1 %vm75_vm1, %v430_v6 }
   0x7   :  { %409 = vmatprep.mubr.msk.bf16.mxu0 %vm75_vm1, %v427_v4  ;;  %417 = vmatprep.mubr.msk.bf16.mxu1 %vm75_vm1, %v431_v7 }
   0xe   :  { %410 = vmatmul.mubr.msk.bf16.gmra.mxu0 %vm75_vm1, %v428_v8  ;;  %418 = vmatmul.mubr.msk.bf16.gmra.mxu1 %vm75_vm1, %v432_v9 }
  0xc6   :  { %v407_v10 = vpop.f32.mrf.mxu0  ;;  %v495_v12 = vpop.f32.mrf.mxu1 }
  0xc7   :  { %v205_v21 = vsel %vm201_vm2, %v407_v10, 0.0  ;;  %v221_v44 = vsel %vm201_vm2, %v495_v12, 0.0 }
  0xc8   :  { %v138_v11 = vpop.f32.mrf.mxu0  ;;  %v497_v14 = vpop.f32.mrf.mxu1 }
  0xc9   :  { %v202_v16 = vsel %vm201_vm2, %v138_v11, 0.0  ;;  %v217_v39 = vsel %vm201_vm2, %v497_v14, 0.0 }
  0xca   :  { %v408_v13 = vpop.f32.mrf.mxu0  ;;  %v501_v20 = vpop.f32.mrf.mxu1 }
  0xcb   :  { %v207_v24 = vsel %vm201_vm2, %v408_v13, 0.0  ;;  %v223_v46 = vsel %vm201_vm2, %v501_v20, 0.0 }
  0xcc   :  { %v141_v15 = vpop.f32.mrf.mxu0  ;;  %v173_v27 = vpop.f32.mrf.mxu1 }
  0xcd   :  { %v203_v17 = vsel %vm201_vm2, %v141_v15, 0.0  ;;  %v219_v41 = vsel %vm201_vm2, %v173_v27, 0.0 }
  0xce   :  { %v204_v18 = vadd.f32 %v203_v17, %v202_v16  ;;  %v411_v19 = vpop.f32.mrf.mxu0  ;;  %v507_v33 = vpop.f32.mrf.mxu1 }
  0xcf   :  { %v213_v34 = vsel %vm201_vm2, %v411_v19, 0.0  ;;  %v229_v53 = vsel %vm201_vm2, %v507_v33, 0.0 }
  0xd0   :  { %v206_v22 = vadd.f32 %v205_v21, %v204_v18  ;;  %v154_v23 = vpop.f32.mrf.mxu0  ;;  %v511_v38 = vpop.f32.mrf.mxu1 }
  0xd1   :  { %v209_v28 = vsel %vm201_vm2, %v154_v23, 0.0  ;;  %v225_v49 = vsel %vm201_vm2, %v511_v38, 0.0 }
  0xd2   :  { %v208_v25 = vadd.f32 %v207_v24, %v206_v22  ;;  %v412_v26 = vpop.f32.mrf.mxu0  ;;  %v516_v43 = vpop.f32.mrf.mxu1 }
  0xd3   :  { %v215_v36 = vsel %vm201_vm2, %v412_v26, 0.0  ;;  %v231_v55 = vsel %vm201_vm2, %v516_v43, 0.0 }
  0xd4   :  { %v210_v29 = vadd.f32 %v209_v28, %v208_v25  ;;  %v157_v30 = vpop.f32.mrf.mxu0  ;;  %v189_v48 = vpop.f32.mrf.mxu1 }
  0xd5   :  { %v211_v31 = vsel %vm201_vm2, %v157_v30, 0.0  ;;  %v227_v51 = vsel %vm201_vm2, %v189_v48, 0.0 }
  0xd6   :  { %v212_v32 = vadd.f32 %v211_v31, %v210_v29 }
  0xd8   :  { %v214_v35 = vadd.f32 %v213_v34, %v212_v32 }
  0xda   :  { %v216_v37 = vadd.f32 %v215_v36, %v214_v35 }
  0xdc   :  { %v218_v40 = vadd.f32 %v217_v39, %v216_v37 }
  0xde   :  { %v220_v42 = vadd.f32 %v219_v41, %v218_v40 }
  0xe0   :  { %v222_v45 = vadd.f32 %v221_v44, %v220_v42 }
  0xe2   :  { %v224_v47 = vadd.f32 %v223_v46, %v222_v45 }
  0xe4   :  { %v226_v50 = vadd.f32 %v225_v49, %v224_v47 }
  0xe6   :  { %v228_v52 = vadd.f32 %v227_v51, %v226_v50 }
  0xe8   :  { %v230_v54 = vadd.f32 %v229_v53, %v228_v52 }
  0xea   :  { %v232_v56 = vadd.f32 %v231_v55, %v230_v54 }
  0xec   :  { %v233_v57 = vrot.slane %v232_v56, 4 }
  0xee   :  { %v234_v58 = vadd.f32 %v233_v57, %v232_v56 }
  0xf0   :  { %v235_v59 = vrot.slane %v234_v58, 2 }
  0xf2   :  { %v236_v60 = vadd.f32 %v235_v59, %v234_v58 }
  0xf4   :  { %v237_v61 = vrot.slane %v236_v60, 1 }
  0xf6   :  { %v238_v62 = vadd.f32 %v237_v61, %v236_v60 }
  0xf8   :  { %v239_v63 = vmul.f32 0.0078125, %v238_v62 }
  0xfa   :  { %v529_v0 = vsub.f32 %v138_v11, %v239_v63  ;;  %v531_v1 = vsub.f32 %v141_v15, %v239_v63  ;;  %v533_v2 = vsub.f32 %v407_v10, %v239_v63  ;;  %v535_v3 = vsub.f32 %v408_v13, %v239_v63 }
  0xfb   :  { %v541_v6 = vsub.f32 %v154_v23, %v239_v63  ;;  %v545_v8 = vsub.f32 %v157_v30, %v239_v63  ;;  %v551_v15 = vsub.f32 %v411_v19, %v239_v63  ;;  %v556_v21 = vsub.f32 %v412_v26, %v239_v63 }
  0xfc   :  { %v256_v4 = vmul.f32 %v529_v0, %v529_v0  ;;  %v257_v5 = vmul.f32 %v531_v1, %v531_v1  ;;  %v258_v7 = vmul.f32 %v533_v2, %v533_v2  ;;  %v259_v9 = vmul.f32 %v535_v3, %v535_v3 }
  0xfd   :  { %v260_v16 = vmul.f32 %v541_v6, %v541_v6  ;;  %v261_v22 = vmul.f32 %v545_v8, %v545_v8  ;;  %v562_v25 = vsub.f32 %v497_v14, %v239_v63  ;;  %v262_v19 = vmul.f32 %v551_v15, %v551_v15 }
  0xfe   :  { %v272_v10 = vsel %vm201_vm2, %v256_v4, 0.0  ;;  %v273_v11 = vsel %vm201_vm2, %v257_v5, 0.0  ;;  %v275_v17 = vsel %vm201_vm2, %v258_v7, 0.0  ;;  %v277_v23 = vsel %vm201_vm2, %v259_v9, 0.0 }
  0xff   :  { %v274_v13 = vadd.f32 %v273_v11, %v272_v10  ;;  %v279_v28 = vsel %vm201_vm2, %v260_v16, 0.0  ;;  %v567_v30 = vsub.f32 %v173_v27, %v239_v63  ;;  %v263_v26 = vmul.f32 %v556_v21, %v556_v21 }
 0x100   :  { %v281_v31 = vsel %vm201_vm2, %v261_v22, 0.0  ;;  %v573_v34 = vsub.f32 %v495_v12, %v239_v63  ;;  %v264_v14 = vmul.f32 %v562_v25, %v562_v25  ;;  %v283_v35 = vsel %vm201_vm2, %v262_v19, 0.0 }
 0x101   :  { %v276_v18 = vadd.f32 %v275_v17, %v274_v13  ;;  %v251_v37 = vsub.f32 %v501_v20, %v239_v63  ;;  %v265_v27 = vmul.f32 %v567_v30, %v567_v30  ;;  %v285_v39 = vsel %vm201_vm2, %v263_v26, 0.0 }
 0x102   :  { %v252_v41 = vsub.f32 %v511_v38, %v239_v63  ;;  %v266_v12 = vmul.f32 %v573_v34, %v573_v34  ;;  %v287_v42 = vsel %vm201_vm2, %v264_v14, 0.0  ;;  %v253_v45 = vsub.f32 %v189_v48, %v239_v63 }
 0x103   :  { %v278_v24 = vadd.f32 %v277_v23, %v276_v18  ;;  %v267_v46 = vmul.f32 %v251_v37, %v251_v37  ;;  %v289_v47 = vsel %vm201_vm2, %v265_v27, 0.0  ;;  %v254_v20 = vsub.f32 %v507_v33, %v239_v63  ;;  %v312_v18 = vld [vmem:[%s678_s2] sm:$0x1] }
 0x104   :  { %v268_v50 = vmul.f32 %v252_v41, %v252_v41  ;;  %v291_v51 = vsel %vm201_vm2, %v266_v12, 0.0  ;;  %v255_v53 = vsub.f32 %v516_v43, %v239_v63  ;;  %v269_v38 = vmul.f32 %v253_v45, %v253_v45  ;;  %v393_v27 = vld [vmem:[%s679_s3] ss:$0 sm:$0xff] }
 0x105   :  { %v280_v29 = vadd.f32 %v279_v28, %v278_v24  ;;  %v293_v54 = vsel %vm201_vm2, %v267_v46, 0.0  ;;  %v270_v56 = vmul.f32 %v254_v20, %v254_v20  ;;  %v314_v16 = vlaneseq }
 0x106   :  { %v295_v57 = vsel %vm201_vm2, %v268_v50, 0.0  ;;  %v271_v58 = vmul.f32 %v255_v53, %v255_v53  ;;  %v297_v59 = vsel %vm201_vm2, %v269_v38, 0.0 }
 0x107   :  { %v282_v32 = vadd.f32 %v281_v31, %v280_v29  ;;  %v299_v33 = vsel %vm201_vm2, %v270_v56, 0.0  ;;  %v315_v17 = vshrl.u32 %v314_v16, 7 }
 0x108   :  { %v301_v62 = vsel %vm201_vm2, %v271_v58, 0.0 }
 0x109   :  { %v284_v36 = vadd.f32 %v283_v35, %v282_v32  ;;  %v316_v22 = vsub.s32 0, %v315_v17 }
 0x10b   :  { %v286_v40 = vadd.f32 %v285_v39, %v284_v36 }
 0x10d   :  { %v288_v44 = vadd.f32 %v287_v42, %v286_v40 }
 0x10f   :  { %v290_v49 = vadd.f32 %v289_v47, %v288_v44 }
 0x111   :  { %v292_v52 = vadd.f32 %v291_v51, %v290_v49 }
 0x113   :  { %v294_v55 = vadd.f32 %v293_v54, %v292_v52 }
 0x115   :  { %v296_v48 = vadd.f32 %v295_v57, %v294_v55 }
 0x117   :  { %v298_v60 = vadd.f32 %v297_v59, %v296_v48 }
 0x119   :  { %v300_v61 = vadd.f32 %v299_v33, %v298_v60 }
 0x11b   :  { %v302_v4 = vadd.f32 %v301_v62, %v300_v61 }
 0x11d   :  { %v303_v5 = vrot.slane %v302_v4, 4 }
 0x11f   :  { %v304_v43 = vadd.f32 %v303_v5, %v302_v4 }
 0x121   :  { %v305_v63 = vrot.slane %v304_v43, 2 }
 0x123   :  { %v306_v7 = vadd.f32 %v305_v63, %v304_v43 }
 0x125   :  { %v307_v9 = vrot.slane %v306_v7, 1 }
 0x127   :  { %v308_v10 = vadd.f32 %v307_v9, %v306_v7 }
 0x129   :  { %v309_v11 = vmul.f32 0.0078125, %v308_v10 }
 0x12b   :  { %v310_v13 = vadd.f32 1e-05, %v309_v11 }
 0x12d   :  { %433 = vrsqrt.f32 %v310_v13 }
 0x13a   :  { %v434_v23 = vpop.eup %433 }
 0x13b   :  { %v313_v24 = vmul.f32 %v434_v23, %v312_v18 }
 0x13d   :  { %v317_v19 = vrot.slane %v313_v24, %v316_v22 }
 0x13f   :  { %v318_v28 = vmul.f32 %v317_v19, %v529_v0  ;;  %v319_v29 = vmul.f32 %v317_v19, %v531_v1  ;;  %v320_v26 = vmul.f32 %v317_v19, %v533_v2  ;;  %v321_v31 = vmul.f32 %v317_v19, %v535_v3 }
 0x140   :  { %v322_v32 = vmul.f32 %v317_v19, %v541_v6  ;;  %v323_v14 = vmul.f32 %v317_v19, %v545_v8  ;;  %v324_v35 = vmul.f32 %v317_v19, %v551_v15  ;;  %v325_v36 = vmul.f32 %v317_v19, %v556_v21 }
 0x141   :  { %v326_v0 = vmul.f32 %v317_v19, %v562_v25  ;;  %v327_v1 = vmul.f32 %v317_v19, %v567_v30  ;;  %v328_v2 = vmul.f32 %v317_v19, %v573_v34  ;;  %v329_v39 = vmul.f32 %v317_v19, %v251_v37 }
 0x142   :  { %v330_v3 = vmul.f32 %v317_v19, %v252_v41  ;;  %v331_v40 = vmul.f32 %v317_v19, %v253_v45  ;;  %v332_v6 = vmul.f32 %v317_v19, %v254_v20  ;;  %v333_v12 = vmul.f32 %v317_v19, %v255_v53 }
 0x143   :  { %v341_v8 = vadd.f32 %v393_v27, %v318_v28  ;;  %v342_v42 = vadd.f32 %v393_v27, %v319_v29  ;;  %v343_v15 = vadd.f32 %v393_v27, %v320_v26  ;;  %v344_v44 = vadd.f32 %v393_v27, %v321_v31 }
 0x144   :  { %v345_v21 = vadd.f32 %v393_v27, %v322_v32  ;;  %v346_v46 = vadd.f32 %v393_v27, %v323_v14  ;;  %v347_v47 = vadd.f32 %v393_v27, %v324_v35  ;;  %v348_v49 = vadd.f32 %v393_v27, %v325_v36 }
 0x145   :  { %v349_v50 = vadd.f32 %v393_v27, %v326_v0  ;;  %v350_v51 = vadd.f32 %v393_v27, %v327_v1  ;;  %v351_v25 = vadd.f32 %v393_v27, %v328_v2  ;;  %v352_v52 = vadd.f32 %v393_v27, %v329_v39  ;;  %357 = vst.msk [vmem:[%s680_s4] sm:$0xff] %vm201_vm2, %v341_v8 }
 0x146   :  { %358 = vst.msk [vmem:[%s680_s4 + $0x8] sm:$0xff] %vm201_vm2, %v342_v42  ;;  %359 = vst.msk [vmem:[%s680_s4 + $0x10] sm:$0xff] %vm201_vm2, %v343_v15  ;;  %v353_v30 = vadd.f32 %v393_v27, %v330_v3  ;;  %v354_v34 = vadd.f32 %v393_v27, %v331_v40  ;;  %v355_v37 = vadd.f32 %v393_v27, %v332_v6 }
 0x147   :  { %360 = vst.msk [vmem:[%s680_s4 + $0x18] sm:$0xff] %vm201_vm2, %v344_v44  ;;  %v356_v41 = vadd.f32 %v393_v27, %v333_v12  ;;  %361 = vst.msk [vmem:[%s680_s4 + $0x20] sm:$0xff] %vm201_vm2, %v345_v21 }
 0x148   :  { %362 = vst.msk [vmem:[%s680_s4 + $0x28] sm:$0xff] %vm201_vm2, %v346_v46  ;;  %363 = vst.msk [vmem:[%s680_s4 + $0x30] sm:$0xff] %vm201_vm2, %v347_v47 }
 0x149   :  { %364 = vst.msk [vmem:[%s680_s4 + $0x38] sm:$0xff] %vm201_vm2, %v348_v49  ;;  %365 = vst.msk [vmem:[%s680_s4 + $0x40] sm:$0xff] %vm201_vm2, %v349_v50 }
 0x14a   :  { %366 = vst.msk [vmem:[%s680_s4 + $0x48] sm:$0xff] %vm201_vm2, %v350_v51  ;;  %367 = vst.msk [vmem:[%s680_s4 + $0x50] sm:$0xff] %vm201_vm2, %v351_v25 }
 0x14b   :  { %368 = vst.msk [vmem:[%s680_s4 + $0x58] sm:$0xff] %vm201_vm2, %v352_v52  ;;  %369 = vst.msk [vmem:[%s680_s4 + $0x60] sm:$0xff] %vm201_vm2, %v353_v30 }
 0x14c   :  { %370 = vst.msk [vmem:[%s680_s4 + $0x68] sm:$0xff] %vm201_vm2, %v354_v34  ;;  %371 = vst.msk [vmem:[%s680_s4 + $0x70] sm:$0xff] %vm201_vm2, %v355_v37 }
 0x14d   :  { %372 = vst.msk [vmem:[%s680_s4 + $0x78] sm:$0xff] %vm201_vm2, %v356_v41 }

// kernel: facenet_forward.60
= control target key start
LH: loop header
LB: loop body
LE: loop exit
PB: predicated region body
PF: predicated region fallthrough
CT: control target
= control target key end

     0   :  { %vm103_vm0 = vcmask 1043456   ;;  %vm78_vm1 = vcmask 64512   ;;  %vm204_vm2 = vcmask 261120   ;;  %s780_s1 = inlined_call_operand.vmem [shape: bf16[8,32], index: 1, kind: input, shape index: {}]   ;;  %s781_s0 = inlined_call_operand.vmem [shape: bf16[128,8], index: 0, kind: input, shape index: {}]   ;;  %s782_s2 = inlined_call_operand.vmem [shape: f32[1,32], index: 2, kind: input, shape index: {}]   ;;  %s783_s3 = inlined_call_operand.vmem [shape: f32[1,32], index: 3, kind: input, shape index: {}]   ;;  %s784_s4 = inlined_call_operand.vmem [shape: f32[128,32], index: 4, kind: input, shape index: {}]   ;;  %s785_s5 = inlined_call_operand.vmem [shape: f32[128,32], index: 5, kind: output, shape index: {}]  }
   0x1   :  { %v37_v0 = vld [vmem:[%s780_s1] sm:$0xf]  ;;  %v477_v3 = vld [vmem:[%s781_s0 + $0x8] sm:$0xff]   ;;  %v478_v4 = vld [vmem:[%s781_s0 + $0x10] sm:$0xff]  }
   0x2   :  { %474 = vmatprep.subr.msk.bf16.mxu0 %vm103_vm0, %v37_v0  ;;  %v105_v1 = vsel %vm103_vm0, %v37_v0, 0  ;;  %v476_v2 = vld [vmem:[%s781_s0] sm:$0xff]   ;;  %475 = vmatprep.subr.msk.bf16.mxu1 %vm103_vm0, %v37_v0  ;;  %v481_v6 = vld [vmem:[%s781_s0 + $0x28] sm:$0xff]   ;;  %v482_v7 = vld [vmem:[%s781_s0 + $0x30] sm:$0xff]  }
   0x3   :  { %455 = vmatpush3.bf16.msra.mxu0 %v105_v1  ;;  %473 = vmatpush3.bf16.msra.mxu1 %v105_v1  ;;  %v480_v5 = vld [vmem:[%s781_s0 + $0x20] sm:$0xff]   ;;  %v479_v8 = vld [vmem:[%s781_s0 + $0x18] sm:$0xff]  }
   0x4   :  { %456 = vmatprep.mubr.msk.bf16.mxu0 %vm78_vm1, %v476_v2  ;;  %464 = vmatprep.mubr.msk.bf16.mxu1 %vm78_vm1, %v480_v5  ;;  %v483_v9 = vld [vmem:[%s781_s0 + $0x38] sm:$0xff]  }
   0x6   :  { %457 = vmatmul.mubr.msk.bf16.vlgmr.msra.gmra.mxu0 %vm78_vm1, %v477_v3  ;;  %465 = vmatmul.mubr.msk.bf16.vlgmr.msra.gmra.mxu1 %vm78_vm1, %v481_v6 }
   0x7   :  { %460 = vmatprep.mubr.msk.bf16.mxu0 %vm78_vm1, %v478_v4  ;;  %468 = vmatprep.mubr.msk.bf16.mxu1 %vm78_vm1, %v482_v7 }
   0xe   :  { %461 = vmatmul.mubr.msk.bf16.gmra.mxu0 %vm78_vm1, %v479_v8  ;;  %469 = vmatmul.mubr.msk.bf16.gmra.mxu1 %vm78_vm1, %v483_v9 }
  0xc6   :  { %v458_v10 = vpop.f32.mrf.mxu0  ;;  %v551_v12 = vpop.f32.mrf.mxu1 }
  0xc7   :  { %v208_v21 = vsel %vm204_vm2, %v458_v10, 0.0  ;;  %v224_v44 = vsel %vm204_vm2, %v551_v12, 0.0 }
  0xc8   :  { %v141_v11 = vpop.f32.mrf.mxu0  ;;  %v553_v14 = vpop.f32.mrf.mxu1 }
  0xc9   :  { %v205_v16 = vsel %vm204_vm2, %v141_v11, 0.0  ;;  %v220_v39 = vsel %vm204_vm2, %v553_v14, 0.0 }
  0xca   :  { %v459_v13 = vpop.f32.mrf.mxu0  ;;  %v557_v20 = vpop.f32.mrf.mxu1 }
  0xcb   :  { %v210_v24 = vsel %vm204_vm2, %v459_v13, 0.0  ;;  %v226_v46 = vsel %vm204_vm2, %v557_v20, 0.0 }
  0xcc   :  { %v144_v15 = vpop.f32.mrf.mxu0  ;;  %v176_v27 = vpop.f32.mrf.mxu1 }
  0xcd   :  { %v206_v17 = vsel %vm204_vm2, %v144_v15, 0.0  ;;  %v222_v41 = vsel %vm204_vm2, %v176_v27, 0.0 }
  0xce   :  { %v207_v18 = vadd.f32 %v206_v17, %v205_v16  ;;  %v462_v19 = vpop.f32.mrf.mxu0  ;;  %v563_v33 = vpop.f32.mrf.mxu1 }
  0xcf   :  { %v216_v34 = vsel %vm204_vm2, %v462_v19, 0.0  ;;  %v232_v53 = vsel %vm204_vm2, %v563_v33, 0.0 }
  0xd0   :  { %v209_v22 = vadd.f32 %v208_v21, %v207_v18  ;;  %v157_v23 = vpop.f32.mrf.mxu0  ;;  %v567_v38 = vpop.f32.mrf.mxu1 }
  0xd1   :  { %v212_v28 = vsel %vm204_vm2, %v157_v23, 0.0  ;;  %v228_v49 = vsel %vm204_vm2, %v567_v38, 0.0 }
  0xd2   :  { %v211_v25 = vadd.f32 %v210_v24, %v209_v22  ;;  %v463_v26 = vpop.f32.mrf.mxu0  ;;  %v572_v43 = vpop.f32.mrf.mxu1 }
  0xd3   :  { %v218_v36 = vsel %vm204_vm2, %v463_v26, 0.0  ;;  %v234_v55 = vsel %vm204_vm2, %v572_v43, 0.0 }
  0xd4   :  { %v213_v29 = vadd.f32 %v212_v28, %v211_v25  ;;  %v160_v30 = vpop.f32.mrf.mxu0  ;;  %v192_v48 = vpop.f32.mrf.mxu1 }
  0xd5   :  { %v214_v31 = vsel %vm204_vm2, %v160_v30, 0.0  ;;  %v230_v51 = vsel %vm204_vm2, %v192_v48, 0.0 }
  0xd6   :  { %v215_v32 = vadd.f32 %v214_v31, %v213_v29 }
  0xd8   :  { %v217_v35 = vadd.f32 %v216_v34, %v215_v32 }
  0xda   :  { %v219_v37 = vadd.f32 %v218_v36, %v217_v35 }
  0xdc   :  { %v221_v40 = vadd.f32 %v220_v39, %v219_v37 }
  0xde   :  { %v223_v42 = vadd.f32 %v222_v41, %v221_v40 }
  0xe0   :  { %v225_v45 = vadd.f32 %v224_v44, %v223_v42 }
  0xe2   :  { %v227_v47 = vadd.f32 %v226_v46, %v225_v45 }
  0xe4   :  { %v229_v50 = vadd.f32 %v228_v49, %v227_v47 }
  0xe6   :  { %v231_v52 = vadd.f32 %v230_v51, %v229_v50 }
  0xe8   :  { %v233_v54 = vadd.f32 %v232_v53, %v231_v52 }
  0xea   :  { %v235_v56 = vadd.f32 %v234_v55, %v233_v54 }
  0xec   :  { %v236_v57 = vrot.slane %v235_v56, 4 }
  0xee   :  { %v237_v58 = vadd.f32 %v236_v57, %v235_v56 }
  0xf0   :  { %v238_v59 = vrot.slane %v237_v58, 2 }
  0xf2   :  { %v239_v60 = vadd.f32 %v238_v59, %v237_v58 }
  0xf4   :  { %v240_v61 = vrot.slane %v239_v60, 1 }
  0xf6   :  { %v241_v62 = vadd.f32 %v240_v61, %v239_v60 }
  0xf8   :  { %v242_v63 = vmul.f32 0.0078125, %v241_v62 }
  0xfa   :  { %v585_v0 = vsub.f32 %v141_v11, %v242_v63  ;;  %v587_v1 = vsub.f32 %v144_v15, %v242_v63  ;;  %v589_v2 = vsub.f32 %v458_v10, %v242_v63  ;;  %v591_v3 = vsub.f32 %v459_v13, %v242_v63 }
  0xfb   :  { %v597_v6 = vsub.f32 %v157_v23, %v242_v63  ;;  %v601_v8 = vsub.f32 %v160_v30, %v242_v63  ;;  %v607_v15 = vsub.f32 %v462_v19, %v242_v63  ;;  %v612_v21 = vsub.f32 %v463_v26, %v242_v63 }
  0xfc   :  { %v259_v4 = vmul.f32 %v585_v0, %v585_v0  ;;  %v260_v5 = vmul.f32 %v587_v1, %v587_v1  ;;  %v261_v7 = vmul.f32 %v589_v2, %v589_v2  ;;  %v262_v9 = vmul.f32 %v591_v3, %v591_v3 }
  0xfd   :  { %v263_v16 = vmul.f32 %v597_v6, %v597_v6  ;;  %v264_v22 = vmul.f32 %v601_v8, %v601_v8  ;;  %v618_v25 = vsub.f32 %v553_v14, %v242_v63  ;;  %v265_v19 = vmul.f32 %v607_v15, %v607_v15 }
  0xfe   :  { %v275_v10 = vsel %vm204_vm2, %v259_v4, 0.0  ;;  %v276_v11 = vsel %vm204_vm2, %v260_v5, 0.0  ;;  %v278_v17 = vsel %vm204_vm2, %v261_v7, 0.0  ;;  %v280_v23 = vsel %vm204_vm2, %v262_v9, 0.0 }
  0xff   :  { %v277_v13 = vadd.f32 %v276_v11, %v275_v10  ;;  %v282_v28 = vsel %vm204_vm2, %v263_v16, 0.0  ;;  %v623_v30 = vsub.f32 %v176_v27, %v242_v63  ;;  %v266_v26 = vmul.f32 %v612_v21, %v612_v21 }
 0x100   :  { %v284_v31 = vsel %vm204_vm2, %v264_v22, 0.0  ;;  %v629_v34 = vsub.f32 %v551_v12, %v242_v63  ;;  %v267_v14 = vmul.f32 %v618_v25, %v618_v25  ;;  %v286_v35 = vsel %vm204_vm2, %v265_v19, 0.0 }
 0x101   :  { %v279_v18 = vadd.f32 %v278_v17, %v277_v13  ;;  %v254_v37 = vsub.f32 %v557_v20, %v242_v63  ;;  %v268_v27 = vmul.f32 %v623_v30, %v623_v30  ;;  %v288_v39 = vsel %vm204_vm2, %v266_v26, 0.0 }
 0x102   :  { %v255_v41 = vsub.f32 %v567_v38, %v242_v63  ;;  %v269_v12 = vmul.f32 %v629_v34, %v629_v34  ;;  %v290_v42 = vsel %vm204_vm2, %v267_v14, 0.0  ;;  %v256_v45 = vsub.f32 %v192_v48, %v242_v63 }
 0x103   :  { %v281_v24 = vadd.f32 %v280_v23, %v279_v18  ;;  %v270_v46 = vmul.f32 %v254_v37, %v254_v37  ;;  %v292_v47 = vsel %vm204_vm2, %v268_v27, 0.0  ;;  %v257_v20 = vsub.f32 %v563_v33, %v242_v63  ;;  %v315_v18 = vld [vmem:[%s782_s2] sm:$0x1] }
 0x104   :  { %v271_v50 = vmul.f32 %v255_v41, %v255_v41  ;;  %v294_v51 = vsel %vm204_vm2, %v269_v12, 0.0  ;;  %v258_v53 = vsub.f32 %v572_v43, %v242_v63  ;;  %v272_v38 = vmul.f32 %v256_v45, %v256_v45  ;;  %v444_v27 = vld [vmem:[%s783_s3] ss:$0 sm:$0xff] }
 0x105   :  { %v283_v29 = vadd.f32 %v282_v28, %v281_v24  ;;  %v296_v54 = vsel %vm204_vm2, %v270_v46, 0.0  ;;  %v273_v56 = vmul.f32 %v257_v20, %v257_v20  ;;  %v317_v16 = vlaneseq }
 0x106   :  { %v298_v57 = vsel %vm204_vm2, %v271_v50, 0.0  ;;  %v274_v58 = vmul.f32 %v258_v53, %v258_v53  ;;  %v300_v59 = vsel %vm204_vm2, %v272_v38, 0.0  ;;  %v367_v38 = vld [vmem:[%s784_s4 + $0x38] sm:$0xff] }
 0x107   :  { %v285_v32 = vadd.f32 %v284_v31, %v283_v29  ;;  %v302_v33 = vsel %vm204_vm2, %v273_v56, 0.0  ;;  %v318_v17 = vshrl.u32 %v317_v16, 7 }
 0x108   :  { %v304_v62 = vsel %vm204_vm2, %v274_v58, 0.0 }
 0x109   :  { %v287_v36 = vadd.f32 %v286_v35, %v285_v32  ;;  %v319_v22 = vsub.s32 0, %v318_v17 }
 0x10b   :  { %v289_v40 = vadd.f32 %v288_v39, %v287_v36 }
 0x10d   :  { %v291_v44 = vadd.f32 %v290_v42, %v289_v40 }
 0x10f   :  { %v293_v49 = vadd.f32 %v292_v47, %v291_v44  ;;  %v364_v47 = vld [vmem:[%s784_s4 + $0x20] sm:$0xff] }
 0x111   :  { %v295_v52 = vadd.f32 %v294_v51, %v293_v49  ;;  %v365_v49 = vld [vmem:[%s784_s4 + $0x28] sm:$0xff] }
 0x113   :  { %v297_v55 = vadd.f32 %v296_v54, %v295_v52  ;;  %v368_v54 = vld [vmem:[%s784_s4 + $0x40] sm:$0xff] }
 0x115   :  { %v299_v48 = vadd.f32 %v298_v57, %v297_v55  ;;  %v369_v55 = vld [vmem:[%s784_s4 + $0x48] sm:$0xff] }
 0x117   :  { %v301_v60 = vadd.f32 %v300_v59, %v299_v48  ;;  %v370_v59 = vld [vmem:[%s784_s4 + $0x50] sm:$0xff] }
 0x119   :  { %v303_v61 = vadd.f32 %v302_v33, %v301_v60  ;;  %v371_v60 = vld [vmem:[%s784_s4 + $0x58] sm:$0xff]  ;;  %v372_v33 = vld [vmem:[%s784_s4 + $0x60] sm:$0xff] }
 0x11b   :  { %v305_v4 = vadd.f32 %v304_v62, %v303_v61  ;;  %v373_v61 = vld [vmem:[%s784_s4 + $0x68] sm:$0xff]  ;;  %v374_v62 = vld [vmem:[%s784_s4 + $0x70] sm:$0xff] }
 0x11d   :  { %v306_v5 = vrot.slane %v305_v4, 4 }
 0x11f   :  { %v307_v43 = vadd.f32 %v306_v5, %v305_v4  ;;  %v375_v4 = vld [vmem:[%s784_s4 + $0x78] sm:$0xff] }
 0x121   :  { %v308_v63 = vrot.slane %v307_v43, 2 }
 0x123   :  { %v309_v7 = vadd.f32 %v308_v63, %v307_v43 }
 0x125   :  { %v310_v9 = vrot.slane %v309_v7, 1 }
 0x127   :  { %v311_v10 = vadd.f32 %v310_v9, %v309_v7 }
 0x129   :  { %v312_v11 = vmul.f32 0.0078125, %v311_v10 }
 0x12b   :  { %v313_v13 = vadd.f32 1e-05, %v312_v11 }
 0x12d   :  { %484 = vrsqrt.f32 %v313_v13 }
 0x13a   :  { %v485_v23 = vpop.eup %484 }
 0x13b   :  { %v316_v24 = vmul.f32 %v485_v23, %v315_v18 }
 0x13d   :  { %v320_v19 = vrot.slane %v316_v24, %v319_v22 }
 0x13f   :  { %v321_v28 = vmul.f32 %v320_v19, %v585_v0  ;;  %v322_v29 = vmul.f32 %v320_v19, %v587_v1  ;;  %v323_v26 = vmul.f32 %v320_v19, %v589_v2  ;;  %v324_v31 = vmul.f32 %v320_v19, %v591_v3 }
 0x140   :  { %v325_v32 = vmul.f32 %v320_v19, %v597_v6  ;;  %v326_v14 = vmul.f32 %v320_v19, %v601_v8  ;;  %v327_v35 = vmul.f32 %v320_v19, %v607_v15  ;;  %v328_v36 = vmul.f32 %v320_v19, %v612_v21  ;;  %v360_v8 = vld [vmem:[%s784_s4] sm:$0xff] }
 0x141   :  { %v329_v0 = vmul.f32 %v320_v19, %v618_v25  ;;  %v330_v1 = vmul.f32 %v320_v19, %v623_v30  ;;  %v331_v2 = vmul.f32 %v320_v19, %v629_v34  ;;  %v332_v39 = vmul.f32 %v320_v19, %v254_v37  ;;  %v361_v25 = vld [vmem:[%s784_s4 + $0x8] sm:$0xff]  ;;  %v362_v30 = vld [vmem:[%s784_s4 + $0x10] sm:$0xff]  ;;  %v363_v34 = vld [vmem:[%s784_s4 + $0x18] sm:$0xff] }
 0x142   :  { %v333_v3 = vmul.f32 %v320_v19, %v255_v41  ;;  %v334_v40 = vmul.f32 %v320_v19, %v256_v45  ;;  %v335_v6 = vmul.f32 %v320_v19, %v257_v20  ;;  %v336_v12 = vmul.f32 %v320_v19, %v258_v53  ;;  %v366_v20 = vld [vmem:[%s784_s4 + $0x30] sm:$0xff] }
 0x143   :  { %v344_v15 = vadd.f32 %v444_v27, %v321_v28  ;;  %v345_v21 = vadd.f32 %v444_v27, %v322_v29  ;;  %v346_v42 = vadd.f32 %v444_v27, %v323_v26  ;;  %v347_v44 = vadd.f32 %v444_v27, %v324_v31 }
 0x144   :  { %v348_v37 = vadd.f32 %v444_v27, %v325_v32  ;;  %v349_v41 = vadd.f32 %v444_v27, %v326_v14  ;;  %v350_v45 = vadd.f32 %v444_v27, %v327_v35  ;;  %v351_v46 = vadd.f32 %v444_v27, %v328_v36 }
 0x145   :  { %v352_v50 = vadd.f32 %v444_v27, %v329_v0  ;;  %v353_v51 = vadd.f32 %v444_v27, %v330_v1  ;;  %v354_v52 = vadd.f32 %v444_v27, %v331_v2  ;;  %v355_v53 = vadd.f32 %v444_v27, %v332_v39 }
 0x146   :  { %v356_v56 = vadd.f32 %v444_v27, %v333_v3  ;;  %v357_v57 = vadd.f32 %v444_v27, %v334_v40  ;;  %v358_v48 = vadd.f32 %v444_v27, %v335_v6  ;;  %v359_v58 = vadd.f32 %v444_v27, %v336_v12 }
 0x147   :  { %v376_v5 = vadd.f32 %v360_v8, %v344_v15  ;;  %v377_v43 = vadd.f32 %v361_v25, %v345_v21  ;;  %v378_v63 = vadd.f32 %v362_v30, %v346_v42  ;;  %v379_v7 = vadd.f32 %v363_v34, %v347_v44 }
 0x148   :  { %v380_v9 = vadd.f32 %v364_v47, %v348_v37  ;;  %v381_v10 = vadd.f32 %v365_v49, %v349_v41  ;;  %v382_v11 = vadd.f32 %v366_v20, %v350_v45  ;;  %v383_v13 = vadd.f32 %v367_v38, %v351_v46 }
 0x149   :  { %v384_v16 = vadd.f32 %v368_v54, %v352_v50  ;;  %v385_v17 = vadd.f32 %v369_v55, %v353_v51  ;;  %v386_v18 = vadd.f32 %v370_v59, %v354_v52  ;;  %v387_v22 = vadd.f32 %v371_v60, %v355_v53 }
 0x14a   :  { %v388_v23 = vadd.f32 %v372_v33, %v356_v56  ;;  %v389_v24 = vadd.f32 %v373_v61, %v357_v57  ;;  %v390_v19 = vadd.f32 %v374_v62, %v358_v48  ;;  %v391_v28 = vadd.f32 %v375_v4, %v359_v58 }
 0x14b   :  { %v392_v29 = vmax.f32 %v376_v5, 0.0  ;;  %v393_v26 = vmax.f32 %v377_v43, 0.0  ;;  %v394_v31 = vmax.f32 %v378_v63, 0.0  ;;  %v395_v32 = vmax.f32 %v379_v7, 0.0 }
 0x14c   :  { %v396_v14 = vmax.f32 %v380_v9, 0.0  ;;  %v397_v35 = vmax.f32 %v381_v10, 0.0  ;;  %v398_v36 = vmax.f32 %v382_v11, 0.0  ;;  %v399_v27 = vmax.f32 %v383_v13, 0.0 }
 0x14d   :  { %v400_v0 = vmax.f32 %v384_v16, 0.0  ;;  %v401_v1 = vmax.f32 %v385_v17, 0.0  ;;  %v402_v2 = vmax.f32 %v386_v18, 0.0  ;;  %v403_v39 = vmax.f32 %v387_v22, 0.0  ;;  %408 = vst.msk [vmem:[%s785_s5] sm:$0xff] %vm204_vm2, %v392_v29  ;;  %409 = vst.msk [vmem:[%s785_s5 + $0x8] sm:$0xff] %vm204_vm2, %v393_v26 }
 0x14e   :  { %410 = vst.msk [vmem:[%s785_s5 + $0x10] sm:$0xff] %vm204_vm2, %v394_v31  ;;  %411 = vst.msk [vmem:[%s785_s5 + $0x18] sm:$0xff] %vm204_vm2, %v395_v32  ;;  %v404_v3 = vmax.f32 %v388_v23, 0.0  ;;  %v405_v40 = vmax.f32 %v389_v24, 0.0  ;;  %v406_v6 = vmax.f32 %v390_v19, 0.0  ;;  %v407_v12 = vmax.f32 %v391_v28, 0.0 }
 0x14f   :  { %412 = vst.msk [vmem:[%s785_s5 + $0x20] sm:$0xff] %vm204_vm2, %v396_v14  ;;  %413 = vst.msk [vmem:[%s785_s5 + $0x28] sm:$0xff] %vm204_vm2, %v397_v35 }
 0x150   :  { %414 = vst.msk [vmem:[%s785_s5 + $0x30] sm:$0xff] %vm204_vm2, %v398_v36  ;;  %415 = vst.msk [vmem:[%s785_s5 + $0x38] sm:$0xff] %vm204_vm2, %v399_v27 }
 0x151   :  { %416 = vst.msk [vmem:[%s785_s5 + $0x40] sm:$0xff] %vm204_vm2, %v400_v0  ;;  %417 = vst.msk [vmem:[%s785_s5 + $0x48] sm:$0xff] %vm204_vm2, %v401_v1 }
 0x152   :  { %418 = vst.msk [vmem:[%s785_s5 + $0x50] sm:$0xff] %vm204_vm2, %v402_v2  ;;  %419 = vst.msk [vmem:[%s785_s5 + $0x58] sm:$0xff] %vm204_vm2, %v403_v39 }
 0x153   :  { %420 = vst.msk [vmem:[%s785_s5 + $0x60] sm:$0xff] %vm204_vm2, %v404_v3  ;;  %421 = vst.msk [vmem:[%s785_s5 + $0x68] sm:$0xff] %vm204_vm2, %v405_v40 }
 0x154   :  { %422 = vst.msk [vmem:[%s785_s5 + $0x70] sm:$0xff] %vm204_vm2, %v406_v6  ;;  %423 = vst.msk [vmem:[%s785_s5 + $0x78] sm:$0xff] %vm204_vm2, %v407_v12 }

// kernel: facenet_forward.61
= control target key start
LH: loop header
LB: loop body
LE: loop exit
PB: predicated region body
PF: predicated region fallthrough
CT: control target
= control target key end

     0   :  { %vm90_vm0 = vcmask 261120   ;;  %vm212_vm1 = vcmask 64512   ;;  %s713_s1 = inlined_call_operand.vmem [shape: bf16[32,8], index: 1, kind: input, shape index: {}]   ;;  %s714_s0 = inlined_call_operand.vmem [shape: bf16[128,32], index: 0, kind: input, shape index: {}]   ;;  %s715_s2 = inlined_call_operand.vmem [shape: f32[1,8], index: 2, kind: input, shape index: {}]   ;;  %s716_s3 = inlined_call_operand.vmem [shape: f32[1,8], index: 3, kind: input, shape index: {}]   ;;  %s717_s4 = inlined_call_operand.vmem [shape: f32[128,8], index: 4, kind: output, shape index: {}]  }
   0x1   :  { %v457_v0 = vld [vmem:[%s713_s1 + $0x8] sm:$0xff]   ;;  %v458_v1 = vld [vmem:[%s713_s1] sm:$0xff]   ;;  %v461_v4 = vld [vmem:[%s714_s0 + $0x10] sm:$0xff]  }
   0x2   :  { %433 = vmatprep.subr.bf16.mxu0 %v457_v0  ;;  %v459_v2 = vld [vmem:[%s714_s0] sm:$0xff]   ;;  %453 = vmatprep.subr.bf16.mxu1 %v457_v0  ;;  %v460_v3 = vld [vmem:[%s714_s0 + $0x8] sm:$0xff]   ;;  %v465_v7 = vld [vmem:[%s714_s0 + $0x30] sm:$0xff]  }
   0x3   :  { %434 = vmatpush3.bf16.msra.mxu0 %v457_v0  ;;  %455 = vmatpush3.bf16.msra.mxu1 %v457_v0  ;;  %v463_v5 = vld [vmem:[%s714_s0 + $0x20] sm:$0xff]   ;;  %v464_v6 = vld [vmem:[%s714_s0 + $0x28] sm:$0xff]   ;;  %v462_v8 = vld [vmem:[%s714_s0 + $0x18] sm:$0xff]  }
   0x4   :  { %435 = vmatprep.subr.bf16.mxu0 %v458_v1  ;;  %437 = vmatprep.mubr.msk.bf16.mxu0 %vm90_vm0, %v459_v2  ;;  %v466_v9 = vld [vmem:[%s714_s0 + $0x38] sm:$0xff]  }
   0x5   :  { %454 = vmatprep.subr.bf16.mxu1 %v458_v1  ;;  %445 = vmatprep.mubr.msk.bf16.mxu1 %vm90_vm0, %v463_v5 }
   0x7   :  { %436 = vmatpush3.bf16.msra.mxu0 %v458_v1  ;;  %456 = vmatpush3.bf16.msra.mxu1 %v458_v1 }
   0xa   :  { %438 = vmatmul.mubr.msk.bf16.vlgmr.msra.gmra.mxu0 %vm90_vm0, %v460_v3  ;;  %446 = vmatmul.mubr.msk.bf16.vlgmr.msra.gmra.mxu1 %vm90_vm0, %v464_v6 }
   0xb   :  { %441 = vmatprep.mubr.msk.bf16.mxu0 %vm90_vm0, %v461_v4  ;;  %449 = vmatprep.mubr.msk.bf16.mxu1 %vm90_vm0, %v465_v7 }
  0x12   :  { %442 = vmatmul.mubr.msk.bf16.gmra.mxu0 %vm90_vm0, %v462_v8  ;;  %450 = vmatmul.mubr.msk.bf16.gmra.mxu1 %vm90_vm0, %v466_v9 }
  0xca   :  { %v439_v10 = vpop.f32.mrf.mxu0  ;;  %v532_v11 = vpop.f32.mrf.mxu1 }
  0xcb   :  { %v216_v21 = vsel %vm212_vm1, %v439_v10, 0.0  ;;  %v232_v44 = vsel %vm212_vm1, %v532_v11, 0.0 }
  0xcc   :  { %v149_v12 = vpop.f32.mrf.mxu0  ;;  %v534_v14 = vpop.f32.mrf.mxu1 }
  0xcd   :  { %v213_v16 = vsel %vm212_vm1, %v149_v12, 0.0  ;;  %v228_v39 = vsel %vm212_vm1, %v534_v14, 0.0 }
  0xce   :  { %v440_v13 = vpop.f32.mrf.mxu0  ;;  %v538_v20 = vpop.f32.mrf.mxu1 }
  0xcf   :  { %v218_v24 = vsel %vm212_vm1, %v440_v13, 0.0  ;;  %v234_v46 = vsel %vm212_vm1, %v538_v20, 0.0 }
  0xd0   :  { %v152_v15 = vpop.f32.mrf.mxu0  ;;  %v184_v27 = vpop.f32.mrf.mxu1 }
  0xd1   :  { %v214_v17 = vsel %vm212_vm1, %v152_v15, 0.0  ;;  %v230_v41 = vsel %vm212_vm1, %v184_v27, 0.0 }
  0xd2   :  { %v215_v18 = vadd.f32 %v214_v17, %v213_v16  ;;  %v443_v19 = vpop.f32.mrf.mxu0  ;;  %v544_v33 = vpop.f32.mrf.mxu1 }
  0xd3   :  { %v224_v34 = vsel %vm212_vm1, %v443_v19, 0.0  ;;  %v240_v53 = vsel %vm212_vm1, %v544_v33, 0.0 }
  0xd4   :  { %v217_v22 = vadd.f32 %v216_v21, %v215_v18  ;;  %v165_v23 = vpop.f32.mrf.mxu0  ;;  %v548_v38 = vpop.f32.mrf.mxu1 }
  0xd5   :  { %v220_v28 = vsel %vm212_vm1, %v165_v23, 0.0  ;;  %v236_v49 = vsel %vm212_vm1, %v548_v38, 0.0 }
  0xd6   :  { %v219_v25 = vadd.f32 %v218_v24, %v217_v22  ;;  %v444_v26 = vpop.f32.mrf.mxu0  ;;  %v553_v43 = vpop.f32.mrf.mxu1 }
  0xd7   :  { %v226_v36 = vsel %vm212_vm1, %v444_v26, 0.0  ;;  %v242_v55 = vsel %vm212_vm1, %v553_v43, 0.0 }
  0xd8   :  { %v221_v29 = vadd.f32 %v220_v28, %v219_v25  ;;  %v168_v30 = vpop.f32.mrf.mxu0  ;;  %v200_v48 = vpop.f32.mrf.mxu1 }
  0xd9   :  { %v222_v31 = vsel %vm212_vm1, %v168_v30, 0.0  ;;  %v238_v51 = vsel %vm212_vm1, %v200_v48, 0.0 }
  0xda   :  { %v223_v32 = vadd.f32 %v222_v31, %v221_v29 }
  0xdc   :  { %v225_v35 = vadd.f32 %v224_v34, %v223_v32 }
  0xde   :  { %v227_v37 = vadd.f32 %v226_v36, %v225_v35 }
  0xe0   :  { %v229_v40 = vadd.f32 %v228_v39, %v227_v37 }
  0xe2   :  { %v231_v42 = vadd.f32 %v230_v41, %v229_v40 }
  0xe4   :  { %v233_v45 = vadd.f32 %v232_v44, %v231_v42 }
  0xe6   :  { %v235_v47 = vadd.f32 %v234_v46, %v233_v45 }
  0xe8   :  { %v237_v50 = vadd.f32 %v236_v49, %v235_v47 }
  0xea   :  { %v239_v52 = vadd.f32 %v238_v51, %v237_v50 }
  0xec   :  { %v241_v54 = vadd.f32 %v240_v53, %v239_v52 }
  0xee   :  { %v243_v56 = vadd.f32 %v242_v55, %v241_v54 }
  0xf0   :  { %v244_v57 = vrot.slane %v243_v56, 4 }
  0xf2   :  { %v245_v58 = vadd.f32 %v244_v57, %v243_v56 }
  0xf4   :  { %v246_v59 = vrot.slane %v245_v58, 2 }
  0xf6   :  { %v247_v60 = vadd.f32 %v246_v59, %v245_v58 }
  0xf8   :  { %v248_v61 = vrot.slane %v247_v60, 1 }
  0xfa   :  { %v249_v62 = vadd.f32 %v248_v61, %v247_v60 }
  0xfc   :  { %v250_v63 = vmul.f32 0.0078125, %v249_v62 }
  0xfe   :  { %v566_v0 = vsub.f32 %v149_v12, %v250_v63  ;;  %v568_v1 = vsub.f32 %v152_v15, %v250_v63  ;;  %v570_v2 = vsub.f32 %v439_v10, %v250_v63  ;;  %v572_v3 = vsub.f32 %v440_v13, %v250_v63 }
  0xff   :  { %v578_v6 = vsub.f32 %v165_v23, %v250_v63  ;;  %v582_v8 = vsub.f32 %v168_v30, %v250_v63  ;;  %v588_v15 = vsub.f32 %v443_v19, %v250_v63  ;;  %v593_v21 = vsub.f32 %v444_v26, %v250_v63 }
 0x100   :  { %v267_v4 = vmul.f32 %v566_v0, %v566_v0  ;;  %v268_v5 = vmul.f32 %v568_v1, %v568_v1  ;;  %v269_v7 = vmul.f32 %v570_v2, %v570_v2  ;;  %v270_v9 = vmul.f32 %v572_v3, %v572_v3 }
 0x101   :  { %v271_v16 = vmul.f32 %v578_v6, %v578_v6  ;;  %v272_v22 = vmul.f32 %v582_v8, %v582_v8  ;;  %v599_v25 = vsub.f32 %v534_v14, %v250_v63  ;;  %v273_v19 = vmul.f32 %v588_v15, %v588_v15 }
 0x102   :  { %v283_v10 = vsel %vm212_vm1, %v267_v4, 0.0  ;;  %v284_v12 = vsel %vm212_vm1, %v268_v5, 0.0  ;;  %v286_v17 = vsel %vm212_vm1, %v269_v7, 0.0  ;;  %v288_v23 = vsel %vm212_vm1, %v270_v9, 0.0 }
 0x103   :  { %v285_v13 = vadd.f32 %v284_v12, %v283_v10  ;;  %v290_v28 = vsel %vm212_vm1, %v271_v16, 0.0  ;;  %v604_v30 = vsub.f32 %v184_v27, %v250_v63  ;;  %v274_v26 = vmul.f32 %v593_v21, %v593_v21 }
 0x104   :  { %v292_v31 = vsel %vm212_vm1, %v272_v22, 0.0  ;;  %v610_v34 = vsub.f32 %v532_v11, %v250_v63  ;;  %v275_v14 = vmul.f32 %v599_v25, %v599_v25  ;;  %v294_v35 = vsel %vm212_vm1, %v273_v19, 0.0 }
 0x105   :  { %v287_v18 = vadd.f32 %v286_v17, %v285_v13  ;;  %v262_v37 = vsub.f32 %v538_v20, %v250_v63  ;;  %v276_v27 = vmul.f32 %v604_v30, %v604_v30  ;;  %v296_v39 = vsel %vm212_vm1, %v274_v26, 0.0 }
 0x106   :  { %v263_v41 = vsub.f32 %v548_v38, %v250_v63  ;;  %v277_v11 = vmul.f32 %v610_v34, %v610_v34  ;;  %v298_v42 = vsel %vm212_vm1, %v275_v14, 0.0  ;;  %v264_v45 = vsub.f32 %v200_v48, %v250_v63 }
 0x107   :  { %v289_v24 = vadd.f32 %v288_v23, %v287_v18  ;;  %v278_v46 = vmul.f32 %v262_v37, %v262_v37  ;;  %v300_v47 = vsel %vm212_vm1, %v276_v27, 0.0  ;;  %v265_v20 = vsub.f32 %v544_v33, %v250_v63  ;;  %v323_v18 = vld [vmem:[%s715_s2] sm:$0x1] }
 0x108   :  { %v279_v50 = vmul.f32 %v263_v41, %v263_v41  ;;  %v302_v51 = vsel %vm212_vm1, %v277_v11, 0.0  ;;  %v266_v53 = vsub.f32 %v553_v43, %v250_v63  ;;  %v280_v38 = vmul.f32 %v264_v45, %v264_v45  ;;  %v422_v27 = vld [vmem:[%s716_s3] ss:$0 sm:$0xff] }
 0x109   :  { %v291_v29 = vadd.f32 %v290_v28, %v289_v24  ;;  %v304_v54 = vsel %vm212_vm1, %v278_v46, 0.0  ;;  %v281_v56 = vmul.f32 %v265_v20, %v265_v20  ;;  %v325_v16 = vlaneseq }
 0x10a   :  { %v306_v57 = vsel %vm212_vm1, %v279_v50, 0.0  ;;  %v282_v58 = vmul.f32 %v266_v53, %v266_v53  ;;  %v308_v59 = vsel %vm212_vm1, %v280_v38, 0.0 }
 0x10b   :  { %v293_v32 = vadd.f32 %v292_v31, %v291_v29  ;;  %v310_v33 = vsel %vm212_vm1, %v281_v56, 0.0  ;;  %v326_v17 = vshrl.u32 %v325_v16, 7 }
 0x10c   :  { %v312_v62 = vsel %vm212_vm1, %v282_v58, 0.0 }
 0x10d   :  { %v295_v36 = vadd.f32 %v294_v35, %v293_v32  ;;  %v327_v22 = vsub.s32 0, %v326_v17 }
 0x10f   :  { %v297_v40 = vadd.f32 %v296_v39, %v295_v36 }
 0x111   :  { %v299_v44 = vadd.f32 %v298_v42, %v297_v40 }
 0x113   :  { %v301_v49 = vadd.f32 %v300_v47, %v299_v44 }
 0x115   :  { %v303_v52 = vadd.f32 %v302_v51, %v301_v49 }
 0x117   :  { %v305_v55 = vadd.f32 %v304_v54, %v303_v52 }
 0x119   :  { %v307_v48 = vadd.f32 %v306_v57, %v305_v55 }
 0x11b   :  { %v309_v60 = vadd.f32 %v308_v59, %v307_v48 }
 0x11d   :  { %v311_v61 = vadd.f32 %v310_v33, %v309_v60 }
 0x11f   :  { %v313_v4 = vadd.f32 %v312_v62, %v311_v61 }
 0x121   :  { %v314_v5 = vrot.slane %v313_v4, 4 }
 0x123   :  { %v315_v43 = vadd.f32 %v314_v5, %v313_v4 }
 0x125   :  { %v316_v63 = vrot.slane %v315_v43, 2 }
 0x127   :  { %v317_v7 = vadd.f32 %v316_v63, %v315_v43 }
 0x129   :  { %v318_v9 = vrot.slane %v317_v7, 1 }
 0x12b   :  { %v319_v10 = vadd.f32 %v318_v9, %v317_v7 }
 0x12d   :  { %v320_v12 = vmul.f32 0.0078125, %v319_v10 }
 0x12f   :  { %v321_v13 = vadd.f32 1e-05, %v320_v12 }
 0x131   :  { %467 = vrsqrt.f32 %v321_v13 }
 0x13e   :  { %v468_v23 = vpop.eup %467 }
 0x13f   :  { %v324_v24 = vmul.f32 %v468_v23, %v323_v18 }
 0x141   :  { %v328_v19 = vrot.slane %v324_v24, %v327_v22 }
 0x143   :  { %v329_v28 = vmul.f32 %v328_v19, %v566_v0  ;;  %v330_v29 = vmul.f32 %v328_v19, %v568_v1  ;;  %v331_v26 = vmul.f32 %v328_v19, %v570_v2  ;;  %v332_v31 = vmul.f32 %v328_v19, %v572_v3 }
 0x144   :  { %v333_v32 = vmul.f32 %v328_v19, %v578_v6  ;;  %v334_v14 = vmul.f32 %v328_v19, %v582_v8  ;;  %v335_v35 = vmul.f32 %v328_v19, %v588_v15  ;;  %v336_v36 = vmul.f32 %v328_v19, %v593_v21 }
 0x145   :  { %v337_v0 = vmul.f32 %v328_v19, %v599_v25  ;;  %v338_v1 = vmul.f32 %v328_v19, %v604_v30  ;;  %v339_v2 = vmul.f32 %v328_v19, %v610_v34  ;;  %v340_v39 = vmul.f32 %v328_v19, %v262_v37 }
 0x146   :  { %v341_v3 = vmul.f32 %v328_v19, %v263_v41  ;;  %v342_v40 = vmul.f32 %v328_v19, %v264_v45  ;;  %v343_v6 = vmul.f32 %v328_v19, %v265_v20  ;;  %v344_v11 = vmul.f32 %v328_v19, %v266_v53 }
 0x147   :  { %v352_v8 = vadd.f32 %v422_v27, %v329_v28  ;;  %v353_v42 = vadd.f32 %v422_v27, %v330_v29  ;;  %v354_v15 = vadd.f32 %v422_v27, %v331_v26  ;;  %v355_v44 = vadd.f32 %v422_v27, %v332_v31 }
 0x148   :  { %v356_v21 = vadd.f32 %v422_v27, %v333_v32  ;;  %v357_v46 = vadd.f32 %v422_v27, %v334_v14  ;;  %v358_v47 = vadd.f32 %v422_v27, %v335_v35  ;;  %v359_v49 = vadd.f32 %v422_v27, %v336_v36 }
 0x149   :  { %v360_v50 = vadd.f32 %v422_v27, %v337_v0  ;;  %v361_v51 = vadd.f32 %v422_v27, %v338_v1  ;;  %v362_v25 = vadd.f32 %v422_v27, %v339_v2  ;;  %v363_v52 = vadd.f32 %v422_v27, %v340_v39 }
 0x14a   :  { %v364_v30 = vadd.f32 %v422_v27, %v341_v3  ;;  %v365_v38 = vadd.f32 %v422_v27, %v342_v40  ;;  %v366_v34 = vadd.f32 %v422_v27, %v343_v6  ;;  %v367_v37 = vadd.f32 %v422_v27, %v344_v11 }
 0x14b   :  { %v368_v41 = vmax.f32 %v352_v8, 0.0  ;;  %v369_v45 = vmax.f32 %v353_v42, 0.0  ;;  %v370_v20 = vmax.f32 %v354_v15, 0.0  ;;  %v371_v53 = vmax.f32 %v355_v44, 0.0 }
 0x14c   :  { %v372_v54 = vmax.f32 %v356_v21, 0.0  ;;  %v373_v55 = vmax.f32 %v357_v46, 0.0  ;;  %v374_v56 = vmax.f32 %v358_v47, 0.0  ;;  %v375_v57 = vmax.f32 %v359_v49, 0.0 }
 0x14d   :  { %v376_v48 = vmax.f32 %v360_v50, 0.0  ;;  %v377_v58 = vmax.f32 %v361_v51, 0.0  ;;  %v378_v59 = vmax.f32 %v362_v25, 0.0  ;;  %v379_v60 = vmax.f32 %v363_v52, 0.0  ;;  %384 = vst.msk [vmem:[%s717_s4] sm:$0xff] %vm212_vm1, %v368_v41  ;;  %385 = vst.msk [vmem:[%s717_s4 + $0x8] sm:$0xff] %vm212_vm1, %v369_v45 }
 0x14e   :  { %386 = vst.msk [vmem:[%s717_s4 + $0x10] sm:$0xff] %vm212_vm1, %v370_v20  ;;  %387 = vst.msk [vmem:[%s717_s4 + $0x18] sm:$0xff] %vm212_vm1, %v371_v53  ;;  %v380_v33 = vmax.f32 %v364_v30, 0.0  ;;  %v381_v61 = vmax.f32 %v365_v38, 0.0  ;;  %v382_v62 = vmax.f32 %v366_v34, 0.0  ;;  %v383_v4 = vmax.f32 %v367_v37, 0.0 }
 0x14f   :  { %388 = vst.msk [vmem:[%s717_s4 + $0x20] sm:$0xff] %vm212_vm1, %v372_v54  ;;  %389 = vst.msk [vmem:[%s717_s4 + $0x28] sm:$0xff] %vm212_vm1, %v373_v55 }
 0x150   :  { %390 = vst.msk [vmem:[%s717_s4 + $0x30] sm:$0xff] %vm212_vm1, %v374_v56  ;;  %391 = vst.msk [vmem:[%s717_s4 + $0x38] sm:$0xff] %vm212_vm1, %v375_v57 }
 0x151   :  { %392 = vst.msk [vmem:[%s717_s4 + $0x40] sm:$0xff] %vm212_vm1, %v376_v48  ;;  %393 = vst.msk [vmem:[%s717_s4 + $0x48] sm:$0xff] %vm212_vm1, %v377_v58 }
 0x152   :  { %394 = vst.msk [vmem:[%s717_s4 + $0x50] sm:$0xff] %vm212_vm1, %v378_v59  ;;  %395 = vst.msk [vmem:[%s717_s4 + $0x58] sm:$0xff] %vm212_vm1, %v379_v60 }
 0x153   :  { %396 = vst.msk [vmem:[%s717_s4 + $0x60] sm:$0xff] %vm212_vm1, %v380_v33  ;;  %397 = vst.msk [vmem:[%s717_s4 + $0x68] sm:$0xff] %vm212_vm1, %v381_v61 }
 0x154   :  { %398 = vst.msk [vmem:[%s717_s4 + $0x70] sm:$0xff] %vm212_vm1, %v382_v62  ;;  %399 = vst.msk [vmem:[%s717_s4 + $0x78] sm:$0xff] %vm212_vm1, %v383_v4 }

// kernel: facenet_forward.67
= control target key start
LH: loop header
LB: loop body
LE: loop exit
PB: predicated region body
PF: predicated region fallthrough
CT: control target
= control target key end

     0   :  { %vm90_vm0 = vcmask 261120   ;;  %vm212_vm1 = vcmask 130048   ;;  %s713_s1 = inlined_call_operand.vmem [shape: bf16[32,16], index: 1, kind: input, shape index: {}]   ;;  %s714_s0 = inlined_call_operand.vmem [shape: bf16[128,32], index: 0, kind: input, shape index: {}]   ;;  %s715_s2 = inlined_call_operand.vmem [shape: f32[1,16], index: 2, kind: input, shape index: {}]   ;;  %s716_s3 = inlined_call_operand.vmem [shape: f32[1,16], index: 3, kind: input, shape index: {}]   ;;  %s717_s4 = inlined_call_operand.vmem [shape: f32[128,16], index: 4, kind: output, shape index: {}]  }
   0x1   :  { %v457_v0 = vld [vmem:[%s713_s1 + $0x8] sm:$0xff]   ;;  %v458_v1 = vld [vmem:[%s713_s1] sm:$0xff]   ;;  %v461_v4 = vld [vmem:[%s714_s0 + $0x10] sm:$0xff]  }
   0x2   :  { %433 = vmatprep.subr.bf16.mxu0 %v457_v0  ;;  %v459_v2 = vld [vmem:[%s714_s0] sm:$0xff]   ;;  %453 = vmatprep.subr.bf16.mxu1 %v457_v0  ;;  %v460_v3 = vld [vmem:[%s714_s0 + $0x8] sm:$0xff]   ;;  %v465_v7 = vld [vmem:[%s714_s0 + $0x30] sm:$0xff]  }
   0x3   :  { %434 = vmatpush3.bf16.msra.mxu0 %v457_v0  ;;  %455 = vmatpush3.bf16.msra.mxu1 %v457_v0  ;;  %v463_v5 = vld [vmem:[%s714_s0 + $0x20] sm:$0xff]   ;;  %v464_v6 = vld [vmem:[%s714_s0 + $0x28] sm:$0xff]   ;;  %v462_v8 = vld [vmem:[%s714_s0 + $0x18] sm:$0xff]  }
   0x4   :  { %435 = vmatprep.subr.bf16.mxu0 %v458_v1  ;;  %437 = vmatprep.mubr.msk.bf16.mxu0 %vm90_vm0, %v459_v2  ;;  %v466_v9 = vld [vmem:[%s714_s0 + $0x38] sm:$0xff]  }
   0x5   :  { %454 = vmatprep.subr.bf16.mxu1 %v458_v1  ;;  %445 = vmatprep.mubr.msk.bf16.mxu1 %vm90_vm0, %v463_v5 }
   0x7   :  { %436 = vmatpush3.bf16.msra.mxu0 %v458_v1  ;;  %456 = vmatpush3.bf16.msra.mxu1 %v458_v1 }
   0xa   :  { %438 = vmatmul.mubr.msk.bf16.vlgmr.msra.gmra.mxu0 %vm90_vm0, %v460_v3  ;;  %446 = vmatmul.mubr.msk.bf16.vlgmr.msra.gmra.mxu1 %vm90_vm0, %v464_v6 }
   0xb   :  { %441 = vmatprep.mubr.msk.bf16.mxu0 %vm90_vm0, %v461_v4  ;;  %449 = vmatprep.mubr.msk.bf16.mxu1 %vm90_vm0, %v465_v7 }
  0x12   :  { %442 = vmatmul.mubr.msk.bf16.gmra.mxu0 %vm90_vm0, %v462_v8  ;;  %450 = vmatmul.mubr.msk.bf16.gmra.mxu1 %vm90_vm0, %v466_v9 }
  0xca   :  { %v439_v10 = vpop.f32.mrf.mxu0  ;;  %v532_v11 = vpop.f32.mrf.mxu1 }
  0xcb   :  { %v216_v21 = vsel %vm212_vm1, %v439_v10, 0.0  ;;  %v232_v44 = vsel %vm212_vm1, %v532_v11, 0.0 }
  0xcc   :  { %v149_v12 = vpop.f32.mrf.mxu0  ;;  %v534_v14 = vpop.f32.mrf.mxu1 }
  0xcd   :  { %v213_v16 = vsel %vm212_vm1, %v149_v12, 0.0  ;;  %v228_v39 = vsel %vm212_vm1, %v534_v14, 0.0 }
  0xce   :  { %v440_v13 = vpop.f32.mrf.mxu0  ;;  %v538_v20 = vpop.f32.mrf.mxu1 }
  0xcf   :  { %v218_v24 = vsel %vm212_vm1, %v440_v13, 0.0  ;;  %v234_v46 = vsel %vm212_vm1, %v538_v20, 0.0 }
  0xd0   :  { %v152_v15 = vpop.f32.mrf.mxu0  ;;  %v184_v27 = vpop.f32.mrf.mxu1 }
  0xd1   :  { %v214_v17 = vsel %vm212_vm1, %v152_v15, 0.0  ;;  %v230_v41 = vsel %vm212_vm1, %v184_v27, 0.0 }
  0xd2   :  { %v215_v18 = vadd.f32 %v214_v17, %v213_v16  ;;  %v443_v19 = vpop.f32.mrf.mxu0  ;;  %v544_v33 = vpop.f32.mrf.mxu1 }
  0xd3   :  { %v224_v34 = vsel %vm212_vm1, %v443_v19, 0.0  ;;  %v240_v53 = vsel %vm212_vm1, %v544_v33, 0.0 }
  0xd4   :  { %v217_v22 = vadd.f32 %v216_v21, %v215_v18  ;;  %v165_v23 = vpop.f32.mrf.mxu0  ;;  %v548_v38 = vpop.f32.mrf.mxu1 }
  0xd5   :  { %v220_v28 = vsel %vm212_vm1, %v165_v23, 0.0  ;;  %v236_v49 = vsel %vm212_vm1, %v548_v38, 0.0 }
  0xd6   :  { %v219_v25 = vadd.f32 %v218_v24, %v217_v22  ;;  %v444_v26 = vpop.f32.mrf.mxu0  ;;  %v553_v43 = vpop.f32.mrf.mxu1 }
  0xd7   :  { %v226_v36 = vsel %vm212_vm1, %v444_v26, 0.0  ;;  %v242_v55 = vsel %vm212_vm1, %v553_v43, 0.0 }
  0xd8   :  { %v221_v29 = vadd.f32 %v220_v28, %v219_v25  ;;  %v168_v30 = vpop.f32.mrf.mxu0  ;;  %v200_v48 = vpop.f32.mrf.mxu1 }
  0xd9   :  { %v222_v31 = vsel %vm212_vm1, %v168_v30, 0.0  ;;  %v238_v51 = vsel %vm212_vm1, %v200_v48, 0.0 }
  0xda   :  { %v223_v32 = vadd.f32 %v222_v31, %v221_v29 }
  0xdc   :  { %v225_v35 = vadd.f32 %v224_v34, %v223_v32 }
  0xde   :  { %v227_v37 = vadd.f32 %v226_v36, %v225_v35 }
  0xe0   :  { %v229_v40 = vadd.f32 %v228_v39, %v227_v37 }
  0xe2   :  { %v231_v42 = vadd.f32 %v230_v41, %v229_v40 }
  0xe4   :  { %v233_v45 = vadd.f32 %v232_v44, %v231_v42 }
  0xe6   :  { %v235_v47 = vadd.f32 %v234_v46, %v233_v45 }
  0xe8   :  { %v237_v50 = vadd.f32 %v236_v49, %v235_v47 }
  0xea   :  { %v239_v52 = vadd.f32 %v238_v51, %v237_v50 }
  0xec   :  { %v241_v54 = vadd.f32 %v240_v53, %v239_v52 }
  0xee   :  { %v243_v56 = vadd.f32 %v242_v55, %v241_v54 }
  0xf0   :  { %v244_v57 = vrot.slane %v243_v56, 4 }
  0xf2   :  { %v245_v58 = vadd.f32 %v244_v57, %v243_v56 }
  0xf4   :  { %v246_v59 = vrot.slane %v245_v58, 2 }
  0xf6   :  { %v247_v60 = vadd.f32 %v246_v59, %v245_v58 }
  0xf8   :  { %v248_v61 = vrot.slane %v247_v60, 1 }
  0xfa   :  { %v249_v62 = vadd.f32 %v248_v61, %v247_v60 }
  0xfc   :  { %v250_v63 = vmul.f32 0.0078125, %v249_v62 }
  0xfe   :  { %v566_v0 = vsub.f32 %v149_v12, %v250_v63  ;;  %v568_v1 = vsub.f32 %v152_v15, %v250_v63  ;;  %v570_v2 = vsub.f32 %v439_v10, %v250_v63  ;;  %v572_v3 = vsub.f32 %v440_v13, %v250_v63 }
  0xff   :  { %v578_v6 = vsub.f32 %v165_v23, %v250_v63  ;;  %v582_v8 = vsub.f32 %v168_v30, %v250_v63  ;;  %v588_v15 = vsub.f32 %v443_v19, %v250_v63  ;;  %v593_v21 = vsub.f32 %v444_v26, %v250_v63 }
 0x100   :  { %v267_v4 = vmul.f32 %v566_v0, %v566_v0  ;;  %v268_v5 = vmul.f32 %v568_v1, %v568_v1  ;;  %v269_v7 = vmul.f32 %v570_v2, %v570_v2  ;;  %v270_v9 = vmul.f32 %v572_v3, %v572_v3 }
 0x101   :  { %v271_v16 = vmul.f32 %v578_v6, %v578_v6  ;;  %v272_v22 = vmul.f32 %v582_v8, %v582_v8  ;;  %v599_v25 = vsub.f32 %v534_v14, %v250_v63  ;;  %v273_v19 = vmul.f32 %v588_v15, %v588_v15 }
 0x102   :  { %v283_v10 = vsel %vm212_vm1, %v267_v4, 0.0  ;;  %v284_v12 = vsel %vm212_vm1, %v268_v5, 0.0  ;;  %v286_v17 = vsel %vm212_vm1, %v269_v7, 0.0  ;;  %v288_v23 = vsel %vm212_vm1, %v270_v9, 0.0 }
 0x103   :  { %v285_v13 = vadd.f32 %v284_v12, %v283_v10  ;;  %v290_v28 = vsel %vm212_vm1, %v271_v16, 0.0  ;;  %v604_v30 = vsub.f32 %v184_v27, %v250_v63  ;;  %v274_v26 = vmul.f32 %v593_v21, %v593_v21 }
 0x104   :  { %v292_v31 = vsel %vm212_vm1, %v272_v22, 0.0  ;;  %v610_v34 = vsub.f32 %v532_v11, %v250_v63  ;;  %v275_v14 = vmul.f32 %v599_v25, %v599_v25  ;;  %v294_v35 = vsel %vm212_vm1, %v273_v19, 0.0 }
 0x105   :  { %v287_v18 = vadd.f32 %v286_v17, %v285_v13  ;;  %v262_v37 = vsub.f32 %v538_v20, %v250_v63  ;;  %v276_v27 = vmul.f32 %v604_v30, %v604_v30  ;;  %v296_v39 = vsel %vm212_vm1, %v274_v26, 0.0 }
 0x106   :  { %v263_v41 = vsub.f32 %v548_v38, %v250_v63  ;;  %v277_v11 = vmul.f32 %v610_v34, %v610_v34  ;;  %v298_v42 = vsel %vm212_vm1, %v275_v14, 0.0  ;;  %v264_v45 = vsub.f32 %v200_v48, %v250_v63 }
 0x107   :  { %v289_v24 = vadd.f32 %v288_v23, %v287_v18  ;;  %v278_v46 = vmul.f32 %v262_v37, %v262_v37  ;;  %v300_v47 = vsel %vm212_vm1, %v276_v27, 0.0  ;;  %v265_v20 = vsub.f32 %v544_v33, %v250_v63  ;;  %v323_v18 = vld [vmem:[%s715_s2] sm:$0x1] }
 0x108   :  { %v279_v50 = vmul.f32 %v263_v41, %v263_v41  ;;  %v302_v51 = vsel %vm212_vm1, %v277_v11, 0.0  ;;  %v266_v53 = vsub.f32 %v553_v43, %v250_v63  ;;  %v280_v38 = vmul.f32 %v264_v45, %v264_v45  ;;  %v422_v27 = vld [vmem:[%s716_s3] ss:$0 sm:$0xff] }
 0x109   :  { %v291_v29 = vadd.f32 %v290_v28, %v289_v24  ;;  %v304_v54 = vsel %vm212_vm1, %v278_v46, 0.0  ;;  %v281_v56 = vmul.f32 %v265_v20, %v265_v20  ;;  %v325_v16 = vlaneseq }
 0x10a   :  { %v306_v57 = vsel %vm212_vm1, %v279_v50, 0.0  ;;  %v282_v58 = vmul.f32 %v266_v53, %v266_v53  ;;  %v308_v59 = vsel %vm212_vm1, %v280_v38, 0.0 }
 0x10b   :  { %v293_v32 = vadd.f32 %v292_v31, %v291_v29  ;;  %v310_v33 = vsel %vm212_vm1, %v281_v56, 0.0  ;;  %v326_v17 = vshrl.u32 %v325_v16, 7 }
 0x10c   :  { %v312_v62 = vsel %vm212_vm1, %v282_v58, 0.0 }
 0x10d   :  { %v295_v36 = vadd.f32 %v294_v35, %v293_v32  ;;  %v327_v22 = vsub.s32 0, %v326_v17 }
 0x10f   :  { %v297_v40 = vadd.f32 %v296_v39, %v295_v36 }
 0x111   :  { %v299_v44 = vadd.f32 %v298_v42, %v297_v40 }
 0x113   :  { %v301_v49 = vadd.f32 %v300_v47, %v299_v44 }
 0x115   :  { %v303_v52 = vadd.f32 %v302_v51, %v301_v49 }
 0x117   :  { %v305_v55 = vadd.f32 %v304_v54, %v303_v52 }
 0x119   :  { %v307_v48 = vadd.f32 %v306_v57, %v305_v55 }
 0x11b   :  { %v309_v60 = vadd.f32 %v308_v59, %v307_v48 }
 0x11d   :  { %v311_v61 = vadd.f32 %v310_v33, %v309_v60 }
 0x11f   :  { %v313_v4 = vadd.f32 %v312_v62, %v311_v61 }
 0x121   :  { %v314_v5 = vrot.slane %v313_v4, 4 }
 0x123   :  { %v315_v43 = vadd.f32 %v314_v5, %v313_v4 }
 0x125   :  { %v316_v63 = vrot.slane %v315_v43, 2 }
 0x127   :  { %v317_v7 = vadd.f32 %v316_v63, %v315_v43 }
 0x129   :  { %v318_v9 = vrot.slane %v317_v7, 1 }
 0x12b   :  { %v319_v10 = vadd.f32 %v318_v9, %v317_v7 }
 0x12d   :  { %v320_v12 = vmul.f32 0.0078125, %v319_v10 }
 0x12f   :  { %v321_v13 = vadd.f32 1e-05, %v320_v12 }
 0x131   :  { %467 = vrsqrt.f32 %v321_v13 }
 0x13e   :  { %v468_v23 = vpop.eup %467 }
 0x13f   :  { %v324_v24 = vmul.f32 %v468_v23, %v323_v18 }
 0x141   :  { %v328_v19 = vrot.slane %v324_v24, %v327_v22 }
 0x143   :  { %v329_v28 = vmul.f32 %v328_v19, %v566_v0  ;;  %v330_v29 = vmul.f32 %v328_v19, %v568_v1  ;;  %v331_v26 = vmul.f32 %v328_v19, %v570_v2  ;;  %v332_v31 = vmul.f32 %v328_v19, %v572_v3 }
 0x144   :  { %v333_v32 = vmul.f32 %v328_v19, %v578_v6  ;;  %v334_v14 = vmul.f32 %v328_v19, %v582_v8  ;;  %v335_v35 = vmul.f32 %v328_v19, %v588_v15  ;;  %v336_v36 = vmul.f32 %v328_v19, %v593_v21 }
 0x145   :  { %v337_v0 = vmul.f32 %v328_v19, %v599_v25  ;;  %v338_v1 = vmul.f32 %v328_v19, %v604_v30  ;;  %v339_v2 = vmul.f32 %v328_v19, %v610_v34  ;;  %v340_v39 = vmul.f32 %v328_v19, %v262_v37 }
 0x146   :  { %v341_v3 = vmul.f32 %v328_v19, %v263_v41  ;;  %v342_v40 = vmul.f32 %v328_v19, %v264_v45  ;;  %v343_v6 = vmul.f32 %v328_v19, %v265_v20  ;;  %v344_v11 = vmul.f32 %v328_v19, %v266_v53 }
 0x147   :  { %v352_v8 = vadd.f32 %v422_v27, %v329_v28  ;;  %v353_v42 = vadd.f32 %v422_v27, %v330_v29  ;;  %v354_v15 = vadd.f32 %v422_v27, %v331_v26  ;;  %v355_v44 = vadd.f32 %v422_v27, %v332_v31 }
 0x148   :  { %v356_v21 = vadd.f32 %v422_v27, %v333_v32  ;;  %v357_v46 = vadd.f32 %v422_v27, %v334_v14  ;;  %v358_v47 = vadd.f32 %v422_v27, %v335_v35  ;;  %v359_v49 = vadd.f32 %v422_v27, %v336_v36 }
 0x149   :  { %v360_v50 = vadd.f32 %v422_v27, %v337_v0  ;;  %v361_v51 = vadd.f32 %v422_v27, %v338_v1  ;;  %v362_v25 = vadd.f32 %v422_v27, %v339_v2  ;;  %v363_v52 = vadd.f32 %v422_v27, %v340_v39 }
 0x14a   :  { %v364_v30 = vadd.f32 %v422_v27, %v341_v3  ;;  %v365_v38 = vadd.f32 %v422_v27, %v342_v40  ;;  %v366_v34 = vadd.f32 %v422_v27, %v343_v6  ;;  %v367_v37 = vadd.f32 %v422_v27, %v344_v11 }
 0x14b   :  { %v368_v41 = vmax.f32 %v352_v8, 0.0  ;;  %v369_v45 = vmax.f32 %v353_v42, 0.0  ;;  %v370_v20 = vmax.f32 %v354_v15, 0.0  ;;  %v371_v53 = vmax.f32 %v355_v44, 0.0 }
 0x14c   :  { %v372_v54 = vmax.f32 %v356_v21, 0.0  ;;  %v373_v55 = vmax.f32 %v357_v46, 0.0  ;;  %v374_v56 = vmax.f32 %v358_v47, 0.0  ;;  %v375_v57 = vmax.f32 %v359_v49, 0.0 }
 0x14d   :  { %v376_v48 = vmax.f32 %v360_v50, 0.0  ;;  %v377_v58 = vmax.f32 %v361_v51, 0.0  ;;  %v378_v59 = vmax.f32 %v362_v25, 0.0  ;;  %v379_v60 = vmax.f32 %v363_v52, 0.0  ;;  %384 = vst.msk [vmem:[%s717_s4] sm:$0xff] %vm212_vm1, %v368_v41  ;;  %385 = vst.msk [vmem:[%s717_s4 + $0x8] sm:$0xff] %vm212_vm1, %v369_v45 }
 0x14e   :  { %386 = vst.msk [vmem:[%s717_s4 + $0x10] sm:$0xff] %vm212_vm1, %v370_v20  ;;  %387 = vst.msk [vmem:[%s717_s4 + $0x18] sm:$0xff] %vm212_vm1, %v371_v53  ;;  %v380_v33 = vmax.f32 %v364_v30, 0.0  ;;  %v381_v61 = vmax.f32 %v365_v38, 0.0  ;;  %v382_v62 = vmax.f32 %v366_v34, 0.0  ;;  %v383_v4 = vmax.f32 %v367_v37, 0.0 }
 0x14f   :  { %388 = vst.msk [vmem:[%s717_s4 + $0x20] sm:$0xff] %vm212_vm1, %v372_v54  ;;  %389 = vst.msk [vmem:[%s717_s4 + $0x28] sm:$0xff] %vm212_vm1, %v373_v55 }
 0x150   :  { %390 = vst.msk [vmem:[%s717_s4 + $0x30] sm:$0xff] %vm212_vm1, %v374_v56  ;;  %391 = vst.msk [vmem:[%s717_s4 + $0x38] sm:$0xff] %vm212_vm1, %v375_v57 }
 0x151   :  { %392 = vst.msk [vmem:[%s717_s4 + $0x40] sm:$0xff] %vm212_vm1, %v376_v48  ;;  %393 = vst.msk [vmem:[%s717_s4 + $0x48] sm:$0xff] %vm212_vm1, %v377_v58 }
 0x152   :  { %394 = vst.msk [vmem:[%s717_s4 + $0x50] sm:$0xff] %vm212_vm1, %v378_v59  ;;  %395 = vst.msk [vmem:[%s717_s4 + $0x58] sm:$0xff] %vm212_vm1, %v379_v60 }
 0x153   :  { %396 = vst.msk [vmem:[%s717_s4 + $0x60] sm:$0xff] %vm212_vm1, %v380_v33  ;;  %397 = vst.msk [vmem:[%s717_s4 + $0x68] sm:$0xff] %vm212_vm1, %v381_v61 }
 0x154   :  { %398 = vst.msk [vmem:[%s717_s4 + $0x70] sm:$0xff] %vm212_vm1, %v382_v62  ;;  %399 = vst.msk [vmem:[%s717_s4 + $0x78] sm:$0xff] %vm212_vm1, %v383_v4 }

// kernel: facenet_forward.68
= control target key start
LH: loop header
LB: loop body
LE: loop exit
PB: predicated region body
PF: predicated region fallthrough
CT: control target
= control target key end

     0   :  { %v291_v0 = vmov 0   ;;  %vm112_vm0 = vcmask 130048   ;;  %v208_v59 = vlaneseq  ;;  %s388_s1 = inlined_call_operand.vmem [shape: bf16[144,16], index: 1, kind: input, shape index: {}]   ;;  %s389_s0 = inlined_call_operand.vmem [shape: bf16[32,144], index: 0, kind: input, shape index: {}]   ;;  %s390_s2 = inlined_call_operand.vmem [shape: f32[1,16], index: 2, kind: input, shape index: {}]   ;;  %s391_s3 = inlined_call_operand.vmem [shape: f32[1,16], index: 3, kind: input, shape index: {}]   ;;  %s392_s4 = inlined_call_operand.vmem [shape: f32[32,16], index: 4, kind: output, shape index: {}]  }
   0x1   :  { %119 = vmatprep.subr.bf16.mxu0 %v291_v0  ;;  %255 = vmatprep.subr.bf16.mxu1 %v291_v0  ;;  %v274_v1 = vld [vmem:[%s388_s1 + $0x38] sm:$0xff]   ;;  %v275_v2 = vld [vmem:[%s388_s1 + $0x30] sm:$0xff]   ;;  %v276_v3 = vld [vmem:[%s388_s1 + $0x28] sm:$0xff]  }
   0x2   :  { %120 = vmatpush1.bf16.msra.mxu0 %v274_v1  ;;  %264 = vmatpush1.bf16.msra.mxu1 %v274_v1  ;;  %v277_v4 = vld [vmem:[%s388_s1 + $0x20] sm:$0xff]   ;;  %v288_v6 = vld [vmem:[%s389_s0 + $0x14] ss:$8 sps:$4 sm:$0xff]   ;;  %v280_v9 = vld [vmem:[%s388_s1 + $0x8] sm:$0xff]   ;;  %v209_v60 = vshrl.u32 %v208_v59, 7 }
   0x3   :  { %121 = vmatprep.subr.bf16.mxu0 %v291_v0  ;;  %256 = vmatprep.subr.bf16.mxu1 %v291_v0  ;;  %v285_v5 = vld [vmem:[%s389_s0 + $0x4] ss:$8 sps:$4 sm:$0xff]   ;;  %v278_v7 = vld [vmem:[%s388_s1 + $0x18] sm:$0xff]   ;;  %v279_v8 = vld [vmem:[%s388_s1 + $0x10] sm:$0xff]  }
   0x4   :  { %252 = vmatprep.mubr.msk.bf16.mxu0 %vm112_vm0, %v285_v5  ;;  %253 = vmatprep.mubr.msk.bf16.mxu1 %vm112_vm0, %v288_v6  ;;  %v281_v10 = vld [vmem:[%s388_s1] sm:$0xff]   ;;  %v286_v13 = vld [vmem:[%s389_s0 + $0x10] ss:$8 sps:$4 sm:$0xff]   ;;  %v210_v62 = vsub.s32 0, %v209_v60 }
   0x5   :  { %v282_v11 = vld [vmem:[%s388_s1 + $0x40] sm:$0xff]  }
   0x6   :  { %122 = vmatpush1.bf16.msra.mxu0 %v275_v2  ;;  %265 = vmatpush1.bf16.msra.mxu1 %v275_v2  ;;  %v283_v12 = vld [vmem:[%s389_s0] ss:$8 sps:$4 sm:$0xff]  }
   0x7   :  { %123 = vmatprep.subr.bf16.mxu0 %v291_v0  ;;  %257 = vmatprep.subr.bf16.mxu1 %v291_v0  ;;  %v206_v61 = vld [vmem:[%s390_s2] sm:$0x1] }
   0x8   :  { %v254_v2 = vld [vmem:[%s391_s3] ss:$0 sm:$0xff] }
   0xa   :  { %124 = vmatpush1.bf16.msra.mxu0 %v276_v3  ;;  %266 = vmatpush1.bf16.msra.mxu1 %v276_v3 }
   0xb   :  { %125 = vmatprep.subr.bf16.mxu0 %v291_v0  ;;  %258 = vmatprep.subr.bf16.mxu1 %v291_v0 }
   0xe   :  { %126 = vmatpush1.bf16.msra.mxu0 %v277_v4  ;;  %267 = vmatpush1.bf16.msra.mxu1 %v277_v4 }
   0xf   :  { %127 = vmatprep.subr.bf16.mxu0 %v291_v0  ;;  %259 = vmatprep.subr.bf16.mxu1 %v291_v0 }
  0x12   :  { %128 = vmatpush1.bf16.msra.mxu0 %v278_v7  ;;  %268 = vmatpush1.bf16.msra.mxu1 %v278_v7 }
  0x13   :  { %129 = vmatprep.subr.bf16.mxu0 %v291_v0  ;;  %260 = vmatprep.subr.bf16.mxu1 %v291_v0 }
  0x16   :  { %130 = vmatpush1.bf16.msra.mxu0 %v279_v8  ;;  %269 = vmatpush1.bf16.msra.mxu1 %v279_v8 }
  0x17   :  { %131 = vmatprep.subr.bf16.mxu0 %v291_v0  ;;  %261 = vmatprep.subr.bf16.mxu1 %v291_v0 }
  0x1a   :  { %132 = vmatpush1.bf16.msra.mxu0 %v280_v9  ;;  %270 = vmatpush1.bf16.msra.mxu1 %v280_v9 }
  0x1b   :  { %133 = vmatprep.subr.bf16.mxu0 %v291_v0  ;;  %262 = vmatprep.subr.bf16.mxu1 %v291_v0 }
  0x1e   :  { %134 = vmatpush1.bf16.msra.mxu0 %v281_v10  ;;  %271 = vmatpush1.bf16.msra.mxu1 %v281_v10 }
  0x1f   :  { %149 = vmatprep.subr.bf16.mxu0 %v291_v0  ;;  %263 = vmatprep.subr.bf16.mxu1 %v291_v0 }
  0x22   :  { %150 = vmatpush2.bf16.msra.mxu0 %v282_v11  ;;  %272 = vmatpush2.bf16.msra.mxu1 %v282_v11 }
  0x25   :  { %152 = vmatmul.mubr.bf16.vlgmr.msra.gmra.mxu0 %v283_v12  ;;  %160 = vmatmul.mubr.bf16.vlgmr.msra.gmra.mxu1 %v286_v13 }
  0xe5   :  { %v153_v14 = vpop.f32.mrf.mxu0  ;;  %v161_v15 = vpop.f32.mrf.mxu1 }
  0xe6   :  { %v168_v20 = vsel %vm112_vm0, %v153_v14, 0.0  ;;  %v171_v25 = vsel %vm112_vm0, %v161_v15, 0.0 }
  0xe7   :  { %v155_v16 = vpop.f32.mrf.mxu0  ;;  %v163_v17 = vpop.f32.mrf.mxu1 }
  0xe9   :  { %v156_v18 = vpop.f32.mrf.mxu0  ;;  %v164_v19 = vpop.f32.mrf.mxu1 }
  0xea   :  { %v169_v21 = vsel %vm112_vm0, %v156_v18, 0.0  ;;  %v173_v27 = vsel %vm112_vm0, %v164_v19, 0.0 }
  0xeb   :  { %v170_v22 = vadd.f32 %v169_v21, %v168_v20  ;;  %v158_v23 = vpop.f32.mrf.mxu0  ;;  %v166_v24 = vpop.f32.mrf.mxu1 }
  0xed   :  { %v172_v26 = vadd.f32 %v171_v25, %v170_v22 }
  0xef   :  { %v174_v28 = vadd.f32 %v173_v27, %v172_v26 }
  0xf1   :  { %v175_v29 = vrot.slane %v174_v28, 4 }
  0xf3   :  { %v176_v30 = vadd.f32 %v175_v29, %v174_v28 }
  0xf5   :  { %v177_v31 = vrot.slane %v176_v30, 2 }
  0xf7   :  { %v178_v32 = vadd.f32 %v177_v31, %v176_v30 }
  0xf9   :  { %v179_v33 = vrot.slane %v178_v32, 1 }
  0xfb   :  { %v180_v34 = vadd.f32 %v179_v33, %v178_v32 }
  0xfd   :  { %v181_v35 = vmul.f32 0.03125, %v180_v34 }
  0xff   :  { %v182_v36 = vsub.f32 %v153_v14, %v181_v35  ;;  %v183_v37 = vsub.f32 %v156_v18, %v181_v35  ;;  %v184_v38 = vsub.f32 %v161_v15, %v181_v35  ;;  %v185_v39 = vsub.f32 %v164_v19, %v181_v35 }
 0x101   :  { %v186_v40 = vmul.f32 %v182_v36, %v182_v36  ;;  %v187_v41 = vmul.f32 %v183_v37, %v183_v37  ;;  %v188_v42 = vmul.f32 %v184_v38, %v184_v38  ;;  %v189_v43 = vmul.f32 %v185_v39, %v185_v39 }
 0x103   :  { %v190_v44 = vsel %vm112_vm0, %v186_v40, 0.0  ;;  %v191_v45 = vsel %vm112_vm0, %v187_v41, 0.0  ;;  %v193_v47 = vsel %vm112_vm0, %v188_v42, 0.0  ;;  %v195_v49 = vsel %vm112_vm0, %v189_v43, 0.0 }
 0x104   :  { %v192_v46 = vadd.f32 %v191_v45, %v190_v44 }
 0x106   :  { %v194_v48 = vadd.f32 %v193_v47, %v192_v46 }
 0x108   :  { %v196_v50 = vadd.f32 %v195_v49, %v194_v48 }
 0x10a   :  { %v197_v51 = vrot.slane %v196_v50, 4 }
 0x10c   :  { %v198_v52 = vadd.f32 %v197_v51, %v196_v50 }
 0x10e   :  { %v199_v53 = vrot.slane %v198_v52, 2 }
 0x110   :  { %v200_v54 = vadd.f32 %v199_v53, %v198_v52 }
 0x112   :  { %v201_v55 = vrot.slane %v200_v54, 1 }
 0x114   :  { %v202_v56 = vadd.f32 %v201_v55, %v200_v54 }
 0x116   :  { %v203_v57 = vmul.f32 0.03125, %v202_v56 }
 0x118   :  { %v204_v58 = vadd.f32 1e-05, %v203_v57 }
 0x11a   :  { %289 = vrsqrt.f32 %v204_v58 }
 0x127   :  { %v290_v63 = vpop.eup %289 }
 0x128   :  { %v207_v0 = vmul.f32 %v290_v63, %v206_v61 }
 0x12a   :  { %v211_v1 = vrot.slane %v207_v0, %v210_v62 }
 0x12c   :  { %v212_v3 = vmul.f32 %v211_v1, %v182_v36  ;;  %v213_v4 = vmul.f32 %v211_v1, %v183_v37  ;;  %v214_v5 = vmul.f32 %v211_v1, %v184_v38  ;;  %v215_v6 = vmul.f32 %v211_v1, %v185_v39 }
 0x12e   :  { %v223_v7 = vadd.f32 %v254_v2, %v212_v3  ;;  %v224_v8 = vadd.f32 %v254_v2, %v213_v4  ;;  %v225_v9 = vadd.f32 %v254_v2, %v214_v5  ;;  %v226_v10 = vadd.f32 %v254_v2, %v215_v6 }
 0x130   :  { %v227_v11 = vmax.f32 %v223_v7, 0.0  ;;  %v228_v12 = vmax.f32 %v224_v8, 0.0  ;;  %v229_v13 = vmax.f32 %v225_v9, 0.0  ;;  %v230_v14 = vmax.f32 %v226_v10, 0.0 }
 0x132   :  { %231 = vst.msk [vmem:[%s392_s4] sm:$0xff] %vm112_vm0, %v227_v11  ;;  %232 = vst.msk [vmem:[%s392_s4 + $0x8] sm:$0xff] %vm112_vm0, %v228_v12 }
 0x133   :  { %233 = vst.msk [vmem:[%s392_s4 + $0x10] sm:$0xff] %vm112_vm0, %v229_v13  ;;  %234 = vst.msk [vmem:[%s392_s4 + $0x18] sm:$0xff] %vm112_vm0, %v230_v14 }

// kernel: facenet_forward.69
= control target key start
LH: loop header
LB: loop body
LE: loop exit
PB: predicated region body
PF: predicated region fallthrough
CT: control target
= control target key end

     0   :  { %vm48_vm0 = vcmask 261120   ;;  %vm104_vm1 = vcmask 523264   ;;  %v145_v45 = vlaneseq  ;;  %s264_s1 = inlined_call_operand.vmem [shape: bf16[32,64], index: 1, kind: input, shape index: {}]   ;;  %s265_s0 = inlined_call_operand.vmem [shape: bf16[32,32], index: 0, kind: input, shape index: {}]   ;;  %s266_s2 = inlined_call_operand.vmem [shape: f32[1,64], index: 2, kind: input, shape index: {}]   ;;  %s267_s3 = inlined_call_operand.vmem [shape: f32[1,64], index: 3, kind: input, shape index: {}]   ;;  %s268_s4 = inlined_call_operand.vmem [shape: f32[32,64], index: 4, kind: output, shape index: {}]  }
   0x1   :  { %v191_v0 = vld [vmem:[%s264_s1 + $0x8] sm:$0xff]   ;;  %v192_v1 = vld [vmem:[%s264_s1] sm:$0xff]  }
   0x2   :  { %183 = vmatprep.subr.bf16.mxu0 %v191_v0  ;;  %v193_v2 = vld [vmem:[%s265_s0] sm:$0xff]   ;;  %v194_v3 = vld [vmem:[%s265_s0 + $0x8] sm:$0xff]   ;;  %v146_v46 = vshrl.u32 %v145_v45, 7 }
   0x3   :  { %184 = vmatpush3.bf16.msra.mxu0 %v191_v0  ;;  %187 = vmatprep.mubr.msk.bf16.mxu0 %vm48_vm0, %v193_v2  ;;  %v143_v47 = vld [vmem:[%s266_s2] sm:$0x1] }
   0x4   :  { %185 = vmatprep.subr.bf16.mxu0 %v192_v1  ;;  %v147_v48 = vsub.s32 0, %v146_v46  ;;  %v178_v52 = vld [vmem:[%s267_s3] ss:$0 sm:$0xff] }
   0x7   :  { %186 = vmatpush3.bf16.msra.mxu0 %v192_v1 }
   0xa   :  { %188 = vmatmul.mubr.msk.bf16.vlgmr.msra.gmra.mxu0 %vm48_vm0, %v194_v3 }
  0xca   :  { %v189_v4 = vpop.f32.mrf.mxu0 }
  0xcb   :  { %v108_v11 = vsel %vm104_vm1, %v189_v4, 0.0 }
  0xcc   :  { %v89_v5 = vpop.f32.mrf.mxu0 }
  0xcd   :  { %v105_v8 = vsel %vm104_vm1, %v89_v5, 0.0 }
  0xce   :  { %v190_v6 = vpop.f32.mrf.mxu0 }
  0xcf   :  { %v110_v13 = vsel %vm104_vm1, %v190_v6, 0.0 }
  0xd0   :  { %v92_v7 = vpop.f32.mrf.mxu0 }
  0xd1   :  { %v106_v9 = vsel %vm104_vm1, %v92_v7, 0.0 }
  0xd2   :  { %v107_v10 = vadd.f32 %v106_v9, %v105_v8 }
  0xd4   :  { %v109_v12 = vadd.f32 %v108_v11, %v107_v10 }
  0xd6   :  { %v111_v14 = vadd.f32 %v110_v13, %v109_v12 }
  0xd8   :  { %v112_v15 = vrot.slane %v111_v14, 4 }
  0xda   :  { %v113_v16 = vadd.f32 %v112_v15, %v111_v14 }
  0xdc   :  { %v114_v17 = vrot.slane %v113_v16, 2 }
  0xde   :  { %v115_v18 = vadd.f32 %v114_v17, %v113_v16 }
  0xe0   :  { %v116_v19 = vrot.slane %v115_v18, 1 }
  0xe2   :  { %v117_v20 = vadd.f32 %v116_v19, %v115_v18 }
  0xe4   :  { %v118_v21 = vmul.f32 0.03125, %v117_v20 }
  0xe6   :  { %v119_v22 = vsub.f32 %v89_v5, %v118_v21  ;;  %v120_v23 = vsub.f32 %v92_v7, %v118_v21  ;;  %v121_v24 = vsub.f32 %v189_v4, %v118_v21  ;;  %v122_v25 = vsub.f32 %v190_v6, %v118_v21 }
  0xe8   :  { %v123_v26 = vmul.f32 %v119_v22, %v119_v22  ;;  %v124_v27 = vmul.f32 %v120_v23, %v120_v23  ;;  %v125_v28 = vmul.f32 %v121_v24, %v121_v24  ;;  %v126_v29 = vmul.f32 %v122_v25, %v122_v25 }
  0xea   :  { %v127_v30 = vsel %vm104_vm1, %v123_v26, 0.0  ;;  %v128_v31 = vsel %vm104_vm1, %v124_v27, 0.0  ;;  %v130_v33 = vsel %vm104_vm1, %v125_v28, 0.0  ;;  %v132_v35 = vsel %vm104_vm1, %v126_v29, 0.0 }
  0xeb   :  { %v129_v32 = vadd.f32 %v128_v31, %v127_v30 }
  0xed   :  { %v131_v34 = vadd.f32 %v130_v33, %v129_v32 }
  0xef   :  { %v133_v36 = vadd.f32 %v132_v35, %v131_v34 }
  0xf1   :  { %v134_v37 = vrot.slane %v133_v36, 4 }
  0xf3   :  { %v135_v38 = vadd.f32 %v134_v37, %v133_v36 }
  0xf5   :  { %v136_v39 = vrot.slane %v135_v38, 2 }
  0xf7   :  { %v137_v40 = vadd.f32 %v136_v39, %v135_v38 }
  0xf9   :  { %v138_v41 = vrot.slane %v137_v40, 1 }
  0xfb   :  { %v139_v42 = vadd.f32 %v138_v41, %v137_v40 }
  0xfd   :  { %v140_v43 = vmul.f32 0.03125, %v139_v42 }
  0xff   :  { %v141_v44 = vadd.f32 1e-05, %v140_v43 }
 0x101   :  { %195 = vrsqrt.f32 %v141_v44 }
 0x10e   :  { %v196_v49 = vpop.eup %195 }
 0x10f   :  { %v144_v50 = vmul.f32 %v196_v49, %v143_v47 }
 0x111   :  { %v148_v51 = vrot.slane %v144_v50, %v147_v48 }
 0x113   :  { %v149_v53 = vmul.f32 %v148_v51, %v119_v22  ;;  %v150_v54 = vmul.f32 %v148_v51, %v120_v23  ;;  %v151_v55 = vmul.f32 %v148_v51, %v121_v24  ;;  %v152_v56 = vmul.f32 %v148_v51, %v122_v25 }
 0x115   :  { %v160_v57 = vadd.f32 %v178_v52, %v149_v53  ;;  %v161_v58 = vadd.f32 %v178_v52, %v150_v54  ;;  %v162_v59 = vadd.f32 %v178_v52, %v151_v55  ;;  %v163_v60 = vadd.f32 %v178_v52, %v152_v56 }
 0x117   :  { %164 = vst.msk [vmem:[%s268_s4] sm:$0xff] %vm104_vm1, %v160_v57  ;;  %165 = vst.msk [vmem:[%s268_s4 + $0x8] sm:$0xff] %vm104_vm1, %v161_v58 }
 0x118   :  { %166 = vst.msk [vmem:[%s268_s4 + $0x10] sm:$0xff] %vm104_vm1, %v162_v59  ;;  %167 = vst.msk [vmem:[%s268_s4 + $0x18] sm:$0xff] %vm104_vm1, %v163_v60 }

// kernel: facenet_forward.70
= control target key start
LH: loop header
LB: loop body
LE: loop exit
PB: predicated region body
PF: predicated region fallthrough
CT: control target
= control target key end

     0   :  { %vm43_vm0 = vcmask 130048   ;;  %vm99_vm1 = vcmask 523264   ;;  %v140_v44 = vlaneseq  ;;  %s280_s1 = inlined_call_operand.vmem [shape: bf16[16,64], index: 1, kind: input, shape index: {}]   ;;  %s281_s0 = inlined_call_operand.vmem [shape: bf16[32,16], index: 0, kind: input, shape index: {}]   ;;  %s282_s2 = inlined_call_operand.vmem [shape: f32[1,64], index: 2, kind: input, shape index: {}]   ;;  %s283_s3 = inlined_call_operand.vmem [shape: f32[1,64], index: 3, kind: input, shape index: {}]   ;;  %s284_s4 = inlined_call_operand.vmem [shape: f32[32,64], index: 4, kind: input, shape index: {}]   ;;  %s285_s5 = inlined_call_operand.vmem [shape: f32[32,64], index: 5, kind: output, shape index: {}]  }
   0x1   :  { %v194_v0 = vld [vmem:[%s280_s1] sm:$0xff]   ;;  %v196_v2 = vld [vmem:[%s281_s0 + $0x8] sm:$0xff]   ;;  %v161_v58 = vld [vmem:[%s284_s4 + $0x10] sm:$0xff] }
   0x2   :  { %v195_v1 = vld [vmem:[%s281_s0] sm:$0xff]   ;;  %188 = vmatprep.subr.bf16.mxu0 %v194_v0  ;;  %v141_v45 = vshrl.u32 %v140_v44, 7  ;;  %v160_v57 = vld [vmem:[%s284_s4 + $0x8] sm:$0xff]  ;;  %v162_v59 = vld [vmem:[%s284_s4 + $0x18] sm:$0xff] }
   0x3   :  { %189 = vmatpush3.bf16.msra.mxu0 %v194_v0  ;;  %190 = vmatprep.mubr.msk.bf16.mxu0 %vm43_vm0, %v195_v1  ;;  %v138_v46 = vld [vmem:[%s282_s2] sm:$0x1] }
   0x4   :  { %v142_v47 = vsub.s32 0, %v141_v45  ;;  %v184_v51 = vld [vmem:[%s283_s3] ss:$0 sm:$0xff] }
   0x5   :  { %v159_v56 = vld [vmem:[%s284_s4] sm:$0xff] }
   0x6   :  { %191 = vmatmul.mubr.msk.bf16.vlgmr.msra.gmra.mxu0 %vm43_vm0, %v196_v2 }
  0xc6   :  { %v192_v3 = vpop.f32.mrf.mxu0 }
  0xc7   :  { %v103_v10 = vsel %vm99_vm1, %v192_v3, 0.0 }
  0xc8   :  { %v84_v4 = vpop.f32.mrf.mxu0 }
  0xc9   :  { %v100_v7 = vsel %vm99_vm1, %v84_v4, 0.0 }
  0xca   :  { %v193_v5 = vpop.f32.mrf.mxu0 }
  0xcb   :  { %v105_v12 = vsel %vm99_vm1, %v193_v5, 0.0 }
  0xcc   :  { %v87_v6 = vpop.f32.mrf.mxu0 }
  0xcd   :  { %v101_v8 = vsel %vm99_vm1, %v87_v6, 0.0 }
  0xce   :  { %v102_v9 = vadd.f32 %v101_v8, %v100_v7 }
  0xd0   :  { %v104_v11 = vadd.f32 %v103_v10, %v102_v9 }
  0xd2   :  { %v106_v13 = vadd.f32 %v105_v12, %v104_v11 }
  0xd4   :  { %v107_v14 = vrot.slane %v106_v13, 4 }
  0xd6   :  { %v108_v15 = vadd.f32 %v107_v14, %v106_v13 }
  0xd8   :  { %v109_v16 = vrot.slane %v108_v15, 2 }
  0xda   :  { %v110_v17 = vadd.f32 %v109_v16, %v108_v15 }
  0xdc   :  { %v111_v18 = vrot.slane %v110_v17, 1 }
  0xde   :  { %v112_v19 = vadd.f32 %v111_v18, %v110_v17 }
  0xe0   :  { %v113_v20 = vmul.f32 0.03125, %v112_v19 }
  0xe2   :  { %v114_v21 = vsub.f32 %v84_v4, %v113_v20  ;;  %v115_v22 = vsub.f32 %v87_v6, %v113_v20  ;;  %v116_v23 = vsub.f32 %v192_v3, %v113_v20  ;;  %v117_v24 = vsub.f32 %v193_v5, %v113_v20 }
  0xe4   :  { %v118_v25 = vmul.f32 %v114_v21, %v114_v21  ;;  %v119_v26 = vmul.f32 %v115_v22, %v115_v22  ;;  %v120_v27 = vmul.f32 %v116_v23, %v116_v23  ;;  %v121_v28 = vmul.f32 %v117_v24, %v117_v24 }
  0xe6   :  { %v122_v29 = vsel %vm99_vm1, %v118_v25, 0.0  ;;  %v123_v30 = vsel %vm99_vm1, %v119_v26, 0.0  ;;  %v125_v32 = vsel %vm99_vm1, %v120_v27, 0.0  ;;  %v127_v34 = vsel %vm99_vm1, %v121_v28, 0.0 }
  0xe7   :  { %v124_v31 = vadd.f32 %v123_v30, %v122_v29 }
  0xe9   :  { %v126_v33 = vadd.f32 %v125_v32, %v124_v31 }
  0xeb   :  { %v128_v35 = vadd.f32 %v127_v34, %v126_v33 }
  0xed   :  { %v129_v36 = vrot.slane %v128_v35, 4 }
  0xef   :  { %v130_v37 = vadd.f32 %v129_v36, %v128_v35 }
  0xf1   :  { %v131_v38 = vrot.slane %v130_v37, 2 }
  0xf3   :  { %v132_v39 = vadd.f32 %v131_v38, %v130_v37 }
  0xf5   :  { %v133_v40 = vrot.slane %v132_v39, 1 }
  0xf7   :  { %v134_v41 = vadd.f32 %v133_v40, %v132_v39 }
  0xf9   :  { %v135_v42 = vmul.f32 0.03125, %v134_v41 }
  0xfb   :  { %v136_v43 = vadd.f32 1e-05, %v135_v42 }
  0xfd   :  { %197 = vrsqrt.f32 %v136_v43 }
 0x10a   :  { %v198_v48 = vpop.eup %197 }
 0x10b   :  { %v139_v49 = vmul.f32 %v198_v48, %v138_v46 }
 0x10d   :  { %v143_v50 = vrot.slane %v139_v49, %v142_v47 }
 0x10f   :  { %v144_v52 = vmul.f32 %v143_v50, %v114_v21  ;;  %v145_v53 = vmul.f32 %v143_v50, %v115_v22  ;;  %v146_v54 = vmul.f32 %v143_v50, %v116_v23  ;;  %v147_v55 = vmul.f32 %v143_v50, %v117_v24 }
 0x111   :  { %v155_v60 = vadd.f32 %v184_v51, %v144_v52  ;;  %v156_v61 = vadd.f32 %v184_v51, %v145_v53  ;;  %v157_v62 = vadd.f32 %v184_v51, %v146_v54  ;;  %v158_v63 = vadd.f32 %v184_v51, %v147_v55 }
 0x113   :  { %v163_v0 = vadd.f32 %v159_v56, %v155_v60  ;;  %v164_v1 = vadd.f32 %v160_v57, %v156_v61  ;;  %v165_v2 = vadd.f32 %v161_v58, %v157_v62  ;;  %v166_v3 = vadd.f32 %v162_v59, %v158_v63 }
 0x115   :  { %v167_v4 = vmax.f32 %v163_v0, 0.0  ;;  %v168_v5 = vmax.f32 %v164_v1, 0.0  ;;  %v169_v6 = vmax.f32 %v165_v2, 0.0  ;;  %v170_v7 = vmax.f32 %v166_v3, 0.0 }
 0x117   :  { %171 = vst.msk [vmem:[%s285_s5] sm:$0xff] %vm99_vm1, %v167_v4  ;;  %172 = vst.msk [vmem:[%s285_s5 + $0x8] sm:$0xff] %vm99_vm1, %v168_v5 }
 0x118   :  { %173 = vst.msk [vmem:[%s285_s5 + $0x10] sm:$0xff] %vm99_vm1, %v169_v6  ;;  %174 = vst.msk [vmem:[%s285_s5 + $0x18] sm:$0xff] %vm99_vm1, %v170_v7 }

// kernel: facenet_forward.71
= control target key start
LH: loop header
LB: loop body
LE: loop exit
PB: predicated region body
PF: predicated region fallthrough
CT: control target
= control target key end

     0   :  { %vm64_vm0 = vcmask 523264   ;;  %vm120_vm1 = vcmask 130048   ;;  %v161_v47 = vlaneseq  ;;  %s300_s1 = inlined_call_operand.vmem [shape: bf16[64,16], index: 1, kind: input, shape index: {}]   ;;  %s301_s0 = inlined_call_operand.vmem [shape: bf16[32,64], index: 0, kind: input, shape index: {}]   ;;  %s302_s2 = inlined_call_operand.vmem [shape: f32[1,16], index: 2, kind: input, shape index: {}]   ;;  %s303_s3 = inlined_call_operand.vmem [shape: f32[1,16], index: 3, kind: input, shape index: {}]   ;;  %s304_s4 = inlined_call_operand.vmem [shape: f32[32,16], index: 4, kind: output, shape index: {}]  }
   0x1   :  { %v219_v0 = vld [vmem:[%s300_s1 + $0x18] sm:$0xff]   ;;  %v220_v1 = vld [vmem:[%s300_s1 + $0x10] sm:$0xff]   ;;  %v221_v2 = vld [vmem:[%s300_s1 + $0x8] sm:$0xff]  }
   0x2   :  { %207 = vmatprep.subr.bf16.mxu0 %v219_v0  ;;  %v223_v3 = vld [vmem:[%s301_s0] sm:$0xff]   ;;  %v224_v5 = vld [vmem:[%s301_s0 + $0x8] sm:$0xff]   ;;  %v162_v48 = vshrl.u32 %v161_v47, 7 }
   0x3   :  { %208 = vmatpush3.bf16.msra.mxu0 %v219_v0  ;;  %215 = vmatprep.mubr.msk.bf16.mxu0 %vm64_vm0, %v223_v3  ;;  %v222_v4 = vld [vmem:[%s300_s1] sm:$0xff]  }
   0x4   :  { %209 = vmatprep.subr.bf16.mxu0 %v220_v1  ;;  %v159_v49 = vld [vmem:[%s302_s2] sm:$0x1]  ;;  %v163_v50 = vsub.s32 0, %v162_v48 }
   0x5   :  { %v200_v54 = vld [vmem:[%s303_s3] ss:$0 sm:$0xff] }
   0x7   :  { %210 = vmatpush3.bf16.msra.mxu0 %v220_v1 }
   0x8   :  { %211 = vmatprep.subr.bf16.mxu0 %v221_v2 }
   0xb   :  { %212 = vmatpush3.bf16.msra.mxu0 %v221_v2 }
   0xc   :  { %213 = vmatprep.subr.bf16.mxu0 %v222_v4 }
   0xf   :  { %214 = vmatpush3.bf16.msra.mxu0 %v222_v4 }
  0x12   :  { %216 = vmatmul.mubr.msk.bf16.vlgmr.msra.gmra.mxu0 %vm64_vm0, %v224_v5 }
  0xd2   :  { %v217_v6 = vpop.f32.mrf.mxu0 }
  0xd3   :  { %v124_v13 = vsel %vm120_vm1, %v217_v6, 0.0 }
  0xd4   :  { %v105_v7 = vpop.f32.mrf.mxu0 }
  0xd5   :  { %v121_v10 = vsel %vm120_vm1, %v105_v7, 0.0 }
  0xd6   :  { %v218_v8 = vpop.f32.mrf.mxu0 }
  0xd7   :  { %v126_v15 = vsel %vm120_vm1, %v218_v8, 0.0 }
  0xd8   :  { %v108_v9 = vpop.f32.mrf.mxu0 }
  0xd9   :  { %v122_v11 = vsel %vm120_vm1, %v108_v9, 0.0 }
  0xda   :  { %v123_v12 = vadd.f32 %v122_v11, %v121_v10 }
  0xdc   :  { %v125_v14 = vadd.f32 %v124_v13, %v123_v12 }
  0xde   :  { %v127_v16 = vadd.f32 %v126_v15, %v125_v14 }
  0xe0   :  { %v128_v17 = vrot.slane %v127_v16, 4 }
  0xe2   :  { %v129_v18 = vadd.f32 %v128_v17, %v127_v16 }
  0xe4   :  { %v130_v19 = vrot.slane %v129_v18, 2 }
  0xe6   :  { %v131_v20 = vadd.f32 %v130_v19, %v129_v18 }
  0xe8   :  { %v132_v21 = vrot.slane %v131_v20, 1 }
  0xea   :  { %v133_v22 = vadd.f32 %v132_v21, %v131_v20 }
  0xec   :  { %v134_v23 = vmul.f32 0.03125, %v133_v22 }
  0xee   :  { %v135_v24 = vsub.f32 %v105_v7, %v134_v23  ;;  %v136_v25 = vsub.f32 %v108_v9, %v134_v23  ;;  %v137_v26 = vsub.f32 %v217_v6, %v134_v23  ;;  %v138_v27 = vsub.f32 %v218_v8, %v134_v23 }
  0xf0   :  { %v139_v28 = vmul.f32 %v135_v24, %v135_v24  ;;  %v140_v29 = vmul.f32 %v136_v25, %v136_v25  ;;  %v141_v30 = vmul.f32 %v137_v26, %v137_v26  ;;  %v142_v31 = vmul.f32 %v138_v27, %v138_v27 }
  0xf2   :  { %v143_v32 = vsel %vm120_vm1, %v139_v28, 0.0  ;;  %v144_v33 = vsel %vm120_vm1, %v140_v29, 0.0  ;;  %v146_v35 = vsel %vm120_vm1, %v141_v30, 0.0  ;;  %v148_v37 = vsel %vm120_vm1, %v142_v31, 0.0 }
  0xf3   :  { %v145_v34 = vadd.f32 %v144_v33, %v143_v32 }
  0xf5   :  { %v147_v36 = vadd.f32 %v146_v35, %v145_v34 }
  0xf7   :  { %v149_v38 = vadd.f32 %v148_v37, %v147_v36 }
  0xf9   :  { %v150_v39 = vrot.slane %v149_v38, 4 }
  0xfb   :  { %v151_v40 = vadd.f32 %v150_v39, %v149_v38 }
  0xfd   :  { %v152_v41 = vrot.slane %v151_v40, 2 }
  0xff   :  { %v153_v42 = vadd.f32 %v152_v41, %v151_v40 }
 0x101   :  { %v154_v43 = vrot.slane %v153_v42, 1 }
 0x103   :  { %v155_v44 = vadd.f32 %v154_v43, %v153_v42 }
 0x105   :  { %v156_v45 = vmul.f32 0.03125, %v155_v44 }
 0x107   :  { %v157_v46 = vadd.f32 1e-05, %v156_v45 }
 0x109   :  { %225 = vrsqrt.f32 %v157_v46 }
 0x116   :  { %v226_v51 = vpop.eup %225 }
 0x117   :  { %v160_v52 = vmul.f32 %v226_v51, %v159_v49 }
 0x119   :  { %v164_v53 = vrot.slane %v160_v52, %v163_v50 }
 0x11b   :  { %v165_v55 = vmul.f32 %v164_v53, %v135_v24  ;;  %v166_v56 = vmul.f32 %v164_v53, %v136_v25  ;;  %v167_v57 = vmul.f32 %v164_v53, %v137_v26  ;;  %v168_v58 = vmul.f32 %v164_v53, %v138_v27 }
 0x11d   :  { %v176_v59 = vadd.f32 %v200_v54, %v165_v55  ;;  %v177_v60 = vadd.f32 %v200_v54, %v166_v56  ;;  %v178_v61 = vadd.f32 %v200_v54, %v167_v57  ;;  %v179_v62 = vadd.f32 %v200_v54, %v168_v58 }
 0x11f   :  { %v180_v63 = vmax.f32 %v176_v59, 0.0  ;;  %v181_v0 = vmax.f32 %v177_v60, 0.0  ;;  %v182_v1 = vmax.f32 %v178_v61, 0.0  ;;  %v183_v2 = vmax.f32 %v179_v62, 0.0 }
 0x121   :  { %184 = vst.msk [vmem:[%s304_s4] sm:$0xff] %vm120_vm1, %v180_v63  ;;  %185 = vst.msk [vmem:[%s304_s4 + $0x8] sm:$0xff] %vm120_vm1, %v181_v0 }
 0x122   :  { %186 = vst.msk [vmem:[%s304_s4 + $0x10] sm:$0xff] %vm120_vm1, %v182_v1  ;;  %187 = vst.msk [vmem:[%s304_s4 + $0x18] sm:$0xff] %vm120_vm1, %v183_v2 }

// kernel: facenet_forward.80
= control target key start
LH: loop header
LB: loop body
LE: loop exit
PB: predicated region body
PF: predicated region fallthrough
CT: control target
= control target key end

     0   :  { %vm64_vm0 = vcmask 523264   ;;  %vm120_vm1 = vcmask 261120   ;;  %v161_v47 = vlaneseq  ;;  %s300_s1 = inlined_call_operand.vmem [shape: bf16[64,32], index: 1, kind: input, shape index: {}]   ;;  %s301_s0 = inlined_call_operand.vmem [shape: bf16[32,64], index: 0, kind: input, shape index: {}]   ;;  %s302_s2 = inlined_call_operand.vmem [shape: f32[1,32], index: 2, kind: input, shape index: {}]   ;;  %s303_s3 = inlined_call_operand.vmem [shape: f32[1,32], index: 3, kind: input, shape index: {}]   ;;  %s304_s4 = inlined_call_operand.vmem [shape: f32[32,32], index: 4, kind: output, shape index: {}]  }
   0x1   :  { %v219_v0 = vld [vmem:[%s300_s1 + $0x18] sm:$0xff]   ;;  %v220_v1 = vld [vmem:[%s300_s1 + $0x10] sm:$0xff]   ;;  %v221_v2 = vld [vmem:[%s300_s1 + $0x8] sm:$0xff]  }
   0x2   :  { %207 = vmatprep.subr.bf16.mxu0 %v219_v0  ;;  %v223_v3 = vld [vmem:[%s301_s0] sm:$0xff]   ;;  %v224_v5 = vld [vmem:[%s301_s0 + $0x8] sm:$0xff]   ;;  %v162_v48 = vshrl.u32 %v161_v47, 7 }
   0x3   :  { %208 = vmatpush3.bf16.msra.mxu0 %v219_v0  ;;  %215 = vmatprep.mubr.msk.bf16.mxu0 %vm64_vm0, %v223_v3  ;;  %v222_v4 = vld [vmem:[%s300_s1] sm:$0xff]  }
   0x4   :  { %209 = vmatprep.subr.bf16.mxu0 %v220_v1  ;;  %v159_v49 = vld [vmem:[%s302_s2] sm:$0x1]  ;;  %v163_v50 = vsub.s32 0, %v162_v48 }
   0x5   :  { %v200_v54 = vld [vmem:[%s303_s3] ss:$0 sm:$0xff] }
   0x7   :  { %210 = vmatpush3.bf16.msra.mxu0 %v220_v1 }
   0x8   :  { %211 = vmatprep.subr.bf16.mxu0 %v221_v2 }
   0xb   :  { %212 = vmatpush3.bf16.msra.mxu0 %v221_v2 }
   0xc   :  { %213 = vmatprep.subr.bf16.mxu0 %v222_v4 }
   0xf   :  { %214 = vmatpush3.bf16.msra.mxu0 %v222_v4 }
  0x12   :  { %216 = vmatmul.mubr.msk.bf16.vlgmr.msra.gmra.mxu0 %vm64_vm0, %v224_v5 }
  0xd2   :  { %v217_v6 = vpop.f32.mrf.mxu0 }
  0xd3   :  { %v124_v13 = vsel %vm120_vm1, %v217_v6, 0.0 }
  0xd4   :  { %v105_v7 = vpop.f32.mrf.mxu0 }
  0xd5   :  { %v121_v10 = vsel %vm120_vm1, %v105_v7, 0.0 }
  0xd6   :  { %v218_v8 = vpop.f32.mrf.mxu0 }
  0xd7   :  { %v126_v15 = vsel %vm120_vm1, %v218_v8, 0.0 }
  0xd8   :  { %v108_v9 = vpop.f32.mrf.mxu0 }
  0xd9   :  { %v122_v11 = vsel %vm120_vm1, %v108_v9, 0.0 }
  0xda   :  { %v123_v12 = vadd.f32 %v122_v11, %v121_v10 }
  0xdc   :  { %v125_v14 = vadd.f32 %v124_v13, %v123_v12 }
  0xde   :  { %v127_v16 = vadd.f32 %v126_v15, %v125_v14 }
  0xe0   :  { %v128_v17 = vrot.slane %v127_v16, 4 }
  0xe2   :  { %v129_v18 = vadd.f32 %v128_v17, %v127_v16 }
  0xe4   :  { %v130_v19 = vrot.slane %v129_v18, 2 }
  0xe6   :  { %v131_v20 = vadd.f32 %v130_v19, %v129_v18 }
  0xe8   :  { %v132_v21 = vrot.slane %v131_v20, 1 }
  0xea   :  { %v133_v22 = vadd.f32 %v132_v21, %v131_v20 }
  0xec   :  { %v134_v23 = vmul.f32 0.03125, %v133_v22 }
  0xee   :  { %v135_v24 = vsub.f32 %v105_v7, %v134_v23  ;;  %v136_v25 = vsub.f32 %v108_v9, %v134_v23  ;;  %v137_v26 = vsub.f32 %v217_v6, %v134_v23  ;;  %v138_v27 = vsub.f32 %v218_v8, %v134_v23 }
  0xf0   :  { %v139_v28 = vmul.f32 %v135_v24, %v135_v24  ;;  %v140_v29 = vmul.f32 %v136_v25, %v136_v25  ;;  %v141_v30 = vmul.f32 %v137_v26, %v137_v26  ;;  %v142_v31 = vmul.f32 %v138_v27, %v138_v27 }
  0xf2   :  { %v143_v32 = vsel %vm120_vm1, %v139_v28, 0.0  ;;  %v144_v33 = vsel %vm120_vm1, %v140_v29, 0.0  ;;  %v146_v35 = vsel %vm120_vm1, %v141_v30, 0.0  ;;  %v148_v37 = vsel %vm120_vm1, %v142_v31, 0.0 }
  0xf3   :  { %v145_v34 = vadd.f32 %v144_v33, %v143_v32 }
  0xf5   :  { %v147_v36 = vadd.f32 %v146_v35, %v145_v34 }
  0xf7   :  { %v149_v38 = vadd.f32 %v148_v37, %v147_v36 }
  0xf9   :  { %v150_v39 = vrot.slane %v149_v38, 4 }
  0xfb   :  { %v151_v40 = vadd.f32 %v150_v39, %v149_v38 }
  0xfd   :  { %v152_v41 = vrot.slane %v151_v40, 2 }
  0xff   :  { %v153_v42 = vadd.f32 %v152_v41, %v151_v40 }
 0x101   :  { %v154_v43 = vrot.slane %v153_v42, 1 }
 0x103   :  { %v155_v44 = vadd.f32 %v154_v43, %v153_v42 }
 0x105   :  { %v156_v45 = vmul.f32 0.03125, %v155_v44 }
 0x107   :  { %v157_v46 = vadd.f32 1e-05, %v156_v45 }
 0x109   :  { %225 = vrsqrt.f32 %v157_v46 }
 0x116   :  { %v226_v51 = vpop.eup %225 }
 0x117   :  { %v160_v52 = vmul.f32 %v226_v51, %v159_v49 }
 0x119   :  { %v164_v53 = vrot.slane %v160_v52, %v163_v50 }
 0x11b   :  { %v165_v55 = vmul.f32 %v164_v53, %v135_v24  ;;  %v166_v56 = vmul.f32 %v164_v53, %v136_v25  ;;  %v167_v57 = vmul.f32 %v164_v53, %v137_v26  ;;  %v168_v58 = vmul.f32 %v164_v53, %v138_v27 }
 0x11d   :  { %v176_v59 = vadd.f32 %v200_v54, %v165_v55  ;;  %v177_v60 = vadd.f32 %v200_v54, %v166_v56  ;;  %v178_v61 = vadd.f32 %v200_v54, %v167_v57  ;;  %v179_v62 = vadd.f32 %v200_v54, %v168_v58 }
 0x11f   :  { %v180_v63 = vmax.f32 %v176_v59, 0.0  ;;  %v181_v0 = vmax.f32 %v177_v60, 0.0  ;;  %v182_v1 = vmax.f32 %v178_v61, 0.0  ;;  %v183_v2 = vmax.f32 %v179_v62, 0.0 }
 0x121   :  { %184 = vst.msk [vmem:[%s304_s4] sm:$0xff] %vm120_vm1, %v180_v63  ;;  %185 = vst.msk [vmem:[%s304_s4 + $0x8] sm:$0xff] %vm120_vm1, %v181_v0 }
 0x122   :  { %186 = vst.msk [vmem:[%s304_s4 + $0x10] sm:$0xff] %vm120_vm1, %v182_v1  ;;  %187 = vst.msk [vmem:[%s304_s4 + $0x18] sm:$0xff] %vm120_vm1, %v183_v2 }

// kernel: facenet_forward.82
= control target key start
LH: loop header
LB: loop body
LE: loop exit
PB: predicated region body
PF: predicated region fallthrough
CT: control target
= control target key end

     0   :  { %v164_v0 = vmov 0.0   ;;  %vm165_vm0 = vmmov 0   ;;  %vm51_vm1 = vcmask 523264   ;;  %v115_v27 = vlaneseq  ;;  %s215_s1 = inlined_call_operand.vmem [shape: bf16[64,128], index: 1, kind: input, shape index: {}]   ;;  %s216_s0 = inlined_call_operand.vmem [shape: bf16[8,64], index: 0, kind: input, shape index: {}]   ;;  %s217_s2 = inlined_call_operand.vmem [shape: f32[1,128], index: 2, kind: input, shape index: {}]   ;;  %s218_s3 = inlined_call_operand.vmem [shape: f32[1,128], index: 3, kind: input, shape index: {}]   ;;  %s219_s4 = inlined_call_operand.vmem [shape: f32[8,128], index: 4, kind: output, shape index: {}]  }
   0x1   :  { %144 = vmatprep.subr.bf16.mxu0 %v164_v0  ;;  %v158_v1 = vld [vmem:[%s215_s1 + $0x18] sm:$0xff]   ;;  %152 = vmatprep.mubr.msk.bf16.mxu0 %vm165_vm0, %v164_v0  ;;  %v159_v2 = vld [vmem:[%s215_s1 + $0x10] sm:$0xff]   ;;  %v160_v3 = vld [vmem:[%s215_s1 + $0x8] sm:$0xff]  }
   0x2   :  { %145 = vmatpush3.bf16.msra.mxu0 %v158_v1  ;;  %v161_v4 = vld [vmem:[%s215_s1] sm:$0xff]   ;;  %v116_v28 = vshrl.u32 %v115_v27, 7 }
   0x3   :  { %146 = vmatprep.subr.bf16.mxu0 %v164_v0  ;;  %v18_v5 = vld [vmem:[%s216_s0] sm:$0xf] }
   0x4   :  { %v113_v29 = vld [vmem:[%s217_s2] sm:$0x1]  ;;  %v117_v30 = vsub.s32 0, %v116_v28 }
   0x5   :  { %v138_v34 = vld [vmem:[%s218_s3] ss:$0 sm:$0xff] }
   0x6   :  { %147 = vmatpush3.bf16.msra.mxu0 %v159_v2 }
   0x7   :  { %148 = vmatprep.subr.bf16.mxu0 %v164_v0 }
   0xa   :  { %149 = vmatpush3.bf16.msra.mxu0 %v160_v3 }
   0xb   :  { %150 = vmatprep.subr.bf16.mxu0 %v164_v0 }
   0xe   :  { %151 = vmatpush3.bf16.msra.mxu0 %v161_v4 }
  0x11   :  { %153 = vmatmul.mubr.msk.bf16.vlgmr.msra.gmra.mxu0 %vm51_vm1, %v18_v5 }
  0xd1   :  { %v89_v6 = vpop.f32.mrf.mxu0 }
  0xd2   :  { %v95_v7 = vrot.slane %v89_v6, 4 }
  0xd3   :  { %v154_v8 = vpop.f32.mrf.mxu0 }
  0xd4   :  { %v96_v9 = vadd.f32 %v95_v7, %v89_v6 }
  0xd5   :  { %v92_v10 = vpop.f32.mrf.mxu0 }
  0xd6   :  { %v97_v11 = vrot.slane %v96_v9, 2 }
  0xd7   :  { %v155_v12 = vpop.f32.mrf.mxu0 }
  0xd8   :  { %v98_v13 = vadd.f32 %v97_v11, %v96_v9 }
  0xda   :  { %v99_v14 = vrot.slane %v98_v13, 1 }
  0xdc   :  { %v100_v15 = vadd.f32 %v99_v14, %v98_v13 }
  0xde   :  { %v101_v16 = vmul.f32 0.125, %v100_v15 }
  0xe0   :  { %v102_v17 = vsub.f32 %v89_v6, %v101_v16 }
  0xe2   :  { %v103_v18 = vmul.f32 %v102_v17, %v102_v17 }
  0xe4   :  { %v104_v19 = vrot.slane %v103_v18, 4 }
  0xe6   :  { %v105_v20 = vadd.f32 %v104_v19, %v103_v18 }
  0xe8   :  { %v106_v21 = vrot.slane %v105_v20, 2 }
  0xea   :  { %v107_v22 = vadd.f32 %v106_v21, %v105_v20 }
  0xec   :  { %v108_v23 = vrot.slane %v107_v22, 1 }
  0xee   :  { %v109_v24 = vadd.f32 %v108_v23, %v107_v22 }
  0xf0   :  { %v110_v25 = vmul.f32 0.125, %v109_v24 }
  0xf2   :  { %v111_v26 = vadd.f32 1e-05, %v110_v25 }
  0xf4   :  { %162 = vrsqrt.f32 %v111_v26 }
 0x101   :  { %v163_v31 = vpop.eup %162 }
 0x102   :  { %v114_v32 = vmul.f32 %v163_v31, %v113_v29 }
 0x104   :  { %v118_v33 = vrot.slane %v114_v32, %v117_v30 }
 0x106   :  { %v119_v35 = vmul.f32 %v118_v33, %v102_v17 }
 0x108   :  { %v127_v36 = vadd.f32 %v138_v34, %v119_v35 }
 0x10a   :  { %128 = vst [vmem:[%s219_s4] sm:$0xff] %v127_v36 }

// kernel: facenet_forward.81
= control target key start
LH: loop header
LB: loop body
LE: loop exit
PB: predicated region body
PF: predicated region fallthrough
CT: control target
= control target key end

     0   :  { %v380_v1 = vmov 0.0   ;;  %vm381_vm0 = vmmov 0   ;;  %vm174_vm1 = vcmask 261120   ;;  %v280_v52 = vlaneseq  ;;  %s480_s1 = inlined_call_operand.vmem [shape: bf16[288,32], index: 1, kind: input, shape index: {}]   ;;  %s481_s0 = inlined_call_operand.vmem [shape: bf16[8,288], index: 0, kind: input, shape index: {}]   ;;  %s482_s2 = inlined_call_operand.vmem [shape: f32[1,32], index: 2, kind: input, shape index: {}]   ;;  %s483_s3 = inlined_call_operand.vmem [shape: f32[1,32], index: 3, kind: input, shape index: {}]   ;;  %s484_s4 = inlined_call_operand.vmem [shape: f32[8,32], index: 4, kind: output, shape index: {}]  }
   0x1   :  { %v357_v0 = vld [vmem:[%s480_s1 + $0x78] sm:$0xff]   ;;  %347 = vmatprep.subr.bf16.mxu1 %v380_v1  ;;  %351 = vmatprep.mubr.msk.bf16.mxu1 %vm381_vm0, %v380_v1  ;;  %v359_v3 = vld [vmem:[%s480_s1 + $0x70] sm:$0xff]   ;;  %v361_v5 = vld [vmem:[%s480_s1 + $0x68] sm:$0xff]  }
   0x2   :  { %v358_v2 = vld [vmem:[%s480_s1 + $0x38] sm:$0xff]   ;;  %322 = vmatprep.subr.bf16.mxu0 %v357_v0  ;;  %v360_v4 = vld [vmem:[%s480_s1 + $0x30] sm:$0xff]   ;;  %v362_v6 = vld [vmem:[%s480_s1 + $0x28] sm:$0xff]   ;;  %v281_v53 = vshrl.u32 %v280_v52, 7 }
   0x3   :  { %323 = vmatpush3.bf16.msra.mxu0 %v358_v2  ;;  %v363_v7 = vld [vmem:[%s480_s1 + $0x60] sm:$0xff]   ;;  %v365_v9 = vld [vmem:[%s480_s1 + $0x58] sm:$0xff]   ;;  %v369_v10 = vld [vmem:[%s480_s1 + $0x88] sm:$0xff]  }
   0x4   :  { %324 = vmatprep.subr.bf16.mxu0 %v359_v3  ;;  %v364_v8 = vld [vmem:[%s480_s1 + $0x20] sm:$0xff]   ;;  %v366_v11 = vld [vmem:[%s480_s1 + $0x18] sm:$0xff]   ;;  %348 = vmatpush3.bf16.msra.mxu1 %v369_v10  ;;  %v367_v13 = vld [vmem:[%s480_s1 + $0x50] sm:$0xff]   ;;  %v282_v55 = vsub.s32 0, %v281_v53 }
   0x5   :  { %349 = vmatprep.subr.bf16.mxu1 %v380_v1  ;;  %v372_v12 = vld [vmem:[%s480_s1 + $0x80] sm:$0xff]   ;;  %v375_v14 = vld [vmem:[%s481_s0 + $0x8] ss:$0 sps:$4 sm:$0xff]   ;;  %v368_v16 = vld [vmem:[%s480_s1 + $0x10] sm:$0xff]  }
   0x6   :  { %v18_v15 = vld [vmem:[%s481_s0] sm:$0xff]  ;;  %v370_v18 = vld [vmem:[%s480_s1 + $0x48] sm:$0xff]  }
   0x7   :  { %325 = vmatpush3.bf16.msra.mxu0 %v360_v4  ;;  %v300_v17 = vcombine.high %v18_v15, %v18_v15  ;;  %v371_v19 = vld [vmem:[%s480_s1 + $0x8] sm:$0xff]   ;;  %v373_v20 = vld [vmem:[%s480_s1 + $0x40] sm:$0xff]   ;;  %v299_v22 = vcombine.low %v18_v15, %v18_v15 }
   0x8   :  { %326 = vmatprep.subr.bf16.mxu0 %v361_v5  ;;  %350 = vmatpush3.bf16.msra.mxu1 %v372_v12  ;;  %v374_v21 = vld [vmem:[%s480_s1] sm:$0xff]  }
   0x9   :  { %210 = vmatprep.mubr.bf16.mxu0 %v300_v17  ;;  %v278_v54 = vld [vmem:[%s482_s2] sm:$0x1] }
   0xa   :  { %v321_v59 = vld [vmem:[%s483_s3] ss:$0 sm:$0xff] }
   0xb   :  { %327 = vmatpush3.bf16.msra.mxu0 %v362_v6  ;;  %352 = vmatmul.mubr.msk.bf16.vlgmr.msra.gmra.mxu1 %vm174_vm1, %v375_v14 }
   0xc   :  { %328 = vmatprep.subr.bf16.mxu0 %v363_v7 }
   0xf   :  { %329 = vmatpush3.bf16.msra.mxu0 %v364_v8 }
  0x10   :  { %330 = vmatprep.subr.bf16.mxu0 %v365_v9 }
  0x13   :  { %331 = vmatpush3.bf16.msra.mxu0 %v366_v11 }
  0x14   :  { %332 = vmatprep.subr.bf16.mxu0 %v367_v13 }
  0x17   :  { %333 = vmatpush3.bf16.msra.mxu0 %v368_v16 }
  0x18   :  { %334 = vmatprep.subr.bf16.mxu0 %v370_v18 }
  0x1b   :  { %335 = vmatpush3.bf16.msra.mxu0 %v371_v19 }
  0x1c   :  { %336 = vmatprep.subr.bf16.mxu0 %v373_v20 }
  0x1f   :  { %337 = vmatpush3.bf16.msra.mxu0 %v374_v21 }
  0x22   :  { %211 = vmatmul.mubr.bf16.vlgmr.msra.gmra.mxu0 %v299_v22 }
  0xcb   :  { %v252_v23 = vpop.f32.mrf.mxu1 }
  0xcd   :  { %v353_v24 = vpop.f32.mrf.mxu1 }
  0xcf   :  { %v255_v25 = vpop.f32.mrf.mxu1 }
  0xd1   :  { %v354_v26 = vpop.f32.mrf.mxu1 }
  0xe2   :  { %v338_v27 = vpop.f32.mrf.mxu0 }
  0xe4   :  { %v339_v28 = vpop.f32.mrf.mxu0 }
  0xe5   :  { %v340_v29 = vadd.f32 %v339_v28, %v338_v27 }
  0xe6   :  { %v341_v30 = vpop.f32.mrf.mxu0 }
  0xe7   :  { %v253_v31 = vadd.f32 %v340_v29, %v252_v23 }
  0xe8   :  { %v342_v32 = vpop.f32.mrf.mxu0 }
  0xe9   :  { %v258_v33 = vsel %vm174_vm1, %v253_v31, 0.0 }
  0xea   :  { %v259_v34 = vrot.slane %v258_v33, 4 }
  0xec   :  { %v260_v35 = vadd.f32 %v259_v34, %v258_v33 }
  0xee   :  { %v261_v36 = vrot.slane %v260_v35, 2 }
  0xf0   :  { %v262_v37 = vadd.f32 %v261_v36, %v260_v35 }
  0xf2   :  { %v263_v38 = vrot.slane %v262_v37, 1 }
  0xf4   :  { %v264_v39 = vadd.f32 %v263_v38, %v262_v37 }
  0xf6   :  { %v265_v40 = vmul.f32 0.125, %v264_v39 }
  0xf8   :  { %v266_v41 = vsub.f32 %v253_v31, %v265_v40 }
  0xfa   :  { %v267_v42 = vmul.f32 %v266_v41, %v266_v41 }
  0xfc   :  { %v268_v43 = vsel %vm174_vm1, %v267_v42, 0.0 }
  0xfd   :  { %v269_v44 = vrot.slane %v268_v43, 4 }
  0xff   :  { %v270_v45 = vadd.f32 %v269_v44, %v268_v43 }
 0x101   :  { %v271_v46 = vrot.slane %v270_v45, 2 }
 0x103   :  { %v272_v47 = vadd.f32 %v271_v46, %v270_v45 }
 0x105   :  { %v273_v48 = vrot.slane %v272_v47, 1 }
 0x107   :  { %v274_v49 = vadd.f32 %v273_v48, %v272_v47 }
 0x109   :  { %v275_v50 = vmul.f32 0.125, %v274_v49 }
 0x10b   :  { %v276_v51 = vadd.f32 1e-05, %v275_v50 }
 0x10d   :  { %378 = vrsqrt.f32 %v276_v51 }
 0x11a   :  { %v379_v56 = vpop.eup %378 }
 0x11b   :  { %v279_v57 = vmul.f32 %v379_v56, %v278_v54 }
 0x11d   :  { %v283_v58 = vrot.slane %v279_v57, %v282_v55 }
 0x11f   :  { %v284_v60 = vmul.f32 %v283_v58, %v266_v41 }
 0x121   :  { %v292_v61 = vadd.f32 %v321_v59, %v284_v60 }
 0x123   :  { %v293_v62 = vmax.f32 %v292_v61, 0.0 }
 0x125   :  { %294 = vst.msk [vmem:[%s484_s4] sm:$0xff] %vm174_vm1, %v293_v62 }

// kernel: facenet_forward.84
= control target key start
LH: loop header
LB: loop body
LE: loop exit
PB: predicated region body
PF: predicated region fallthrough
CT: control target
= control target key end

     0   :  { %v215_v0 = vmov 0.0   ;;  %vm216_vm0 = vmmov 0   ;;  %vm123_vm1 = vcmask 261120   ;;  %v146_v33 = vlaneseq  ;;  %s281_s1 = inlined_call_operand.vmem [shape: bf16[128,32], index: 1, kind: input, shape index: {}]   ;;  %s282_s0 = inlined_call_operand.vmem [shape: bf16[8,128], index: 0, kind: input, shape index: {}]   ;;  %s283_s2 = inlined_call_operand.vmem [shape: f32[1,32], index: 2, kind: input, shape index: {}]   ;;  %s284_s3 = inlined_call_operand.vmem [shape: f32[1,32], index: 3, kind: input, shape index: {}]   ;;  %s285_s4 = inlined_call_operand.vmem [shape: f32[8,32], index: 4, kind: output, shape index: {}]  }
   0x1   :  { %183 = vmatprep.subr.bf16.mxu0 %v215_v0  ;;  %v205_v1 = vld [vmem:[%s281_s1 + $0x38] sm:$0xff]   ;;  %199 = vmatprep.mubr.msk.bf16.mxu0 %vm216_vm0, %v215_v0  ;;  %v206_v2 = vld [vmem:[%s281_s1 + $0x30] sm:$0xff]   ;;  %v207_v3 = vld [vmem:[%s281_s1 + $0x28] sm:$0xff]  }
   0x2   :  { %184 = vmatpush3.bf16.msra.mxu0 %v205_v1  ;;  %v208_v4 = vld [vmem:[%s281_s1 + $0x20] sm:$0xff]   ;;  %v209_v5 = vld [vmem:[%s281_s1 + $0x18] sm:$0xff]   ;;  %v210_v6 = vld [vmem:[%s281_s1 + $0x10] sm:$0xff]   ;;  %v147_v34 = vshrl.u32 %v146_v33, 7 }
   0x3   :  { %185 = vmatprep.subr.bf16.mxu0 %v215_v0  ;;  %v211_v7 = vld [vmem:[%s281_s1 + $0x8] sm:$0xff]   ;;  %v212_v8 = vld [vmem:[%s281_s1] sm:$0xff]  }
   0x4   :  { %v18_v9 = vld [vmem:[%s282_s0] sm:$0xf]  ;;  %v148_v36 = vsub.s32 0, %v147_v34 }
   0x5   :  { %v144_v35 = vld [vmem:[%s283_s2] sm:$0x1] }
   0x6   :  { %186 = vmatpush3.bf16.msra.mxu0 %v206_v2  ;;  %v173_v40 = vld [vmem:[%s284_s3] ss:$0 sm:$0xff] }
   0x7   :  { %187 = vmatprep.subr.bf16.mxu0 %v215_v0 }
   0xa   :  { %188 = vmatpush3.bf16.msra.mxu0 %v207_v3 }
   0xb   :  { %189 = vmatprep.subr.bf16.mxu0 %v215_v0 }
   0xe   :  { %190 = vmatpush3.bf16.msra.mxu0 %v208_v4 }
   0xf   :  { %191 = vmatprep.subr.bf16.mxu0 %v215_v0 }
  0x12   :  { %192 = vmatpush3.bf16.msra.mxu0 %v209_v5 }
  0x13   :  { %193 = vmatprep.subr.bf16.mxu0 %v215_v0 }
  0x16   :  { %194 = vmatpush3.bf16.msra.mxu0 %v210_v6 }
  0x17   :  { %195 = vmatprep.subr.bf16.mxu0 %v215_v0 }
  0x1a   :  { %196 = vmatpush3.bf16.msra.mxu0 %v211_v7 }
  0x1b   :  { %197 = vmatprep.subr.bf16.mxu0 %v215_v0 }
  0x1e   :  { %198 = vmatpush3.bf16.msra.mxu0 %v212_v8 }
  0x21   :  { %200 = vmatmul.mubr.bf16.vlgmr.msra.gmra.mxu0 %v18_v9 }
  0xe1   :  { %v117_v10 = vpop.f32.mrf.mxu0 }
  0xe2   :  { %v124_v11 = vsel %vm123_vm1, %v117_v10, 0.0 }
  0xe3   :  { %v125_v12 = vrot.slane %v124_v11, 4  ;;  %v201_v13 = vpop.f32.mrf.mxu0 }
  0xe5   :  { %v126_v14 = vadd.f32 %v125_v12, %v124_v11  ;;  %v120_v15 = vpop.f32.mrf.mxu0 }
  0xe7   :  { %v127_v16 = vrot.slane %v126_v14, 2  ;;  %v202_v17 = vpop.f32.mrf.mxu0 }
  0xe9   :  { %v128_v18 = vadd.f32 %v127_v16, %v126_v14 }
  0xeb   :  { %v129_v19 = vrot.slane %v128_v18, 1 }
  0xed   :  { %v130_v20 = vadd.f32 %v129_v19, %v128_v18 }
  0xef   :  { %v131_v21 = vmul.f32 0.125, %v130_v20 }
  0xf1   :  { %v132_v22 = vsub.f32 %v117_v10, %v131_v21 }
  0xf3   :  { %v133_v23 = vmul.f32 %v132_v22, %v132_v22 }
  0xf5   :  { %v134_v24 = vsel %vm123_vm1, %v133_v23, 0.0 }
  0xf6   :  { %v135_v25 = vrot.slane %v134_v24, 4 }
  0xf8   :  { %v136_v26 = vadd.f32 %v135_v25, %v134_v24 }
  0xfa   :  { %v137_v27 = vrot.slane %v136_v26, 2 }
  0xfc   :  { %v138_v28 = vadd.f32 %v137_v27, %v136_v26 }
  0xfe   :  { %v139_v29 = vrot.slane %v138_v28, 1 }
 0x100   :  { %v140_v30 = vadd.f32 %v139_v29, %v138_v28 }
 0x102   :  { %v141_v31 = vmul.f32 0.125, %v140_v30 }
 0x104   :  { %v142_v32 = vadd.f32 1e-05, %v141_v31 }
 0x106   :  { %213 = vrsqrt.f32 %v142_v32 }
 0x113   :  { %v214_v37 = vpop.eup %213 }
 0x114   :  { %v145_v38 = vmul.f32 %v214_v37, %v144_v35 }
 0x116   :  { %v149_v39 = vrot.slane %v145_v38, %v148_v36 }
 0x118   :  { %v150_v41 = vmul.f32 %v149_v39, %v132_v22 }
 0x11a   :  { %v158_v42 = vadd.f32 %v173_v40, %v150_v41 }
 0x11c   :  { %v159_v43 = vmax.f32 %v158_v42, 0.0 }
 0x11e   :  { %160 = vst.msk [vmem:[%s285_s4] sm:$0xff] %vm123_vm1, %v159_v43 }

// kernel: facenet_forward.83
= control target key start
LH: loop header
LB: loop body
LE: loop exit
PB: predicated region body
PF: predicated region fallthrough
CT: control target
= control target key end

     0   :  { %v144_v0 = vmov 0.0   ;;  %vm145_vm0 = vmmov 0   ;;  %vm38_vm1 = vcmask 261120   ;;  %v102_v25 = vlaneseq  ;;  %s197_s1 = inlined_call_operand.vmem [shape: bf16[32,128], index: 1, kind: input, shape index: {}]   ;;  %s198_s0 = inlined_call_operand.vmem [shape: bf16[8,32], index: 0, kind: input, shape index: {}]   ;;  %s199_s2 = inlined_call_operand.vmem [shape: f32[1,128], index: 2, kind: input, shape index: {}]   ;;  %s200_s3 = inlined_call_operand.vmem [shape: f32[1,128], index: 3, kind: input, shape index: {}]   ;;  %s201_s4 = inlined_call_operand.vmem [shape: f32[8,128], index: 4, kind: input, shape index: {}]   ;;  %s202_s5 = inlined_call_operand.vmem [shape: f32[8,128], index: 5, kind: output, shape index: {}]  }
   0x1   :  { %130 = vmatprep.subr.bf16.mxu0 %v144_v0  ;;  %v140_v1 = vld [vmem:[%s197_s1 + $0x8] sm:$0xff]   ;;  %134 = vmatprep.mubr.msk.bf16.mxu0 %vm145_vm0, %v144_v0  ;;  %v141_v2 = vld [vmem:[%s197_s1] sm:$0xff]  }
   0x2   :  { %131 = vmatpush3.bf16.msra.mxu0 %v140_v1  ;;  %v21_v3 = vld [vmem:[%s198_s0] sm:$0xf]  ;;  %v103_v26 = vshrl.u32 %v102_v25, 7 }
   0x3   :  { %132 = vmatprep.subr.bf16.mxu0 %v144_v0  ;;  %v100_v27 = vld [vmem:[%s199_s2] sm:$0x1] }
   0x4   :  { %v104_v28 = vsub.s32 0, %v103_v26  ;;  %v126_v32 = vld [vmem:[%s200_s3] ss:$0 sm:$0xff] }
   0x5   :  { %v115_v34 = vld [vmem:[%s201_s4] sm:$0xff] }
   0x6   :  { %133 = vmatpush3.bf16.msra.mxu0 %v141_v2 }
   0x9   :  { %135 = vmatmul.mubr.msk.bf16.vlgmr.msra.gmra.mxu0 %vm38_vm1, %v21_v3 }
  0xc9   :  { %v76_v4 = vpop.f32.mrf.mxu0 }
  0xca   :  { %v82_v5 = vrot.slane %v76_v4, 4 }
  0xcb   :  { %v136_v6 = vpop.f32.mrf.mxu0 }
  0xcc   :  { %v83_v7 = vadd.f32 %v82_v5, %v76_v4 }
  0xcd   :  { %v79_v8 = vpop.f32.mrf.mxu0 }
  0xce   :  { %v84_v9 = vrot.slane %v83_v7, 2 }
  0xcf   :  { %v137_v10 = vpop.f32.mrf.mxu0 }
  0xd0   :  { %v85_v11 = vadd.f32 %v84_v9, %v83_v7 }
  0xd2   :  { %v86_v12 = vrot.slane %v85_v11, 1 }
  0xd4   :  { %v87_v13 = vadd.f32 %v86_v12, %v85_v11 }
  0xd6   :  { %v88_v14 = vmul.f32 0.125, %v87_v13 }
  0xd8   :  { %v89_v15 = vsub.f32 %v76_v4, %v88_v14 }
  0xda   :  { %v90_v16 = vmul.f32 %v89_v15, %v89_v15 }
  0xdc   :  { %v91_v17 = vrot.slane %v90_v16, 4 }
  0xde   :  { %v92_v18 = vadd.f32 %v91_v17, %v90_v16 }
  0xe0   :  { %v93_v19 = vrot.slane %v92_v18, 2 }
  0xe2   :  { %v94_v20 = vadd.f32 %v93_v19, %v92_v18 }
  0xe4   :  { %v95_v21 = vrot.slane %v94_v20, 1 }
  0xe6   :  { %v96_v22 = vadd.f32 %v95_v21, %v94_v20 }
  0xe8   :  { %v97_v23 = vmul.f32 0.125, %v96_v22 }
  0xea   :  { %v98_v24 = vadd.f32 1e-05, %v97_v23 }
  0xec   :  { %142 = vrsqrt.f32 %v98_v24 }
  0xf9   :  { %v143_v29 = vpop.eup %142 }
  0xfa   :  { %v101_v30 = vmul.f32 %v143_v29, %v100_v27 }
  0xfc   :  { %v105_v31 = vrot.slane %v101_v30, %v104_v28 }
  0xfe   :  { %v106_v33 = vmul.f32 %v105_v31, %v89_v15 }
 0x100   :  { %v114_v35 = vadd.f32 %v126_v32, %v106_v33 }
 0x102   :  { %v116_v36 = vadd.f32 %v115_v34, %v114_v35 }
 0x104   :  { %v117_v37 = vmax.f32 %v116_v36, 0.0 }
 0x106   :  { %118 = vst [vmem:[%s202_s5] sm:$0xff] %v117_v37 }

// kernel: facenet_forward.99
= control target key start
LH: loop header
LB: loop body
LE: loop exit
PB: predicated region body
PF: predicated region fallthrough
CT: control target
= control target key end

     0   :  { %v215_v0 = vmov 0.0   ;;  %vm216_vm0 = vmmov 0   ;;  %vm123_vm1 = vcmask 523264   ;;  %v146_v33 = vlaneseq  ;;  %s281_s1 = inlined_call_operand.vmem [shape: bf16[128,64], index: 1, kind: input, shape index: {}]   ;;  %s282_s0 = inlined_call_operand.vmem [shape: bf16[8,128], index: 0, kind: input, shape index: {}]   ;;  %s283_s2 = inlined_call_operand.vmem [shape: f32[1,64], index: 2, kind: input, shape index: {}]   ;;  %s284_s3 = inlined_call_operand.vmem [shape: f32[1,64], index: 3, kind: input, shape index: {}]   ;;  %s285_s4 = inlined_call_operand.vmem [shape: f32[8,64], index: 4, kind: output, shape index: {}]  }
   0x1   :  { %183 = vmatprep.subr.bf16.mxu0 %v215_v0  ;;  %v205_v1 = vld [vmem:[%s281_s1 + $0x38] sm:$0xff]   ;;  %199 = vmatprep.mubr.msk.bf16.mxu0 %vm216_vm0, %v215_v0  ;;  %v206_v2 = vld [vmem:[%s281_s1 + $0x30] sm:$0xff]   ;;  %v207_v3 = vld [vmem:[%s281_s1 + $0x28] sm:$0xff]  }
   0x2   :  { %184 = vmatpush3.bf16.msra.mxu0 %v205_v1  ;;  %v208_v4 = vld [vmem:[%s281_s1 + $0x20] sm:$0xff]   ;;  %v209_v5 = vld [vmem:[%s281_s1 + $0x18] sm:$0xff]   ;;  %v210_v6 = vld [vmem:[%s281_s1 + $0x10] sm:$0xff]   ;;  %v147_v34 = vshrl.u32 %v146_v33, 7 }
   0x3   :  { %185 = vmatprep.subr.bf16.mxu0 %v215_v0  ;;  %v211_v7 = vld [vmem:[%s281_s1 + $0x8] sm:$0xff]   ;;  %v212_v8 = vld [vmem:[%s281_s1] sm:$0xff]  }
   0x4   :  { %v18_v9 = vld [vmem:[%s282_s0] sm:$0xf]  ;;  %v148_v36 = vsub.s32 0, %v147_v34 }
   0x5   :  { %v144_v35 = vld [vmem:[%s283_s2] sm:$0x1] }
   0x6   :  { %186 = vmatpush3.bf16.msra.mxu0 %v206_v2  ;;  %v173_v40 = vld [vmem:[%s284_s3] ss:$0 sm:$0xff] }
   0x7   :  { %187 = vmatprep.subr.bf16.mxu0 %v215_v0 }
   0xa   :  { %188 = vmatpush3.bf16.msra.mxu0 %v207_v3 }
   0xb   :  { %189 = vmatprep.subr.bf16.mxu0 %v215_v0 }
   0xe   :  { %190 = vmatpush3.bf16.msra.mxu0 %v208_v4 }
   0xf   :  { %191 = vmatprep.subr.bf16.mxu0 %v215_v0 }
  0x12   :  { %192 = vmatpush3.bf16.msra.mxu0 %v209_v5 }
  0x13   :  { %193 = vmatprep.subr.bf16.mxu0 %v215_v0 }
  0x16   :  { %194 = vmatpush3.bf16.msra.mxu0 %v210_v6 }
  0x17   :  { %195 = vmatprep.subr.bf16.mxu0 %v215_v0 }
  0x1a   :  { %196 = vmatpush3.bf16.msra.mxu0 %v211_v7 }
  0x1b   :  { %197 = vmatprep.subr.bf16.mxu0 %v215_v0 }
  0x1e   :  { %198 = vmatpush3.bf16.msra.mxu0 %v212_v8 }
  0x21   :  { %200 = vmatmul.mubr.bf16.vlgmr.msra.gmra.mxu0 %v18_v9 }
  0xe1   :  { %v117_v10 = vpop.f32.mrf.mxu0 }
  0xe2   :  { %v124_v11 = vsel %vm123_vm1, %v117_v10, 0.0 }
  0xe3   :  { %v125_v12 = vrot.slane %v124_v11, 4  ;;  %v201_v13 = vpop.f32.mrf.mxu0 }
  0xe5   :  { %v126_v14 = vadd.f32 %v125_v12, %v124_v11  ;;  %v120_v15 = vpop.f32.mrf.mxu0 }
  0xe7   :  { %v127_v16 = vrot.slane %v126_v14, 2  ;;  %v202_v17 = vpop.f32.mrf.mxu0 }
  0xe9   :  { %v128_v18 = vadd.f32 %v127_v16, %v126_v14 }
  0xeb   :  { %v129_v19 = vrot.slane %v128_v18, 1 }
  0xed   :  { %v130_v20 = vadd.f32 %v129_v19, %v128_v18 }
  0xef   :  { %v131_v21 = vmul.f32 0.125, %v130_v20 }
  0xf1   :  { %v132_v22 = vsub.f32 %v117_v10, %v131_v21 }
  0xf3   :  { %v133_v23 = vmul.f32 %v132_v22, %v132_v22 }
  0xf5   :  { %v134_v24 = vsel %vm123_vm1, %v133_v23, 0.0 }
  0xf6   :  { %v135_v25 = vrot.slane %v134_v24, 4 }
  0xf8   :  { %v136_v26 = vadd.f32 %v135_v25, %v134_v24 }
  0xfa   :  { %v137_v27 = vrot.slane %v136_v26, 2 }
  0xfc   :  { %v138_v28 = vadd.f32 %v137_v27, %v136_v26 }
  0xfe   :  { %v139_v29 = vrot.slane %v138_v28, 1 }
 0x100   :  { %v140_v30 = vadd.f32 %v139_v29, %v138_v28 }
 0x102   :  { %v141_v31 = vmul.f32 0.125, %v140_v30 }
 0x104   :  { %v142_v32 = vadd.f32 1e-05, %v141_v31 }
 0x106   :  { %213 = vrsqrt.f32 %v142_v32 }
 0x113   :  { %v214_v37 = vpop.eup %213 }
 0x114   :  { %v145_v38 = vmul.f32 %v214_v37, %v144_v35 }
 0x116   :  { %v149_v39 = vrot.slane %v145_v38, %v148_v36 }
 0x118   :  { %v150_v41 = vmul.f32 %v149_v39, %v132_v22 }
 0x11a   :  { %v158_v42 = vadd.f32 %v173_v40, %v150_v41 }
 0x11c   :  { %v159_v43 = vmax.f32 %v158_v42, 0.0 }
 0x11e   :  { %160 = vst.msk [vmem:[%s285_s4] sm:$0xff] %vm123_vm1, %v159_v43 }

// kernel: facenet_forward.101
= control target key start
LH: loop header
LB: loop body
LE: loop exit
PB: predicated region body
PF: predicated region fallthrough
CT: control target
= control target key end

     0   :  { %v297_v1 = vmov 0   ;;  %vm156_vm0 = vcmask 1041408   ;;  %v199_v58 = vlaneseq  ;;  %s387_s1 = inlined_call_operand.vmem [shape: bf16[128,256], index: 1, kind: input, shape index: {}]   ;;  %s388_s0 = inlined_call_operand.vmem [shape: bf16[2,128], index: 0, kind: input, shape index: {}]   ;;  %s389_s2 = inlined_call_operand.vmem [shape: f32[1,256], index: 2, kind: input, shape index: {}]   ;;  %s390_s3 = inlined_call_operand.vmem [shape: f32[1,256], index: 3, kind: input, shape index: {}]   ;;  %s391_s4 = inlined_call_operand.vmem [shape: f32[2,256], index: 4, kind: output, shape index: {}]  }
   0x1   :  { %v269_v0 = vld [vmem:[%s387_s1 + $0x74] ss:$8 sps:$4 sm:$0xff]   ;;  %147 = vmatprep.mubr.bf16.mxu0 %v297_v1  ;;  %v271_v2 = vld [vmem:[%s387_s1 + $0x70] ss:$8 sps:$4 sm:$0xff]   ;;  %v272_v3 = vld [vmem:[%s387_s1 + $0x64] ss:$8 sps:$4 sm:$0xff]  }
   0x2   :  { %115 = vmatprep.subr.bf16.mxu0 %v269_v0  ;;  %v274_v4 = vld [vmem:[%s387_s1 + $0x60] ss:$8 sps:$4 sm:$0xff]   ;;  %v275_v5 = vld [vmem:[%s387_s1 + $0x54] ss:$8 sps:$4 sm:$0xff]   ;;  %v277_v6 = vld [vmem:[%s387_s1 + $0x50] ss:$8 sps:$4 sm:$0xff]  }
   0x3   :  { %116 = vmatpush1.bf16.msra.mxu0 %v271_v2  ;;  %v278_v7 = vld [vmem:[%s387_s1 + $0x44] ss:$8 sps:$4 sm:$0xff]   ;;  %v280_v8 = vld [vmem:[%s387_s1 + $0x40] ss:$8 sps:$4 sm:$0xff]   ;;  %v281_v9 = vld [vmem:[%s387_s1 + $0x34] ss:$8 sps:$4 sm:$0xff]  }
   0x4   :  { %117 = vmatprep.subr.bf16.mxu0 %v272_v3  ;;  %v283_v10 = vld [vmem:[%s387_s1 + $0x30] ss:$8 sps:$4 sm:$0xff]   ;;  %v284_v11 = vld [vmem:[%s387_s1 + $0x24] ss:$8 sps:$4 sm:$0xff]   ;;  %v286_v12 = vld [vmem:[%s387_s1 + $0x20] ss:$8 sps:$4 sm:$0xff]  }
   0x5   :  { %v287_v13 = vld [vmem:[%s387_s1 + $0x14] ss:$8 sps:$4 sm:$0xff]   ;;  %v289_v14 = vld [vmem:[%s387_s1 + $0x10] ss:$8 sps:$4 sm:$0xff]   ;;  %v290_v15 = vld [vmem:[%s387_s1 + $0x4] ss:$8 sps:$4 sm:$0xff]  }
   0x6   :  { %v292_v16 = vld [vmem:[%s387_s1] ss:$8 sps:$4 sm:$0xff]   ;;  %v200_v61 = vshrl.u32 %v199_v58, 7 }
   0x7   :  { %118 = vmatpush1.bf16.msra.mxu0 %v274_v4  ;;  %v18_v17 = vld [vmem:[%s388_s0] sm:$0x1] }
   0x8   :  { %119 = vmatprep.subr.bf16.mxu0 %v275_v5  ;;  %v201_v62 = vsub.s32 0, %v200_v61  ;;  %v197_v63 = vld [vmem:[%s389_s2] sm:$0x3]  ;;  %v205_v0 = vsub.s32 1, %v200_v61 }
   0xa   :  { %v202_v1 = vrot.slane %v197_v63, %v201_v62  ;;  %v206_v2 = vrot.slane %v197_v63, %v205_v0 }
   0xb   :  { %120 = vmatpush1.bf16.msra.mxu0 %v277_v6  ;;  %v221_v6 = vld [vmem:[%s390_s3] sm:$0x3] }
   0xc   :  { %121 = vmatprep.subr.bf16.mxu0 %v278_v7 }
   0xf   :  { %122 = vmatpush1.bf16.msra.mxu0 %v280_v8 }
  0x10   :  { %123 = vmatprep.subr.bf16.mxu0 %v281_v9 }
  0x13   :  { %124 = vmatpush1.bf16.msra.mxu0 %v283_v10  ;;  %v226_v10 = vrot.slane %v221_v6, %v201_v62 }
  0x14   :  { %125 = vmatprep.subr.bf16.mxu0 %v284_v11 }
  0x17   :  { %126 = vmatpush1.bf16.msra.mxu0 %v286_v12  ;;  %v230_v12 = vrot.slane %v221_v6, %v205_v0 }
  0x18   :  { %127 = vmatprep.subr.bf16.mxu0 %v287_v13 }
  0x1b   :  { %128 = vmatpush1.bf16.msra.mxu0 %v289_v14 }
  0x1c   :  { %129 = vmatprep.subr.bf16.mxu0 %v290_v15 }
  0x1f   :  { %130 = vmatpush1.bf16.msra.mxu0 %v292_v16 }
  0x22   :  { %148 = vmatmul.mubr.bf16.vlgmr.msra.gmra.mxu0 %v18_v17 }
  0xe2   :  { %v149_v18 = vpop.f32.mrf.mxu0 }
  0xe3   :  { %v157_v19 = vsel %vm156_vm0, %v149_v18, 0.0 }
  0xe4   :  { %v158_v20 = vrot.slane %v157_v19, 4  ;;  %v151_v21 = vpop.f32.mrf.mxu0 }
  0xe5   :  { %v164_v22 = vsel %vm156_vm0, %v151_v21, 0.0 }
  0xe6   :  { %v159_v23 = vadd.f32 %v158_v20, %v157_v19  ;;  %v165_v24 = vrot.slane %v164_v22, 4  ;;  %v153_v25 = vpop.f32.mrf.mxu0 }
  0xe8   :  { %v160_v26 = vrot.slane %v159_v23, 2  ;;  %v166_v27 = vadd.f32 %v165_v24, %v164_v22  ;;  %v154_v28 = vpop.f32.mrf.mxu0 }
  0xea   :  { %v161_v29 = vadd.f32 %v160_v26, %v159_v23  ;;  %v167_v30 = vrot.slane %v166_v27, 2 }
  0xec   :  { %v162_v31 = vrot.slane %v161_v29, 1  ;;  %v168_v32 = vadd.f32 %v167_v30, %v166_v27 }
  0xee   :  { %v163_v33 = vadd.f32 %v162_v31, %v161_v29  ;;  %v169_v34 = vrot.slane %v168_v32, 1 }
  0xf0   :  { %v171_v35 = vmul.f32 0.5, %v163_v33  ;;  %v170_v36 = vadd.f32 %v169_v34, %v168_v32 }
  0xf2   :  { %v173_v37 = vsub.f32 %v149_v18, %v171_v35  ;;  %v172_v38 = vmul.f32 0.5, %v170_v36 }
  0xf4   :  { %v175_v39 = vmul.f32 %v173_v37, %v173_v37  ;;  %v174_v40 = vsub.f32 %v151_v21, %v172_v38 }
  0xf6   :  { %v177_v41 = vsel %vm156_vm0, %v175_v39, 0.0  ;;  %v176_v42 = vmul.f32 %v174_v40, %v174_v40 }
  0xf7   :  { %v178_v43 = vrot.slane %v177_v41, 4 }
  0xf8   :  { %v184_v44 = vsel %vm156_vm0, %v176_v42, 0.0 }
  0xf9   :  { %v179_v45 = vadd.f32 %v178_v43, %v177_v41  ;;  %v185_v46 = vrot.slane %v184_v44, 4 }
  0xfb   :  { %v180_v47 = vrot.slane %v179_v45, 2  ;;  %v186_v48 = vadd.f32 %v185_v46, %v184_v44 }
  0xfd   :  { %v181_v49 = vadd.f32 %v180_v47, %v179_v45  ;;  %v187_v50 = vrot.slane %v186_v48, 2 }
  0xff   :  { %v182_v51 = vrot.slane %v181_v49, 1  ;;  %v188_v52 = vadd.f32 %v187_v50, %v186_v48 }
 0x101   :  { %v183_v53 = vadd.f32 %v182_v51, %v181_v49  ;;  %v189_v54 = vrot.slane %v188_v52, 1 }
 0x103   :  { %v191_v55 = vmul.f32 0.5, %v183_v53  ;;  %v190_v56 = vadd.f32 %v189_v54, %v188_v52 }
 0x105   :  { %v193_v57 = vadd.f32 1e-05, %v191_v55  ;;  %v192_v59 = vmul.f32 0.5, %v190_v56 }
 0x107   :  { %293 = vrsqrt.f32 %v193_v57  ;;  %v194_v60 = vadd.f32 1e-05, %v192_v59 }
 0x109   :  { %295 = vrsqrt.f32 %v194_v60 }
 0x114   :  { %v294_v3 = vpop.eup %293 }
 0x115   :  { %v209_v4 = vmul.f32 %v294_v3, %v202_v1 }
 0x116   :  { %v296_v5 = vpop.eup %295 }
 0x117   :  { %v214_v7 = vrot.slane %v209_v4, %v201_v62  ;;  %v210_v8 = vmul.f32 %v296_v5, %v206_v2 }
 0x119   :  { %v219_v9 = vmul.f32 %v214_v7, %v173_v37  ;;  %v218_v11 = vrot.slane %v210_v8, %v201_v62 }
 0x11b   :  { %v220_v13 = vmul.f32 %v218_v11, %v174_v40  ;;  %v233_v14 = vadd.f32 %v226_v10, %v219_v9 }
 0x11d   :  { %v234_v15 = vadd.f32 %v230_v12, %v220_v13 }
 0x11f   :  { %v237_v16 = vcombine.low %v233_v14, %v234_v15 }
 0x121   :  { %267 = vst.sshfl [vmem:[%s391_s4] sm:$0x33 pattern:$0x76325410] %v237_v16 }

// kernel: facenet_forward.100
= control target key start
LH: loop header
LB: loop body
LE: loop exit
PB: predicated region body
PF: predicated region fallthrough
CT: control target
= control target key end

     0   :  { %v658_v22 = vmov 1966171168   ;;  %v96_v24 = vlaneseq  ;;  %v659_v40 = vmov 0.0   ;;  %vm660_vm0 = vmmov 0   ;;  %s813_s1 = inlined_call_operand.vmem [shape: bf16[576,64], index: 1, kind: input, shape index: {}]   ;;  %s814_s0 = inlined_call_operand.vmem [shape: bf16[2,576], index: 0, kind: input, shape index: {}]   ;;  %s815_s2 = inlined_call_operand.vmem [shape: f32[1,64], index: 2, kind: input, shape index: {}]   ;;  %s816_s3 = inlined_call_operand.vmem [shape: f32[1,64], index: 3, kind: input, shape index: {}]   ;;  %s817_s4 = inlined_call_operand.vmem [shape: f32[2,64], index: 4, kind: output, shape index: {}]  }
   0x1   :  { %v619_v0 = vld [vmem:[%s813_s1 + $0x78] sm:$0xff]   ;;  %v623_v4 = vld [vmem:[%s813_s1 + $0x70] sm:$0xff]   ;;  %v627_v8 = vld [vmem:[%s813_s1 + $0x68] sm:$0xff]   ;;  %v94_v23 = vunpack.c.l.s4 %v658_v22  ;;  %vm351_vm1 = vcmask 523264   ;;  %vm475_vm2 = vcmask 517120  }
   0x2   :  { %v620_v1 = vld [vmem:[%s813_s1 + $0xf8] sm:$0xff]   ;;  %555 = vmatprep.subr.bf16.mxu0 %v619_v0  ;;  %v624_v5 = vld [vmem:[%s813_s1 + $0xf0] sm:$0xff]   ;;  %v628_v9 = vld [vmem:[%s813_s1 + $0xe8] sm:$0xff]   ;;  %v764_v30 = vshrl.u32 %v96_v24, 7 }
   0x3   :  { %v621_v2 = vld [vmem:[%s813_s1 + $0x38] sm:$0xff]   ;;  %577 = vmatprep.subr.bf16.mxu1 %v620_v1  ;;  %v625_v6 = vld [vmem:[%s813_s1 + $0x30] sm:$0xff]   ;;  %v629_v10 = vld [vmem:[%s813_s1 + $0x28] sm:$0xff]   ;;  %v95_v29 = vunpack.c.0.s8 %v94_v23 }
   0x4   :  { %v622_v3 = vld [vmem:[%s813_s1 + $0xb8] sm:$0xff]   ;;  %556 = vmatpush3.bf16.msra.mxu0 %v621_v2  ;;  %v626_v7 = vld [vmem:[%s813_s1 + $0xb0] sm:$0xff]   ;;  %v630_v11 = vld [vmem:[%s813_s1 + $0xa8] sm:$0xff]  }
   0x5   :  { %578 = vmatpush3.bf16.msra.mxu1 %v622_v3  ;;  %557 = vmatprep.subr.bf16.mxu0 %v623_v4  ;;  %v631_v12 = vld [vmem:[%s813_s1 + $0x60] sm:$0xff]   ;;  %v635_v16 = vld [vmem:[%s813_s1 + $0x58] sm:$0xff]   ;;  %v639_v20 = vld [vmem:[%s813_s1 + $0x50] sm:$0xff]   ;;  %v98_v35 = vsub.s32 %v95_v29, %v764_v30 }
   0x6   :  { %579 = vmatprep.subr.bf16.mxu1 %v624_v5  ;;  %v632_v13 = vld [vmem:[%s813_s1 + $0xe0] sm:$0xff]   ;;  %v636_v17 = vld [vmem:[%s813_s1 + $0xd8] sm:$0xff]   ;;  %v640_v21 = vld [vmem:[%s813_s1 + $0xd0] sm:$0xff]  }
   0x7   :  { %v633_v14 = vld [vmem:[%s813_s1 + $0x20] sm:$0xff]   ;;  %v637_v18 = vld [vmem:[%s813_s1 + $0x18] sm:$0xff]   ;;  %v641_v25 = vld [vmem:[%s813_s1 + $0x10] sm:$0xff]  }
   0x8   :  { %558 = vmatpush3.bf16.msra.mxu0 %v625_v6  ;;  %v634_v15 = vld [vmem:[%s813_s1 + $0xa0] sm:$0xff]   ;;  %v638_v19 = vld [vmem:[%s813_s1 + $0x98] sm:$0xff]   ;;  %v642_v26 = vld [vmem:[%s813_s1 + $0x90] sm:$0xff]  }
   0x9   :  { %580 = vmatpush3.bf16.msra.mxu1 %v626_v7  ;;  %559 = vmatprep.subr.bf16.mxu0 %v627_v8  ;;  %v643_v27 = vld [vmem:[%s813_s1 + $0x48] sm:$0xff]   ;;  %v647_v33 = vld [vmem:[%s813_s1 + $0x40] sm:$0xff]   ;;  %v652_v44 = vld [vmem:[%s813_s1 + $0x118] sm:$0xff]  }
   0xa   :  { %581 = vmatprep.subr.bf16.mxu1 %v628_v9  ;;  %v644_v28 = vld [vmem:[%s813_s1 + $0xc8] sm:$0xff]   ;;  %v648_v34 = vld [vmem:[%s813_s1 + $0xc0] sm:$0xff]   ;;  %v653_v47 = vld [vmem:[%s813_s1 + $0x110] sm:$0xff]  }
   0xb   :  { %v645_v31 = vld [vmem:[%s813_s1 + $0x8] sm:$0xff]   ;;  %v649_v36 = vld [vmem:[%s813_s1] sm:$0xff]  }
   0xc   :  { %560 = vmatpush3.bf16.msra.mxu0 %v629_v10  ;;  %v646_v32 = vld [vmem:[%s813_s1 + $0x88] sm:$0xff]   ;;  %v650_v37 = vld [vmem:[%s813_s1 + $0x80] sm:$0xff]  }
   0xd   :  { %582 = vmatpush3.bf16.msra.mxu1 %v630_v11  ;;  %561 = vmatprep.subr.bf16.mxu0 %v631_v12  ;;  %v18_v38 = vld [vmem:[%s814_s0] sm:$0x1f]  ;;  %v654_v49 = vld [vmem:[%s813_s1 + $0x108] sm:$0xff]  }
   0xe   :  { %583 = vmatprep.subr.bf16.mxu1 %v632_v13  ;;  %v99_v39 = vrot.slane %v18_v38, %v98_v35  ;;  %v92_v48 = vcombine.high %v18_v38, %v18_v38  ;;  %v655_v51 = vld [vmem:[%s813_s1 + $0x100] sm:$0xff]  }
   0xf   :  { %v496_v24 = vld [vmem:[%s815_s2] sm:$0x1] }
  0x10   :  { %562 = vmatpush3.bf16.msra.mxu0 %v633_v14  ;;  %v107_v41 = vcombine.high %v99_v39, %v99_v39  ;;  %v114_v42 = vrot.slane %v99_v39, %v98_v35  ;;  %v106_v50 = vrot.slane %v92_v48, %v98_v35  ;;  %v554_v29 = vld [vmem:[%s816_s3] ss:$0 sm:$0xff] }
  0x11   :  { %584 = vmatpush3.bf16.msra.mxu1 %v634_v15  ;;  %563 = vmatprep.subr.bf16.mxu0 %v635_v16 }
  0x12   :  { %585 = vmatprep.subr.bf16.mxu1 %v636_v17  ;;  %v128_v43 = vrot.slane %v107_v41, %v98_v35  ;;  %v129_v45 = vcombine.high %v114_v42, %v114_v42  ;;  %v121_v52 = vrot.slane %v106_v50, %v98_v35 }
  0x14   :  { %564 = vmatpush3.bf16.msra.mxu0 %v637_v18  ;;  %387 = vmatprep.mubr.bf16.mxu0 %v128_v43  ;;  %v130_v46 = vcombine.high %v128_v43, %v128_v43 }
  0x15   :  { %586 = vmatpush3.bf16.msra.mxu1 %v638_v19  ;;  %565 = vmatprep.subr.bf16.mxu0 %v639_v20 }
  0x16   :  { %587 = vmatprep.subr.bf16.mxu1 %v640_v21  ;;  %427 = vmatprep.mubr.bf16.mxu1 %v130_v46 }
  0x18   :  { %566 = vmatpush3.bf16.msra.mxu0 %v641_v25  ;;  %v500_v25 = vsub.s32 0, %v764_v30 }
  0x19   :  { %588 = vmatpush3.bf16.msra.mxu1 %v642_v26  ;;  %567 = vmatprep.subr.bf16.mxu0 %v643_v27 }
  0x1a   :  { %589 = vmatprep.subr.bf16.mxu1 %v644_v28 }
  0x1c   :  { %568 = vmatpush3.bf16.msra.mxu0 %v645_v31 }
  0x1d   :  { %590 = vmatpush3.bf16.msra.mxu1 %v646_v32  ;;  %569 = vmatprep.subr.bf16.mxu0 %v647_v33 }
  0x1e   :  { %591 = vmatprep.subr.bf16.mxu1 %v648_v34 }
  0x20   :  { %570 = vmatpush3.bf16.msra.mxu0 %v649_v36 }
  0x21   :  { %592 = vmatpush3.bf16.msra.mxu1 %v650_v37  ;;  %604 = vmatprep.subr.bf16.mxu0 %v659_v40 }
  0x23   :  { %388 = vmatmul.mubr.bf16.vlgmr.msra.gmra.mxu0 %v114_v42 }
  0x24   :  { %605 = vmatpush3.bf16.msra.mxu0 %v652_v44  ;;  %428 = vmatmul.mubr.bf16.vlgmr.msra.gmra.mxu1 %v129_v45 }
  0x25   :  { %606 = vmatprep.subr.bf16.mxu0 %v659_v40  ;;  %612 = vmatprep.mubr.msk.bf16.mxu0 %vm660_vm0, %v659_v40 }
  0x28   :  { %607 = vmatpush3.bf16.msra.mxu0 %v653_v47 }
  0x29   :  { %608 = vmatprep.subr.bf16.mxu0 %v659_v40 }
  0x2c   :  { %609 = vmatpush3.bf16.msra.mxu0 %v654_v49 }
  0x2d   :  { %610 = vmatprep.subr.bf16.mxu0 %v659_v40 }
  0x30   :  { %611 = vmatpush3.bf16.msra.mxu0 %v655_v51 }
  0x33   :  { %613 = vmatmul.mubr.msk.bf16.vlgmr.msra.gmra.mxu0 %vm351_vm1, %v121_v52 }
  0xe3   :  { %v571_v53 = vpop.f32.mrf.mxu0 }
  0xe4   :  { %v593_v54 = vpop.f32.mrf.mxu1 }
  0xe5   :  { %v572_v55 = vpop.f32.mrf.mxu0 }
  0xe6   :  { %v594_v56 = vpop.f32.mrf.mxu1  ;;  %v573_v61 = vadd.f32 %v572_v55, %v571_v53 }
  0xe7   :  { %v574_v57 = vpop.f32.mrf.mxu0  ;;  %v595_v62 = vadd.f32 %v594_v56, %v593_v54 }
  0xe8   :  { %v596_v59 = vpop.f32.mrf.mxu1 }
  0xe9   :  { %v575_v58 = vpop.f32.mrf.mxu0  ;;  %v430_v63 = vadd.f32 %v595_v62, %v573_v61 }
  0xea   :  { %v597_v60 = vpop.f32.mrf.mxu1 }
  0xf3   :  { %v469_v0 = vpop.f32.mrf.mxu0 }
  0xf4   :  { %v470_v1 = vadd.f32 %v469_v0, %v430_v63 }
  0xf5   :  { %v614_v2 = vpop.f32.mrf.mxu0 }
  0xf6   :  { %v476_v3 = vsel %vm475_vm2, %v470_v1, 0.0 }
  0xf7   :  { %v477_v4 = vrot.slane %v476_v3, 4  ;;  %v472_v5 = vpop.f32.mrf.mxu0 }
  0xf9   :  { %v478_v6 = vadd.f32 %v477_v4, %v476_v3  ;;  %v615_v7 = vpop.f32.mrf.mxu0 }
  0xfb   :  { %v479_v8 = vrot.slane %v478_v6, 2 }
  0xfd   :  { %v480_v9 = vadd.f32 %v479_v8, %v478_v6 }
  0xff   :  { %v481_v10 = vrot.slane %v480_v9, 1 }
 0x101   :  { %v482_v11 = vadd.f32 %v481_v10, %v480_v9 }
 0x103   :  { %v483_v12 = vmul.f32 0.5, %v482_v11 }
 0x105   :  { %v484_v13 = vsub.f32 %v470_v1, %v483_v12 }
 0x107   :  { %v485_v14 = vmul.f32 %v484_v13, %v484_v13 }
 0x109   :  { %v486_v15 = vsel %vm475_vm2, %v485_v14, 0.0 }
 0x10a   :  { %v487_v16 = vrot.slane %v486_v15, 4 }
 0x10c   :  { %v488_v17 = vadd.f32 %v487_v16, %v486_v15 }
 0x10e   :  { %v489_v18 = vrot.slane %v488_v17, 2 }
 0x110   :  { %v490_v19 = vadd.f32 %v489_v18, %v488_v17 }
 0x112   :  { %v491_v20 = vrot.slane %v490_v19, 1 }
 0x114   :  { %v492_v21 = vadd.f32 %v491_v20, %v490_v19 }
 0x116   :  { %v493_v22 = vmul.f32 0.5, %v492_v21 }
 0x118   :  { %v494_v23 = vadd.f32 1e-05, %v493_v22 }
 0x11a   :  { %656 = vrsqrt.f32 %v494_v23 }
 0x127   :  { %v657_v26 = vpop.eup %656 }
 0x128   :  { %v497_v27 = vmul.f32 %v657_v26, %v496_v24 }
 0x12a   :  { %v501_v28 = vrot.slane %v497_v27, %v500_v25 }
 0x12c   :  { %v502_v31 = vmul.f32 %v501_v28, %v484_v13 }
 0x12e   :  { %v510_v32 = vadd.f32 %v554_v29, %v502_v31 }
 0x130   :  { %v511_v33 = vmax.f32 %v510_v32, 0.0 }
 0x132   :  { %512 = vst.msk [vmem:[%s817_s4] sm:$0x3] %vm475_vm2, %v511_v33 }

// kernel: facenet_forward.102
= control target key start
LH: loop header
LB: loop body
LE: loop exit
PB: predicated region body
PF: predicated region fallthrough
CT: control target
= control target key end

     0   :  { %v254_v1 = vmov 0   ;;  %vm70_vm0 = vcmask 523264   ;;  %vm115_vm1 = vcmask 1041408   ;;  %v158_v50 = vlaneseq  ;;  %s328_s1 = inlined_call_operand.vmem [shape: bf16[64,256], index: 1, kind: input, shape index: {}]   ;;  %s329_s0 = inlined_call_operand.vmem [shape: bf16[2,64], index: 0, kind: input, shape index: {}]   ;;  %s330_s2 = inlined_call_operand.vmem [shape: f32[1,256], index: 2, kind: input, shape index: {}]   ;;  %s331_s3 = inlined_call_operand.vmem [shape: f32[1,256], index: 3, kind: input, shape index: {}]   ;;  %s332_s4 = inlined_call_operand.vmem [shape: f32[2,256], index: 4, kind: input, shape index: {}]   ;;  %s333_s5 = inlined_call_operand.vmem [shape: f32[2,256], index: 5, kind: output, shape index: {}]  }
   0x1   :  { %v238_v0 = vld [vmem:[%s328_s1 + $0x34] ss:$8 sps:$4 sm:$0xff]   ;;  %106 = vmatprep.mubr.bf16.mxu0 %v254_v1  ;;  %v240_v2 = vld [vmem:[%s328_s1 + $0x30] ss:$8 sps:$4 sm:$0xff]   ;;  %v241_v3 = vld [vmem:[%s328_s1 + $0x24] ss:$8 sps:$4 sm:$0xff]  }
   0x2   :  { %82 = vmatprep.subr.bf16.mxu0 %v238_v0  ;;  %v243_v4 = vld [vmem:[%s328_s1 + $0x20] ss:$8 sps:$4 sm:$0xff]   ;;  %v244_v5 = vld [vmem:[%s328_s1 + $0x14] ss:$8 sps:$4 sm:$0xff]   ;;  %v246_v6 = vld [vmem:[%s328_s1 + $0x10] ss:$8 sps:$4 sm:$0xff]  }
   0x3   :  { %83 = vmatpush1.bf16.msra.mxu0 %v240_v2  ;;  %v247_v7 = vld [vmem:[%s328_s1 + $0x4] ss:$8 sps:$4 sm:$0xff]   ;;  %v249_v8 = vld [vmem:[%s328_s1] ss:$8 sps:$4 sm:$0xff]   ;;  %v159_v53 = vshrl.u32 %v158_v50, 7 }
   0x4   :  { %84 = vmatprep.subr.bf16.mxu0 %v241_v3  ;;  %v21_v9 = vld [vmem:[%s329_s0] sm:$0x1] }
   0x5   :  { %v160_v54 = vsub.s32 0, %v159_v53  ;;  %v156_v55 = vld [vmem:[%s330_s2] sm:$0x3]  ;;  %v164_v56 = vsub.s32 1, %v159_v53 }
   0x6   :  { %v180_v60 = vld [vmem:[%s331_s3] sm:$0x3] }
   0x7   :  { %85 = vmatpush1.bf16.msra.mxu0 %v243_v4  ;;  %v161_v57 = vrot.slane %v156_v55, %v160_v54  ;;  %v165_v58 = vrot.slane %v156_v55, %v164_v56  ;;  %v185_v0 = vrot.slane %v180_v60, %v160_v54  ;;  %v235_v2 = vld.sshfl [vmem:[%s332_s4] sm:$0x33 pattern:$0x76325410] }
   0x8   :  { %86 = vmatprep.subr.bf16.mxu0 %v244_v5  ;;  %v189_v5 = vrot.slane %v180_v60, %v164_v56 }
   0xb   :  { %87 = vmatpush1.bf16.msra.mxu0 %v246_v6 }
   0xc   :  { %88 = vmatprep.subr.bf16.mxu0 %v247_v7 }
   0xf   :  { %89 = vmatpush1.bf16.msra.mxu0 %v249_v8  ;;  %v203_v8 = vcombine.high %v235_v2, %v235_v2 }
  0x12   :  { %234 = vmatmul.mubr.msk.bf16.vlgmr.msra.gmra.mxu0 %vm70_vm0, %v21_v9 }
  0xd2   :  { %v108_v10 = vpop.f32.mrf.mxu0 }
  0xd3   :  { %v116_v11 = vsel %vm115_vm1, %v108_v10, 0.0 }
  0xd4   :  { %v117_v12 = vrot.slane %v116_v11, 4  ;;  %v110_v13 = vpop.f32.mrf.mxu0 }
  0xd5   :  { %v123_v14 = vsel %vm115_vm1, %v110_v13, 0.0 }
  0xd6   :  { %v118_v15 = vadd.f32 %v117_v12, %v116_v11  ;;  %v124_v16 = vrot.slane %v123_v14, 4  ;;  %v112_v17 = vpop.f32.mrf.mxu0 }
  0xd8   :  { %v119_v18 = vrot.slane %v118_v15, 2  ;;  %v125_v19 = vadd.f32 %v124_v16, %v123_v14  ;;  %v113_v20 = vpop.f32.mrf.mxu0 }
  0xda   :  { %v120_v21 = vadd.f32 %v119_v18, %v118_v15  ;;  %v126_v22 = vrot.slane %v125_v19, 2 }
  0xdc   :  { %v121_v23 = vrot.slane %v120_v21, 1  ;;  %v127_v24 = vadd.f32 %v126_v22, %v125_v19 }
  0xde   :  { %v122_v25 = vadd.f32 %v121_v23, %v120_v21  ;;  %v128_v26 = vrot.slane %v127_v24, 1 }
  0xe0   :  { %v130_v27 = vmul.f32 0.5, %v122_v25  ;;  %v129_v28 = vadd.f32 %v128_v26, %v127_v24 }
  0xe2   :  { %v132_v29 = vsub.f32 %v108_v10, %v130_v27  ;;  %v131_v30 = vmul.f32 0.5, %v129_v28 }
  0xe4   :  { %v134_v31 = vmul.f32 %v132_v29, %v132_v29  ;;  %v133_v32 = vsub.f32 %v110_v13, %v131_v30 }
  0xe6   :  { %v136_v33 = vsel %vm115_vm1, %v134_v31, 0.0  ;;  %v135_v34 = vmul.f32 %v133_v32, %v133_v32 }
  0xe7   :  { %v137_v35 = vrot.slane %v136_v33, 4 }
  0xe8   :  { %v143_v36 = vsel %vm115_vm1, %v135_v34, 0.0 }
  0xe9   :  { %v138_v37 = vadd.f32 %v137_v35, %v136_v33  ;;  %v144_v38 = vrot.slane %v143_v36, 4 }
  0xeb   :  { %v139_v39 = vrot.slane %v138_v37, 2  ;;  %v145_v40 = vadd.f32 %v144_v38, %v143_v36 }
  0xed   :  { %v140_v41 = vadd.f32 %v139_v39, %v138_v37  ;;  %v146_v42 = vrot.slane %v145_v40, 2 }
  0xef   :  { %v141_v43 = vrot.slane %v140_v41, 1  ;;  %v147_v44 = vadd.f32 %v146_v42, %v145_v40 }
  0xf1   :  { %v142_v45 = vadd.f32 %v141_v43, %v140_v41  ;;  %v148_v46 = vrot.slane %v147_v44, 1 }
  0xf3   :  { %v150_v47 = vmul.f32 0.5, %v142_v45  ;;  %v149_v48 = vadd.f32 %v148_v46, %v147_v44 }
  0xf5   :  { %v152_v49 = vadd.f32 1e-05, %v150_v47  ;;  %v151_v51 = vmul.f32 0.5, %v149_v48 }
  0xf7   :  { %250 = vrsqrt.f32 %v152_v49  ;;  %v153_v52 = vadd.f32 1e-05, %v151_v51 }
  0xf9   :  { %252 = vrsqrt.f32 %v153_v52 }
 0x104   :  { %v251_v59 = vpop.eup %250 }
 0x105   :  { %v168_v61 = vmul.f32 %v251_v59, %v161_v57 }
 0x106   :  { %v253_v62 = vpop.eup %252 }
 0x107   :  { %v173_v63 = vrot.slane %v168_v61, %v160_v54  ;;  %v169_v1 = vmul.f32 %v253_v62, %v165_v58 }
 0x109   :  { %v178_v3 = vmul.f32 %v173_v63, %v132_v29  ;;  %v177_v4 = vrot.slane %v169_v1, %v160_v54 }
 0x10b   :  { %v192_v6 = vadd.f32 %v185_v0, %v178_v3  ;;  %v179_v7 = vmul.f32 %v177_v4, %v133_v32 }
 0x10d   :  { %v206_v9 = vadd.f32 %v235_v2, %v192_v6  ;;  %v193_v10 = vadd.f32 %v189_v5, %v179_v7 }
 0x10f   :  { %v207_v11 = vadd.f32 %v203_v8, %v193_v10  ;;  %v208_v12 = vmax.f32 %v206_v9, 0.0 }
 0x111   :  { %v209_v13 = vmax.f32 %v207_v11, 0.0 }
 0x113   :  { %v212_v14 = vcombine.low %v208_v12, %v209_v13 }
 0x115   :  { %236 = vst.sshfl [vmem:[%s333_s5] sm:$0x33 pattern:$0x76325410] %v212_v14 }

// kernel: facenet_forward.103
= control target key start
LH: loop header
LB: loop body
LE: loop exit
PB: predicated region body
PF: predicated region fallthrough
CT: control target
= control target key end

     0   :  { %v313_v6 = vmov 1966171168   ;;  %v63_v8 = vlaneseq  ;;  %vm212_vm0 = vcmask 517120   ;;  %s402_s1 = inlined_call_operand.vmem [shape: bf16[256,64], index: 1, kind: input, shape index: {}]   ;;  %s403_s0 = inlined_call_operand.vmem [shape: bf16[2,256], index: 0, kind: input, shape index: {}]   ;;  %s404_s2 = inlined_call_operand.vmem [shape: f32[1,64], index: 2, kind: input, shape index: {}]   ;;  %s405_s3 = inlined_call_operand.vmem [shape: f32[1,64], index: 3, kind: input, shape index: {}]   ;;  %s406_s4 = inlined_call_operand.vmem [shape: f32[2,64], index: 4, kind: output, shape index: {}]  }
   0x1   :  { %v295_v0 = vld [vmem:[%s402_s1 + $0x78] sm:$0xff]   ;;  %v297_v2 = vld [vmem:[%s402_s1 + $0x70] sm:$0xff]   ;;  %v299_v4 = vld [vmem:[%s402_s1 + $0x68] sm:$0xff]   ;;  %v61_v7 = vunpack.c.l.s4 %v313_v6 }
   0x2   :  { %v296_v1 = vld [vmem:[%s402_s1 + $0x38] sm:$0xff]   ;;  %272 = vmatprep.subr.bf16.mxu0 %v295_v0  ;;  %v298_v3 = vld [vmem:[%s402_s1 + $0x30] sm:$0xff]   ;;  %v300_v5 = vld [vmem:[%s402_s1 + $0x28] sm:$0xff]   ;;  %v64_v12 = vshrl.u32 %v63_v8, 7 }
   0x3   :  { %273 = vmatpush3.bf16.msra.mxu0 %v296_v1  ;;  %v301_v9 = vld [vmem:[%s402_s1 + $0x60] sm:$0xff]   ;;  %v62_v11 = vunpack.c.0.s8 %v61_v7  ;;  %v303_v13 = vld [vmem:[%s402_s1 + $0x58] sm:$0xff]   ;;  %v305_v16 = vld [vmem:[%s402_s1 + $0x50] sm:$0xff]  }
   0x4   :  { %274 = vmatprep.subr.bf16.mxu0 %v297_v2  ;;  %v302_v10 = vld [vmem:[%s402_s1 + $0x20] sm:$0xff]   ;;  %v304_v14 = vld [vmem:[%s402_s1 + $0x18] sm:$0xff]   ;;  %v306_v19 = vld [vmem:[%s402_s1 + $0x10] sm:$0xff]   ;;  %v237_v51 = vsub.s32 0, %v64_v12 }
   0x5   :  { %v65_v15 = vsub.s32 %v62_v11, %v64_v12  ;;  %v254_v17 = vld.sshfl [vmem:[%s403_s0] sm:$0x11 pattern:$0x75316420]  ;;  %v307_v21 = vld [vmem:[%s402_s1 + $0x48] sm:$0xff]  }
   0x6   :  { %v59_v18 = vcombine.high %v254_v17, %v254_v17  ;;  %v308_v22 = vld [vmem:[%s402_s1 + $0x8] sm:$0xff]   ;;  %v309_v23 = vld [vmem:[%s402_s1 + $0x40] sm:$0xff]  }
   0x7   :  { %275 = vmatpush3.bf16.msra.mxu0 %v298_v3  ;;  %v310_v24 = vld [vmem:[%s402_s1] sm:$0xff]   ;;  %v66_v25 = vrot.slane %v254_v17, %v65_v15 }
   0x8   :  { %276 = vmatprep.subr.bf16.mxu0 %v299_v4  ;;  %v73_v20 = vrot.slane %v59_v18, %v65_v15  ;;  %v233_v50 = vld [vmem:[%s404_s2] sm:$0x1] }
   0x9   :  { %v271_v55 = vld [vmem:[%s405_s3] ss:$0 sm:$0xff] }
   0xa   :  { %204 = vmatprep.mubr.bf16.mxu0 %v73_v20 }
   0xb   :  { %277 = vmatpush3.bf16.msra.mxu0 %v300_v5 }
   0xc   :  { %278 = vmatprep.subr.bf16.mxu0 %v301_v9 }
   0xf   :  { %279 = vmatpush3.bf16.msra.mxu0 %v302_v10 }
  0x10   :  { %280 = vmatprep.subr.bf16.mxu0 %v303_v13 }
  0x13   :  { %281 = vmatpush3.bf16.msra.mxu0 %v304_v14 }
  0x14   :  { %282 = vmatprep.subr.bf16.mxu0 %v305_v16 }
  0x17   :  { %283 = vmatpush3.bf16.msra.mxu0 %v306_v19 }
  0x18   :  { %284 = vmatprep.subr.bf16.mxu0 %v307_v21 }
  0x1b   :  { %285 = vmatpush3.bf16.msra.mxu0 %v308_v22 }
  0x1c   :  { %286 = vmatprep.subr.bf16.mxu0 %v309_v23 }
  0x1f   :  { %287 = vmatpush3.bf16.msra.mxu0 %v310_v24 }
  0x22   :  { %205 = vmatmul.mubr.bf16.vlgmr.msra.gmra.mxu0 %v66_v25 }
  0xe2   :  { %v288_v26 = vpop.f32.mrf.mxu0 }
  0xe4   :  { %v289_v27 = vpop.f32.mrf.mxu0 }
  0xe5   :  { %v290_v28 = vadd.f32 %v289_v27, %v288_v26 }
  0xe6   :  { %v291_v29 = vpop.f32.mrf.mxu0 }
  0xe7   :  { %v213_v30 = vsel %vm212_vm0, %v290_v28, 0.0 }
  0xe8   :  { %v214_v31 = vrot.slane %v213_v30, 4  ;;  %v292_v32 = vpop.f32.mrf.mxu0 }
  0xea   :  { %v215_v33 = vadd.f32 %v214_v31, %v213_v30 }
  0xec   :  { %v216_v34 = vrot.slane %v215_v33, 2 }
  0xee   :  { %v217_v35 = vadd.f32 %v216_v34, %v215_v33 }
  0xf0   :  { %v218_v36 = vrot.slane %v217_v35, 1 }
  0xf2   :  { %v219_v37 = vadd.f32 %v218_v36, %v217_v35 }
  0xf4   :  { %v220_v38 = vmul.f32 0.5, %v219_v37 }
  0xf6   :  { %v221_v39 = vsub.f32 %v290_v28, %v220_v38 }
  0xf8   :  { %v222_v40 = vmul.f32 %v221_v39, %v221_v39 }
  0xfa   :  { %v223_v41 = vsel %vm212_vm0, %v222_v40, 0.0 }
  0xfb   :  { %v224_v42 = vrot.slane %v223_v41, 4 }
  0xfd   :  { %v225_v43 = vadd.f32 %v224_v42, %v223_v41 }
  0xff   :  { %v226_v44 = vrot.slane %v225_v43, 2 }
 0x101   :  { %v227_v45 = vadd.f32 %v226_v44, %v225_v43 }
 0x103   :  { %v228_v46 = vrot.slane %v227_v45, 1 }
 0x105   :  { %v229_v47 = vadd.f32 %v228_v46, %v227_v45 }
 0x107   :  { %v230_v48 = vmul.f32 0.5, %v229_v47 }
 0x109   :  { %v231_v49 = vadd.f32 1e-05, %v230_v48 }
 0x10b   :  { %311 = vrsqrt.f32 %v231_v49 }
 0x118   :  { %v312_v52 = vpop.eup %311 }
 0x119   :  { %v234_v53 = vmul.f32 %v312_v52, %v233_v50 }
 0x11b   :  { %v238_v54 = vrot.slane %v234_v53, %v237_v51 }
 0x11d   :  { %v239_v56 = vmul.f32 %v238_v54, %v221_v39 }
 0x11f   :  { %v247_v57 = vadd.f32 %v271_v55, %v239_v56 }
 0x121   :  { %v248_v58 = vmax.f32 %v247_v57, 0.0 }
 0x123   :  { %249 = vst.msk [vmem:[%s406_s4] sm:$0x3] %vm212_vm0, %v248_v58 }

// kernel: facenet_forward.109
= control target key start
LH: loop header
LB: loop body
LE: loop exit
PB: predicated region body
PF: predicated region fallthrough
CT: control target
= control target key end

     0   :  { %v68_v9 = vlaneseq  ;;  %v332_v13 = vmov 1966171168   ;;  %s411_s0 = inlined_call_operand.vmem [shape: bf16[2,256], index: 0, kind: input, shape index: {}]   ;;  %s412_s1 = inlined_call_operand.vmem [shape: bf16[256,128], index: 1, kind: input, shape index: {}]   ;;  %s413_s2 = inlined_call_operand.vmem [shape: f32[1,128], index: 2, kind: input, shape index: {}]   ;;  %s414_s3 = inlined_call_operand.hbm [shape: f32[2,128], index: 3, kind: output, shape index: {}]  }
   0x1   :  { %v290_v0 = vld [vmem:[%s412_s1 + $0x78] sm:$0xff]   ;;  %v292_v2 = vld [vmem:[%s412_s1 + $0x70] sm:$0xff]   ;;  %v294_v4 = vld [vmem:[%s412_s1 + $0x68] sm:$0xff]   ;;  %v66_v14 = vunpack.c.l.s4 %v332_v13 }
   0x2   :  { %v291_v1 = vld [vmem:[%s412_s1 + $0x38] sm:$0xff]   ;;  %266 = vmatprep.subr.bf16.mxu0 %v290_v0  ;;  %v293_v3 = vld [vmem:[%s412_s1 + $0x30] sm:$0xff]   ;;  %v295_v5 = vld [vmem:[%s412_s1 + $0x28] sm:$0xff]   ;;  %v69_v15 = vshrl.u32 %v68_v9, 7 }
   0x3   :  { %267 = vmatpush3.bf16.msra.mxu0 %v291_v1  ;;  %v296_v6 = vld [vmem:[%s412_s1 + $0x60] sm:$0xff]   ;;  %v298_v8 = vld [vmem:[%s412_s1 + $0x58] sm:$0xff]   ;;  %v300_v11 = vld [vmem:[%s412_s1 + $0x50] sm:$0xff]  }
   0x4   :  { %268 = vmatprep.subr.bf16.mxu0 %v292_v2  ;;  %v297_v7 = vld [vmem:[%s412_s1 + $0x20] sm:$0xff]   ;;  %v299_v10 = vld [vmem:[%s412_s1 + $0x18] sm:$0xff]  }
   0x5   :  { %v249_v12 = vld.sshfl [vmem:[%s411_s0] sm:$0x11 pattern:$0x75316420] }
   0x7   :  { %269 = vmatpush3.bf16.msra.mxu0 %v293_v3 }
   0x8   :  { %270 = vmatprep.subr.bf16.mxu0 %v294_v4 }
   0xb   :  { %271 = vmatpush3.bf16.msra.mxu0 %v295_v5 }
   0xc   :  { %272 = vmatprep.subr.bf16.mxu0 %v296_v6 }
   0xf   :  { %273 = vmatpush3.bf16.msra.mxu0 %v297_v7 }
  0x10   :  { %274 = vmatprep.subr.bf16.mxu0 %v298_v8 }
  0x11   :  { %8 = vsyncpa [#allocation3], 0  ;;  %v301_v16 = vld [vmem:[%s412_s1 + $0x10] sm:$0xff]   ;;  %v64_v17 = vcombine.high %v249_v12, %v249_v12  ;;  %v67_v18 = vunpack.c.0.s8 %v66_v14  ;;  %v302_v19 = vld [vmem:[%s412_s1 + $0x48] sm:$0xff]   ;;  %vm218_vm0 = vcmask 1041408  }
  0x12   :  { %v303_v21 = vld [vmem:[%s412_s1 + $0x8] sm:$0xff]   ;;  %v304_v23 = vld [vmem:[%s412_s1 + $0x40] sm:$0xff]  }
  0x13   :  { %275 = vmatpush3.bf16.msra.mxu0 %v299_v10  ;;  %v70_v20 = vsub.s32 %v67_v18, %v69_v15  ;;  %v305_v24 = vld [vmem:[%s412_s1] sm:$0xff]   ;;  %s333_s1 = smov [#allocation2]  }
  0x14   :  { %276 = vmatprep.subr.bf16.mxu0 %v300_v11  ;;  %v248_v27 = vld [vmem:[%s413_s2] ss:$0 sm:$0xff]  ;;  %s240_s2 = sshll.u32 %s333_s1, 4  ;;  %s241_s2 = int_to_ptr.vmem [resolvable:$true] %s240_s2 }
  0x15   :  { %v78_v22 = vrot.slane %v64_v17, %v70_v20  ;;  %v71_v25 = vrot.slane %v249_v12, %v70_v20  ;;  %s310_s20 = scalar_lea.vmem %s241_s2, 32  ;;  %p315_p1 = scmp.lt.s32.totalorder %s241_s2, %s241_s2 }
  0x16   :  { %p311_p0 = scmp.ne.s32.totalorder %s241_s2, %s310_s20  ;;  %p316_p2 = scmp.lt.s32.totalorder %s310_s20, %s310_s20 }
  0x17   :  { %277 = vmatpush3.bf16.msra.mxu0 %v301_v16  ;;  %209 = vmatprep.mubr.bf16.mxu0 %v78_v22 }
  0x18   :  { %278 = vmatprep.subr.bf16.mxu0 %v302_v19  ;;  %p317_p3 = por %p316_p2, %p315_p1 }
  0x1a   :  { %p318_p4 = pnand %p317_p3, %p311_p0 }
  0x1b   :  { %279 = vmatpush3.bf16.msra.mxu0 %v303_v21 }
  0x1c   :  { %280 = vmatprep.subr.bf16.mxu0 %v304_v23 }
  0x1f   :  { %281 = vmatpush3.bf16.msra.mxu0 %v305_v24 }
  0x22   :  { %210 = vmatmul.mubr.bf16.vlgmr.msra.gmra.mxu0 %v71_v25 }
  0xe2   :  { %v282_v26 = vpop.f32.mrf.mxu0 }
  0xe4   :  { %v283_v28 = vpop.f32.mrf.mxu0 }
  0xe5   :  { %v284_v29 = vadd.f32 %v283_v28, %v282_v26 }
  0xe6   :  { %v285_v30 = vpop.f32.mrf.mxu0 }
  0xe7   :  { %v212_v31 = vadd.f32 %v284_v29, %v248_v27 }
  0xe8   :  { %v286_v32 = vpop.f32.mrf.mxu0 }
  0xe9   :  { %v217_v33 = vmul.f32 %v212_v31, %v212_v31 }
  0xeb   :  { %v219_v34 = vsel %vm218_vm0, %v217_v33, 0.0 }
  0xec   :  { %220 = vadd.xlane.f32.xlu0 %v219_v34 }
 0x175   :  { %v221_v35 = vpop.xlane.xlu0 %220 }
 0x176   :  { %v222_v36 = vadd.f32 1e-10, %v221_v35 }
 0x178   :  { %306 = vrsqrt.f32 %v222_v36  ;;  %vm225_vm1 = vcmp.eq.f32.partialorder %v222_v36, inf  ;;  %v228_v39 = vand.u32 2147483648, %v222_v36  ;;  %vm227_vm2 = vcmp.eq.f32.partialorder %v222_v36, 0.0 }
 0x185   :  { %v307_v37 = vpop.eup %306 }
 0x186   :  { %v224_v38 = vmul.f32 %v307_v37, %v222_v36 }
 0x188   :  { %v226_v40 = vsel %vm225_vm1, %v222_v36, %v224_v38 }
 0x189   :  { %v229_v41 = vsel %vm227_vm2, %v228_v39, %v226_v40 }
 0x18a   :  { %308 = vrcp.f32 %v229_v41 }
 0x197   :  { %v309_v42 = vpop.eup %308 }
 0x198   :  { %v231_v43 = vmul.f32 %v309_v42, %v212_v31 }
 0x19a   :  { %v232_v44 = vmul.f32 10.0, %v231_v43 }
 0x19c   :  { %233 = vst [vmem:[#allocation2] sm:$0x3] %v232_v44 }
 0x19d   :  { %321 = shalt.err (!%p318_p4)
}
 0x19e   :  { %243 = dma.vmem_to_hbm [thread:$0]  %s241_s2, 32, %s414_s3, [#allocation3]  }
 0x19f   :  { %330 = dma.done.wait [#allocation3], 32  }
 0x1a0   :  { %331 = vsyncadd [#allocation3], 4294967264 }
 0x1a1   :  { %247 = vsyncpa [#allocation3], 1 }

</bundles_post_ra>
